<compile_context>
chip_gen: v7x
topology: tpu7x:2x2x1
jax: 0.10.0
libtpu: 0.0.40
codegen_flags: <defaults>
</compile_context>

<pallas_src>
import jax
import jax.numpy as jnp
import numpy as np
from jax.experimental import pallas as pl
from jax.experimental.pallas import tpu as pltpu

EPS = 1e-5


# ------------------------------ fused kernel -------------------------------- #

def convnet6_kernel(x_ref,
                    w1_ref, s1_ref, b1_ref,
                    w2_ref, s2_ref, b2_ref,
                    w3_ref, s3_ref, b3_ref,
                    w4_ref, s4_ref, b4_ref,
                    w6_ref, s6_ref, b6_ref,
                    out_ref,
                    pad1, pad2, pad3, y1, y2):
    """Whole ConvNet6 forward on VMEM-resident activations.

    x_ref : (N, H, W, 3)        NHWC input
    w*_ref: (9, Cin, Cout)      conv weights, tap-major (dy*3+dx)
    s*/b* : (1, Cout)           folded BatchNorm scale / bias
    out   : (N*H/4*W/4, Cout6)  rows in (n, y, x) order
    pad*  : zero-halo VMEM scratch for the three distinct input sizes
    y1/y2 : pre-pool conv outputs (read back with strided pl.ds for the pool)
    """
    N, H1, W1, _ = x_ref.shape
    H2, W2 = H1 // 2, W1 // 2
    H3, W3 = H2 // 2, W2 // 2
    C1 = w1_ref.shape[2]
    C2 = w2_ref.shape[2]
    C3 = w3_ref.shape[2]
    C4 = w4_ref.shape[2]

    def conv_bn_relu(pad_ref, x_val, w_ref, s_ref, b_ref):
        """ReLU(scale*conv3x3(x)+bias) -> (N*H*W, Cout) rows (x fastest)."""
        n, H, W, Cin = x_val.shape
        Cout = w_ref.shape[2]
        # Interior store; the 1-pixel halo of pad_ref was zeroed once at start
        # and is never written, so it stays zero across reuse.
        pad_ref[:, 1:H + 1, 1:W + 1, :] = x_val
        M = n * H * W
        acc = jnp.zeros((M, Cout), jnp.float32)
        for tap in range(9):               # statically unrolled, 9 MXU matmuls
            dy, dx = tap // 3, tap % 3
            xs = pad_ref[:, dy:dy + H, dx:dx + W, :].reshape(M, Cin)
            acc = acc + jax.lax.dot_general(
                xs, w_ref[tap],
                dimension_numbers=(((1,), (0,)), ((), ())),
                preferred_element_type=jnp.float32)
        return jnp.maximum(acc * s_ref[...] + b_ref[...], 0.0)

    def maxpool2(y_ref):
        """2x2 max pool, stride 2, from a VMEM ref: (N,H,W,C) -> (N,H/2,W/2,C)."""
        n, H, W, C = y_ref.shape
        Hh, Wh = H // 2, W // 2
        a = y_ref[:, pl.ds(0, Hh, 2), pl.ds(0, Wh, 2), :]
        b = y_ref[:, pl.ds(0, Hh, 2), pl.ds(1, Wh, 2), :]
        c = y_ref[:, pl.ds(1, Hh, 2), pl.ds(0, Wh, 2), :]
        d = y_ref[:, pl.ds(1, Hh, 2), pl.ds(1, Wh, 2), :]
        return jnp.maximum(jnp.maximum(a, b), jnp.maximum(c, d))

    # Zero the conv halos once (pad3 is reused by layers 3, 4 and 6).
    pad1[...] = jnp.zeros_like(pad1)
    pad2[...] = jnp.zeros_like(pad2)
    pad3[...] = jnp.zeros_like(pad3)

    # layer1: conv+BN+ReLU -> 2x2 pool   (H1 x W1 -> H2 x W2)
    y1[...] = conv_bn_relu(pad1, x_ref[...], w1_ref, s1_ref, b1_ref
                           ).reshape(N, H1, W1, C1)
    h = maxpool2(y1)

    # layer2: conv+BN+ReLU -> 2x2 pool   (H2 x W2 -> H3 x W3)
    y2[...] = conv_bn_relu(pad2, h, w2_ref, s2_ref, b2_ref
                           ).reshape(N, H2, W2, C2)
    h = maxpool2(y2)

    # layers 3 and 4 (no pooling)
    h = conv_bn_relu(pad3, h, w3_ref, s3_ref, b3_ref).reshape(N, H3, W3, C3)
    h4 = conv_bn_relu(pad3, h, w4_ref, s4_ref, b4_ref).reshape(N, H3, W3, C4)

    # layer5 output is unused by ConvNet6.forward (x6 = layer6(x4)) -> skipped.
    # layer6 on x4
    out_ref[...] = conv_bn_relu(pad3, h4, w6_ref, s6_ref, b6_ref)


# ------------------------------ pallas_call glue ---------------------------- #

def convnet6_forward(x_nchw, folded):
    """folded: list of 5 (w9, scale, bias) tuples for layers [1, 2, 3, 4, 6]."""
    N, Cin, H, W = x_nchw.shape
    x = jnp.transpose(x_nchw, (0, 2, 3, 1)).astype(jnp.float32)   # NCHW -> NHWC
    H2, W2, H3, W3 = H // 2, W // 2, H // 4, W // 4
    C1 = folded[0][0].shape[-1]
    C2 = folded[1][0].shape[-1]
    Cout = folded[4][0].shape[-1]

    flat_in = [x]
    for (w9, s, b) in folded:
        flat_in += [w9, s, b]

    vmem_spec = pl.BlockSpec(memory_space=pltpu.MemorySpace.VMEM)
    out2d = pl.pallas_call(
        convnet6_kernel,
        out_shape=jax.ShapeDtypeStruct((N * H3 * W3, Cout), jnp.float32),
        in_specs=[vmem_spec] * len(flat_in),
        out_specs=vmem_spec,
        scratch_shapes=[
            pltpu.VMEM((N, H + 2, W + 2, Cin), jnp.float32),    # pad1
            pltpu.VMEM((N, H2 + 2, W2 + 2, C1), jnp.float32),   # pad2
            pltpu.VMEM((N, H3 + 2, W3 + 2, C2), jnp.float32),   # pad3 (L3/4/6)
            pltpu.VMEM((N, H, W, C1), jnp.float32),             # y1 (pre-pool)
            pltpu.VMEM((N, H2, W2, C2), jnp.float32),           # y2 (pre-pool)
        ],
    )(*flat_in)

    out = out2d.reshape(N, H3, W3, Cout)
    return jnp.transpose(out, (0, 3, 1, 2))                       # NHWC -> NCHW


# ------------------------------ parameters ---------------------------------- #

def init_layer_params(key, cin, cout):
    """Deterministic init mimicking PyTorch shapes: Conv2d(cin,cout,3)+BN(cout)."""
    kw, kb, kg, kbeta, km, kv = jax.random.split(key, 6)
    bound = 1.0 / np.sqrt(cin * 9)
    return dict(
        w=jax.random.uniform(kw, (3, 3, cin, cout), jnp.float32, -bound, bound),
        b=jax.random.uniform(kb, (cout,), jnp.float32, -bound, bound),
        gamma=1.0 + 0.1 * jax.random.normal(kg, (cout,), jnp.float32),
        beta=0.1 * jax.random.normal(kbeta, (cout,), jnp.float32),
        mean=0.1 * jax.random.normal(km, (cout,), jnp.float32),
        var=0.5 + jax.random.uniform(kv, (cout,), jnp.float32),
    )


def fold_bn(p):
    """Fold eval-mode BatchNorm into per-channel scale/bias; tap-major weights."""
    scale = p["gamma"] / jnp.sqrt(p["var"] + EPS)                  # (Cout,)
    bias = (p["b"] - p["mean"]) * scale + p["beta"]                # (Cout,)
    w9 = p["w"].reshape(9, p["w"].shape[2], p["w"].shape[3])       # (9, Cin, Cout)
    return (w9.astype(jnp.float32),
            scale[None, :].astype(jnp.float32),
            bias[None, :].astype(jnp.float32))


# ------------------------------ pure-JAX reference -------------------------- #

def ref_forward(x_nchw, params):
    x = jnp.transpose(x_nchw, (0, 2, 3, 1))

    def block(h, p, pool):
        y = jax.lax.conv_general_dilated(
            h, p["w"], (1, 1), "SAME",
            dimension_numbers=("NHWC", "HWIO", "NHWC")) + p["b"]
        scale = p["gamma"] / jnp.sqrt(p["var"] + EPS)
        y = (y - p["mean"]) * scale + p["beta"]
        y = jnp.maximum(y, 0.0)
        if pool:
            y = jax.lax.reduce_window(y, -jnp.inf, jax.lax.max,
                                      (1, 2, 2, 1), (1, 2, 2, 1), "VALID")
        return y

    x1 = block(x, params[0], True)
    x2 = block(x1, params[1], True)
    x3 = block(x2, params[2], False)
    x4 = block(x3, params[3], False)
    x6 = block(x4, params[5], False)      # x5 is dead in ConvNet6.forward
    return jnp.transpose(x6, (0, 3, 1, 2))


# ----------------------------------- main ----------------------------------- #

if __name__ == "__main__":
    key = jax.random.PRNGKey(0)
    kx, k1, k2, k3, k4, k5, k6 = jax.random.split(key, 7)

    x_dim, hid_dim, z_dim = 3, 32, 32
    dims = [(x_dim, hid_dim), (hid_dim, hid_dim), (hid_dim, hid_dim),
            (hid_dim, hid_dim), (hid_dim, hid_dim), (hid_dim, z_dim)]
    params = [init_layer_params(k, ci, co)
              for k, (ci, co) in zip([k1, k2, k3, k4, k5, k6], dims)]

    # Fold BN + reorder weights once, outside the traced forward.
    folded = [fold_bn(params[i]) for i in (0, 1, 2, 3, 5)]

    # PyTorch-convention NCHW input.
    x = jax.random.normal(kx, (2, x_dim, 16, 16), jnp.float32)

    fwd = jax.jit(convnet6_forward)
    out = jax.block_until_ready(fwd(x, folded))
    ref = jax.block_until_ready(ref_forward(x, params))

    assert out.shape == (2, z_dim, 4, 4), out.shape
    np.testing.assert_allclose(np.asarray(out), np.asarray(ref),
                               rtol=2e-3, atol=2e-3)
    print("KERNEL_OK")
</pallas_src>

<mosaic_0001>
module attributes {stable_mosaic.version = 11 : i64} {
  func.func @convnet6_kernel(%arg0: memref<2x16x16x3xf32, #tpu.memory_space<vmem>>, %arg1: memref<9x3x32xf32, #tpu.memory_space<vmem>>, %arg2: memref<1x32xf32, #tpu.memory_space<vmem>>, %arg3: memref<1x32xf32, #tpu.memory_space<vmem>>, %arg4: memref<9x32x32xf32, #tpu.memory_space<vmem>>, %arg5: memref<1x32xf32, #tpu.memory_space<vmem>>, %arg6: memref<1x32xf32, #tpu.memory_space<vmem>>, %arg7: memref<9x32x32xf32, #tpu.memory_space<vmem>>, %arg8: memref<1x32xf32, #tpu.memory_space<vmem>>, %arg9: memref<1x32xf32, #tpu.memory_space<vmem>>, %arg10: memref<9x32x32xf32, #tpu.memory_space<vmem>>, %arg11: memref<1x32xf32, #tpu.memory_space<vmem>>, %arg12: memref<1x32xf32, #tpu.memory_space<vmem>>, %arg13: memref<9x32x32xf32, #tpu.memory_space<vmem>>, %arg14: memref<1x32xf32, #tpu.memory_space<vmem>>, %arg15: memref<1x32xf32, #tpu.memory_space<vmem>>, %arg16: memref<32x32xf32, #tpu.memory_space<vmem>>, %arg17: memref<2x18x18x3xf32, #tpu.memory_space<vmem>>, %arg18: memref<2x10x10x32xf32, #tpu.memory_space<vmem>>, %arg19: memref<2x6x6x32xf32, #tpu.memory_space<vmem>>, %arg20: memref<2x16x16x32xf32, #tpu.memory_space<vmem>>, %arg21: memref<2x8x8x32xf32, #tpu.memory_space<vmem>>) attributes {dimension_semantics = [], scalar_prefetch = 0 : i64, scratch_operands = 5 : i64, tpu.core_type = #tpu.core_type<tc>} {
    %cst = arith.constant 0.000000e+00 : f32
    %0 = vector.broadcast %cst : f32 to vector<2x18x18x3xf32>
    %c0 = arith.constant 0 : index
    %c0_0 = arith.constant 0 : index
    %c0_1 = arith.constant 0 : index
    %c0_2 = arith.constant 0 : index
    %1 = vector.load %arg17[%c0, %c0_0, %c0_1, %c0_2] : memref<2x18x18x3xf32, #tpu.memory_space<vmem>>, vector<2x18x18x3xf32>
    tpu.vector_store %arg17[%c0, %c0_0, %c0_1, %c0_2], %0 {strides = array<i32>} : memref<2x18x18x3xf32, #tpu.memory_space<vmem>>, vector<2x18x18x3xf32>,
    %cst_3 = arith.constant 0.000000e+00 : f32
    %2 = vector.broadcast %cst_3 : f32 to vector<2x10x10x32xf32>
    %c0_4 = arith.constant 0 : index
    %c0_5 = arith.constant 0 : index
    %c0_6 = arith.constant 0 : index
    %c0_7 = arith.constant 0 : index
    %3 = vector.load %arg18[%c0_4, %c0_5, %c0_6, %c0_7] : memref<2x10x10x32xf32, #tpu.memory_space<vmem>>, vector<2x10x10x32xf32>
    tpu.vector_store %arg18[%c0_4, %c0_5, %c0_6, %c0_7], %2 {strides = array<i32>} : memref<2x10x10x32xf32, #tpu.memory_space<vmem>>, vector<2x10x10x32xf32>,
    %cst_8 = arith.constant 0.000000e+00 : f32
    %4 = vector.broadcast %cst_8 : f32 to vector<2x6x6x32xf32>
    %c0_9 = arith.constant 0 : index
    %c0_10 = arith.constant 0 : index
    %c0_11 = arith.constant 0 : index
    %c0_12 = arith.constant 0 : index
    %5 = vector.load %arg19[%c0_9, %c0_10, %c0_11, %c0_12] : memref<2x6x6x32xf32, #tpu.memory_space<vmem>>, vector<2x6x6x32xf32>
    tpu.vector_store %arg19[%c0_9, %c0_10, %c0_11, %c0_12], %4 {strides = array<i32>} : memref<2x6x6x32xf32, #tpu.memory_space<vmem>>, vector<2x6x6x32xf32>,
    %c0_13 = arith.constant 0 : index
    %c0_14 = arith.constant 0 : index
    %c0_15 = arith.constant 0 : index
    %c0_16 = arith.constant 0 : index
    %6 = vector.load %arg0[%c0_13, %c0_14, %c0_15, %c0_16] : memref<2x16x16x3xf32, #tpu.memory_space<vmem>>, vector<2x16x16x3xf32>
    %c0_17 = arith.constant 0 : index
    %c1 = arith.constant 1 : index
    %c1_18 = arith.constant 1 : index
    %c0_19 = arith.constant 0 : index
    %7 = vector.load %arg17[%c0_17, %c1, %c1_18, %c0_19] : memref<2x18x18x3xf32, #tpu.memory_space<vmem>>, vector<2x16x16x3xf32>
    tpu.vector_store %arg17[%c0_17, %c1, %c1_18, %c0_19], %6 {strides = array<i32>} : memref<2x18x18x3xf32, #tpu.memory_space<vmem>>, vector<2x16x16x3xf32>,
    %cst_20 = arith.constant 0.000000e+00 : f32
    %8 = vector.broadcast %cst_20 : f32 to vector<512x32xf32>
    %c0_21 = arith.constant 0 : index
    %c0_22 = arith.constant 0 : index
    %c0_23 = arith.constant 0 : index
    %c0_24 = arith.constant 0 : index
    %9 = vector.load %arg17[%c0_21, %c0_22, %c0_23, %c0_24] : memref<2x18x18x3xf32, #tpu.memory_space<vmem>>, vector<2x16x16x3xf32>
    %10 = vector.shape_cast %9 : vector<2x16x16x3xf32> to vector<512x3xf32>
    %c0_25 = arith.constant 0 : index
    %c0_26 = arith.constant 0 : index
    %c0_27 = arith.constant 0 : index
    %11 = vector.load %arg1[%c0_25, %c0_26, %c0_27] : memref<9x3x32xf32, #tpu.memory_space<vmem>>, vector<1x3x32xf32>
    %12 = vector.shape_cast %11 : vector<1x3x32xf32> to vector<3x32xf32>
    %cst_28 = arith.constant dense<0.000000e+00> : vector<512x32xf32>
    %13 = tpu.matmul %10, %12, %cst_28 {dimension_numbers = #tpu.dot_dimension_numbers<[1], [0], [0], [1], [0, 0, 1, 1], [], []>} : vector<512x3xf32>, vector<3x32xf32>, vector<512x32xf32> -> vector<512x32xf32>
    %14 = arith.addf %8, %13 : vector<512x32xf32>
    %c0_29 = arith.constant 0 : index
    %c0_30 = arith.constant 0 : index
    %c1_31 = arith.constant 1 : index
    %c0_32 = arith.constant 0 : index
    %15 = vector.load %arg17[%c0_29, %c0_30, %c1_31, %c0_32] : memref<2x18x18x3xf32, #tpu.memory_space<vmem>>, vector<2x16x16x3xf32>
    %16 = vector.shape_cast %15 : vector<2x16x16x3xf32> to vector<512x3xf32>
    %c1_33 = arith.constant 1 : index
    %c0_34 = arith.constant 0 : index
    %c0_35 = arith.constant 0 : index
    %17 = vector.load %arg1[%c1_33, %c0_34, %c0_35] : memref<9x3x32xf32, #tpu.memory_space<vmem>>, vector<1x3x32xf32>
    %18 = vector.shape_cast %17 : vector<1x3x32xf32> to vector<3x32xf32>
    %cst_36 = arith.constant dense<0.000000e+00> : vector<512x32xf32>
    %19 = tpu.matmul %16, %18, %cst_36 {dimension_numbers = #tpu.dot_dimension_numbers<[1], [0], [0], [1], [0, 0, 1, 1], [], []>} : vector<512x3xf32>, vector<3x32xf32>, vector<512x32xf32> -> vector<512x32xf32>
    %20 = arith.addf %14, %19 : vector<512x32xf32>
    %c0_37 = arith.constant 0 : index
    %c0_38 = arith.constant 0 : index
    %c2 = arith.constant 2 : index
    %c0_39 = arith.constant 0 : index
    %21 = vector.load %arg17[%c0_37, %c0_38, %c2, %c0_39] : memref<2x18x18x3xf32, #tpu.memory_space<vmem>>, vector<2x16x16x3xf32>
    %22 = vector.shape_cast %21 : vector<2x16x16x3xf32> to vector<512x3xf32>
    %c2_40 = arith.constant 2 : index
    %c0_41 = arith.constant 0 : index
    %c0_42 = arith.constant 0 : index
    %23 = vector.load %arg1[%c2_40, %c0_41, %c0_42] : memref<9x3x32xf32, #tpu.memory_space<vmem>>, vector<1x3x32xf32>
    %24 = vector.shape_cast %23 : vector<1x3x32xf32> to vector<3x32xf32>
    %cst_43 = arith.constant dense<0.000000e+00> : vector<512x32xf32>
    %25 = tpu.matmul %22, %24, %cst_43 {dimension_numbers = #tpu.dot_dimension_numbers<[1], [0], [0], [1], [0, 0, 1, 1], [], []>} : vector<512x3xf32>, vector<3x32xf32>, vector<512x32xf32> -> vector<512x32xf32>
    %26 = arith.addf %20, %25 : vector<512x32xf32>
    %c0_44 = arith.constant 0 : index
    %c1_45 = arith.constant 1 : index
    %c0_46 = arith.constant 0 : index
    %c0_47 = arith.constant 0 : index
    %27 = vector.load %arg17[%c0_44, %c1_45, %c0_46, %c0_47] : memref<2x18x18x3xf32, #tpu.memory_space<vmem>>, vector<2x16x16x3xf32>
    %28 = vector.shape_cast %27 : vector<2x16x16x3xf32> to vector<512x3xf32>
    %c3 = arith.constant 3 : index
    %c0_48 = arith.constant 0 : index
    %c0_49 = arith.constant 0 : index
    %29 = vector.load %arg1[%c3, %c0_48, %c0_49] : memref<9x3x32xf32, #tpu.memory_space<vmem>>, vector<1x3x32xf32>
    %30 = vector.shape_cast %29 : vector<1x3x32xf32> to vector<3x32xf32>
    %cst_50 = arith.constant dense<0.000000e+00> : vector<512x32xf32>
    %31 = tpu.matmul %28, %30, %cst_50 {dimension_numbers = #tpu.dot_dimension_numbers<[1], [0], [0], [1], [0, 0, 1, 1], [], []>} : vector<512x3xf32>, vector<3x32xf32>, vector<512x32xf32> -> vector<512x32xf32>
    %32 = arith.addf %26, %31 : vector<512x32xf32>
    %c0_51 = arith.constant 0 : index
    %c1_52 = arith.constant 1 : index
    %c1_53 = arith.constant 1 : index
    %c0_54 = arith.constant 0 : index
    %33 = vector.load %arg17[%c0_51, %c1_52, %c1_53, %c0_54] : memref<2x18x18x3xf32, #tpu.memory_space<vmem>>, vector<2x16x16x3xf32>
    %34 = vector.shape_cast %33 : vector<2x16x16x3xf32> to vector<512x3xf32>
    %c4 = arith.constant 4 : index
    %c0_55 = arith.constant 0 : index
    %c0_56 = arith.constant 0 : index
    %35 = vector.load %arg1[%c4, %c0_55, %c0_56] : memref<9x3x32xf32, #tpu.memory_space<vmem>>, vector<1x3x32xf32>
    %36 = vector.shape_cast %35 : vector<1x3x32xf32> to vector<3x32xf32>
    %cst_57 = arith.constant dense<0.000000e+00> : vector<512x32xf32>
    %37 = tpu.matmul %34, %36, %cst_57 {dimension_numbers = #tpu.dot_dimension_numbers<[1], [0], [0], [1], [0, 0, 1, 1], [], []>} : vector<512x3xf32>, vector<3x32xf32>, vector<512x32xf32> -> vector<512x32xf32>
    %38 = arith.addf %32, %37 : vector<512x32xf32>
    %c0_58 = arith.constant 0 : index
    %c1_59 = arith.constant 1 : index
    %c2_60 = arith.constant 2 : index
    %c0_61 = arith.constant 0 : index
    %39 = vector.load %arg17[%c0_58, %c1_59, %c2_60, %c0_61] : memref<2x18x18x3xf32, #tpu.memory_space<vmem>>, vector<2x16x16x3xf32>
    %40 = vector.shape_cast %39 : vector<2x16x16x3xf32> to vector<512x3xf32>
    %c5 = arith.constant 5 : index
    %c0_62 = arith.constant 0 : index
    %c0_63 = arith.constant 0 : index
    %41 = vector.load %arg1[%c5, %c0_62, %c0_63] : memref<9x3x32xf32, #tpu.memory_space<vmem>>, vector<1x3x32xf32>
    %42 = vector.shape_cast %41 : vector<1x3x32xf32> to vector<3x32xf32>
    %cst_64 = arith.constant dense<0.000000e+00> : vector<512x32xf32>
    %43 = tpu.matmul %40, %42, %cst_64 {dimension_numbers = #tpu.dot_dimension_numbers<[1], [0], [0], [1], [0, 0, 1, 1], [], []>} : vector<512x3xf32>, vector<3x32xf32>, vector<512x32xf32> -> vector<512x32xf32>
    %44 = arith.addf %38, %43 : vector<512x32xf32>
    %c0_65 = arith.constant 0 : index
    %c2_66 = arith.constant 2 : index
    %c0_67 = arith.constant 0 : index
    %c0_68 = arith.constant 0 : index
    %45 = vector.load %arg17[%c0_65, %c2_66, %c0_67, %c0_68] : memref<2x18x18x3xf32, #tpu.memory_space<vmem>>, vector<2x16x16x3xf32>
    %46 = vector.shape_cast %45 : vector<2x16x16x3xf32> to vector<512x3xf32>
    %c6 = arith.constant 6 : index
    %c0_69 = arith.constant 0 : index
    %c0_70 = arith.constant 0 : index
    %47 = vector.load %arg1[%c6, %c0_69, %c0_70] : memref<9x3x32xf32, #tpu.memory_space<vmem>>, vector<1x3x32xf32>
    %48 = vector.shape_cast %47 : vector<1x3x32xf32> to vector<3x32xf32>
    %cst_71 = arith.constant dense<0.000000e+00> : vector<512x32xf32>
    %49 = tpu.matmul %46, %48, %cst_71 {dimension_numbers = #tpu.dot_dimension_numbers<[1], [0], [0], [1], [0, 0, 1, 1], [], []>} : vector<512x3xf32>, vector<3x32xf32>, vector<512x32xf32> -> vector<512x32xf32>
    %50 = arith.addf %44, %49 : vector<512x32xf32>
    %c0_72 = arith.constant 0 : index
    %c2_73 = arith.constant 2 : index
    %c1_74 = arith.constant 1 : index
    %c0_75 = arith.constant 0 : index
    %51 = vector.load %arg17[%c0_72, %c2_73, %c1_74, %c0_75] : memref<2x18x18x3xf32, #tpu.memory_space<vmem>>, vector<2x16x16x3xf32>
    %52 = vector.shape_cast %51 : vector<2x16x16x3xf32> to vector<512x3xf32>
    %c7 = arith.constant 7 : index
    %c0_76 = arith.constant 0 : index
    %c0_77 = arith.constant 0 : index
    %53 = vector.load %arg1[%c7, %c0_76, %c0_77] : memref<9x3x32xf32, #tpu.memory_space<vmem>>, vector<1x3x32xf32>
    %54 = vector.shape_cast %53 : vector<1x3x32xf32> to vector<3x32xf32>
    %cst_78 = arith.constant dense<0.000000e+00> : vector<512x32xf32>
    %55 = tpu.matmul %52, %54, %cst_78 {dimension_numbers = #tpu.dot_dimension_numbers<[1], [0], [0], [1], [0, 0, 1, 1], [], []>} : vector<512x3xf32>, vector<3x32xf32>, vector<512x32xf32> -> vector<512x32xf32>
    %56 = arith.addf %50, %55 : vector<512x32xf32>
    %c0_79 = arith.constant 0 : index
    %c2_80 = arith.constant 2 : index
    %c2_81 = arith.constant 2 : index
    %c0_82 = arith.constant 0 : index
    %57 = vector.load %arg17[%c0_79, %c2_80, %c2_81, %c0_82] : memref<2x18x18x3xf32, #tpu.memory_space<vmem>>, vector<2x16x16x3xf32>
    %58 = vector.shape_cast %57 : vector<2x16x16x3xf32> to vector<512x3xf32>
    %c8 = arith.constant 8 : index
    %c0_83 = arith.constant 0 : index
    %c0_84 = arith.constant 0 : index
    %59 = vector.load %arg1[%c8, %c0_83, %c0_84] : memref<9x3x32xf32, #tpu.memory_space<vmem>>, vector<1x3x32xf32>
    %60 = vector.shape_cast %59 : vector<1x3x32xf32> to vector<3x32xf32>
    %cst_85 = arith.constant dense<0.000000e+00> : vector<512x32xf32>
    %61 = tpu.matmul %58, %60, %cst_85 {dimension_numbers = #tpu.dot_dimension_numbers<[1], [0], [0], [1], [0, 0, 1, 1], [], []>} : vector<512x3xf32>, vector<3x32xf32>, vector<512x32xf32> -> vector<512x32xf32>
    %62 = arith.addf %56, %61 : vector<512x32xf32>
    %c0_86 = arith.constant 0 : index
    %c0_87 = arith.constant 0 : index
    %63 = vector.load %arg2[%c0_86, %c0_87] : memref<1x32xf32, #tpu.memory_space<vmem>>, vector<1x32xf32>
    %64 = vector.broadcast %63 : vector<1x32xf32> to vector<512x32xf32>
    %65 = arith.mulf %62, %64 : vector<512x32xf32>
    %c0_88 = arith.constant 0 : index
    %c0_89 = arith.constant 0 : index
    %66 = vector.load %arg3[%c0_88, %c0_89] : memref<1x32xf32, #tpu.memory_space<vmem>>, vector<1x32xf32>
    %67 = vector.broadcast %66 : vector<1x32xf32> to vector<512x32xf32>
    %68 = arith.addf %65, %67 : vector<512x32xf32>
    %cst_90 = arith.constant 0.000000e+00 : f32
    %69 = vector.broadcast %cst_90 : f32 to vector<512x32xf32>
    %70 = arith.maximumf %68, %69 : vector<512x32xf32>
    %71 = vector.shape_cast %70 : vector<512x32xf32> to vector<2x16x16x32xf32>
    %c0_91 = arith.constant 0 : index
    %c0_92 = arith.constant 0 : index
    %c0_93 = arith.constant 0 : index
    %c0_94 = arith.constant 0 : index
    %72 = vector.load %arg20[%c0_91, %c0_92, %c0_93, %c0_94] : memref<2x16x16x32xf32, #tpu.memory_space<vmem>>, vector<2x16x16x32xf32>
    tpu.vector_store %arg20[%c0_91, %c0_92, %c0_93, %c0_94], %71 {strides = array<i32>} : memref<2x16x16x32xf32, #tpu.memory_space<vmem>>, vector<2x16x16x32xf32>,
    %c0_95 = arith.constant 0 : index
    %c0_96 = arith.constant 0 : index
    %c0_97 = arith.constant 0 : index
    %c0_98 = arith.constant 0 : index
    %73 = tpu.strided_load %arg20[%c0_95, %c0_96, %c0_97, %c0_98] {strides = array<i32: 1, 2, 2, 1>} : memref<2x16x16x32xf32, #tpu.memory_space<vmem>>, vector<2x8x8x32xf32>
    %c0_99 = arith.constant 0 : index
    %c0_100 = arith.constant 0 : index
    %c1_101 = arith.constant 1 : index
    %c0_102 = arith.constant 0 : index
    %74 = tpu.strided_load %arg20[%c0_99, %c0_100, %c1_101, %c0_102] {strides = array<i32: 1, 2, 2, 1>} : memref<2x16x16x32xf32, #tpu.memory_space<vmem>>, vector<2x8x8x32xf32>
    %c0_103 = arith.constant 0 : index
    %c1_104 = arith.constant 1 : index
    %c0_105 = arith.constant 0 : index
    %c0_106 = arith.constant 0 : index
    %75 = tpu.strided_load %arg20[%c0_103, %c1_104, %c0_105, %c0_106] {strides = array<i32: 1, 2, 2, 1>} : memref<2x16x16x32xf32, #tpu.memory_space<vmem>>, vector<2x8x8x32xf32>
    %c0_107 = arith.constant 0 : index
    %c1_108 = arith.constant 1 : index
    %c1_109 = arith.constant 1 : index
    %c0_110 = arith.constant 0 : index
    %76 = tpu.strided_load %arg20[%c0_107, %c1_108, %c1_109, %c0_110] {strides = array<i32: 1, 2, 2, 1>} : memref<2x16x16x32xf32, #tpu.memory_space<vmem>>, vector<2x8x8x32xf32>
    %77 = arith.maximumf %73, %74 : vector<2x8x8x32xf32>
    %78 = arith.maximumf %75, %76 : vector<2x8x8x32xf32>
    %79 = arith.maximumf %77, %78 : vector<2x8x8x32xf32>
    %c0_111 = arith.constant 0 : index
    %c1_112 = arith.constant 1 : index
    %c1_113 = arith.constant 1 : index
    %c0_114 = arith.constant 0 : index
    %80 = vector.load %arg18[%c0_111, %c1_112, %c1_113, %c0_114] : memref<2x10x10x32xf32, #tpu.memory_space<vmem>>, vector<2x8x8x32xf32>
    tpu.vector_store %arg18[%c0_111, %c1_112, %c1_113, %c0_114], %79 {strides = array<i32>} : memref<2x10x10x32xf32, #tpu.memory_space<vmem>>, vector<2x8x8x32xf32>,
    %cst_115 = arith.constant 0.000000e+00 : f32
    %81 = vector.broadcast %cst_115 : f32 to vector<128x32xf32>
    %c0_116 = arith.constant 0 : index
    %c0_117 = arith.constant 0 : index
    %c0_118 = arith.constant 0 : index
    %c0_119 = arith.constant 0 : index
    %82 = vector.load %arg18[%c0_116, %c0_117, %c0_118, %c0_119] : memref<2x10x10x32xf32, #tpu.memory_space<vmem>>, vector<2x8x8x32xf32>
    %83 = vector.shape_cast %82 : vector<2x8x8x32xf32> to vector<128x32xf32>
    %c0_120 = arith.constant 0 : index
    %c0_121 = arith.constant 0 : index
    %c0_122 = arith.constant 0 : index
    %84 = vector.load %arg4[%c0_120, %c0_121, %c0_122] : memref<9x32x32xf32, #tpu.memory_space<vmem>>, vector<1x32x32xf32>
    %85 = vector.shape_cast %84 : vector<1x32x32xf32> to vector<32x32xf32>
    %cst_123 = arith.constant dense<0.000000e+00> : vector<128x32xf32>
    %86 = tpu.matmul %83, %85, %cst_123 {dimension_numbers = #tpu.dot_dimension_numbers<[1], [0], [0], [1], [0, 0, 1, 1], [], []>} : vector<128x32xf32>, vector<32x32xf32>, vector<128x32xf32> -> vector<128x32xf32>
    %87 = arith.addf %81, %86 : vector<128x32xf32>
    %c0_124 = arith.constant 0 : index
    %c0_125 = arith.constant 0 : index
    %c1_126 = arith.constant 1 : index
    %c0_127 = arith.constant 0 : index
    %88 = vector.load %arg18[%c0_124, %c0_125, %c1_126, %c0_127] : memref<2x10x10x32xf32, #tpu.memory_space<vmem>>, vector<2x8x8x32xf32>
    %89 = vector.shape_cast %88 : vector<2x8x8x32xf32> to vector<128x32xf32>
    %c1_128 = arith.constant 1 : index
    %c0_129 = arith.constant 0 : index
    %c0_130 = arith.constant 0 : index
    %90 = vector.load %arg4[%c1_128, %c0_129, %c0_130] : memref<9x32x32xf32, #tpu.memory_space<vmem>>, vector<1x32x32xf32>
    %91 = vector.shape_cast %90 : vector<1x32x32xf32> to vector<32x32xf32>
    %cst_131 = arith.constant dense<0.000000e+00> : vector<128x32xf32>
    %92 = tpu.matmul %89, %91, %cst_131 {dimension_numbers = #tpu.dot_dimension_numbers<[1], [0], [0], [1], [0, 0, 1, 1], [], []>} : vector<128x32xf32>, vector<32x32xf32>, vector<128x32xf32> -> vector<128x32xf32>
    %93 = arith.addf %87, %92 : vector<128x32xf32>
    %c0_132 = arith.constant 0 : index
    %c0_133 = arith.constant 0 : index
    %c2_134 = arith.constant 2 : index
    %c0_135 = arith.constant 0 : index
    %94 = vector.load %arg18[%c0_132, %c0_133, %c2_134, %c0_135] : memref<2x10x10x32xf32, #tpu.memory_space<vmem>>, vector<2x8x8x32xf32>
    %95 = vector.shape_cast %94 : vector<2x8x8x32xf32> to vector<128x32xf32>
    %c2_136 = arith.constant 2 : index
    %c0_137 = arith.constant 0 : index
    %c0_138 = arith.constant 0 : index
    %96 = vector.load %arg4[%c2_136, %c0_137, %c0_138] : memref<9x32x32xf32, #tpu.memory_space<vmem>>, vector<1x32x32xf32>
    %97 = vector.shape_cast %96 : vector<1x32x32xf32> to vector<32x32xf32>
    %cst_139 = arith.constant dense<0.000000e+00> : vector<128x32xf32>
    %98 = tpu.matmul %95, %97, %cst_139 {dimension_numbers = #tpu.dot_dimension_numbers<[1], [0], [0], [1], [0, 0, 1, 1], [], []>} : vector<128x32xf32>, vector<32x32xf32>, vector<128x32xf32> -> vector<128x32xf32>
    %99 = arith.addf %93, %98 : vector<128x32xf32>
    %c0_140 = arith.constant 0 : index
    %c1_141 = arith.constant 1 : index
    %c0_142 = arith.constant 0 : index
    %c0_143 = arith.constant 0 : index
    %100 = vector.load %arg18[%c0_140, %c1_141, %c0_142, %c0_143] : memref<2x10x10x32xf32, #tpu.memory_space<vmem>>, vector<2x8x8x32xf32>
    %101 = vector.shape_cast %100 : vector<2x8x8x32xf32> to vector<128x32xf32>
    %c3_144 = arith.constant 3 : index
    %c0_145 = arith.constant 0 : index
    %c0_146 = arith.constant 0 : index
    %102 = vector.load %arg4[%c3_144, %c0_145, %c0_146] : memref<9x32x32xf32, #tpu.memory_space<vmem>>, vector<1x32x32xf32>
    %103 = vector.shape_cast %102 : vector<1x32x32xf32> to vector<32x32xf32>
    %cst_147 = arith.constant dense<0.000000e+00> : vector<128x32xf32>
    %104 = tpu.matmul %101, %103, %cst_147 {dimension_numbers = #tpu.dot_dimension_numbers<[1], [0], [0], [1], [0, 0, 1, 1], [], []>} : vector<128x32xf32>, vector<32x32xf32>, vector<128x32xf32> -> vector<128x32xf32>
    %105 = arith.addf %99, %104 : vector<128x32xf32>
    %c0_148 = arith.constant 0 : index
    %c1_149 = arith.constant 1 : index
    %c1_150 = arith.constant 1 : index
    %c0_151 = arith.constant 0 : index
    %106 = vector.load %arg18[%c0_148, %c1_149, %c1_150, %c0_151] : memref<2x10x10x32xf32, #tpu.memory_space<vmem>>, vector<2x8x8x32xf32>
    %107 = vector.shape_cast %106 : vector<2x8x8x32xf32> to vector<128x32xf32>
    %c4_152 = arith.constant 4 : index
    %c0_153 = arith.constant 0 : index
    %c0_154 = arith.constant 0 : index
    %108 = vector.load %arg4[%c4_152, %c0_153, %c0_154] : memref<9x32x32xf32, #tpu.memory_space<vmem>>, vector<1x32x32xf32>
    %109 = vector.shape_cast %108 : vector<1x32x32xf32> to vector<32x32xf32>
    %cst_155 = arith.constant dense<0.000000e+00> : vector<128x32xf32>
    %110 = tpu.matmul %107, %109, %cst_155 {dimension_numbers = #tpu.dot_dimension_numbers<[1], [0], [0], [1], [0, 0, 1, 1], [], []>} : vector<128x32xf32>, vector<32x32xf32>, vector<128x32xf32> -> vector<128x32xf32>
    %111 = arith.addf %105, %110 : vector<128x32xf32>
    %c0_156 = arith.constant 0 : index
    %c1_157 = arith.constant 1 : index
    %c2_158 = arith.constant 2 : index
    %c0_159 = arith.constant 0 : index
    %112 = vector.load %arg18[%c0_156, %c1_157, %c2_158, %c0_159] : memref<2x10x10x32xf32, #tpu.memory_space<vmem>>, vector<2x8x8x32xf32>
    %113 = vector.shape_cast %112 : vector<2x8x8x32xf32> to vector<128x32xf32>
    %c5_160 = arith.constant 5 : index
    %c0_161 = arith.constant 0 : index
    %c0_162 = arith.constant 0 : index
    %114 = vector.load %arg4[%c5_160, %c0_161, %c0_162] : memref<9x32x32xf32, #tpu.memory_space<vmem>>, vector<1x32x32xf32>
    %115 = vector.shape_cast %114 : vector<1x32x32xf32> to vector<32x32xf32>
    %cst_163 = arith.constant dense<0.000000e+00> : vector<128x32xf32>
    %116 = tpu.matmul %113, %115, %cst_163 {dimension_numbers = #tpu.dot_dimension_numbers<[1], [0], [0], [1], [0, 0, 1, 1], [], []>} : vector<128x32xf32>, vector<32x32xf32>, vector<128x32xf32> -> vector<128x32xf32>
    %117 = arith.addf %111, %116 : vector<128x32xf32>
    %c0_164 = arith.constant 0 : index
    %c2_165 = arith.constant 2 : index
    %c0_166 = arith.constant 0 : index
    %c0_167 = arith.constant 0 : index
    %118 = vector.load %arg18[%c0_164, %c2_165, %c0_166, %c0_167] : memref<2x10x10x32xf32, #tpu.memory_space<vmem>>, vector<2x8x8x32xf32>
    %119 = vector.shape_cast %118 : vector<2x8x8x32xf32> to vector<128x32xf32>
    %c6_168 = arith.constant 6 : index
    %c0_169 = arith.constant 0 : index
    %c0_170 = arith.constant 0 : index
    %120 = vector.load %arg4[%c6_168, %c0_169, %c0_170] : memref<9x32x32xf32, #tpu.memory_space<vmem>>, vector<1x32x32xf32>
    %121 = vector.shape_cast %120 : vector<1x32x32xf32> to vector<32x32xf32>
    %cst_171 = arith.constant dense<0.000000e+00> : vector<128x32xf32>
    %122 = tpu.matmul %119, %121, %cst_171 {dimension_numbers = #tpu.dot_dimension_numbers<[1], [0], [0], [1], [0, 0, 1, 1], [], []>} : vector<128x32xf32>, vector<32x32xf32>, vector<128x32xf32> -> vector<128x32xf32>
    %123 = arith.addf %117, %122 : vector<128x32xf32>
    %c0_172 = arith.constant 0 : index
    %c2_173 = arith.constant 2 : index
    %c1_174 = arith.constant 1 : index
    %c0_175 = arith.constant 0 : index
    %124 = vector.load %arg18[%c0_172, %c2_173, %c1_174, %c0_175] : memref<2x10x10x32xf32, #tpu.memory_space<vmem>>, vector<2x8x8x32xf32>
    %125 = vector.shape_cast %124 : vector<2x8x8x32xf32> to vector<128x32xf32>
    %c7_176 = arith.constant 7 : index
    %c0_177 = arith.constant 0 : index
    %c0_178 = arith.constant 0 : index
    %126 = vector.load %arg4[%c7_176, %c0_177, %c0_178] : memref<9x32x32xf32, #tpu.memory_space<vmem>>, vector<1x32x32xf32>
    %127 = vector.shape_cast %126 : vector<1x32x32xf32> to vector<32x32xf32>
    %cst_179 = arith.constant dense<0.000000e+00> : vector<128x32xf32>
    %128 = tpu.matmul %125, %127, %cst_179 {dimension_numbers = #tpu.dot_dimension_numbers<[1], [0], [0], [1], [0, 0, 1, 1], [], []>} : vector<128x32xf32>, vector<32x32xf32>, vector<128x32xf32> -> vector<128x32xf32>
    %129 = arith.addf %123, %128 : vector<128x32xf32>
    %c0_180 = arith.constant 0 : index
    %c2_181 = arith.constant 2 : index
    %c2_182 = arith.constant 2 : index
    %c0_183 = arith.constant 0 : index
    %130 = vector.load %arg18[%c0_180, %c2_181, %c2_182, %c0_183] : memref<2x10x10x32xf32, #tpu.memory_space<vmem>>, vector<2x8x8x32xf32>
    %131 = vector.shape_cast %130 : vector<2x8x8x32xf32> to vector<128x32xf32>
    %c8_184 = arith.constant 8 : index
    %c0_185 = arith.constant 0 : index
    %c0_186 = arith.constant 0 : index
    %132 = vector.load %arg4[%c8_184, %c0_185, %c0_186] : memref<9x32x32xf32, #tpu.memory_space<vmem>>, vector<1x32x32xf32>
    %133 = vector.shape_cast %132 : vector<1x32x32xf32> to vector<32x32xf32>
    %cst_187 = arith.constant dense<0.000000e+00> : vector<128x32xf32>
    %134 = tpu.matmul %131, %133, %cst_187 {dimension_numbers = #tpu.dot_dimension_numbers<[1], [0], [0], [1], [0, 0, 1, 1], [], []>} : vector<128x32xf32>, vector<32x32xf32>, vector<128x32xf32> -> vector<128x32xf32>
    %135 = arith.addf %129, %134 : vector<128x32xf32>
    %c0_188 = arith.constant 0 : index
    %c0_189 = arith.constant 0 : index
    %136 = vector.load %arg5[%c0_188, %c0_189] : memref<1x32xf32, #tpu.memory_space<vmem>>, vector<1x32xf32>
    %137 = vector.broadcast %136 : vector<1x32xf32> to vector<128x32xf32>
    %138 = arith.mulf %135, %137 : vector<128x32xf32>
    %c0_190 = arith.constant 0 : index
    %c0_191 = arith.constant 0 : index
    %139 = vector.load %arg6[%c0_190, %c0_191] : memref<1x32xf32, #tpu.memory_space<vmem>>, vector<1x32xf32>
    %140 = vector.broadcast %139 : vector<1x32xf32> to vector<128x32xf32>
    %141 = arith.addf %138, %140 : vector<128x32xf32>
    %cst_192 = arith.constant 0.000000e+00 : f32
    %142 = vector.broadcast %cst_192 : f32 to vector<128x32xf32>
    %143 = arith.maximumf %141, %142 : vector<128x32xf32>
    %144 = vector.shape_cast %143 : vector<128x32xf32> to vector<2x8x8x32xf32>
    %c0_193 = arith.constant 0 : index
    %c0_194 = arith.constant 0 : index
    %c0_195 = arith.constant 0 : index
    %c0_196 = arith.constant 0 : index
    %145 = vector.load %arg21[%c0_193, %c0_194, %c0_195, %c0_196] : memref<2x8x8x32xf32, #tpu.memory_space<vmem>>, vector<2x8x8x32xf32>
    tpu.vector_store %arg21[%c0_193, %c0_194, %c0_195, %c0_196], %144 {strides = array<i32>} : memref<2x8x8x32xf32, #tpu.memory_space<vmem>>, vector<2x8x8x32xf32>,
    %c0_197 = arith.constant 0 : index
    %c0_198 = arith.constant 0 : index
    %c0_199 = arith.constant 0 : index
    %c0_200 = arith.constant 0 : index
    %146 = tpu.strided_load %arg21[%c0_197, %c0_198, %c0_199, %c0_200] {strides = array<i32: 1, 2, 2, 1>} : memref<2x8x8x32xf32, #tpu.memory_space<vmem>>, vector<2x4x4x32xf32>
    %c0_201 = arith.constant 0 : index
    %c0_202 = arith.constant 0 : index
    %c1_203 = arith.constant 1 : index
    %c0_204 = arith.constant 0 : index
    %147 = tpu.strided_load %arg21[%c0_201, %c0_202, %c1_203, %c0_204] {strides = array<i32: 1, 2, 2, 1>} : memref<2x8x8x32xf32, #tpu.memory_space<vmem>>, vector<2x4x4x32xf32>
    %c0_205 = arith.constant 0 : index
    %c1_206 = arith.constant 1 : index
    %c0_207 = arith.constant 0 : index
    %c0_208 = arith.constant 0 : index
    %148 = tpu.strided_load %arg21[%c0_205, %c1_206, %c0_207, %c0_208] {strides = array<i32: 1, 2, 2, 1>} : memref<2x8x8x32xf32, #tpu.memory_space<vmem>>, vector<2x4x4x32xf32>
    %c0_209 = arith.constant 0 : index
    %c1_210 = arith.constant 1 : index
    %c1_211 = arith.constant 1 : index
    %c0_212 = arith.constant 0 : index
    %149 = tpu.strided_load %arg21[%c0_209, %c1_210, %c1_211, %c0_212] {strides = array<i32: 1, 2, 2, 1>} : memref<2x8x8x32xf32, #tpu.memory_space<vmem>>, vector<2x4x4x32xf32>
    %150 = arith.maximumf %146, %147 : vector<2x4x4x32xf32>
    %151 = arith.maximumf %148, %149 : vector<2x4x4x32xf32>
    %152 = arith.maximumf %150, %151 : vector<2x4x4x32xf32>
    %c0_213 = arith.constant 0 : index
    %c1_214 = arith.constant 1 : index
    %c1_215 = arith.constant 1 : index
    %c0_216 = arith.constant 0 : index
    %153 = vector.load %arg19[%c0_213, %c1_214, %c1_215, %c0_216] : memref<2x6x6x32xf32, #tpu.memory_space<vmem>>, vector<2x4x4x32xf32>
    tpu.vector_store %arg19[%c0_213, %c1_214, %c1_215, %c0_216], %152 {strides = array<i32>} : memref<2x6x6x32xf32, #tpu.memory_space<vmem>>, vector<2x4x4x32xf32>,
    %cst_217 = arith.constant 0.000000e+00 : f32
    %154 = vector.broadcast %cst_217 : f32 to vector<32x32xf32>
    %c0_218 = arith.constant 0 : index
    %c0_219 = arith.constant 0 : index
    %c0_220 = arith.constant 0 : index
    %c0_221 = arith.constant 0 : index
    %155 = vector.load %arg19[%c0_218, %c0_219, %c0_220, %c0_221] : memref<2x6x6x32xf32, #tpu.memory_space<vmem>>, vector<2x4x4x32xf32>
    %156 = vector.shape_cast %155 : vector<2x4x4x32xf32> to vector<32x32xf32>
    %c0_222 = arith.constant 0 : index
    %c0_223 = arith.constant 0 : index
    %c0_224 = arith.constant 0 : index
    %157 = vector.load %arg7[%c0_222, %c0_223, %c0_224] : memref<9x32x32xf32, #tpu.memory_space<vmem>>, vector<1x32x32xf32>
    %158 = vector.shape_cast %157 : vector<1x32x32xf32> to vector<32x32xf32>
    %cst_225 = arith.constant dense<0.000000e+00> : vector<32x32xf32>
    %159 = tpu.matmul %156, %158, %cst_225 {dimension_numbers = #tpu.dot_dimension_numbers<[1], [0], [0], [1], [0, 0, 1, 1], [], []>} : vector<32x32xf32>, vector<32x32xf32>, vector<32x32xf32> -> vector<32x32xf32>
    %160 = arith.addf %154, %159 : vector<32x32xf32>
    %c0_226 = arith.constant 0 : index
    %c0_227 = arith.constant 0 : index
    %c1_228 = arith.constant 1 : index
    %c0_229 = arith.constant 0 : index
    %161 = vector.load %arg19[%c0_226, %c0_227, %c1_228, %c0_229] : memref<2x6x6x32xf32, #tpu.memory_space<vmem>>, vector<2x4x4x32xf32>
    %162 = vector.shape_cast %161 : vector<2x4x4x32xf32> to vector<32x32xf32>
    %c1_230 = arith.constant 1 : index
    %c0_231 = arith.constant 0 : index
    %c0_232 = arith.constant 0 : index
    %163 = vector.load %arg7[%c1_230, %c0_231, %c0_232] : memref<9x32x32xf32, #tpu.memory_space<vmem>>, vector<1x32x32xf32>
    %164 = vector.shape_cast %163 : vector<1x32x32xf32> to vector<32x32xf32>
    %cst_233 = arith.constant dense<0.000000e+00> : vector<32x32xf32>
    %165 = tpu.matmul %162, %164, %cst_233 {dimension_numbers = #tpu.dot_dimension_numbers<[1], [0], [0], [1], [0, 0, 1, 1], [], []>} : vector<32x32xf32>, vector<32x32xf32>, vector<32x32xf32> -> vector<32x32xf32>
    %166 = arith.addf %160, %165 : vector<32x32xf32>
    %c0_234 = arith.constant 0 : index
    %c0_235 = arith.constant 0 : index
    %c2_236 = arith.constant 2 : index
    %c0_237 = arith.constant 0 : index
    %167 = vector.load %arg19[%c0_234, %c0_235, %c2_236, %c0_237] : memref<2x6x6x32xf32, #tpu.memory_space<vmem>>, vector<2x4x4x32xf32>
    %168 = vector.shape_cast %167 : vector<2x4x4x32xf32> to vector<32x32xf32>
    %c2_238 = arith.constant 2 : index
    %c0_239 = arith.constant 0 : index
    %c0_240 = arith.constant 0 : index
    %169 = vector.load %arg7[%c2_238, %c0_239, %c0_240] : memref<9x32x32xf32, #tpu.memory_space<vmem>>, vector<1x32x32xf32>
    %170 = vector.shape_cast %169 : vector<1x32x32xf32> to vector<32x32xf32>
    %cst_241 = arith.constant dense<0.000000e+00> : vector<32x32xf32>
    %171 = tpu.matmul %168, %170, %cst_241 {dimension_numbers = #tpu.dot_dimension_numbers<[1], [0], [0], [1], [0, 0, 1, 1], [], []>} : vector<32x32xf32>, vector<32x32xf32>, vector<32x32xf32> -> vector<32x32xf32>
    %172 = arith.addf %166, %171 : vector<32x32xf32>
    %c0_242 = arith.constant 0 : index
    %c1_243 = arith.constant 1 : index
    %c0_244 = arith.constant 0 : index
    %c0_245 = arith.constant 0 : index
    %173 = vector.load %arg19[%c0_242, %c1_243, %c0_244, %c0_245] : memref<2x6x6x32xf32, #tpu.memory_space<vmem>>, vector<2x4x4x32xf32>
    %174 = vector.shape_cast %173 : vector<2x4x4x32xf32> to vector<32x32xf32>
    %c3_246 = arith.constant 3 : index
    %c0_247 = arith.constant 0 : index
    %c0_248 = arith.constant 0 : index
    %175 = vector.load %arg7[%c3_246, %c0_247, %c0_248] : memref<9x32x32xf32, #tpu.memory_space<vmem>>, vector<1x32x32xf32>
    %176 = vector.shape_cast %175 : vector<1x32x32xf32> to vector<32x32xf32>
    %cst_249 = arith.constant dense<0.000000e+00> : vector<32x32xf32>
    %177 = tpu.matmul %174, %176, %cst_249 {dimension_numbers = #tpu.dot_dimension_numbers<[1], [0], [0], [1], [0, 0, 1, 1], [], []>} : vector<32x32xf32>, vector<32x32xf32>, vector<32x32xf32> -> vector<32x32xf32>
    %178 = arith.addf %172, %177 : vector<32x32xf32>
    %c0_250 = arith.constant 0 : index
    %c1_251 = arith.constant 1 : index
    %c1_252 = arith.constant 1 : index
    %c0_253 = arith.constant 0 : index
    %179 = vector.load %arg19[%c0_250, %c1_251, %c1_252, %c0_253] : memref<2x6x6x32xf32, #tpu.memory_space<vmem>>, vector<2x4x4x32xf32>
    %180 = vector.shape_cast %179 : vector<2x4x4x32xf32> to vector<32x32xf32>
    %c4_254 = arith.constant 4 : index
    %c0_255 = arith.constant 0 : index
    %c0_256 = arith.constant 0 : index
    %181 = vector.load %arg7[%c4_254, %c0_255, %c0_256] : memref<9x32x32xf32, #tpu.memory_space<vmem>>, vector<1x32x32xf32>
    %182 = vector.shape_cast %181 : vector<1x32x32xf32> to vector<32x32xf32>
    %cst_257 = arith.constant dense<0.000000e+00> : vector<32x32xf32>
    %183 = tpu.matmul %180, %182, %cst_257 {dimension_numbers = #tpu.dot_dimension_numbers<[1], [0], [0], [1], [0, 0, 1, 1], [], []>} : vector<32x32xf32>, vector<32x32xf32>, vector<32x32xf32> -> vector<32x32xf32>
    %184 = arith.addf %178, %183 : vector<32x32xf32>
    %c0_258 = arith.constant 0 : index
    %c1_259 = arith.constant 1 : index
    %c2_260 = arith.constant 2 : index
    %c0_261 = arith.constant 0 : index
    %185 = vector.load %arg19[%c0_258, %c1_259, %c2_260, %c0_261] : memref<2x6x6x32xf32, #tpu.memory_space<vmem>>, vector<2x4x4x32xf32>
    %186 = vector.shape_cast %185 : vector<2x4x4x32xf32> to vector<32x32xf32>
    %c5_262 = arith.constant 5 : index
    %c0_263 = arith.constant 0 : index
    %c0_264 = arith.constant 0 : index
    %187 = vector.load %arg7[%c5_262, %c0_263, %c0_264] : memref<9x32x32xf32, #tpu.memory_space<vmem>>, vector<1x32x32xf32>
    %188 = vector.shape_cast %187 : vector<1x32x32xf32> to vector<32x32xf32>
    %cst_265 = arith.constant dense<0.000000e+00> : vector<32x32xf32>
    %189 = tpu.matmul %186, %188, %cst_265 {dimension_numbers = #tpu.dot_dimension_numbers<[1], [0], [0], [1], [0, 0, 1, 1], [], []>} : vector<32x32xf32>, vector<32x32xf32>, vector<32x32xf32> -> vector<32x32xf32>
    %190 = arith.addf %184, %189 : vector<32x32xf32>
    %c0_266 = arith.constant 0 : index
    %c2_267 = arith.constant 2 : index
    %c0_268 = arith.constant 0 : index
    %c0_269 = arith.constant 0 : index
    %191 = vector.load %arg19[%c0_266, %c2_267, %c0_268, %c0_269] : memref<2x6x6x32xf32, #tpu.memory_space<vmem>>, vector<2x4x4x32xf32>
    %192 = vector.shape_cast %191 : vector<2x4x4x32xf32> to vector<32x32xf32>
    %c6_270 = arith.constant 6 : index
    %c0_271 = arith.constant 0 : index
    %c0_272 = arith.constant 0 : index
    %193 = vector.load %arg7[%c6_270, %c0_271, %c0_272] : memref<9x32x32xf32, #tpu.memory_space<vmem>>, vector<1x32x32xf32>
    %194 = vector.shape_cast %193 : vector<1x32x32xf32> to vector<32x32xf32>
    %cst_273 = arith.constant dense<0.000000e+00> : vector<32x32xf32>
    %195 = tpu.matmul %192, %194, %cst_273 {dimension_numbers = #tpu.dot_dimension_numbers<[1], [0], [0], [1], [0, 0, 1, 1], [], []>} : vector<32x32xf32>, vector<32x32xf32>, vector<32x32xf32> -> vector<32x32xf32>
    %196 = arith.addf %190, %195 : vector<32x32xf32>
    %c0_274 = arith.constant 0 : index
    %c2_275 = arith.constant 2 : index
    %c1_276 = arith.constant 1 : index
    %c0_277 = arith.constant 0 : index
    %197 = vector.load %arg19[%c0_274, %c2_275, %c1_276, %c0_277] : memref<2x6x6x32xf32, #tpu.memory_space<vmem>>, vector<2x4x4x32xf32>
    %198 = vector.shape_cast %197 : vector<2x4x4x32xf32> to vector<32x32xf32>
    %c7_278 = arith.constant 7 : index
    %c0_279 = arith.constant 0 : index
    %c0_280 = arith.constant 0 : index
    %199 = vector.load %arg7[%c7_278, %c0_279, %c0_280] : memref<9x32x32xf32, #tpu.memory_space<vmem>>, vector<1x32x32xf32>
    %200 = vector.shape_cast %199 : vector<1x32x32xf32> to vector<32x32xf32>
    %cst_281 = arith.constant dense<0.000000e+00> : vector<32x32xf32>
    %201 = tpu.matmul %198, %200, %cst_281 {dimension_numbers = #tpu.dot_dimension_numbers<[1], [0], [0], [1], [0, 0, 1, 1], [], []>} : vector<32x32xf32>, vector<32x32xf32>, vector<32x32xf32> -> vector<32x32xf32>
    %202 = arith.addf %196, %201 : vector<32x32xf32>
    %c0_282 = arith.constant 0 : index
    %c2_283 = arith.constant 2 : index
    %c2_284 = arith.constant 2 : index
    %c0_285 = arith.constant 0 : index
    %203 = vector.load %arg19[%c0_282, %c2_283, %c2_284, %c0_285] : memref<2x6x6x32xf32, #tpu.memory_space<vmem>>, vector<2x4x4x32xf32>
    %204 = vector.shape_cast %203 : vector<2x4x4x32xf32> to vector<32x32xf32>
    %c8_286 = arith.constant 8 : index
    %c0_287 = arith.constant 0 : index
    %c0_288 = arith.constant 0 : index
    %205 = vector.load %arg7[%c8_286, %c0_287, %c0_288] : memref<9x32x32xf32, #tpu.memory_space<vmem>>, vector<1x32x32xf32>
    %206 = vector.shape_cast %205 : vector<1x32x32xf32> to vector<32x32xf32>
    %cst_289 = arith.constant dense<0.000000e+00> : vector<32x32xf32>
    %207 = tpu.matmul %204, %206, %cst_289 {dimension_numbers = #tpu.dot_dimension_numbers<[1], [0], [0], [1], [0, 0, 1, 1], [], []>} : vector<32x32xf32>, vector<32x32xf32>, vector<32x32xf32> -> vector<32x32xf32>
    %208 = arith.addf %202, %207 : vector<32x32xf32>
    %c0_290 = arith.constant 0 : index
    %c0_291 = arith.constant 0 : index
    %209 = vector.load %arg8[%c0_290, %c0_291] : memref<1x32xf32, #tpu.memory_space<vmem>>, vector<1x32xf32>
    %210 = vector.broadcast %209 : vector<1x32xf32> to vector<32x32xf32>
    %211 = arith.mulf %208, %210 : vector<32x32xf32>
    %c0_292 = arith.constant 0 : index
    %c0_293 = arith.constant 0 : index
    %212 = vector.load %arg9[%c0_292, %c0_293] : memref<1x32xf32, #tpu.memory_space<vmem>>, vector<1x32xf32>
    %213 = vector.broadcast %212 : vector<1x32xf32> to vector<32x32xf32>
    %214 = arith.addf %211, %213 : vector<32x32xf32>
    %cst_294 = arith.constant 0.000000e+00 : f32
    %215 = vector.broadcast %cst_294 : f32 to vector<32x32xf32>
    %216 = arith.maximumf %214, %215 : vector<32x32xf32>
    %217 = vector.shape_cast %216 : vector<32x32xf32> to vector<2x4x4x32xf32>
    %c0_295 = arith.constant 0 : index
    %c1_296 = arith.constant 1 : index
    %c1_297 = arith.constant 1 : index
    %c0_298 = arith.constant 0 : index
    %218 = vector.load %arg19[%c0_295, %c1_296, %c1_297, %c0_298] : memref<2x6x6x32xf32, #tpu.memory_space<vmem>>, vector<2x4x4x32xf32>
    tpu.vector_store %arg19[%c0_295, %c1_296, %c1_297, %c0_298], %217 {strides = array<i32>} : memref<2x6x6x32xf32, #tpu.memory_space<vmem>>, vector<2x4x4x32xf32>,
    %cst_299 = arith.constant 0.000000e+00 : f32
    %219 = vector.broadcast %cst_299 : f32 to vector<32x32xf32>
    %c0_300 = arith.constant 0 : index
    %c0_301 = arith.constant 0 : index
    %c0_302 = arith.constant 0 : index
    %c0_303 = arith.constant 0 : index
    %220 = vector.load %arg19[%c0_300, %c0_301, %c0_302, %c0_303] : memref<2x6x6x32xf32, #tpu.memory_space<vmem>>, vector<2x4x4x32xf32>
    %221 = vector.shape_cast %220 : vector<2x4x4x32xf32> to vector<32x32xf32>
    %c0_304 = arith.constant 0 : index
    %c0_305 = arith.constant 0 : index
    %c0_306 = arith.constant 0 : index
    %222 = vector.load %arg10[%c0_304, %c0_305, %c0_306] : memref<9x32x32xf32, #tpu.memory_space<vmem>>, vector<1x32x32xf32>
    %223 = vector.shape_cast %222 : vector<1x32x32xf32> to vector<32x32xf32>
    %cst_307 = arith.constant dense<0.000000e+00> : vector<32x32xf32>
    %224 = tpu.matmul %221, %223, %cst_307 {dimension_numbers = #tpu.dot_dimension_numbers<[1], [0], [0], [1], [0, 0, 1, 1], [], []>} : vector<32x32xf32>, vector<32x32xf32>, vector<32x32xf32> -> vector<32x32xf32>
    %225 = arith.addf %219, %224 : vector<32x32xf32>
    %c0_308 = arith.constant 0 : index
    %c0_309 = arith.constant 0 : index
    %c1_310 = arith.constant 1 : index
    %c0_311 = arith.constant 0 : index
    %226 = vector.load %arg19[%c0_308, %c0_309, %c1_310, %c0_311] : memref<2x6x6x32xf32, #tpu.memory_space<vmem>>, vector<2x4x4x32xf32>
    %227 = vector.shape_cast %226 : vector<2x4x4x32xf32> to vector<32x32xf32>
    %c1_312 = arith.constant 1 : index
    %c0_313 = arith.constant 0 : index
    %c0_314 = arith.constant 0 : index
    %228 = vector.load %arg10[%c1_312, %c0_313, %c0_314] : memref<9x32x32xf32, #tpu.memory_space<vmem>>, vector<1x32x32xf32>
    %229 = vector.shape_cast %228 : vector<1x32x32xf32> to vector<32x32xf32>
    %cst_315 = arith.constant dense<0.000000e+00> : vector<32x32xf32>
    %230 = tpu.matmul %227, %229, %cst_315 {dimension_numbers = #tpu.dot_dimension_numbers<[1], [0], [0], [1], [0, 0, 1, 1], [], []>} : vector<32x32xf32>, vector<32x32xf32>, vector<32x32xf32> -> vector<32x32xf32>
    %231 = arith.addf %225, %230 : vector<32x32xf32>
    %c0_316 = arith.constant 0 : index
    %c0_317 = arith.constant 0 : index
    %c2_318 = arith.constant 2 : index
    %c0_319 = arith.constant 0 : index
    %232 = vector.load %arg19[%c0_316, %c0_317, %c2_318, %c0_319] : memref<2x6x6x32xf32, #tpu.memory_space<vmem>>, vector<2x4x4x32xf32>
    %233 = vector.shape_cast %232 : vector<2x4x4x32xf32> to vector<32x32xf32>
    %c2_320 = arith.constant 2 : index
    %c0_321 = arith.constant 0 : index
    %c0_322 = arith.constant 0 : index
    %234 = vector.load %arg10[%c2_320, %c0_321, %c0_322] : memref<9x32x32xf32, #tpu.memory_space<vmem>>, vector<1x32x32xf32>
    %235 = vector.shape_cast %234 : vector<1x32x32xf32> to vector<32x32xf32>
    %cst_323 = arith.constant dense<0.000000e+00> : vector<32x32xf32>
    %236 = tpu.matmul %233, %235, %cst_323 {dimension_numbers = #tpu.dot_dimension_numbers<[1], [0], [0], [1], [0, 0, 1, 1], [], []>} : vector<32x32xf32>, vector<32x32xf32>, vector<32x32xf32> -> vector<32x32xf32>
    %237 = arith.addf %231, %236 : vector<32x32xf32>
    %c0_324 = arith.constant 0 : index
    %c1_325 = arith.constant 1 : index
    %c0_326 = arith.constant 0 : index
    %c0_327 = arith.constant 0 : index
    %238 = vector.load %arg19[%c0_324, %c1_325, %c0_326, %c0_327] : memref<2x6x6x32xf32, #tpu.memory_space<vmem>>, vector<2x4x4x32xf32>
    %239 = vector.shape_cast %238 : vector<2x4x4x32xf32> to vector<32x32xf32>
    %c3_328 = arith.constant 3 : index
    %c0_329 = arith.constant 0 : index
    %c0_330 = arith.constant 0 : index
    %240 = vector.load %arg10[%c3_328, %c0_329, %c0_330] : memref<9x32x32xf32, #tpu.memory_space<vmem>>, vector<1x32x32xf32>
    %241 = vector.shape_cast %240 : vector<1x32x32xf32> to vector<32x32xf32>
    %cst_331 = arith.constant dense<0.000000e+00> : vector<32x32xf32>
    %242 = tpu.matmul %239, %241, %cst_331 {dimension_numbers = #tpu.dot_dimension_numbers<[1], [0], [0], [1], [0, 0, 1, 1], [], []>} : vector<32x32xf32>, vector<32x32xf32>, vector<32x32xf32> -> vector<32x32xf32>
    %243 = arith.addf %237, %242 : vector<32x32xf32>
    %c0_332 = arith.constant 0 : index
    %c1_333 = arith.constant 1 : index
    %c1_334 = arith.constant 1 : index
    %c0_335 = arith.constant 0 : index
    %244 = vector.load %arg19[%c0_332, %c1_333, %c1_334, %c0_335] : memref<2x6x6x32xf32, #tpu.memory_space<vmem>>, vector<2x4x4x32xf32>
    %245 = vector.shape_cast %244 : vector<2x4x4x32xf32> to vector<32x32xf32>
    %c4_336 = arith.constant 4 : index
    %c0_337 = arith.constant 0 : index
    %c0_338 = arith.constant 0 : index
    %246 = vector.load %arg10[%c4_336, %c0_337, %c0_338] : memref<9x32x32xf32, #tpu.memory_space<vmem>>, vector<1x32x32xf32>
    %247 = vector.shape_cast %246 : vector<1x32x32xf32> to vector<32x32xf32>
    %cst_339 = arith.constant dense<0.000000e+00> : vector<32x32xf32>
    %248 = tpu.matmul %245, %247, %cst_339 {dimension_numbers = #tpu.dot_dimension_numbers<[1], [0], [0], [1], [0, 0, 1, 1], [], []>} : vector<32x32xf32>, vector<32x32xf32>, vector<32x32xf32> -> vector<32x32xf32>
    %249 = arith.addf %243, %248 : vector<32x32xf32>
    %c0_340 = arith.constant 0 : index
    %c1_341 = arith.constant 1 : index
    %c2_342 = arith.constant 2 : index
    %c0_343 = arith.constant 0 : index
    %250 = vector.load %arg19[%c0_340, %c1_341, %c2_342, %c0_343] : memref<2x6x6x32xf32, #tpu.memory_space<vmem>>, vector<2x4x4x32xf32>
    %251 = vector.shape_cast %250 : vector<2x4x4x32xf32> to vector<32x32xf32>
    %c5_344 = arith.constant 5 : index
    %c0_345 = arith.constant 0 : index
    %c0_346 = arith.constant 0 : index
    %252 = vector.load %arg10[%c5_344, %c0_345, %c0_346] : memref<9x32x32xf32, #tpu.memory_space<vmem>>, vector<1x32x32xf32>
    %253 = vector.shape_cast %252 : vector<1x32x32xf32> to vector<32x32xf32>
    %cst_347 = arith.constant dense<0.000000e+00> : vector<32x32xf32>
    %254 = tpu.matmul %251, %253, %cst_347 {dimension_numbers = #tpu.dot_dimension_numbers<[1], [0], [0], [1], [0, 0, 1, 1], [], []>} : vector<32x32xf32>, vector<32x32xf32>, vector<32x32xf32> -> vector<32x32xf32>
    %255 = arith.addf %249, %254 : vector<32x32xf32>
    %c0_348 = arith.constant 0 : index
    %c2_349 = arith.constant 2 : index
    %c0_350 = arith.constant 0 : index
    %c0_351 = arith.constant 0 : index
    %256 = vector.load %arg19[%c0_348, %c2_349, %c0_350, %c0_351] : memref<2x6x6x32xf32, #tpu.memory_space<vmem>>, vector<2x4x4x32xf32>
    %257 = vector.shape_cast %256 : vector<2x4x4x32xf32> to vector<32x32xf32>
    %c6_352 = arith.constant 6 : index
    %c0_353 = arith.constant 0 : index
    %c0_354 = arith.constant 0 : index
    %258 = vector.load %arg10[%c6_352, %c0_353, %c0_354] : memref<9x32x32xf32, #tpu.memory_space<vmem>>, vector<1x32x32xf32>
    %259 = vector.shape_cast %258 : vector<1x32x32xf32> to vector<32x32xf32>
    %cst_355 = arith.constant dense<0.000000e+00> : vector<32x32xf32>
    %260 = tpu.matmul %257, %259, %cst_355 {dimension_numbers = #tpu.dot_dimension_numbers<[1], [0], [0], [1], [0, 0, 1, 1], [], []>} : vector<32x32xf32>, vector<32x32xf32>, vector<32x32xf32> -> vector<32x32xf32>
    %261 = arith.addf %255, %260 : vector<32x32xf32>
    %c0_356 = arith.constant 0 : index
    %c2_357 = arith.constant 2 : index
    %c1_358 = arith.constant 1 : index
    %c0_359 = arith.constant 0 : index
    %262 = vector.load %arg19[%c0_356, %c2_357, %c1_358, %c0_359] : memref<2x6x6x32xf32, #tpu.memory_space<vmem>>, vector<2x4x4x32xf32>
    %263 = vector.shape_cast %262 : vector<2x4x4x32xf32> to vector<32x32xf32>
    %c7_360 = arith.constant 7 : index
    %c0_361 = arith.constant 0 : index
    %c0_362 = arith.constant 0 : index
    %264 = vector.load %arg10[%c7_360, %c0_361, %c0_362] : memref<9x32x32xf32, #tpu.memory_space<vmem>>, vector<1x32x32xf32>
    %265 = vector.shape_cast %264 : vector<1x32x32xf32> to vector<32x32xf32>
    %cst_363 = arith.constant dense<0.000000e+00> : vector<32x32xf32>
    %266 = tpu.matmul %263, %265, %cst_363 {dimension_numbers = #tpu.dot_dimension_numbers<[1], [0], [0], [1], [0, 0, 1, 1], [], []>} : vector<32x32xf32>, vector<32x32xf32>, vector<32x32xf32> -> vector<32x32xf32>
    %267 = arith.addf %261, %266 : vector<32x32xf32>
    %c0_364 = arith.constant 0 : index
    %c2_365 = arith.constant 2 : index
    %c2_366 = arith.constant 2 : index
    %c0_367 = arith.constant 0 : index
    %268 = vector.load %arg19[%c0_364, %c2_365, %c2_366, %c0_367] : memref<2x6x6x32xf32, #tpu.memory_space<vmem>>, vector<2x4x4x32xf32>
    %269 = vector.shape_cast %268 : vector<2x4x4x32xf32> to vector<32x32xf32>
    %c8_368 = arith.constant 8 : index
    %c0_369 = arith.constant 0 : index
    %c0_370 = arith.constant 0 : index
    %270 = vector.load %arg10[%c8_368, %c0_369, %c0_370] : memref<9x32x32xf32, #tpu.memory_space<vmem>>, vector<1x32x32xf32>
    %271 = vector.shape_cast %270 : vector<1x32x32xf32> to vector<32x32xf32>
    %cst_371 = arith.constant dense<0.000000e+00> : vector<32x32xf32>
    %272 = tpu.matmul %269, %271, %cst_371 {dimension_numbers = #tpu.dot_dimension_numbers<[1], [0], [0], [1], [0, 0, 1, 1], [], []>} : vector<32x32xf32>, vector<32x32xf32>, vector<32x32xf32> -> vector<32x32xf32>
    %273 = arith.addf %267, %272 : vector<32x32xf32>
    %c0_372 = arith.constant 0 : index
    %c0_373 = arith.constant 0 : index
    %274 = vector.load %arg11[%c0_372, %c0_373] : memref<1x32xf32, #tpu.memory_space<vmem>>, vector<1x32xf32>
    %275 = vector.broadcast %274 : vector<1x32xf32> to vector<32x32xf32>
    %276 = arith.mulf %273, %275 : vector<32x32xf32>
    %c0_374 = arith.constant 0 : index
    %c0_375 = arith.constant 0 : index
    %277 = vector.load %arg12[%c0_374, %c0_375] : memref<1x32xf32, #tpu.memory_space<vmem>>, vector<1x32xf32>
    %278 = vector.broadcast %277 : vector<1x32xf32> to vector<32x32xf32>
    %279 = arith.addf %276, %278 : vector<32x32xf32>
    %cst_376 = arith.constant 0.000000e+00 : f32
    %280 = vector.broadcast %cst_376 : f32 to vector<32x32xf32>
    %281 = arith.maximumf %279, %280 : vector<32x32xf32>
    %282 = vector.shape_cast %281 : vector<32x32xf32> to vector<2x4x4x32xf32>
    %c0_377 = arith.constant 0 : index
    %c1_378 = arith.constant 1 : index
    %c1_379 = arith.constant 1 : index
    %c0_380 = arith.constant 0 : index
    %283 = vector.load %arg19[%c0_377, %c1_378, %c1_379, %c0_380] : memref<2x6x6x32xf32, #tpu.memory_space<vmem>>, vector<2x4x4x32xf32>
    tpu.vector_store %arg19[%c0_377, %c1_378, %c1_379, %c0_380], %282 {strides = array<i32>} : memref<2x6x6x32xf32, #tpu.memory_space<vmem>>, vector<2x4x4x32xf32>,
    %cst_381 = arith.constant 0.000000e+00 : f32
    %284 = vector.broadcast %cst_381 : f32 to vector<32x32xf32>
    %c0_382 = arith.constant 0 : index
    %c0_383 = arith.constant 0 : index
    %c0_384 = arith.constant 0 : index
    %c0_385 = arith.constant 0 : index
    %285 = vector.load %arg19[%c0_382, %c0_383, %c0_384, %c0_385] : memref<2x6x6x32xf32, #tpu.memory_space<vmem>>, vector<2x4x4x32xf32>
    %286 = vector.shape_cast %285 : vector<2x4x4x32xf32> to vector<32x32xf32>
    %c0_386 = arith.constant 0 : index
    %c0_387 = arith.constant 0 : index
    %c0_388 = arith.constant 0 : index
    %287 = vector.load %arg13[%c0_386, %c0_387, %c0_388] : memref<9x32x32xf32, #tpu.memory_space<vmem>>, vector<1x32x32xf32>
    %288 = vector.shape_cast %287 : vector<1x32x32xf32> to vector<32x32xf32>
    %cst_389 = arith.constant dense<0.000000e+00> : vector<32x32xf32>
    %289 = tpu.matmul %286, %288, %cst_389 {dimension_numbers = #tpu.dot_dimension_numbers<[1], [0], [0], [1], [0, 0, 1, 1], [], []>} : vector<32x32xf32>, vector<32x32xf32>, vector<32x32xf32> -> vector<32x32xf32>
    %290 = arith.addf %284, %289 : vector<32x32xf32>
    %c0_390 = arith.constant 0 : index
    %c0_391 = arith.constant 0 : index
    %c1_392 = arith.constant 1 : index
    %c0_393 = arith.constant 0 : index
    %291 = vector.load %arg19[%c0_390, %c0_391, %c1_392, %c0_393] : memref<2x6x6x32xf32, #tpu.memory_space<vmem>>, vector<2x4x4x32xf32>
    %292 = vector.shape_cast %291 : vector<2x4x4x32xf32> to vector<32x32xf32>
    %c1_394 = arith.constant 1 : index
    %c0_395 = arith.constant 0 : index
    %c0_396 = arith.constant 0 : index
    %293 = vector.load %arg13[%c1_394, %c0_395, %c0_396] : memref<9x32x32xf32, #tpu.memory_space<vmem>>, vector<1x32x32xf32>
    %294 = vector.shape_cast %293 : vector<1x32x32xf32> to vector<32x32xf32>
    %cst_397 = arith.constant dense<0.000000e+00> : vector<32x32xf32>
    %295 = tpu.matmul %292, %294, %cst_397 {dimension_numbers = #tpu.dot_dimension_numbers<[1], [0], [0], [1], [0, 0, 1, 1], [], []>} : vector<32x32xf32>, vector<32x32xf32>, vector<32x32xf32> -> vector<32x32xf32>
    %296 = arith.addf %290, %295 : vector<32x32xf32>
    %c0_398 = arith.constant 0 : index
    %c0_399 = arith.constant 0 : index
    %c2_400 = arith.constant 2 : index
    %c0_401 = arith.constant 0 : index
    %297 = vector.load %arg19[%c0_398, %c0_399, %c2_400, %c0_401] : memref<2x6x6x32xf32, #tpu.memory_space<vmem>>, vector<2x4x4x32xf32>
    %298 = vector.shape_cast %297 : vector<2x4x4x32xf32> to vector<32x32xf32>
    %c2_402 = arith.constant 2 : index
    %c0_403 = arith.constant 0 : index
    %c0_404 = arith.constant 0 : index
    %299 = vector.load %arg13[%c2_402, %c0_403, %c0_404] : memref<9x32x32xf32, #tpu.memory_space<vmem>>, vector<1x32x32xf32>
    %300 = vector.shape_cast %299 : vector<1x32x32xf32> to vector<32x32xf32>
    %cst_405 = arith.constant dense<0.000000e+00> : vector<32x32xf32>
    %301 = tpu.matmul %298, %300, %cst_405 {dimension_numbers = #tpu.dot_dimension_numbers<[1], [0], [0], [1], [0, 0, 1, 1], [], []>} : vector<32x32xf32>, vector<32x32xf32>, vector<32x32xf32> -> vector<32x32xf32>
    %302 = arith.addf %296, %301 : vector<32x32xf32>
    %c0_406 = arith.constant 0 : index
    %c1_407 = arith.constant 1 : index
    %c0_408 = arith.constant 0 : index
    %c0_409 = arith.constant 0 : index
    %303 = vector.load %arg19[%c0_406, %c1_407, %c0_408, %c0_409] : memref<2x6x6x32xf32, #tpu.memory_space<vmem>>, vector<2x4x4x32xf32>
    %304 = vector.shape_cast %303 : vector<2x4x4x32xf32> to vector<32x32xf32>
    %c3_410 = arith.constant 3 : index
    %c0_411 = arith.constant 0 : index
    %c0_412 = arith.constant 0 : index
    %305 = vector.load %arg13[%c3_410, %c0_411, %c0_412] : memref<9x32x32xf32, #tpu.memory_space<vmem>>, vector<1x32x32xf32>
    %306 = vector.shape_cast %305 : vector<1x32x32xf32> to vector<32x32xf32>
    %cst_413 = arith.constant dense<0.000000e+00> : vector<32x32xf32>
    %307 = tpu.matmul %304, %306, %cst_413 {dimension_numbers = #tpu.dot_dimension_numbers<[1], [0], [0], [1], [0, 0, 1, 1], [], []>} : vector<32x32xf32>, vector<32x32xf32>, vector<32x32xf32> -> vector<32x32xf32>
    %308 = arith.addf %302, %307 : vector<32x32xf32>
    %c0_414 = arith.constant 0 : index
    %c1_415 = arith.constant 1 : index
    %c1_416 = arith.constant 1 : index
    %c0_417 = arith.constant 0 : index
    %309 = vector.load %arg19[%c0_414, %c1_415, %c1_416, %c0_417] : memref<2x6x6x32xf32, #tpu.memory_space<vmem>>, vector<2x4x4x32xf32>
    %310 = vector.shape_cast %309 : vector<2x4x4x32xf32> to vector<32x32xf32>
    %c4_418 = arith.constant 4 : index
    %c0_419 = arith.constant 0 : index
    %c0_420 = arith.constant 0 : index
    %311 = vector.load %arg13[%c4_418, %c0_419, %c0_420] : memref<9x32x32xf32, #tpu.memory_space<vmem>>, vector<1x32x32xf32>
    %312 = vector.shape_cast %311 : vector<1x32x32xf32> to vector<32x32xf32>
    %cst_421 = arith.constant dense<0.000000e+00> : vector<32x32xf32>
    %313 = tpu.matmul %310, %312, %cst_421 {dimension_numbers = #tpu.dot_dimension_numbers<[1], [0], [0], [1], [0, 0, 1, 1], [], []>} : vector<32x32xf32>, vector<32x32xf32>, vector<32x32xf32> -> vector<32x32xf32>
    %314 = arith.addf %308, %313 : vector<32x32xf32>
    %c0_422 = arith.constant 0 : index
    %c1_423 = arith.constant 1 : index
    %c2_424 = arith.constant 2 : index
    %c0_425 = arith.constant 0 : index
    %315 = vector.load %arg19[%c0_422, %c1_423, %c2_424, %c0_425] : memref<2x6x6x32xf32, #tpu.memory_space<vmem>>, vector<2x4x4x32xf32>
    %316 = vector.shape_cast %315 : vector<2x4x4x32xf32> to vector<32x32xf32>
    %c5_426 = arith.constant 5 : index
    %c0_427 = arith.constant 0 : index
    %c0_428 = arith.constant 0 : index
    %317 = vector.load %arg13[%c5_426, %c0_427, %c0_428] : memref<9x32x32xf32, #tpu.memory_space<vmem>>, vector<1x32x32xf32>
    %318 = vector.shape_cast %317 : vector<1x32x32xf32> to vector<32x32xf32>
    %cst_429 = arith.constant dense<0.000000e+00> : vector<32x32xf32>
    %319 = tpu.matmul %316, %318, %cst_429 {dimension_numbers = #tpu.dot_dimension_numbers<[1], [0], [0], [1], [0, 0, 1, 1], [], []>} : vector<32x32xf32>, vector<32x32xf32>, vector<32x32xf32> -> vector<32x32xf32>
    %320 = arith.addf %314, %319 : vector<32x32xf32>
    %c0_430 = arith.constant 0 : index
    %c2_431 = arith.constant 2 : index
    %c0_432 = arith.constant 0 : index
    %c0_433 = arith.constant 0 : index
    %321 = vector.load %arg19[%c0_430, %c2_431, %c0_432, %c0_433] : memref<2x6x6x32xf32, #tpu.memory_space<vmem>>, vector<2x4x4x32xf32>
    %322 = vector.shape_cast %321 : vector<2x4x4x32xf32> to vector<32x32xf32>
    %c6_434 = arith.constant 6 : index
    %c0_435 = arith.constant 0 : index
    %c0_436 = arith.constant 0 : index
    %323 = vector.load %arg13[%c6_434, %c0_435, %c0_436] : memref<9x32x32xf32, #tpu.memory_space<vmem>>, vector<1x32x32xf32>
    %324 = vector.shape_cast %323 : vector<1x32x32xf32> to vector<32x32xf32>
    %cst_437 = arith.constant dense<0.000000e+00> : vector<32x32xf32>
    %325 = tpu.matmul %322, %324, %cst_437 {dimension_numbers = #tpu.dot_dimension_numbers<[1], [0], [0], [1], [0, 0, 1, 1], [], []>} : vector<32x32xf32>, vector<32x32xf32>, vector<32x32xf32> -> vector<32x32xf32>
    %326 = arith.addf %320, %325 : vector<32x32xf32>
    %c0_438 = arith.constant 0 : index
    %c2_439 = arith.constant 2 : index
    %c1_440 = arith.constant 1 : index
    %c0_441 = arith.constant 0 : index
    %327 = vector.load %arg19[%c0_438, %c2_439, %c1_440, %c0_441] : memref<2x6x6x32xf32, #tpu.memory_space<vmem>>, vector<2x4x4x32xf32>
    %328 = vector.shape_cast %327 : vector<2x4x4x32xf32> to vector<32x32xf32>
    %c7_442 = arith.constant 7 : index
    %c0_443 = arith.constant 0 : index
    %c0_444 = arith.constant 0 : index
    %329 = vector.load %arg13[%c7_442, %c0_443, %c0_444] : memref<9x32x32xf32, #tpu.memory_space<vmem>>, vector<1x32x32xf32>
    %330 = vector.shape_cast %329 : vector<1x32x32xf32> to vector<32x32xf32>
    %cst_445 = arith.constant dense<0.000000e+00> : vector<32x32xf32>
    %331 = tpu.matmul %328, %330, %cst_445 {dimension_numbers = #tpu.dot_dimension_numbers<[1], [0], [0], [1], [0, 0, 1, 1], [], []>} : vector<32x32xf32>, vector<32x32xf32>, vector<32x32xf32> -> vector<32x32xf32>
    %332 = arith.addf %326, %331 : vector<32x32xf32>
    %c0_446 = arith.constant 0 : index
    %c2_447 = arith.constant 2 : index
    %c2_448 = arith.constant 2 : index
    %c0_449 = arith.constant 0 : index
    %333 = vector.load %arg19[%c0_446, %c2_447, %c2_448, %c0_449] : memref<2x6x6x32xf32, #tpu.memory_space<vmem>>, vector<2x4x4x32xf32>
    %334 = vector.shape_cast %333 : vector<2x4x4x32xf32> to vector<32x32xf32>
    %c8_450 = arith.constant 8 : index
    %c0_451 = arith.constant 0 : index
    %c0_452 = arith.constant 0 : index
    %335 = vector.load %arg13[%c8_450, %c0_451, %c0_452] : memref<9x32x32xf32, #tpu.memory_space<vmem>>, vector<1x32x32xf32>
    %336 = vector.shape_cast %335 : vector<1x32x32xf32> to vector<32x32xf32>
    %cst_453 = arith.constant dense<0.000000e+00> : vector<32x32xf32>
    %337 = tpu.matmul %334, %336, %cst_453 {dimension_numbers = #tpu.dot_dimension_numbers<[1], [0], [0], [1], [0, 0, 1, 1], [], []>} : vector<32x32xf32>, vector<32x32xf32>, vector<32x32xf32> -> vector<32x32xf32>
    %338 = arith.addf %332, %337 : vector<32x32xf32>
    %c0_454 = arith.constant 0 : index
    %c0_455 = arith.constant 0 : index
    %339 = vector.load %arg14[%c0_454, %c0_455] : memref<1x32xf32, #tpu.memory_space<vmem>>, vector<1x32xf32>
    %340 = vector.broadcast %339 : vector<1x32xf32> to vector<32x32xf32>
    %341 = arith.mulf %338, %340 : vector<32x32xf32>
    %c0_456 = arith.constant 0 : index
    %c0_457 = arith.constant 0 : index
    %342 = vector.load %arg15[%c0_456, %c0_457] : memref<1x32xf32, #tpu.memory_space<vmem>>, vector<1x32xf32>
    %343 = vector.broadcast %342 : vector<1x32xf32> to vector<32x32xf32>
    %344 = arith.addf %341, %343 : vector<32x32xf32>
    %cst_458 = arith.constant 0.000000e+00 : f32
    %345 = vector.broadcast %cst_458 : f32 to vector<32x32xf32>
    %346 = arith.maximumf %344, %345 : vector<32x32xf32>
    %c0_459 = arith.constant 0 : index
    %c0_460 = arith.constant 0 : index
    %347 = vector.load %arg16[%c0_459, %c0_460] : memref<32x32xf32, #tpu.memory_space<vmem>>, vector<32x32xf32>
    tpu.vector_store %arg16[%c0_459, %c0_460], %346 {strides = array<i32>} : memref<32x32xf32, #tpu.memory_space<vmem>>, vector<32x32xf32>,
    return
  }
}

</mosaic_0001>

<bundles_post_ra>
// kernel: convnet6_forward.1
= control target key start
LH: loop header
LB: loop body
LE: loop exit
PB: predicated region body
PF: predicated region fallthrough
CT: control target
= control target key end

     0   :  { %s20468_s0 = inlined_call_operand.vmem [shape: f32[2,16,16,3], index: 0, kind: input, shape index: {}]   ;;  %s20469_s1 = inlined_call_operand.hbm [shape: f32[9,3,32], index: 1, kind: input, shape index: {}]   ;;  %s20470_s2 = inlined_call_operand.vmem [shape: f32[1,32], index: 2, kind: input, shape index: {}]   ;;  %s20471_s3 = inlined_call_operand.vmem [shape: f32[1,32], index: 3, kind: input, shape index: {}]   ;;  %s20472_s4 = inlined_call_operand.vmem [shape: f32[9,32,32], index: 4, kind: input, shape index: {}]   ;;  %s20473_s5 = inlined_call_operand.vmem [shape: f32[1,32], index: 5, kind: input, shape index: {}]   ;;  %s20474_s6 = inlined_call_operand.vmem [shape: f32[1,32], index: 6, kind: input, shape index: {}]   ;;  %s20475_s7 = inlined_call_operand.vmem [shape: f32[9,32,32], index: 7, kind: input, shape index: {}]   ;;  %s20476_s8 = inlined_call_operand.vmem [shape: f32[1,32], index: 8, kind: input, shape index: {}]   ;;  %s20477_s9 = inlined_call_operand.vmem [shape: f32[1,32], index: 9, kind: input, shape index: {}]   ;;  %s20478_s10 = inlined_call_operand.hbm [shape: f32[9,32,32], index: 10, kind: input, shape index: {}]   ;;  %s20479_s11 = inlined_call_operand.vmem [shape: f32[1,32], index: 11, kind: input, shape index: {}]   ;;  %s20480_s12 = inlined_call_operand.vmem [shape: f32[1,32], index: 12, kind: input, shape index: {}]   ;;  %s20481_s13 = inlined_call_operand.hbm [shape: f32[9,32,32], index: 13, kind: input, shape index: {}]   ;;  %s20482_s14 = inlined_call_operand.vmem [shape: f32[1,32], index: 14, kind: input, shape index: {}]   ;;  %s20483_s15 = inlined_call_operand.vmem [shape: f32[1,32], index: 15, kind: input, shape index: {}]   ;;  %s20484_s16 = inlined_call_operand.hbm [shape: f32[32,32], index: 16, kind: output, shape index: {}]  }
   0x1   :  { %20520 = sst [smem:[#allocation46_spill]] %s20468_s0 }
   0x2   :  { %21 = vsyncpa [#allocation8], 0 }
   0x3   :  { %22 = vsyncpa [#allocation11], 0 }
   0x4   :  { %23 = vsyncpa [#allocation9], 0  ;;  %s17462_s21 = smov [#allocation10]   ;;  %s17368_s25 = scalar_lea.hbm %s20478_s10, 4608 }
   0x5   :  { %s59_s22 = sshll.u32 %s17462_s21, 4  ;;  %p17369_p0 = scmp.ne.s32.totalorder %s20478_s10, %s17368_s25  ;;  %s60_s22 = int_to_ptr.vmem [resolvable:$true] %s59_s22 }
   0x6   :  { %p17372_p1 = scmp.lt.u32.totalorder %s17368_s25, %s20478_s10 }
   0x8   :  { %p17374_p2 = pnand %p17372_p1, %p17369_p0 }
   0xa   :  { %17377 = shalt.err (!%p17374_p2)
}
   0xb   :  { %s17378_s30 = scalar_lea.vmem %s60_s22, 4608  ;;  %p17383_p4 = scmp.lt.s32.totalorder %s60_s22, %s60_s22 }
   0xc   :  { %p17379_p3 = scmp.ne.s32.totalorder %s60_s22, %s17378_s30  ;;  %p17384_p5 = scmp.lt.s32.totalorder %s17378_s30, %s17378_s30 }
   0xe   :  { %p17385_p6 = por %p17384_p5, %p17383_p4 }
  0x10   :  { %p17386_p7 = pnand %p17385_p6, %p17379_p3 }
  0x12   :  { %17389 = shalt.err (!%p17386_p7)
}
  0x13   :  { %s20486_s0 = smov 128   ;;  %s17464_s17 = smov 8  }
  0x14   :  { %65 = dma.hbm_to_vmem [thread:$0]  %s20478_s10, 4608, %s60_s22, [#allocation11], %s20486_s0, %s20486_s0, %s17464_s17  }
  0x15   :  { %s17465_s20 = smov [#allocation7]   ;;  %s17390_s25 = scalar_lea.hbm %s20469_s1, 576 }
  0x16   :  { %s31_s21 = sshll.u32 %s17465_s20, 4  ;;  %p17391_p8 = scmp.ne.s32.totalorder %s20469_s1, %s17390_s25  ;;  %s32_s21 = int_to_ptr.vmem [resolvable:$true] %s31_s21 }
  0x17   :  { %p17394_p9 = scmp.lt.u32.totalorder %s17390_s25, %s20469_s1 }
  0x19   :  { %p17396_p10 = pnand %p17394_p9, %p17391_p8 }
  0x1b   :  { %17399 = shalt.err (!%p17396_p10)
}
  0x1c   :  { %s17400_s30 = scalar_lea.vmem %s32_s21, 576  ;;  %p17405_p12 = scmp.lt.s32.totalorder %s32_s21, %s32_s21 }
  0x1d   :  { %p17401_p11 = scmp.ne.s32.totalorder %s32_s21, %s17400_s30  ;;  %p17406_p13 = scmp.lt.s32.totalorder %s17400_s30, %s17400_s30 }
  0x1f   :  { %p17407_p0 = por %p17406_p13, %p17405_p12 }
  0x21   :  { %p17408_p1 = pnand %p17407_p0, %p17401_p11 }
  0x23   :  { %17411 = shalt.err (!%p17408_p1)
}
  0x24   :  { %s17466_s10 = smov 64   ;;  %s17467_s22 = smov 4  }
  0x25   :  { %37 = dma.hbm_to_vmem [thread:$0]  %s20469_s1, 576, %s32_s21, [#allocation8], %s17466_s10, %s17466_s10, %s17467_s22  }
  0x26   :  { %s17468_s20 = smov [#allocation12]   ;;  %s17412_s26 = scalar_lea.hbm %s20481_s13, 4608 }
  0x27   :  { %s75_s23 = sshll.u32 %s17468_s20, 4  ;;  %p17413_p2 = scmp.ne.s32.totalorder %s20481_s13, %s17412_s26  ;;  %s76_s23 = int_to_ptr.vmem [resolvable:$true] %s75_s23 }
  0x28   :  { %p17416_p3 = scmp.lt.u32.totalorder %s17412_s26, %s20481_s13 }
  0x2a   :  { %p17418_p4 = pnand %p17416_p3, %p17413_p2 }
  0x2c   :  { %17421 = shalt.err (!%p17418_p4)
}
  0x2d   :  { %s17422_s0 = scalar_lea.vmem %s76_s23, 4608  ;;  %p17427_p6 = scmp.lt.s32.totalorder %s76_s23, %s76_s23 }
  0x2e   :  { %p17423_p5 = scmp.ne.s32.totalorder %s76_s23, %s17422_s0  ;;  %p17428_p7 = scmp.lt.s32.totalorder %s17422_s0, %s17422_s0 }
  0x30   :  { %p17429_p8 = por %p17428_p7, %p17427_p6 }
  0x32   :  { %p17430_p9 = pnand %p17429_p8, %p17423_p5 }
  0x34   :  { %17433 = shalt.err (!%p17430_p9)
}
  0x35   :  { %s20521_s1 = smov 128  }
  0x36   :  { %81 = dma.hbm_to_vmem [thread:$0]  %s20481_s13, 4608, %s76_s23, [#allocation11], %s20521_s1, %s20521_s1, %s17464_s17  }
  0x37   :  { %17456 = dma.done.wait [#allocation8], 576  }
  0x38   :  { %17457 = vsyncadd [#allocation8], 4294966720 }
  0x39   :  { %17458 = dma.done.wait [#allocation11], 9216  }
  0x3a   :  { %17459 = vsyncadd [#allocation11], 4294958080  ;;  %vm95_vm0 = vcmask 23552   ;;  %vm98_vm1 = vcmask 17408   ;;  %v20488_v0 = vmov 0.0   ;;  %vm712_vm2 = vcmask 1042432  }
  0x3b   :  { %96 = vst.msk [vmem:[#allocation2] sm:$0xff] %vm95_vm0, %v20488_v0  ;;  %97 = vst.msk [vmem:[#allocation2 + $0x8] sm:$0xff] %vm95_vm0, %v20488_v0  ;;  %v1746_v1 = vld [vmem:[#allocation7 + $0x8] sm:$0x7]  ;;  %v2456_v2 = vld [vmem:[#allocation7 + $0xc] sm:$0x7] }
  0x3c   :  { %100 = vst.msk [vmem:[#allocation2 + $0x18] sm:$0xff] %vm95_vm0, %v20488_v0  ;;  %101 = vst.msk [vmem:[#allocation2 + $0x20] sm:$0xff] %vm95_vm0, %v20488_v0  ;;  %s20522_s22 = sld [smem:[#allocation46_spill]]  ;;  %14869 = vmatprep.subr.msk.mxu0 %vm712_vm2, %v1746_v1  ;;  %v17958_v40 = vld [vmem:[#allocation7 + $0x10] sm:$0x7]  ;;  %vm205_vm3 = vcmask 261120  }
  0x3d   :  { %103 = vst.msk [vmem:[#allocation2 + $0x30] sm:$0xff] %vm95_vm0, %v20488_v0  ;;  %104 = vst.msk [vmem:[#allocation2 + $0x38] sm:$0xff] %vm95_vm0, %v20488_v0  ;;  %14870 = vmatpush3.msk.msra.mxu0 %vm712_vm2, %v1746_v1  ;;  %vm207_vm4 = vcmask 254976   ;;  %vm247_vm5 = vcmask 259072   ;;  %vm9318_vm6 = vcmask 257024  }
  0x3e   :  { %106 = vst.msk [vmem:[#allocation2 + $0x48] sm:$0xff] %vm95_vm0, %v20488_v0  ;;  %107 = vst.msk [vmem:[#allocation2 + $0x50] sm:$0xff] %vm95_vm0, %v20488_v0  ;;  %14967 = vmatprep.subr.msk.mxu0 %vm712_vm2, %v2456_v2 }
  0x3f   :  { %109 = vst.msk [vmem:[#allocation2 + $0x60] sm:$0xff] %vm95_vm0, %v20488_v0  ;;  %110 = vst.msk [vmem:[#allocation2 + $0x68] sm:$0xff] %vm95_vm0, %v20488_v0 }
  0x40   :  { %112 = vst.msk [vmem:[#allocation2 + $0x78] sm:$0xff] %vm95_vm0, %v20488_v0  ;;  %113 = vst.msk [vmem:[#allocation2 + $0x80] sm:$0xff] %vm95_vm0, %v20488_v0 }
  0x41   :  { %115 = vst.msk [vmem:[#allocation2 + $0x90] sm:$0xff] %vm95_vm0, %v20488_v0  ;;  %116 = vst.msk [vmem:[#allocation2 + $0x98] sm:$0xff] %vm95_vm0, %v20488_v0 }
  0x42   :  { %118 = vst.msk [vmem:[#allocation2 + $0xa8] sm:$0xff] %vm95_vm0, %v20488_v0  ;;  %119 = vst.msk [vmem:[#allocation2 + $0xb0] sm:$0xff] %vm95_vm0, %v20488_v0  ;;  %v260_v3 = vld [vmem:[%s20522_s22] sm:$0xff]  ;;  %v261_v6 = vld [vmem:[%s20522_s22 + $0x8] sm:$0xff] }
  0x43   :  { %121 = vst.msk [vmem:[#allocation2 + $0xc0] sm:$0xff] %vm95_vm0, %v20488_v0  ;;  %122 = vst.msk [vmem:[#allocation2 + $0xc8] sm:$0xff] %vm95_vm0, %v20488_v0  ;;  %v1681_v4 = vld [vmem:[#allocation2 + $0x2] sm:$0xff]  ;;  %v262_v7 = vld [vmem:[%s20522_s22 + $0x10] sm:$0xff] }
  0x44   :  { %124 = vst.msk [vmem:[#allocation2 + $0xd8] sm:$0xff] %vm95_vm0, %v20488_v0  ;;  %125 = vst.msk [vmem:[#allocation2 + $0xe0] sm:$0xff] %vm95_vm0, %v20488_v0  ;;  %14871 = vmatprep.mubr.msk.f32.mxu0 %vm95_vm0, %v1681_v4  ;;  %v263_v8 = vld [vmem:[%s20522_s22 + $0x18] sm:$0xff]  ;;  %v264_v9 = vld [vmem:[%s20522_s22 + $0x20] sm:$0xff] }
  0x45   :  { %127 = vst.msk [vmem:[#allocation2 + $0xf0] sm:$0xff] %vm95_vm0, %v20488_v0  ;;  %128 = vst.msk [vmem:[#allocation2 + $0xf8] sm:$0xff] %vm95_vm0, %v20488_v0  ;;  %v265_v10 = vld [vmem:[%s20522_s22 + $0x28] sm:$0xff]  ;;  %v266_v11 = vld [vmem:[%s20522_s22 + $0x30] sm:$0xff] }
  0x46   :  { %130 = vst.msk [vmem:[#allocation2 + $0x108] sm:$0xff] %vm95_vm0, %v20488_v0  ;;  %131 = vst.msk [vmem:[#allocation2 + $0x110] sm:$0xff] %vm95_vm0, %v20488_v0  ;;  %v267_v12 = vld [vmem:[%s20522_s22 + $0x38] sm:$0xff]  ;;  %v268_v13 = vld [vmem:[%s20522_s22 + $0x40] sm:$0xff] }
  0x47   :  { %133 = vst.msk [vmem:[#allocation2 + $0x120] sm:$0xff] %vm95_vm0, %v20488_v0  ;;  %134 = vst.msk [vmem:[#allocation2 + $0x128] sm:$0xff] %vm95_vm0, %v20488_v0  ;;  %v269_v14 = vld [vmem:[%s20522_s22 + $0x48] sm:$0xff]  ;;  %v270_v15 = vld [vmem:[%s20522_s22 + $0x50] sm:$0xff] }
  0x48   :  { %136 = vst.msk [vmem:[#allocation2 + $0x138] sm:$0xff] %vm95_vm0, %v20488_v0  ;;  %137 = vst.msk [vmem:[#allocation2 + $0x140] sm:$0xff] %vm95_vm0, %v20488_v0  ;;  %v271_v16 = vld [vmem:[%s20522_s22 + $0x58] sm:$0xff]  ;;  %v272_v17 = vld [vmem:[%s20522_s22 + $0x60] sm:$0xff] }
  0x49   :  { %139 = vst.msk [vmem:[#allocation2 + $0x150] sm:$0xff] %vm95_vm0, %v20488_v0  ;;  %140 = vst.msk [vmem:[#allocation2 + $0x158] sm:$0xff] %vm95_vm0, %v20488_v0  ;;  %v273_v18 = vld [vmem:[%s20522_s22 + $0x68] sm:$0xff]  ;;  %v274_v19 = vld [vmem:[%s20522_s22 + $0x70] sm:$0xff] }
  0x4a   :  { %142 = vst.msk [vmem:[#allocation2 + $0x168] sm:$0xff] %vm95_vm0, %v20488_v0  ;;  %143 = vst.msk [vmem:[#allocation2 + $0x170] sm:$0xff] %vm95_vm0, %v20488_v0  ;;  %v275_v20 = vld [vmem:[%s20522_s22 + $0x78] sm:$0xff]  ;;  %v276_v21 = vld [vmem:[%s20522_s22 + $0x80] sm:$0xff] }
  0x4b   :  { %145 = vst.msk [vmem:[#allocation2 + $0x180] sm:$0xff] %vm95_vm0, %v20488_v0  ;;  %146 = vst.msk [vmem:[#allocation2 + $0x188] sm:$0xff] %vm95_vm0, %v20488_v0  ;;  %v277_v22 = vld [vmem:[%s20522_s22 + $0x88] sm:$0xff]  ;;  %v278_v23 = vld [vmem:[%s20522_s22 + $0x90] sm:$0xff] }
  0x4c   :  { %148 = vst.msk [vmem:[#allocation2 + $0x198] sm:$0xff] %vm95_vm0, %v20488_v0  ;;  %149 = vst.msk [vmem:[#allocation2 + $0x1a0] sm:$0xff] %vm95_vm0, %v20488_v0  ;;  %v279_v24 = vld [vmem:[%s20522_s22 + $0x98] sm:$0xff]  ;;  %v280_v25 = vld [vmem:[%s20522_s22 + $0xa0] sm:$0xff] }
  0x4d   :  { %151 = vst.msk [vmem:[#allocation2 + $0x1b0] sm:$0xff] %vm95_vm0, %v20488_v0  ;;  %152 = vst.msk [vmem:[#allocation2 + $0x1b8] sm:$0xff] %vm95_vm0, %v20488_v0  ;;  %v281_v26 = vld [vmem:[%s20522_s22 + $0xa8] sm:$0xff]  ;;  %v282_v27 = vld [vmem:[%s20522_s22 + $0xb0] sm:$0xff] }
  0x4e   :  { %154 = vst.msk [vmem:[#allocation2 + $0x1c8] sm:$0xff] %vm95_vm0, %v20488_v0  ;;  %155 = vst.msk [vmem:[#allocation2 + $0x1d0] sm:$0xff] %vm95_vm0, %v20488_v0  ;;  %v283_v30 = vld [vmem:[%s20522_s22 + $0xb8] sm:$0xff]  ;;  %v284_v32 = vld [vmem:[%s20522_s22 + $0xc0] sm:$0xff] }
  0x4f   :  { %157 = vst.msk [vmem:[#allocation2 + $0x1e0] sm:$0xff] %vm95_vm0, %v20488_v0  ;;  %158 = vst.msk [vmem:[#allocation2 + $0x1e8] sm:$0xff] %vm95_vm0, %v20488_v0  ;;  %v285_v37 = vld [vmem:[%s20522_s22 + $0xc8] sm:$0xff]  ;;  %v286_v38 = vld [vmem:[%s20522_s22 + $0xd0] sm:$0xff] }
  0x50   :  { %160 = vst.msk [vmem:[#allocation2 + $0x1f8] sm:$0xff] %vm95_vm0, %v20488_v0  ;;  %161 = vst.msk [vmem:[#allocation2 + $0x200] sm:$0xff] %vm95_vm0, %v20488_v0  ;;  %v287_v39 = vld [vmem:[%s20522_s22 + $0xd8] sm:$0xff]  ;;  %v288_v47 = vld [vmem:[%s20522_s22 + $0xe0] sm:$0xff] }
  0x51   :  { %163 = vst.msk [vmem:[#allocation2 + $0x210] sm:$0xff] %vm95_vm0, %v20488_v0  ;;  %164 = vst.msk [vmem:[#allocation2 + $0x218] sm:$0xff] %vm95_vm0, %v20488_v0  ;;  %v289_v49 = vld [vmem:[%s20522_s22 + $0xe8] sm:$0xff]  ;;  %v290_v50 = vld [vmem:[%s20522_s22 + $0xf0] sm:$0xff] }
  0x52   :  { %166 = vst.msk [vmem:[#allocation2 + $0x228] sm:$0xff] %vm95_vm0, %v20488_v0  ;;  %167 = vst.msk [vmem:[#allocation2 + $0x230] sm:$0xff] %vm95_vm0, %v20488_v0  ;;  %v291_v51 = vld [vmem:[%s20522_s22 + $0xf8] sm:$0xff]  ;;  %v292_v53 = vld [vmem:[%s20522_s22 + $0x100] sm:$0xff] }
  0x53   :  { %169 = vst.msk [vmem:[#allocation2 + $0x240] sm:$0xff] %vm95_vm0, %v20488_v0  ;;  %170 = vst.msk [vmem:[#allocation2 + $0x248] sm:$0xff] %vm95_vm0, %v20488_v0  ;;  %v293_v54 = vld [vmem:[%s20522_s22 + $0x108] sm:$0xff]  ;;  %v294_v55 = vld [vmem:[%s20522_s22 + $0x110] sm:$0xff] }
  0x54   :  { %172 = vst.msk [vmem:[#allocation2 + $0x258] sm:$0xff] %vm95_vm0, %v20488_v0  ;;  %173 = vst.msk [vmem:[#allocation2 + $0x260] sm:$0xff] %vm95_vm0, %v20488_v0  ;;  %v295_v56 = vld [vmem:[%s20522_s22 + $0x118] sm:$0xff]  ;;  %v296_v57 = vld [vmem:[%s20522_s22 + $0x120] sm:$0xff] }
  0x55   :  { %175 = vst.msk [vmem:[#allocation2 + $0x270] sm:$0xff] %vm95_vm0, %v20488_v0  ;;  %176 = vst.msk [vmem:[#allocation2 + $0x278] sm:$0xff] %vm95_vm0, %v20488_v0  ;;  %v297_v58 = vld [vmem:[%s20522_s22 + $0x128] sm:$0xff]  ;;  %v298_v59 = vld [vmem:[%s20522_s22 + $0x130] sm:$0xff] }
  0x56   :  { %178 = vst.msk [vmem:[#allocation2 + $0x288] sm:$0xff] %vm95_vm0, %v20488_v0  ;;  %179 = vst.msk [vmem:[#allocation2 + $0x290] sm:$0xff] %vm95_vm0, %v20488_v0  ;;  %v299_v60 = vld [vmem:[%s20522_s22 + $0x138] sm:$0xff]  ;;  %v300_v61 = vld [vmem:[%s20522_s22 + $0x140] sm:$0xff] }
  0x57   :  { %181 = vst.msk [vmem:[#allocation2 + $0x2a0] sm:$0xff] %vm95_vm0, %v20488_v0  ;;  %182 = vst.msk [vmem:[#allocation2 + $0x2a8] sm:$0xff] %vm95_vm0, %v20488_v0  ;;  %v301_v63 = vld [vmem:[%s20522_s22 + $0x148] sm:$0xff]  ;;  %v302_v1 = vld [vmem:[%s20522_s22 + $0x150] sm:$0xff] }
  0x58   :  { %184 = vst.msk [vmem:[#allocation2 + $0x2b8] sm:$0xff] %vm95_vm0, %v20488_v0  ;;  %185 = vst.msk [vmem:[#allocation2 + $0x2c0] sm:$0xff] %vm95_vm0, %v20488_v0  ;;  %v305_v4 = vld [vmem:[%s20522_s22 + $0x168] sm:$0xff] }
  0x59   :  { %187 = vst.msk [vmem:[#allocation2 + $0x2d0] sm:$0xff] %vm95_vm0, %v20488_v0  ;;  %188 = vst.msk [vmem:[#allocation2 + $0x2d8] sm:$0xff] %vm95_vm0, %v20488_v0 }
  0x5a   :  { %190 = vst.msk [vmem:[#allocation2 + $0x2e8] sm:$0xff] %vm95_vm0, %v20488_v0  ;;  %191 = vst.msk [vmem:[#allocation2 + $0x2f0] sm:$0xff] %vm95_vm0, %v20488_v0 }
  0x5b   :  { %193 = vst.msk [vmem:[#allocation2 + $0x300] sm:$0xff] %vm95_vm0, %v20488_v0  ;;  %194 = vst.msk [vmem:[#allocation2 + $0x308] sm:$0xff] %vm95_vm0, %v20488_v0 }
  0x5c   :  { %196 = vst.msk [vmem:[#allocation2 + $0x318] sm:$0xff] %vm95_vm0, %v20488_v0  ;;  %197 = vst.msk [vmem:[#allocation2 + $0x320] sm:$0xff] %vm95_vm0, %v20488_v0 }
  0x5d   :  { %199 = vst.msk [vmem:[#allocation2 + $0x330] sm:$0xff] %vm95_vm0, %v20488_v0  ;;  %200 = vst.msk [vmem:[#allocation2 + $0x338] sm:$0xff] %vm95_vm0, %v20488_v0 }
  0x5e   :  { %202 = vst.msk [vmem:[#allocation2 + $0x348] sm:$0xff] %vm95_vm0, %v20488_v0  ;;  %203 = vst.msk [vmem:[#allocation2 + $0x350] sm:$0xff] %vm95_vm0, %v20488_v0 }
  0x5f   :  { %99 = vst.msk [vmem:[#allocation2 + $0x10] sm:$0x3] %vm98_vm1, %v20488_v0  ;;  %102 = vst.msk [vmem:[#allocation2 + $0x28] sm:$0x3] %vm98_vm1, %v20488_v0 }
  0x60   :  { %105 = vst.msk [vmem:[#allocation2 + $0x40] sm:$0x3] %vm98_vm1, %v20488_v0  ;;  %108 = vst.msk [vmem:[#allocation2 + $0x58] sm:$0x3] %vm98_vm1, %v20488_v0 }
  0x61   :  { %111 = vst.msk [vmem:[#allocation2 + $0x70] sm:$0x3] %vm98_vm1, %v20488_v0  ;;  %114 = vst.msk [vmem:[#allocation2 + $0x88] sm:$0x3] %vm98_vm1, %v20488_v0 }
  0x62   :  { %117 = vst.msk [vmem:[#allocation2 + $0xa0] sm:$0x3] %vm98_vm1, %v20488_v0  ;;  %120 = vst.msk [vmem:[#allocation2 + $0xb8] sm:$0x3] %vm98_vm1, %v20488_v0 }
  0x63   :  { %123 = vst.msk [vmem:[#allocation2 + $0xd0] sm:$0x3] %vm98_vm1, %v20488_v0  ;;  %126 = vst.msk [vmem:[#allocation2 + $0xe8] sm:$0x3] %vm98_vm1, %v20488_v0 }
  0x64   :  { %129 = vst.msk [vmem:[#allocation2 + $0x100] sm:$0x3] %vm98_vm1, %v20488_v0  ;;  %132 = vst.msk [vmem:[#allocation2 + $0x118] sm:$0x3] %vm98_vm1, %v20488_v0 }
  0x65   :  { %135 = vst.msk [vmem:[#allocation2 + $0x130] sm:$0x3] %vm98_vm1, %v20488_v0  ;;  %138 = vst.msk [vmem:[#allocation2 + $0x148] sm:$0x3] %vm98_vm1, %v20488_v0 }
  0x66   :  { %141 = vst.msk [vmem:[#allocation2 + $0x160] sm:$0x3] %vm98_vm1, %v20488_v0  ;;  %144 = vst.msk [vmem:[#allocation2 + $0x178] sm:$0x3] %vm98_vm1, %v20488_v0  ;;  %v1682_v5 = vld [vmem:[#allocation2 + $0xa] sm:$0xff] }
  0x67   :  { %147 = vst.msk [vmem:[#allocation2 + $0x190] sm:$0x3] %vm98_vm1, %v20488_v0  ;;  %150 = vst.msk [vmem:[#allocation2 + $0x1a8] sm:$0x3] %vm98_vm1, %v20488_v0  ;;  %14872 = vmatmul.mubr.msk.f32.vlgmr.msra.gmra.mrb[0].mxu0 %vm95_vm0, %v1682_v5  ;;  %v306_v5 = vld [vmem:[%s20522_s22 + $0x170] sm:$0xff] }
  0x68   :  { %153 = vst.msk [vmem:[#allocation2 + $0x1c0] sm:$0x3] %vm98_vm1, %v20488_v0  ;;  %156 = vst.msk [vmem:[#allocation2 + $0x1d8] sm:$0x3] %vm98_vm1, %v20488_v0  ;;  %14968 = vmatpush3.msk.msra.mxu0 %vm712_vm2, %v2456_v2  ;;  %v303_v2 = vld [vmem:[%s20522_s22 + $0x158] sm:$0xff] }
  0x69   :  { %159 = vst.msk [vmem:[#allocation2 + $0x1f0] sm:$0x3] %vm98_vm1, %v20488_v0  ;;  %162 = vst.msk [vmem:[#allocation2 + $0x208] sm:$0x3] %vm98_vm1, %v20488_v0  ;;  %15065 = vmatprep.subr.msk.mxu0 %vm712_vm2, %v17958_v40 }
  0x6a   :  { %165 = vst.msk [vmem:[#allocation2 + $0x220] sm:$0x3] %vm98_vm1, %v20488_v0  ;;  %168 = vst.msk [vmem:[#allocation2 + $0x238] sm:$0x3] %vm98_vm1, %v20488_v0 }
  0x6b   :  { %171 = vst.msk [vmem:[#allocation2 + $0x250] sm:$0x3] %vm98_vm1, %v20488_v0  ;;  %174 = vst.msk [vmem:[#allocation2 + $0x268] sm:$0x3] %vm98_vm1, %v20488_v0 }
  0x6c   :  { %177 = vst.msk [vmem:[#allocation2 + $0x280] sm:$0x3] %vm98_vm1, %v20488_v0  ;;  %180 = vst.msk [vmem:[#allocation2 + $0x298] sm:$0x3] %vm98_vm1, %v20488_v0 }
  0x6d   :  { %183 = vst.msk [vmem:[#allocation2 + $0x2b0] sm:$0x3] %vm98_vm1, %v20488_v0  ;;  %186 = vst.msk [vmem:[#allocation2 + $0x2c8] sm:$0x3] %vm98_vm1, %v20488_v0 }
  0x6e   :  { %189 = vst.msk [vmem:[#allocation2 + $0x2e0] sm:$0x3] %vm98_vm1, %v20488_v0  ;;  %192 = vst.msk [vmem:[#allocation2 + $0x2f8] sm:$0x3] %vm98_vm1, %v20488_v0 }
  0x6f   :  { %195 = vst.msk [vmem:[#allocation2 + $0x310] sm:$0x3] %vm98_vm1, %v20488_v0  ;;  %198 = vst.msk [vmem:[#allocation2 + $0x328] sm:$0x3] %vm98_vm1, %v20488_v0 }
  0x70   :  { %201 = vst.msk [vmem:[#allocation2 + $0x340] sm:$0x3] %vm98_vm1, %v20488_v0  ;;  %204 = vst.msk [vmem:[#allocation2 + $0x358] sm:$0x3] %vm98_vm1, %v20488_v0 }
  0x71   :  { %325 = vst.msk [vmem:[#allocation2 + $0x19] sm:$0xff] %vm95_vm0, %v260_v3  ;;  %326 = vst.msk [vmem:[#allocation2 + $0x21] sm:$0xff] %vm95_vm0, %v261_v6  ;;  %v304_v3 = vld [vmem:[%s20522_s22 + $0x160] sm:$0xff]  ;;  %v307_v6 = vld [vmem:[%s20522_s22 + $0x178] sm:$0xff] }
  0x72   :  { %327 = vst.msk [vmem:[#allocation2 + $0x31] sm:$0xff] %vm95_vm0, %v262_v7  ;;  %328 = vst.msk [vmem:[#allocation2 + $0x39] sm:$0xff] %vm95_vm0, %v263_v8  ;;  %v308_v7 = vld [vmem:[%s20522_s22 + $0x180] sm:$0xff]  ;;  %v309_v8 = vld [vmem:[%s20522_s22 + $0x188] sm:$0xff] }
  0x73   :  { %329 = vst.msk [vmem:[#allocation2 + $0x49] sm:$0xff] %vm95_vm0, %v264_v9  ;;  %330 = vst.msk [vmem:[#allocation2 + $0x51] sm:$0xff] %vm95_vm0, %v265_v10  ;;  %v310_v10 = vld [vmem:[%s20522_s22 + $0x190] sm:$0xff] }
  0x74   :  { %331 = vst.msk [vmem:[#allocation2 + $0x61] sm:$0xff] %vm95_vm0, %v266_v11  ;;  %332 = vst.msk [vmem:[#allocation2 + $0x69] sm:$0xff] %vm95_vm0, %v267_v12  ;;  %v311_v11 = vld [vmem:[%s20522_s22 + $0x198] sm:$0xff] }
  0x75   :  { %333 = vst.msk [vmem:[#allocation2 + $0x79] sm:$0xff] %vm95_vm0, %v268_v13  ;;  %334 = vst.msk [vmem:[#allocation2 + $0x81] sm:$0xff] %vm95_vm0, %v269_v14 }
  0x76   :  { %335 = vst.msk [vmem:[#allocation2 + $0x91] sm:$0xff] %vm95_vm0, %v270_v15  ;;  %336 = vst.msk [vmem:[#allocation2 + $0x99] sm:$0xff] %vm95_vm0, %v271_v16  ;;  %v312_v16 = vld [vmem:[%s20522_s22 + $0x1a0] sm:$0xff] }
  0x77   :  { %337 = vst.msk [vmem:[#allocation2 + $0xa9] sm:$0xff] %vm95_vm0, %v272_v17  ;;  %338 = vst.msk [vmem:[#allocation2 + $0xb1] sm:$0xff] %vm95_vm0, %v273_v18  ;;  %v313_v17 = vld [vmem:[%s20522_s22 + $0x1a8] sm:$0xff]  ;;  %v314_v18 = vld [vmem:[%s20522_s22 + $0x1b0] sm:$0xff] }
  0x78   :  { %339 = vst.msk [vmem:[#allocation2 + $0xc1] sm:$0xff] %vm95_vm0, %v274_v19  ;;  %340 = vst.msk [vmem:[#allocation2 + $0xc9] sm:$0xff] %vm95_vm0, %v275_v20  ;;  %v17909_v28 = vld [vmem:[#allocation2 + $0x1a] sm:$0xff]  ;;  %v17911_v29 = vld [vmem:[#allocation2 + $0x22] sm:$0xff] }
  0x79   :  { %341 = vst.msk [vmem:[#allocation2 + $0xd9] sm:$0xff] %vm95_vm0, %v276_v21  ;;  %342 = vst.msk [vmem:[#allocation2 + $0xe1] sm:$0xff] %vm95_vm0, %v277_v22  ;;  %14874 = vmatprep.mubr.msk.f32.mxu0 %vm95_vm0, %v17909_v28  ;;  %v17921_v31 = vld [vmem:[#allocation2 + $0x32] sm:$0xff]  ;;  %v17932_v33 = vld [vmem:[#allocation2 + $0x3a] sm:$0xff] }
  0x7a   :  { %343 = vst.msk [vmem:[#allocation2 + $0xf1] sm:$0xff] %vm95_vm0, %v278_v23  ;;  %344 = vst.msk [vmem:[#allocation2 + $0xf9] sm:$0xff] %vm95_vm0, %v279_v24  ;;  %14875 = vmatmul.mubr.msk.f32.gmra.mrb[2].mxu0 %vm95_vm0, %v17911_v29  ;;  %v17934_v34 = vld [vmem:[#allocation2 + $0x4a] sm:$0xff]  ;;  %v17940_v35 = vld [vmem:[#allocation2 + $0x52] sm:$0xff] }
  0x7b   :  { %345 = vst.msk [vmem:[#allocation2 + $0x109] sm:$0xff] %vm95_vm0, %v280_v25  ;;  %346 = vst.msk [vmem:[#allocation2 + $0x111] sm:$0xff] %vm95_vm0, %v281_v26  ;;  %14877 = vmatprep.mubr.msk.f32.mxu0 %vm95_vm0, %v17921_v31  ;;  %v17942_v36 = vld [vmem:[#allocation2 + $0x62] sm:$0xff]  ;;  %v17962_v41 = vld [vmem:[#allocation2 + $0x6a] sm:$0xff] }
  0x7c   :  { %347 = vst.msk [vmem:[#allocation2 + $0x121] sm:$0xff] %vm95_vm0, %v282_v27  ;;  %348 = vst.msk [vmem:[#allocation2 + $0x129] sm:$0xff] %vm95_vm0, %v283_v30  ;;  %v17966_v42 = vld [vmem:[#allocation2 + $0x7a] sm:$0xff]  ;;  %v17972_v43 = vld [vmem:[#allocation2 + $0x82] sm:$0xff] }
  0x7d   :  { %349 = vst.msk [vmem:[#allocation2 + $0x139] sm:$0xff] %vm95_vm0, %v284_v32  ;;  %350 = vst.msk [vmem:[#allocation2 + $0x141] sm:$0xff] %vm95_vm0, %v285_v37  ;;  %v17974_v44 = vld [vmem:[#allocation2 + $0x92] sm:$0xff]  ;;  %v17980_v45 = vld [vmem:[#allocation2 + $0x9a] sm:$0xff] }
  0x7e   :  { %14878 = vmatmul.mubr.msk.f32.gmra.mrb[4].mxu0 %vm95_vm0, %v17932_v33  ;;  %351 = vst.msk [vmem:[#allocation2 + $0x151] sm:$0xff] %vm95_vm0, %v286_v38  ;;  %352 = vst.msk [vmem:[#allocation2 + $0x159] sm:$0xff] %vm95_vm0, %v287_v39  ;;  %v17982_v46 = vld [vmem:[#allocation2 + $0xaa] sm:$0xff]  ;;  %v17987_v48 = vld [vmem:[#allocation2 + $0xb2] sm:$0xff] }
  0x7f   :  { %14880 = vmatprep.mubr.msk.f32.mxu0 %vm95_vm0, %v17934_v34  ;;  %353 = vst.msk [vmem:[#allocation2 + $0x169] sm:$0xff] %vm95_vm0, %v288_v47  ;;  %v18001_v52 = vld [vmem:[#allocation2 + $0xc2] sm:$0xff]  ;;  %354 = vst.msk [vmem:[#allocation2 + $0x171] sm:$0xff] %vm95_vm0, %v289_v49  ;;  %v18041_v62 = vld [vmem:[#allocation2 + $0xca] sm:$0xff] }
  0x80   :  { %355 = vst.msk [vmem:[#allocation2 + $0x181] sm:$0xff] %vm95_vm0, %v290_v50  ;;  %356 = vst.msk [vmem:[#allocation2 + $0x189] sm:$0xff] %vm95_vm0, %v291_v51  ;;  %v18083_v9 = vld [vmem:[#allocation2 + $0xda] sm:$0xff]  ;;  %v18100_v12 = vld [vmem:[#allocation2 + $0xe2] sm:$0xff] }
  0x81   :  { %357 = vst.msk [vmem:[#allocation2 + $0x1c9] sm:$0xff] %vm95_vm0, %v292_v53  ;;  %358 = vst.msk [vmem:[#allocation2 + $0x1d1] sm:$0xff] %vm95_vm0, %v293_v54  ;;  %v18102_v13 = vld [vmem:[#allocation2 + $0xf2] sm:$0xff]  ;;  %v18108_v14 = vld [vmem:[#allocation2 + $0xfa] sm:$0xff] }
  0x82   :  { %14881 = vmatmul.mubr.msk.f32.gmra.mrb[6].mxu0 %vm95_vm0, %v17940_v35  ;;  %359 = vst.msk [vmem:[#allocation2 + $0x1e1] sm:$0xff] %vm95_vm0, %v294_v55  ;;  %360 = vst.msk [vmem:[#allocation2 + $0x1e9] sm:$0xff] %vm95_vm0, %v295_v56  ;;  %v18110_v15 = vld [vmem:[#allocation2 + $0x10a] sm:$0xff]  ;;  %v315_v19 = vld [vmem:[%s20522_s22 + $0x1b8] sm:$0xff] }
  0x83   :  { %14883 = vmatprep.mubr.msk.f32.mxu0 %vm95_vm0, %v17942_v36  ;;  %361 = vst.msk [vmem:[#allocation2 + $0x1f9] sm:$0xff] %vm95_vm0, %v296_v57  ;;  %362 = vst.msk [vmem:[#allocation2 + $0x201] sm:$0xff] %vm95_vm0, %v297_v58  ;;  %v316_v20 = vld [vmem:[%s20522_s22 + $0x1c0] sm:$0xff]  ;;  %v317_v21 = vld [vmem:[%s20522_s22 + $0x1c8] sm:$0xff] }
  0x84   :  { %363 = vst.msk [vmem:[#allocation2 + $0x211] sm:$0xff] %vm95_vm0, %v298_v59  ;;  %364 = vst.msk [vmem:[#allocation2 + $0x219] sm:$0xff] %vm95_vm0, %v299_v60  ;;  %v318_v22 = vld [vmem:[%s20522_s22 + $0x1d0] sm:$0xff]  ;;  %v319_v24 = vld [vmem:[%s20522_s22 + $0x1d8] sm:$0xff] }
  0x85   :  { %365 = vst.msk [vmem:[#allocation2 + $0x229] sm:$0xff] %vm95_vm0, %v300_v61  ;;  %366 = vst.msk [vmem:[#allocation2 + $0x231] sm:$0xff] %vm95_vm0, %v301_v63  ;;  %v18141_v23 = vld [vmem:[#allocation2 + $0x112] sm:$0xff]  ;;  %v18149_v25 = vld [vmem:[#allocation2 + $0x122] sm:$0xff] }
  0x86   :  { %14884 = vmatmul.mubr.msk.f32.gmra.mrb[8].mxu0 %vm95_vm0, %v17962_v41  ;;  %367 = vst.msk [vmem:[#allocation2 + $0x241] sm:$0xff] %vm95_vm0, %v302_v1  ;;  %368 = vst.msk [vmem:[#allocation2 + $0x249] sm:$0xff] %vm95_vm0, %v303_v2  ;;  %v320_v26 = vld [vmem:[%s20522_s22 + $0x1e0] sm:$0xff]  ;;  %v321_v27 = vld [vmem:[%s20522_s22 + $0x1e8] sm:$0xff] }
  0x87   :  { %14886 = vmatprep.mubr.msk.f32.mxu0 %vm95_vm0, %v17966_v42  ;;  %369 = vst.msk [vmem:[#allocation2 + $0x259] sm:$0xff] %vm95_vm0, %v304_v3  ;;  %370 = vst.msk [vmem:[#allocation2 + $0x261] sm:$0xff] %vm95_vm0, %v305_v4  ;;  %v18164_v30 = vld [vmem:[#allocation2 + $0x12a] sm:$0xff]  ;;  %v18166_v32 = vld [vmem:[#allocation2 + $0x13a] sm:$0xff] }
  0x88   :  { %371 = vst.msk [vmem:[#allocation2 + $0x271] sm:$0xff] %vm95_vm0, %v306_v5  ;;  %372 = vst.msk [vmem:[#allocation2 + $0x279] sm:$0xff] %vm95_vm0, %v307_v6  ;;  %v322_v37 = vld [vmem:[%s20522_s22 + $0x1f0] sm:$0xff]  ;;  %v18176_v38 = vld [vmem:[#allocation2 + $0x142] sm:$0xff] }
  0x89   :  { %373 = vst.msk [vmem:[#allocation2 + $0x289] sm:$0xff] %vm95_vm0, %v308_v7  ;;  %374 = vst.msk [vmem:[#allocation2 + $0x291] sm:$0xff] %vm95_vm0, %v309_v8  ;;  %v323_v39 = vld [vmem:[%s20522_s22 + $0x1f8] sm:$0xff]  ;;  %v2392_v51 = vld [vmem:[#allocation2 + $0x20] sm:$0xff] }
  0x8a   :  { %14887 = vmatmul.mubr.msk.f32.gmra.mrb[10].mxu0 %vm95_vm0, %v17972_v43  ;;  %375 = vst.msk [vmem:[#allocation2 + $0x2a1] sm:$0xff] %vm95_vm0, %v310_v10  ;;  %376 = vst.msk [vmem:[#allocation2 + $0x2a9] sm:$0xff] %vm95_vm0, %v311_v11  ;;  %v18181_v47 = vld [vmem:[#allocation2 + $0x152] sm:$0xff]  ;;  %v18188_v49 = vld [vmem:[#allocation2 + $0x15a] sm:$0xff] }
  0x8b   :  { %14889 = vmatprep.mubr.msk.f32.mxu0 %vm95_vm0, %v17974_v44  ;;  %377 = vst.msk [vmem:[#allocation2 + $0x2b9] sm:$0xff] %vm95_vm0, %v312_v16  ;;  %378 = vst.msk [vmem:[#allocation2 + $0x2c1] sm:$0xff] %vm95_vm0, %v313_v17  ;;  %v2391_v50 = vld [vmem:[#allocation2 + $0x18] sm:$0xff]  ;;  %v2393_v53 = vld [vmem:[#allocation2 + $0x30] sm:$0xff] }
  0x8c   :  { %379 = vst.msk [vmem:[#allocation2 + $0x2d1] sm:$0xff] %vm95_vm0, %v314_v18  ;;  %380 = vst.msk [vmem:[#allocation2 + $0x2d9] sm:$0xff] %vm95_vm0, %v315_v19  ;;  %v18193_v54 = vld [vmem:[#allocation7 + $0x14] sm:$0x7]  ;;  %v2394_v55 = vld [vmem:[#allocation2 + $0x38] sm:$0xff] }
  0x8d   :  { %381 = vst.msk [vmem:[#allocation2 + $0x2e9] sm:$0xff] %vm95_vm0, %v316_v20  ;;  %382 = vst.msk [vmem:[#allocation2 + $0x2f1] sm:$0xff] %vm95_vm0, %v317_v21  ;;  %v2395_v56 = vld [vmem:[#allocation2 + $0x48] sm:$0xff]  ;;  %v2396_v57 = vld [vmem:[#allocation2 + $0x50] sm:$0xff] }
  0x8e   :  { %14890 = vmatmul.mubr.msk.f32.gmra.mrb[12].mxu0 %vm95_vm0, %v17980_v45  ;;  %383 = vst.msk [vmem:[#allocation2 + $0x301] sm:$0xff] %vm95_vm0, %v318_v22  ;;  %384 = vst.msk [vmem:[#allocation2 + $0x309] sm:$0xff] %vm95_vm0, %v319_v24  ;;  %v2397_v58 = vld [vmem:[#allocation2 + $0x60] sm:$0xff]  ;;  %v2398_v59 = vld [vmem:[#allocation2 + $0x68] sm:$0xff] }
  0x8f   :  { %14892 = vmatprep.mubr.msk.f32.mxu0 %vm95_vm0, %v17982_v46  ;;  %385 = vst.msk [vmem:[#allocation2 + $0x319] sm:$0xff] %vm95_vm0, %v320_v26  ;;  %386 = vst.msk [vmem:[#allocation2 + $0x321] sm:$0xff] %vm95_vm0, %v321_v27  ;;  %v2399_v60 = vld [vmem:[#allocation2 + $0x78] sm:$0xff]  ;;  %v2401_v61 = vld [vmem:[#allocation2 + $0x90] sm:$0xff] }
  0x90   :  { %387 = vst.msk [vmem:[#allocation2 + $0x331] sm:$0xff] %vm95_vm0, %v322_v37  ;;  %388 = vst.msk [vmem:[#allocation2 + $0x339] sm:$0xff] %vm95_vm0, %v323_v39  ;;  %v2402_v63 = vld [vmem:[#allocation2 + $0x98] sm:$0xff]  ;;  %v2403_v1 = vld [vmem:[#allocation2 + $0xa8] sm:$0xff] }
  0x91   :  { %v2404_v2 = vld [vmem:[#allocation2 + $0xb0] sm:$0xff]  ;;  %v2405_v3 = vld [vmem:[#allocation2 + $0xc0] sm:$0xff]  ;;  %v2406_v4 = vld [vmem:[#allocation2 + $0xc8] sm:$0xff] }
  0x92   :  { %14893 = vmatmul.mubr.msk.f32.gmra.mrb[14].mxu0 %vm95_vm0, %v17987_v48  ;;  %v2407_v5 = vld [vmem:[#allocation2 + $0xd8] sm:$0xff]  ;;  %v2408_v6 = vld [vmem:[#allocation2 + $0xe0] sm:$0xff]  ;;  %v2409_v7 = vld [vmem:[#allocation2 + $0xf0] sm:$0xff] }
  0x93   :  { %14895 = vmatprep.mubr.msk.f32.mxu0 %vm95_vm0, %v18001_v52  ;;  %v2410_v8 = vld [vmem:[#allocation2 + $0xf8] sm:$0xff]  ;;  %v2411_v10 = vld [vmem:[#allocation2 + $0x108] sm:$0xff]  ;;  %v2412_v11 = vld [vmem:[#allocation2 + $0x110] sm:$0xff] }
  0x94   :  { %v2413_v16 = vld [vmem:[#allocation2 + $0x120] sm:$0xff]  ;;  %v2414_v17 = vld [vmem:[#allocation2 + $0x128] sm:$0xff]  ;;  %v2415_v18 = vld [vmem:[#allocation2 + $0x138] sm:$0xff] }
  0x95   :  { %v2416_v19 = vld [vmem:[#allocation2 + $0x140] sm:$0xff]  ;;  %v2417_v20 = vld [vmem:[#allocation2 + $0x150] sm:$0xff]  ;;  %v2418_v21 = vld [vmem:[#allocation2 + $0x158] sm:$0xff] }
  0x96   :  { %14896 = vmatmul.mubr.msk.f32.gmra.mrb[16].mxu0 %vm95_vm0, %v18041_v62  ;;  %v2419_v22 = vld [vmem:[#allocation2 + $0x168] sm:$0xff]  ;;  %v2420_v24 = vld [vmem:[#allocation2 + $0x170] sm:$0xff]  ;;  %v2421_v26 = vld [vmem:[#allocation2 + $0x180] sm:$0xff] }
  0x97   :  { %14898 = vmatprep.mubr.msk.f32.mxu0 %vm95_vm0, %v18083_v9  ;;  %v2422_v27 = vld [vmem:[#allocation2 + $0x188] sm:$0xff]  ;;  %v2424_v39 = vld [vmem:[#allocation2 + $0x1d0] sm:$0xff] }
  0x98   :  { %v2423_v37 = vld [vmem:[#allocation2 + $0x1c8] sm:$0xff] }
  0x99   :  { %v18718_v0 = vld [vmem:[#allocation2 + $0x28a] sm:$0xff] }
  0x9a   :  { %14899 = vmatmul.mubr.msk.f32.gmra.mrb[18].mxu0 %vm95_vm0, %v18100_v12 }
  0x9b   :  { %14901 = vmatprep.mubr.msk.f32.mxu0 %vm95_vm0, %v18102_v13 }
  0x9e   :  { %14902 = vmatmul.mubr.msk.f32.gmra.mrb[20].mxu0 %vm95_vm0, %v18108_v14 }
  0x9f   :  { %14904 = vmatprep.mubr.msk.f32.mxu0 %vm95_vm0, %v18110_v15 }
  0xa2   :  { %14905 = vmatmul.mubr.msk.f32.gmra.mrb[22].mxu0 %vm95_vm0, %v18141_v23 }
  0xa3   :  { %14907 = vmatprep.mubr.msk.f32.mxu0 %vm95_vm0, %v18149_v25 }
  0xa6   :  { %14908 = vmatmul.mubr.msk.f32.gmra.mrb[24].mxu0 %vm95_vm0, %v18164_v30 }
  0xa7   :  { %14910 = vmatprep.mubr.msk.f32.mxu0 %vm95_vm0, %v18166_v32 }
  0xaa   :  { %14911 = vmatmul.mubr.msk.f32.gmra.mrb[26].mxu0 %vm95_vm0, %v18176_v38 }
  0xab   :  { %14913 = vmatprep.mubr.msk.f32.mxu0 %vm95_vm0, %v18181_v47 }
  0xae   :  { %14914 = vmatmul.mubr.msk.f32.gmra.mrb[28].mxu0 %vm95_vm0, %v18188_v49 }
  0xaf   :  { %14969 = vmatprep.mubr.msk.f32.mxu0 %vm95_vm0, %v2391_v50  ;;  %v2425_v50 = vld [vmem:[#allocation2 + $0x1e0] sm:$0xff] }
  0xb2   :  { %14970 = vmatmul.mubr.msk.f32.vlgmr.msra.gmra.mrb[0].mxu0 %vm95_vm0, %v2392_v51  ;;  %v2426_v51 = vld [vmem:[#allocation2 + $0x1e8] sm:$0xff] }
  0xb3   :  { %15066 = vmatpush3.msk.msra.mxu0 %vm712_vm2, %v17958_v40  ;;  %14972 = vmatprep.mubr.msk.f32.mxu0 %vm95_vm0, %v2393_v53  ;;  %v2400_v40 = vld [vmem:[#allocation2 + $0x80] sm:$0xff]  ;;  %v2427_v53 = vld [vmem:[#allocation2 + $0x1f8] sm:$0xff] }
  0xb4   :  { %15163 = vmatprep.subr.msk.mxu0 %vm712_vm2, %v18193_v54 }
  0xb6   :  { %14973 = vmatmul.mubr.msk.f32.gmra.mrb[2].mxu0 %vm95_vm0, %v2394_v55  ;;  %v2428_v55 = vld [vmem:[#allocation2 + $0x200] sm:$0xff] }
  0xb7   :  { %14975 = vmatprep.mubr.msk.f32.mxu0 %vm95_vm0, %v2395_v56  ;;  %v2429_v56 = vld [vmem:[#allocation2 + $0x210] sm:$0xff] }
  0xba   :  { %14976 = vmatmul.mubr.msk.f32.gmra.mrb[4].mxu0 %vm95_vm0, %v2396_v57  ;;  %v2430_v57 = vld [vmem:[#allocation2 + $0x218] sm:$0xff] }
  0xbb   :  { %14978 = vmatprep.mubr.msk.f32.mxu0 %vm95_vm0, %v2397_v58  ;;  %v2431_v58 = vld [vmem:[#allocation2 + $0x228] sm:$0xff] }
  0xbe   :  { %14979 = vmatmul.mubr.msk.f32.gmra.mrb[6].mxu0 %vm95_vm0, %v2398_v59  ;;  %v2432_v59 = vld [vmem:[#allocation2 + $0x230] sm:$0xff] }
  0xbf   :  { %14981 = vmatprep.mubr.msk.f32.mxu0 %vm95_vm0, %v2399_v60  ;;  %v2433_v60 = vld [vmem:[#allocation2 + $0x240] sm:$0xff] }
  0xc2   :  { %14982 = vmatmul.mubr.msk.f32.gmra.mrb[8].mxu0 %vm95_vm0, %v2400_v40  ;;  %v2434_v40 = vld [vmem:[#allocation2 + $0x248] sm:$0xff] }
  0xc3   :  { %14984 = vmatprep.mubr.msk.f32.mxu0 %vm95_vm0, %v2401_v61  ;;  %v2435_v61 = vld [vmem:[#allocation2 + $0x258] sm:$0xff] }
  0xc6   :  { %14985 = vmatmul.mubr.msk.f32.gmra.mrb[10].mxu0 %vm95_vm0, %v2402_v63  ;;  %v2436_v63 = vld [vmem:[#allocation2 + $0x260] sm:$0xff] }
  0xc7   :  { %14987 = vmatprep.mubr.msk.f32.mxu0 %vm95_vm0, %v2403_v1  ;;  %v2437_v1 = vld [vmem:[#allocation2 + $0x270] sm:$0xff] }
  0xca   :  { %14988 = vmatmul.mubr.msk.f32.gmra.mrb[12].mxu0 %vm95_vm0, %v2404_v2  ;;  %v2438_v2 = vld [vmem:[#allocation2 + $0x278] sm:$0xff] }
  0xcb   :  { %14990 = vmatprep.mubr.msk.f32.mxu0 %vm95_vm0, %v2405_v3  ;;  %v2439_v3 = vld [vmem:[#allocation2 + $0x288] sm:$0xff] }
  0xce   :  { %14991 = vmatmul.mubr.msk.f32.gmra.mrb[14].mxu0 %vm95_vm0, %v2406_v4  ;;  %v2440_v4 = vld [vmem:[#allocation2 + $0x290] sm:$0xff] }
  0xcf   :  { %14993 = vmatprep.mubr.msk.f32.mxu0 %vm95_vm0, %v2407_v5  ;;  %v2441_v5 = vld [vmem:[#allocation2 + $0x2a0] sm:$0xff] }
  0xd2   :  { %14994 = vmatmul.mubr.msk.f32.gmra.mrb[16].mxu0 %vm95_vm0, %v2408_v6  ;;  %v2442_v6 = vld [vmem:[#allocation2 + $0x2a8] sm:$0xff] }
  0xd3   :  { %14996 = vmatprep.mubr.msk.f32.mxu0 %vm95_vm0, %v2409_v7  ;;  %v2443_v7 = vld [vmem:[#allocation2 + $0x2b8] sm:$0xff] }
  0xd6   :  { %14997 = vmatmul.mubr.msk.f32.gmra.mrb[18].mxu0 %vm95_vm0, %v2410_v8  ;;  %v2444_v8 = vld [vmem:[#allocation2 + $0x2c0] sm:$0xff] }
  0xd7   :  { %14999 = vmatprep.mubr.msk.f32.mxu0 %vm95_vm0, %v2411_v10  ;;  %v2445_v10 = vld [vmem:[#allocation2 + $0x2d0] sm:$0xff] }
  0xda   :  { %15000 = vmatmul.mubr.msk.f32.gmra.mrb[20].mxu0 %vm95_vm0, %v2412_v11  ;;  %v2446_v11 = vld [vmem:[#allocation2 + $0x2d8] sm:$0xff] }
  0xdb   :  { %15002 = vmatprep.mubr.msk.f32.mxu0 %vm95_vm0, %v2413_v16  ;;  %v2447_v16 = vld [vmem:[#allocation2 + $0x2e8] sm:$0xff] }
  0xde   :  { %15003 = vmatmul.mubr.msk.f32.gmra.mrb[22].mxu0 %vm95_vm0, %v2414_v17  ;;  %v2448_v17 = vld [vmem:[#allocation2 + $0x2f0] sm:$0xff] }
  0xdf   :  { %15005 = vmatprep.mubr.msk.f32.mxu0 %vm95_vm0, %v2415_v18  ;;  %v2449_v18 = vld [vmem:[#allocation2 + $0x300] sm:$0xff] }
  0xe2   :  { %15006 = vmatmul.mubr.msk.f32.gmra.mrb[24].mxu0 %vm95_vm0, %v2416_v19  ;;  %v2450_v19 = vld [vmem:[#allocation2 + $0x308] sm:$0xff] }
  0xe3   :  { %15008 = vmatprep.mubr.msk.f32.mxu0 %vm95_vm0, %v2417_v20  ;;  %v2451_v20 = vld [vmem:[#allocation2 + $0x318] sm:$0xff] }
  0xe6   :  { %15009 = vmatmul.mubr.msk.f32.gmra.mrb[26].mxu0 %vm95_vm0, %v2418_v21  ;;  %v519_v21 = vld [vmem:[#allocation7 + $0x4] sm:$0x7] }
  0xe7   :  { %15011 = vmatprep.mubr.msk.f32.mxu0 %vm95_vm0, %v2419_v22  ;;  %v454_v22 = vld [vmem:[#allocation2 + $0x1] sm:$0xff]  ;;  %14673 = vmatprep.subr.msk.mxu1 %vm712_vm2, %v519_v21 }
  0xe8   :  { %14674 = vmatpush3.msk.msra.mxu1 %vm712_vm2, %v519_v21  ;;  %14675 = vmatprep.mubr.msk.f32.mxu1 %vm95_vm0, %v454_v22  ;;  %v3129_v21 = vld [vmem:[#allocation2 + $0x169] sm:$0xff]  ;;  %v3130_v22 = vld [vmem:[#allocation2 + $0x171] sm:$0xff] }
  0xea   :  { %15012 = vmatmul.mubr.msk.f32.gmra.mrb[28].mxu0 %vm95_vm0, %v2420_v24  ;;  %v455_v24 = vld [vmem:[#allocation2 + $0x9] sm:$0xff] }
  0xeb   :  { %15014 = vmatprep.mubr.msk.f32.mxu0 %vm95_vm0, %v2421_v26  ;;  %v2452_v26 = vld [vmem:[#allocation2 + $0x320] sm:$0xff]  ;;  %14676 = vmatmul.mubr.msk.f32.vlgmr.msra.gmra.mrb[0].mxu1 %vm95_vm0, %v455_v24  ;;  %v486_v24 = vld [vmem:[#allocation2 + $0x1b1] sm:$0xff] }
  0xee   :  { %15015 = vmatmul.mubr.msk.f32.gmra.mrb[30].mxu0 %vm95_vm0, %v2422_v27  ;;  %v2453_v27 = vld [vmem:[#allocation2 + $0x330] sm:$0xff] }
  0xef   :  { %15017 = vmatprep.mubr.msk.f32.mxu0 %vm95_vm0, %v2423_v37  ;;  %v3101_v37 = vld [vmem:[#allocation2 + $0x19] sm:$0xff] }
  0xf0   :  { %14678 = vmatprep.mubr.msk.f32.mxu1 %vm95_vm0, %v3101_v37 }
  0xf2   :  { %15018 = vmatmul.mubr.msk.f32.gmra.mrb[32].mxu0 %vm95_vm0, %v2424_v39  ;;  %v2454_v39 = vld [vmem:[#allocation2 + $0x338] sm:$0xff] }
  0xf3   :  { %15020 = vmatprep.mubr.msk.f32.mxu0 %vm95_vm0, %v2425_v50  ;;  %v3102_v50 = vld [vmem:[#allocation2 + $0x21] sm:$0xff] }
  0xf4   :  { %14679 = vmatmul.mubr.msk.f32.gmra.mrb[2].mxu1 %vm95_vm0, %v3102_v50 }
  0xf6   :  { %15021 = vmatmul.mubr.msk.f32.gmra.mrb[34].mxu0 %vm95_vm0, %v2426_v51  ;;  %v3103_v51 = vld [vmem:[#allocation2 + $0x31] sm:$0xff] }
  0xf7   :  { %15023 = vmatprep.mubr.msk.f32.mxu0 %vm95_vm0, %v2427_v53  ;;  %14681 = vmatprep.mubr.msk.f32.mxu1 %vm95_vm0, %v3103_v51  ;;  %v3104_v53 = vld [vmem:[#allocation2 + $0x39] sm:$0xff] }
  0xf8   :  { %14682 = vmatmul.mubr.msk.f32.gmra.mrb[4].mxu1 %vm95_vm0, %v3104_v53 }
  0xfa   :  { %15024 = vmatmul.mubr.msk.f32.gmra.mrb[36].mxu0 %vm95_vm0, %v2428_v55  ;;  %v3105_v55 = vld [vmem:[#allocation2 + $0x49] sm:$0xff] }
  0xfb   :  { %15026 = vmatprep.mubr.msk.f32.mxu0 %vm95_vm0, %v2429_v56  ;;  %v18271_v56 = vld [vmem:[#allocation7 + $0x18] sm:$0x7]  ;;  %14684 = vmatprep.mubr.msk.f32.mxu1 %vm95_vm0, %v3105_v55 }
  0xfe   :  { %15027 = vmatmul.mubr.msk.f32.gmra.mrb[38].mxu0 %vm95_vm0, %v2430_v57  ;;  %v3106_v57 = vld [vmem:[#allocation2 + $0x51] sm:$0xff] }
  0xff   :  { %15029 = vmatprep.mubr.msk.f32.mxu0 %vm95_vm0, %v2431_v58  ;;  %v3107_v58 = vld [vmem:[#allocation2 + $0x61] sm:$0xff]  ;;  %14685 = vmatmul.mubr.msk.f32.gmra.mrb[6].mxu1 %vm95_vm0, %v3106_v57 }
 0x100   :  { %14687 = vmatprep.mubr.msk.f32.mxu1 %vm95_vm0, %v3107_v58 }
 0x102   :  { %15030 = vmatmul.mubr.msk.f32.gmra.mrb[40].mxu0 %vm95_vm0, %v2432_v59  ;;  %v3108_v59 = vld [vmem:[#allocation2 + $0x69] sm:$0xff] }
 0x103   :  { %15032 = vmatprep.mubr.msk.f32.mxu0 %vm95_vm0, %v2433_v60  ;;  %v3109_v60 = vld [vmem:[#allocation2 + $0x79] sm:$0xff]  ;;  %14688 = vmatmul.mubr.msk.f32.gmra.mrb[8].mxu1 %vm95_vm0, %v3108_v59 }
 0x104   :  { %14690 = vmatprep.mubr.msk.f32.mxu1 %vm95_vm0, %v3109_v60 }
 0x106   :  { %15033 = vmatmul.mubr.msk.f32.gmra.mrb[42].mxu0 %vm95_vm0, %v2434_v40  ;;  %v3111_v40 = vld [vmem:[#allocation2 + $0x91] sm:$0xff] }
 0x107   :  { %15035 = vmatprep.mubr.msk.f32.mxu0 %vm95_vm0, %v2435_v61  ;;  %v3112_v61 = vld [vmem:[#allocation2 + $0x99] sm:$0xff] }
 0x10a   :  { %15036 = vmatmul.mubr.msk.f32.gmra.mrb[44].mxu0 %vm95_vm0, %v2436_v63  ;;  %v3113_v63 = vld [vmem:[#allocation2 + $0xa9] sm:$0xff] }
 0x10b   :  { %15038 = vmatprep.mubr.msk.f32.mxu0 %vm95_vm0, %v2437_v1  ;;  %v3114_v1 = vld [vmem:[#allocation2 + $0xb1] sm:$0xff] }
 0x10e   :  { %15039 = vmatmul.mubr.msk.f32.gmra.mrb[46].mxu0 %vm95_vm0, %v2438_v2  ;;  %v3115_v2 = vld [vmem:[#allocation2 + $0xc1] sm:$0xff] }
 0x10f   :  { %15041 = vmatprep.mubr.msk.f32.mxu0 %vm95_vm0, %v2439_v3  ;;  %v3116_v3 = vld [vmem:[#allocation2 + $0xc9] sm:$0xff] }
 0x112   :  { %15042 = vmatmul.mubr.msk.f32.gmra.mrb[48].mxu0 %vm95_vm0, %v2440_v4  ;;  %v3117_v4 = vld [vmem:[#allocation2 + $0xd9] sm:$0xff] }
 0x113   :  { %15044 = vmatprep.mubr.msk.f32.mxu0 %vm95_vm0, %v2441_v5  ;;  %v3118_v5 = vld [vmem:[#allocation2 + $0xe1] sm:$0xff] }
 0x116   :  { %15045 = vmatmul.mubr.msk.f32.gmra.mrb[50].mxu0 %vm95_vm0, %v2442_v6  ;;  %v3119_v6 = vld [vmem:[#allocation2 + $0xf1] sm:$0xff] }
 0x117   :  { %15047 = vmatprep.mubr.msk.f32.mxu0 %vm95_vm0, %v2443_v7  ;;  %v3120_v7 = vld [vmem:[#allocation2 + $0xf9] sm:$0xff] }
 0x11a   :  { %15048 = vmatmul.mubr.msk.f32.gmra.mrb[52].mxu0 %vm95_vm0, %v2444_v8  ;;  %v3121_v8 = vld [vmem:[#allocation2 + $0x109] sm:$0xff] }
 0x11b   :  { %15050 = vmatprep.mubr.msk.f32.mxu0 %vm95_vm0, %v2445_v10  ;;  %v3122_v10 = vld [vmem:[#allocation2 + $0x111] sm:$0xff] }
 0x11e   :  { %15051 = vmatmul.mubr.msk.f32.gmra.mrb[54].mxu0 %vm95_vm0, %v2446_v11  ;;  %v3123_v11 = vld [vmem:[#allocation2 + $0x121] sm:$0xff] }
 0x11f   :  { %15053 = vmatprep.mubr.msk.f32.mxu0 %vm95_vm0, %v2447_v16  ;;  %v3124_v16 = vld [vmem:[#allocation2 + $0x129] sm:$0xff] }
 0x122   :  { %15054 = vmatmul.mubr.msk.f32.gmra.mrb[56].mxu0 %vm95_vm0, %v2448_v17  ;;  %v3125_v17 = vld [vmem:[#allocation2 + $0x139] sm:$0xff] }
 0x123   :  { %15056 = vmatprep.mubr.msk.f32.mxu0 %vm95_vm0, %v2449_v18  ;;  %v3126_v18 = vld [vmem:[#allocation2 + $0x141] sm:$0xff] }
 0x126   :  { %15057 = vmatmul.mubr.msk.f32.gmra.mrb[58].mxu0 %vm95_vm0, %v2450_v19  ;;  %v3127_v19 = vld [vmem:[#allocation2 + $0x151] sm:$0xff] }
 0x127   :  { %15059 = vmatprep.mubr.msk.f32.mxu0 %vm95_vm0, %v2451_v20  ;;  %v3128_v20 = vld [vmem:[#allocation2 + $0x159] sm:$0xff] }
 0x12a   :  { %15060 = vmatmul.mubr.msk.f32.gmra.mrb[60].mxu0 %vm95_vm0, %v2452_v26  ;;  %v487_v26 = vld [vmem:[#allocation2 + $0x1b9] sm:$0xff] }
 0x12b   :  { %15062 = vmatprep.mubr.msk.f32.mxu0 %vm95_vm0, %v2453_v27  ;;  %v3131_v27 = vld [vmem:[#allocation2 + $0x181] sm:$0xff] }
 0x12e   :  { %15063 = vmatmul.mubr.msk.f32.gmra.mrb[62].mxu0 %vm95_vm0, %v2454_v39  ;;  %v3132_v39 = vld [vmem:[#allocation2 + $0x189] sm:$0xff] }
 0x12f   :  { %15067 = vmatprep.mubr.msk.f32.mxu0 %vm95_vm0, %v3101_v37  ;;  %v3133_v37 = vld [vmem:[#allocation2 + $0x1c9] sm:$0xff] }
 0x132   :  { %15068 = vmatmul.mubr.msk.f32.vlgmr.msra.gmra.mrb[0].mxu0 %vm95_vm0, %v3102_v50  ;;  %v3134_v50 = vld [vmem:[#allocation2 + $0x1d1] sm:$0xff] }
 0x133   :  { %15164 = vmatpush3.msk.msra.mxu0 %vm712_vm2, %v18193_v54  ;;  %15070 = vmatprep.mubr.msk.f32.mxu0 %vm95_vm0, %v3103_v51  ;;  %v3110_v54 = vld [vmem:[#allocation2 + $0x81] sm:$0xff] }
 0x134   :  { %15261 = vmatprep.subr.msk.mxu0 %vm712_vm2, %v18271_v56  ;;  %14691 = vmatmul.mubr.msk.f32.gmra.mrb[10].mxu1 %vm95_vm0, %v3110_v54  ;;  %v3135_v51 = vld [vmem:[#allocation2 + $0x1e1] sm:$0xff] }
 0x135   :  { %14693 = vmatprep.mubr.msk.f32.mxu1 %vm95_vm0, %v3111_v40 }
 0x136   :  { %15071 = vmatmul.mubr.msk.f32.gmra.mrb[2].mxu0 %vm95_vm0, %v3104_v53  ;;  %v3136_v53 = vld [vmem:[#allocation2 + $0x1e9] sm:$0xff] }
 0x137   :  { %15073 = vmatprep.mubr.msk.f32.mxu0 %vm95_vm0, %v3105_v55  ;;  %v3137_v55 = vld [vmem:[#allocation2 + $0x1f9] sm:$0xff] }
 0x138   :  { %14694 = vmatmul.mubr.msk.f32.gmra.mrb[12].mxu1 %vm95_vm0, %v3112_v61 }
 0x139   :  { %14696 = vmatprep.mubr.msk.f32.mxu1 %vm95_vm0, %v3113_v63 }
 0x13a   :  { %15074 = vmatmul.mubr.msk.f32.gmra.mrb[4].mxu0 %vm95_vm0, %v3106_v57  ;;  %v3138_v57 = vld [vmem:[#allocation2 + $0x201] sm:$0xff] }
 0x13b   :  { %15076 = vmatprep.mubr.msk.f32.mxu0 %vm95_vm0, %v3107_v58  ;;  %v3139_v58 = vld [vmem:[#allocation2 + $0x211] sm:$0xff] }
 0x13c   :  { %14697 = vmatmul.mubr.msk.f32.gmra.mrb[14].mxu1 %vm95_vm0, %v3114_v1 }
 0x13d   :  { %14699 = vmatprep.mubr.msk.f32.mxu1 %vm95_vm0, %v3115_v2 }
 0x13e   :  { %15077 = vmatmul.mubr.msk.f32.gmra.mrb[6].mxu0 %vm95_vm0, %v3108_v59  ;;  %v3140_v59 = vld [vmem:[#allocation2 + $0x219] sm:$0xff] }
 0x13f   :  { %15079 = vmatprep.mubr.msk.f32.mxu0 %vm95_vm0, %v3109_v60  ;;  %v3141_v60 = vld [vmem:[#allocation2 + $0x229] sm:$0xff] }
 0x140   :  { %14700 = vmatmul.mubr.msk.f32.gmra.mrb[16].mxu1 %vm95_vm0, %v3116_v3 }
 0x141   :  { %14702 = vmatprep.mubr.msk.f32.mxu1 %vm95_vm0, %v3117_v4 }
 0x142   :  { %15080 = vmatmul.mubr.msk.f32.gmra.mrb[8].mxu0 %vm95_vm0, %v3110_v54  ;;  %v3142_v54 = vld [vmem:[#allocation2 + $0x231] sm:$0xff] }
 0x143   :  { %15082 = vmatprep.mubr.msk.f32.mxu0 %vm95_vm0, %v3111_v40  ;;  %v3143_v40 = vld [vmem:[#allocation2 + $0x241] sm:$0xff] }
 0x144   :  { %14703 = vmatmul.mubr.msk.f32.gmra.mrb[18].mxu1 %vm95_vm0, %v3118_v5 }
 0x145   :  { %14705 = vmatprep.mubr.msk.f32.mxu1 %vm95_vm0, %v3119_v6 }
 0x146   :  { %15083 = vmatmul.mubr.msk.f32.gmra.mrb[10].mxu0 %vm95_vm0, %v3112_v61  ;;  %v3144_v61 = vld [vmem:[#allocation2 + $0x249] sm:$0xff] }
 0x147   :  { %15085 = vmatprep.mubr.msk.f32.mxu0 %vm95_vm0, %v3113_v63  ;;  %v3145_v63 = vld [vmem:[#allocation2 + $0x259] sm:$0xff] }
 0x148   :  { %14706 = vmatmul.mubr.msk.f32.gmra.mrb[20].mxu1 %vm95_vm0, %v3120_v7 }
 0x149   :  { %14708 = vmatprep.mubr.msk.f32.mxu1 %vm95_vm0, %v3121_v8 }
 0x14a   :  { %15086 = vmatmul.mubr.msk.f32.gmra.mrb[12].mxu0 %vm95_vm0, %v3114_v1  ;;  %v3146_v1 = vld [vmem:[#allocation2 + $0x261] sm:$0xff] }
 0x14b   :  { %15088 = vmatprep.mubr.msk.f32.mxu0 %vm95_vm0, %v3115_v2  ;;  %v3147_v2 = vld [vmem:[#allocation2 + $0x271] sm:$0xff] }
 0x14c   :  { %14709 = vmatmul.mubr.msk.f32.gmra.mrb[22].mxu1 %vm95_vm0, %v3122_v10 }
 0x14d   :  { %14711 = vmatprep.mubr.msk.f32.mxu1 %vm95_vm0, %v3123_v11 }
 0x14e   :  { %15089 = vmatmul.mubr.msk.f32.gmra.mrb[14].mxu0 %vm95_vm0, %v3116_v3  ;;  %v3148_v3 = vld [vmem:[#allocation2 + $0x279] sm:$0xff] }
 0x14f   :  { %15091 = vmatprep.mubr.msk.f32.mxu0 %vm95_vm0, %v3117_v4  ;;  %v3149_v4 = vld [vmem:[#allocation2 + $0x289] sm:$0xff] }
 0x150   :  { %14712 = vmatmul.mubr.msk.f32.gmra.mrb[24].mxu1 %vm95_vm0, %v3124_v16 }
 0x151   :  { %14714 = vmatprep.mubr.msk.f32.mxu1 %vm95_vm0, %v3125_v17 }
 0x152   :  { %15092 = vmatmul.mubr.msk.f32.gmra.mrb[16].mxu0 %vm95_vm0, %v3118_v5  ;;  %v3150_v5 = vld [vmem:[#allocation2 + $0x291] sm:$0xff] }
 0x153   :  { %15094 = vmatprep.mubr.msk.f32.mxu0 %vm95_vm0, %v3119_v6  ;;  %v3151_v6 = vld [vmem:[#allocation2 + $0x2a1] sm:$0xff] }
 0x154   :  { %14715 = vmatmul.mubr.msk.f32.gmra.mrb[26].mxu1 %vm95_vm0, %v3126_v18 }
 0x155   :  { %14717 = vmatprep.mubr.msk.f32.mxu1 %vm95_vm0, %v3127_v19 }
 0x156   :  { %15095 = vmatmul.mubr.msk.f32.gmra.mrb[18].mxu0 %vm95_vm0, %v3120_v7  ;;  %v3152_v7 = vld [vmem:[#allocation2 + $0x2a9] sm:$0xff] }
 0x157   :  { %15097 = vmatprep.mubr.msk.f32.mxu0 %vm95_vm0, %v3121_v8  ;;  %v3153_v8 = vld [vmem:[#allocation2 + $0x2b9] sm:$0xff] }
 0x158   :  { %14718 = vmatmul.mubr.msk.f32.gmra.mrb[28].mxu1 %vm95_vm0, %v3128_v20 }
 0x159   :  { %14720 = vmatprep.mubr.msk.f32.mxu1 %vm95_vm0, %v3129_v21 }
 0x15a   :  { %15098 = vmatmul.mubr.msk.f32.gmra.mrb[20].mxu0 %vm95_vm0, %v3122_v10  ;;  %v3154_v10 = vld [vmem:[#allocation2 + $0x2c1] sm:$0xff] }
 0x15b   :  { %15100 = vmatprep.mubr.msk.f32.mxu0 %vm95_vm0, %v3123_v11  ;;  %v3155_v11 = vld [vmem:[#allocation2 + $0x2d1] sm:$0xff] }
 0x15c   :  { %14721 = vmatmul.mubr.msk.f32.gmra.mrb[30].mxu1 %vm95_vm0, %v3130_v22 }
 0x15d   :  { %14723 = vmatprep.mubr.msk.f32.mxu1 %vm95_vm0, %v486_v24  ;;  %v453_v24 = vld [vmem:[#allocation7] sm:$0x7] }
 0x15e   :  { %15101 = vmatmul.mubr.msk.f32.gmra.mrb[22].mxu0 %vm95_vm0, %v3124_v16  ;;  %v3156_v16 = vld [vmem:[#allocation2 + $0x2d9] sm:$0xff]  ;;  %14771 = vmatprep.subr.msk.mxu1 %vm712_vm2, %v453_v24 }
 0x15f   :  { %15103 = vmatprep.mubr.msk.f32.mxu0 %vm95_vm0, %v3125_v17  ;;  %v3157_v17 = vld [vmem:[#allocation2 + $0x2e9] sm:$0xff]  ;;  %14772 = vmatpush3.msk.msra.mxu1 %vm712_vm2, %v453_v24 }
 0x160   :  { %14724 = vmatmul.mubr.msk.f32.gmra.mrb[32].mxu1 %vm95_vm0, %v487_v26  ;;  %v389_v26 = vld [vmem:[#allocation2] sm:$0xff]  ;;  %v18662_v24 = vld [vmem:[#allocation2 + $0x248] sm:$0xff] }
 0x161   :  { %14726 = vmatprep.mubr.msk.f32.mxu1 %vm95_vm0, %v3133_v37  ;;  %20533 = vst [vmem:[#allocation27_spill] sm:$0xff] %v18662_v24 }
 0x162   :  { %15104 = vmatmul.mubr.msk.f32.gmra.mrb[24].mxu0 %vm95_vm0, %v3126_v18  ;;  %v3158_v18 = vld [vmem:[#allocation2 + $0x2f1] sm:$0xff] }
 0x163   :  { %15106 = vmatprep.mubr.msk.f32.mxu0 %vm95_vm0, %v3127_v19  ;;  %v3159_v19 = vld [vmem:[#allocation2 + $0x301] sm:$0xff] }
 0x164   :  { %14727 = vmatmul.mubr.msk.f32.gmra.mrb[34].mxu1 %vm95_vm0, %v3134_v50 }
 0x165   :  { %14729 = vmatprep.mubr.msk.f32.mxu1 %vm95_vm0, %v3135_v51 }
 0x166   :  { %15107 = vmatmul.mubr.msk.f32.gmra.mrb[26].mxu0 %vm95_vm0, %v3128_v20  ;;  %v3160_v20 = vld [vmem:[#allocation2 + $0x309] sm:$0xff] }
 0x167   :  { %15109 = vmatprep.mubr.msk.f32.mxu0 %vm95_vm0, %v3129_v21  ;;  %v3161_v21 = vld [vmem:[#allocation2 + $0x319] sm:$0xff] }
 0x168   :  { %14730 = vmatmul.mubr.msk.f32.gmra.mrb[36].mxu1 %vm95_vm0, %v3136_v53 }
 0x169   :  { %14732 = vmatprep.mubr.msk.f32.mxu1 %vm95_vm0, %v3137_v55 }
 0x16a   :  { %15110 = vmatmul.mubr.msk.f32.gmra.mrb[28].mxu0 %vm95_vm0, %v3130_v22  ;;  %v3162_v22 = vld [vmem:[#allocation2 + $0x321] sm:$0xff] }
 0x16b   :  { %15112 = vmatprep.mubr.msk.f32.mxu0 %vm95_vm0, %v3131_v27  ;;  %v390_v27 = vld [vmem:[#allocation2 + $0x8] sm:$0xff] }
 0x16c   :  { %14733 = vmatmul.mubr.msk.f32.gmra.mrb[38].mxu1 %vm95_vm0, %v3138_v57 }
 0x16d   :  { %14735 = vmatprep.mubr.msk.f32.mxu1 %vm95_vm0, %v3139_v58 }
 0x16e   :  { %15113 = vmatmul.mubr.msk.f32.gmra.mrb[30].mxu0 %vm95_vm0, %v3132_v39  ;;  %v17364_v39 = vld [vmem:[#allocation7 + $0x8] sm:$0x7] }
 0x16f   :  { %15115 = vmatprep.mubr.msk.f32.mxu0 %vm95_vm0, %v3133_v37  ;;  %v3163_v37 = vld [vmem:[#allocation2 + $0x331] sm:$0xff]  ;;  %16509 = vmatprep.subr.msk.mxu1 %vm712_vm2, %v17364_v39 }
 0x170   :  { %14736 = vmatmul.mubr.msk.f32.gmra.mrb[40].mxu1 %vm95_vm0, %v3140_v59 }
 0x171   :  { %14738 = vmatprep.mubr.msk.f32.mxu1 %vm95_vm0, %v3141_v60 }
 0x172   :  { %15116 = vmatmul.mubr.msk.f32.gmra.mrb[32].mxu0 %vm95_vm0, %v3134_v50  ;;  %v391_v50 = vld [vmem:[#allocation2 + $0x18] sm:$0xff] }
 0x173   :  { %15118 = vmatprep.mubr.msk.f32.mxu0 %vm95_vm0, %v3135_v51  ;;  %v392_v51 = vld [vmem:[#allocation2 + $0x20] sm:$0xff] }
 0x174   :  { %14739 = vmatmul.mubr.msk.f32.gmra.mrb[42].mxu1 %vm95_vm0, %v3142_v54 }
 0x175   :  { %14741 = vmatprep.mubr.msk.f32.mxu1 %vm95_vm0, %v3143_v40 }
 0x176   :  { %15119 = vmatmul.mubr.msk.f32.gmra.mrb[34].mxu0 %vm95_vm0, %v3136_v53  ;;  %v3164_v53 = vld [vmem:[#allocation2 + $0x339] sm:$0xff] }
 0x177   :  { %15121 = vmatprep.mubr.msk.f32.mxu0 %vm95_vm0, %v3137_v55  ;;  %v18406_v55 = vld [vmem:[#allocation2 + $0x30] sm:$0xff] }
 0x178   :  { %14742 = vmatmul.mubr.msk.f32.gmra.mrb[44].mxu1 %vm95_vm0, %v3144_v61 }
 0x179   :  { %14744 = vmatprep.mubr.msk.f32.mxu1 %vm95_vm0, %v3145_v63 }
 0x17a   :  { %15122 = vmatmul.mubr.msk.f32.gmra.mrb[36].mxu0 %vm95_vm0, %v3138_v57  ;;  %v18408_v57 = vld [vmem:[#allocation2 + $0x38] sm:$0xff] }
 0x17b   :  { %15124 = vmatprep.mubr.msk.f32.mxu0 %vm95_vm0, %v3139_v58  ;;  %v18416_v58 = vld [vmem:[#allocation7 + $0x1c] sm:$0x7] }
 0x17c   :  { %14745 = vmatmul.mubr.msk.f32.gmra.mrb[46].mxu1 %vm95_vm0, %v3146_v1 }
 0x17d   :  { %14747 = vmatprep.mubr.msk.f32.mxu1 %vm95_vm0, %v3147_v2 }
 0x17e   :  { %15125 = vmatmul.mubr.msk.f32.gmra.mrb[38].mxu0 %vm95_vm0, %v3140_v59  ;;  %v18424_v59 = vld [vmem:[#allocation2 + $0x48] sm:$0xff] }
 0x17f   :  { %15127 = vmatprep.mubr.msk.f32.mxu0 %vm95_vm0, %v3141_v60  ;;  %v18450_v60 = vld [vmem:[#allocation2 + $0x80] sm:$0xff] }
 0x180   :  { %14748 = vmatmul.mubr.msk.f32.gmra.mrb[48].mxu1 %vm95_vm0, %v3148_v3 }
 0x181   :  { %14750 = vmatprep.mubr.msk.f32.mxu1 %vm95_vm0, %v3149_v4 }
 0x182   :  { %15128 = vmatmul.mubr.msk.f32.gmra.mrb[40].mxu0 %vm95_vm0, %v3142_v54  ;;  %v18584_v54 = vld [vmem:[#allocation2 + $0x172] sm:$0xff] }
 0x183   :  { %15130 = vmatprep.mubr.msk.f32.mxu0 %vm95_vm0, %v3143_v40  ;;  %v423_v40 = vld [vmem:[#allocation2 + $0x1c8] sm:$0xff] }
 0x184   :  { %14751 = vmatmul.mubr.msk.f32.gmra.mrb[50].mxu1 %vm95_vm0, %v3150_v5 }
 0x185   :  { %14753 = vmatprep.mubr.msk.f32.mxu1 %vm95_vm0, %v3151_v6 }
 0x186   :  { %15131 = vmatmul.mubr.msk.f32.gmra.mrb[42].mxu0 %vm95_vm0, %v3144_v61  ;;  %v424_v61 = vld [vmem:[#allocation2 + $0x1d0] sm:$0xff] }
 0x187   :  { %15133 = vmatprep.mubr.msk.f32.mxu0 %vm95_vm0, %v3145_v63  ;;  %v18592_v63 = vld [vmem:[#allocation2 + $0x1ca] sm:$0xff] }
 0x188   :  { %14754 = vmatmul.mubr.msk.f32.gmra.mrb[52].mxu1 %vm95_vm0, %v3152_v7 }
 0x189   :  { %14756 = vmatprep.mubr.msk.f32.mxu1 %vm95_vm0, %v3153_v8 }
 0x18a   :  { %15134 = vmatmul.mubr.msk.f32.gmra.mrb[44].mxu0 %vm95_vm0, %v3146_v1  ;;  %v18596_v1 = vld [vmem:[#allocation2 + $0x1e0] sm:$0xff] }
 0x18b   :  { %15136 = vmatprep.mubr.msk.f32.mxu0 %vm95_vm0, %v3147_v2  ;;  %20524 = vst [vmem:[#allocation18_spill] sm:$0xff] %v18596_v1  ;;  %v18598_v2 = vld [vmem:[#allocation2 + $0x1e8] sm:$0xff] }
 0x18c   :  { %14757 = vmatmul.mubr.msk.f32.gmra.mrb[54].mxu1 %vm95_vm0, %v3154_v10  ;;  %20525 = vst [vmem:[#allocation19_spill] sm:$0xff] %v18598_v2 }
 0x18d   :  { %14759 = vmatprep.mubr.msk.f32.mxu1 %vm95_vm0, %v3155_v11 }
 0x18e   :  { %15137 = vmatmul.mubr.msk.f32.gmra.mrb[46].mxu0 %vm95_vm0, %v3148_v3  ;;  %v18602_v3 = vld [vmem:[#allocation2 + $0x1d2] sm:$0xff] }
 0x18f   :  { %15139 = vmatprep.mubr.msk.f32.mxu0 %vm95_vm0, %v3149_v4  ;;  %v18606_v4 = vld [vmem:[#allocation2 + $0x1e2] sm:$0xff] }
 0x190   :  { %14760 = vmatmul.mubr.msk.f32.gmra.mrb[56].mxu1 %vm95_vm0, %v3156_v16 }
 0x191   :  { %14762 = vmatprep.mubr.msk.f32.mxu1 %vm95_vm0, %v3157_v17 }
 0x192   :  { %15140 = vmatmul.mubr.msk.f32.gmra.mrb[48].mxu0 %vm95_vm0, %v3150_v5  ;;  %v18612_v5 = vld [vmem:[#allocation2 + $0x1f8] sm:$0xff] }
 0x193   :  { %15142 = vmatprep.mubr.msk.f32.mxu0 %vm95_vm0, %v3151_v6  ;;  %20526 = vst [vmem:[#allocation20_spill] sm:$0xff] %v18612_v5  ;;  %v18614_v6 = vld [vmem:[#allocation2 + $0x200] sm:$0xff] }
 0x194   :  { %14763 = vmatmul.mubr.msk.f32.gmra.mrb[58].mxu1 %vm95_vm0, %v3158_v18  ;;  %20527 = vst [vmem:[#allocation21_spill] sm:$0xff] %v18614_v6 }
 0x195   :  { %14765 = vmatprep.mubr.msk.f32.mxu1 %vm95_vm0, %v3159_v19 }
 0x196   :  { %15143 = vmatmul.mubr.msk.f32.gmra.mrb[50].mxu0 %vm95_vm0, %v3152_v7  ;;  %v18618_v7 = vld [vmem:[#allocation2 + $0x1ea] sm:$0xff] }
 0x197   :  { %15145 = vmatprep.mubr.msk.f32.mxu0 %vm95_vm0, %v3153_v8  ;;  %v18622_v8 = vld [vmem:[#allocation2 + $0x1fa] sm:$0xff] }
 0x198   :  { %14766 = vmatmul.mubr.msk.f32.gmra.mrb[60].mxu1 %vm95_vm0, %v3160_v20 }
 0x199   :  { %14768 = vmatprep.mubr.msk.f32.mxu1 %vm95_vm0, %v3161_v21 }
 0x19a   :  { %15146 = vmatmul.mubr.msk.f32.gmra.mrb[52].mxu0 %vm95_vm0, %v3154_v10  ;;  %v18628_v10 = vld [vmem:[#allocation2 + $0x210] sm:$0xff] }
 0x19b   :  { %15148 = vmatprep.mubr.msk.f32.mxu0 %vm95_vm0, %v3155_v11  ;;  %20528 = vst [vmem:[#allocation22_spill] sm:$0xff] %v18628_v10  ;;  %v18630_v11 = vld [vmem:[#allocation2 + $0x218] sm:$0xff] }
 0x19c   :  { %14769 = vmatmul.mubr.msk.f32.gmra.mrb[62].mxu1 %vm95_vm0, %v3162_v22  ;;  %20529 = vst [vmem:[#allocation23_spill] sm:$0xff] %v18630_v11 }
 0x19d   :  { %14773 = vmatprep.mubr.msk.f32.mxu1 %vm95_vm0, %v389_v26  ;;  %v18666_v26 = vld [vmem:[#allocation2 + $0x232] sm:$0xff] }
 0x19e   :  { %15149 = vmatmul.mubr.msk.f32.gmra.mrb[54].mxu0 %vm95_vm0, %v3156_v16  ;;  %v18634_v16 = vld [vmem:[#allocation2 + $0x202] sm:$0xff] }
 0x19f   :  { %15151 = vmatprep.mubr.msk.f32.mxu0 %vm95_vm0, %v3157_v17  ;;  %v18638_v17 = vld [vmem:[#allocation2 + $0x212] sm:$0xff] }
 0x1a0   :  { %14774 = vmatmul.mubr.msk.f32.vlgmr.msra.gmra.mrb[0].mxu1 %vm95_vm0, %v390_v27  ;;  %v18670_v27 = vld [vmem:[#allocation2 + $0x242] sm:$0xff] }
 0x1a1   :  { %16510 = vmatpush3.msk.msra.mxu1 %vm712_vm2, %v17364_v39  ;;  %14776 = vmatprep.mubr.msk.f32.mxu1 %vm95_vm0, %v391_v50  ;;  %v18678_v39 = vld [vmem:[#allocation2 + $0x260] sm:$0xff]  ;;  %v18682_v50 = vld [vmem:[#allocation2 + $0x24a] sm:$0xff] }
 0x1a2   :  { %15152 = vmatmul.mubr.msk.f32.gmra.mrb[56].mxu0 %vm95_vm0, %v3158_v18  ;;  %v18644_v18 = vld [vmem:[#allocation2 + $0x228] sm:$0xff]  ;;  %20535 = vst [vmem:[#allocation29_spill] sm:$0xff] %v18678_v39 }
 0x1a3   :  { %15154 = vmatprep.mubr.msk.f32.mxu0 %vm95_vm0, %v3159_v19  ;;  %20530 = vst [vmem:[#allocation24_spill] sm:$0xff] %v18644_v18  ;;  %v18646_v19 = vld [vmem:[#allocation2 + $0x230] sm:$0xff] }
 0x1a4   :  { %14777 = vmatmul.mubr.msk.f32.gmra.mrb[2].mxu1 %vm95_vm0, %v392_v51  ;;  %20531 = vst [vmem:[#allocation25_spill] sm:$0xff] %v18646_v19  ;;  %v18686_v51 = vld [vmem:[#allocation2 + $0x25a] sm:$0xff] }
 0x1a5   :  { %14779 = vmatprep.mubr.msk.f32.mxu1 %vm95_vm0, %v18406_v55 }
 0x1a6   :  { %15155 = vmatmul.mubr.msk.f32.gmra.mrb[58].mxu0 %vm95_vm0, %v3160_v20  ;;  %v18650_v20 = vld [vmem:[#allocation2 + $0x21a] sm:$0xff] }
 0x1a7   :  { %15157 = vmatprep.mubr.msk.f32.mxu0 %vm95_vm0, %v3161_v21  ;;  %v18654_v21 = vld [vmem:[#allocation2 + $0x22a] sm:$0xff] }
 0x1a8   :  { %14780 = vmatmul.mubr.msk.f32.gmra.mrb[4].mxu1 %vm95_vm0, %v18408_v57 }
 0x1a9   :  { %14782 = vmatprep.mubr.msk.f32.mxu1 %vm95_vm0, %v18424_v59 }
 0x1aa   :  { %15158 = vmatmul.mubr.msk.f32.gmra.mrb[60].mxu0 %vm95_vm0, %v3162_v22  ;;  %v18660_v22 = vld [vmem:[#allocation2 + $0x240] sm:$0xff] }
 0x1ab   :  { %15160 = vmatprep.mubr.msk.f32.mxu0 %vm95_vm0, %v3163_v37  ;;  %20532 = vst [vmem:[#allocation26_spill] sm:$0xff] %v18660_v22  ;;  %v18676_v37 = vld [vmem:[#allocation2 + $0x258] sm:$0xff] }
 0x1ac   :  { %20534 = vst [vmem:[#allocation28_spill] sm:$0xff] %v18676_v37 }
 0x1ae   :  { %15161 = vmatmul.mubr.msk.f32.gmra.mrb[62].mxu0 %vm95_vm0, %v3164_v53  ;;  %v18692_v53 = vld [vmem:[#allocation2 + $0x270] sm:$0xff] }
 0x1af   :  { %15165 = vmatprep.mubr.msk.f32.mxu0 %vm95_vm0, %v17909_v28  ;;  %v18426_v28 = vld [vmem:[#allocation2 + $0x50] sm:$0xff]  ;;  %20536 = vst [vmem:[#allocation30_spill] sm:$0xff] %v18692_v53 }
 0x1b0   :  { %14783 = vmatmul.mubr.msk.f32.gmra.mrb[6].mxu1 %vm95_vm0, %v18426_v28 }
 0x1b2   :  { %15166 = vmatmul.mubr.msk.f32.vlgmr.msra.gmra.mrb[0].mxu0 %vm95_vm0, %v17911_v29  ;;  %v18436_v29 = vld [vmem:[#allocation2 + $0x60] sm:$0xff] }
 0x1b3   :  { %15262 = vmatpush3.msk.msra.mxu0 %vm712_vm2, %v18271_v56  ;;  %15168 = vmatprep.mubr.msk.f32.mxu0 %vm95_vm0, %v17921_v31  ;;  %v18438_v56 = vld [vmem:[#allocation2 + $0x68] sm:$0xff]  ;;  %v18448_v31 = vld [vmem:[#allocation2 + $0x78] sm:$0xff] }
 0x1b4   :  { %15359 = vmatprep.subr.msk.mxu0 %vm712_vm2, %v18416_v58  ;;  %14785 = vmatprep.mubr.msk.f32.mxu1 %vm95_vm0, %v18436_v29 }
 0x1b5   :  { %14786 = vmatmul.mubr.msk.f32.gmra.mrb[8].mxu1 %vm95_vm0, %v18438_v56 }
 0x1b6   :  { %15169 = vmatmul.mubr.msk.f32.gmra.mrb[2].mxu0 %vm95_vm0, %v17932_v33  ;;  %14788 = vmatprep.mubr.msk.f32.mxu1 %vm95_vm0, %v18448_v31  ;;  %v18460_v33 = vld [vmem:[#allocation2 + $0x90] sm:$0xff] }
 0x1b7   :  { %15171 = vmatprep.mubr.msk.f32.mxu0 %vm95_vm0, %v17934_v34  ;;  %v18462_v34 = vld [vmem:[#allocation2 + $0x98] sm:$0xff] }
 0x1b9   :  { %14789 = vmatmul.mubr.msk.f32.gmra.mrb[10].mxu1 %vm95_vm0, %v18450_v60 }
 0x1ba   :  { %15172 = vmatmul.mubr.msk.f32.gmra.mrb[4].mxu0 %vm95_vm0, %v17940_v35  ;;  %14791 = vmatprep.mubr.msk.f32.mxu1 %vm95_vm0, %v18460_v33  ;;  %v18472_v35 = vld [vmem:[#allocation2 + $0xa8] sm:$0xff] }
 0x1bb   :  { %15174 = vmatprep.mubr.msk.f32.mxu0 %vm95_vm0, %v17942_v36  ;;  %v18474_v36 = vld [vmem:[#allocation2 + $0xb0] sm:$0xff] }
 0x1bd   :  { %14792 = vmatmul.mubr.msk.f32.gmra.mrb[12].mxu1 %vm95_vm0, %v18462_v34 }
 0x1be   :  { %15175 = vmatmul.mubr.msk.f32.gmra.mrb[6].mxu0 %vm95_vm0, %v17962_v41  ;;  %14794 = vmatprep.mubr.msk.f32.mxu1 %vm95_vm0, %v18472_v35  ;;  %v18484_v41 = vld [vmem:[#allocation2 + $0xc0] sm:$0xff] }
 0x1bf   :  { %15177 = vmatprep.mubr.msk.f32.mxu0 %vm95_vm0, %v17966_v42  ;;  %v18486_v42 = vld [vmem:[#allocation2 + $0xc8] sm:$0xff] }
 0x1c1   :  { %14795 = vmatmul.mubr.msk.f32.gmra.mrb[14].mxu1 %vm95_vm0, %v18474_v36 }
 0x1c2   :  { %15178 = vmatmul.mubr.msk.f32.gmra.mrb[8].mxu0 %vm95_vm0, %v17972_v43  ;;  %14797 = vmatprep.mubr.msk.f32.mxu1 %vm95_vm0, %v18484_v41  ;;  %v18496_v43 = vld [vmem:[#allocation2 + $0xd8] sm:$0xff] }
 0x1c3   :  { %15180 = vmatprep.mubr.msk.f32.mxu0 %vm95_vm0, %v17974_v44  ;;  %v18498_v44 = vld [vmem:[#allocation2 + $0xe0] sm:$0xff] }
 0x1c5   :  { %14798 = vmatmul.mubr.msk.f32.gmra.mrb[16].mxu1 %vm95_vm0, %v18486_v42 }
 0x1c6   :  { %15181 = vmatmul.mubr.msk.f32.gmra.mrb[10].mxu0 %vm95_vm0, %v17980_v45  ;;  %14800 = vmatprep.mubr.msk.f32.mxu1 %vm95_vm0, %v18496_v43  ;;  %v18508_v45 = vld [vmem:[#allocation2 + $0xf0] sm:$0xff] }
 0x1c7   :  { %15183 = vmatprep.mubr.msk.f32.mxu0 %vm95_vm0, %v17982_v46  ;;  %v18510_v46 = vld [vmem:[#allocation2 + $0xf8] sm:$0xff] }
 0x1c9   :  { %14801 = vmatmul.mubr.msk.f32.gmra.mrb[18].mxu1 %vm95_vm0, %v18498_v44 }
 0x1ca   :  { %15184 = vmatmul.mubr.msk.f32.gmra.mrb[12].mxu0 %vm95_vm0, %v17987_v48  ;;  %14803 = vmatprep.mubr.msk.f32.mxu1 %vm95_vm0, %v18508_v45  ;;  %v18520_v48 = vld [vmem:[#allocation2 + $0x108] sm:$0xff] }
 0x1cb   :  { %15186 = vmatprep.mubr.msk.f32.mxu0 %vm95_vm0, %v18001_v52  ;;  %v18522_v52 = vld [vmem:[#allocation2 + $0x110] sm:$0xff] }
 0x1cd   :  { %14804 = vmatmul.mubr.msk.f32.gmra.mrb[20].mxu1 %vm95_vm0, %v18510_v46 }
 0x1ce   :  { %15187 = vmatmul.mubr.msk.f32.gmra.mrb[14].mxu0 %vm95_vm0, %v18041_v62  ;;  %14806 = vmatprep.mubr.msk.f32.mxu1 %vm95_vm0, %v18520_v48  ;;  %v18532_v62 = vld [vmem:[#allocation2 + $0x120] sm:$0xff] }
 0x1cf   :  { %15189 = vmatprep.mubr.msk.f32.mxu0 %vm95_vm0, %v18083_v9  ;;  %v18534_v9 = vld [vmem:[#allocation2 + $0x128] sm:$0xff] }
 0x1d1   :  { %14807 = vmatmul.mubr.msk.f32.gmra.mrb[22].mxu1 %vm95_vm0, %v18522_v52 }
 0x1d2   :  { %15190 = vmatmul.mubr.msk.f32.gmra.mrb[16].mxu0 %vm95_vm0, %v18100_v12  ;;  %14809 = vmatprep.mubr.msk.f32.mxu1 %vm95_vm0, %v18532_v62  ;;  %v18544_v12 = vld [vmem:[#allocation2 + $0x138] sm:$0xff] }
 0x1d3   :  { %15192 = vmatprep.mubr.msk.f32.mxu0 %vm95_vm0, %v18102_v13  ;;  %v18546_v13 = vld [vmem:[#allocation2 + $0x140] sm:$0xff] }
 0x1d5   :  { %14810 = vmatmul.mubr.msk.f32.gmra.mrb[24].mxu1 %vm95_vm0, %v18534_v9 }
 0x1d6   :  { %15193 = vmatmul.mubr.msk.f32.gmra.mrb[18].mxu0 %vm95_vm0, %v18108_v14  ;;  %14812 = vmatprep.mubr.msk.f32.mxu1 %vm95_vm0, %v18544_v12  ;;  %v18556_v14 = vld [vmem:[#allocation2 + $0x150] sm:$0xff] }
 0x1d7   :  { %15195 = vmatprep.mubr.msk.f32.mxu0 %vm95_vm0, %v18110_v15  ;;  %v18558_v15 = vld [vmem:[#allocation2 + $0x158] sm:$0xff] }
 0x1d9   :  { %14813 = vmatmul.mubr.msk.f32.gmra.mrb[26].mxu1 %vm95_vm0, %v18546_v13 }
 0x1da   :  { %15196 = vmatmul.mubr.msk.f32.gmra.mrb[20].mxu0 %vm95_vm0, %v18141_v23  ;;  %14815 = vmatprep.mubr.msk.f32.mxu1 %vm95_vm0, %v18556_v14  ;;  %v18568_v23 = vld [vmem:[#allocation2 + $0x168] sm:$0xff] }
 0x1db   :  { %15198 = vmatprep.mubr.msk.f32.mxu0 %vm95_vm0, %v18149_v25  ;;  %v18570_v25 = vld [vmem:[#allocation2 + $0x170] sm:$0xff] }
 0x1dc   :  { %20523 = vst [vmem:[#allocation17_spill] sm:$0xff] %v18570_v25 }
 0x1dd   :  { %14816 = vmatmul.mubr.msk.f32.gmra.mrb[28].mxu1 %vm95_vm0, %v18558_v15 }
 0x1de   :  { %15199 = vmatmul.mubr.msk.f32.gmra.mrb[22].mxu0 %vm95_vm0, %v18164_v30  ;;  %14818 = vmatprep.mubr.msk.f32.mxu1 %vm95_vm0, %v18568_v23  ;;  %v18576_v30 = vld [vmem:[#allocation2 + $0x16a] sm:$0xff] }
 0x1df   :  { %15201 = vmatprep.mubr.msk.f32.mxu0 %vm95_vm0, %v18166_v32  ;;  %v421_v32 = vld [vmem:[#allocation2 + $0x1b0] sm:$0xff] }
 0x1e1   :  { %14819 = vmatmul.mubr.msk.f32.gmra.mrb[30].mxu1 %vm95_vm0, %v18570_v25  ;;  %v3874_v25 = vld [vmem:[#allocation2 + $0x33a] sm:$0xff] }
 0x1e2   :  { %15202 = vmatmul.mubr.msk.f32.gmra.mrb[24].mxu0 %vm95_vm0, %v18176_v38  ;;  %v422_v38 = vld [vmem:[#allocation2 + $0x1b8] sm:$0xff]  ;;  %14821 = vmatprep.mubr.msk.f32.mxu1 %vm95_vm0, %v421_v32 }
 0x1e3   :  { %15204 = vmatprep.mubr.msk.f32.mxu0 %vm95_vm0, %v18181_v47  ;;  %v3841_v47 = vld [vmem:[#allocation2 + $0x182] sm:$0xff]  ;;  %v18694_v32 = vld [vmem:[#allocation2 + $0x278] sm:$0xff] }
 0x1e4   :  { %20537 = vst [vmem:[#allocation31_spill] sm:$0xff] %v18694_v32 }
 0x1e5   :  { %14822 = vmatmul.mubr.msk.f32.gmra.mrb[32].mxu1 %vm95_vm0, %v422_v38  ;;  %v18698_v38 = vld [vmem:[#allocation2 + $0x262] sm:$0xff] }
 0x1e6   :  { %15205 = vmatmul.mubr.msk.f32.gmra.mrb[26].mxu0 %vm95_vm0, %v18188_v49  ;;  %v3842_v49 = vld [vmem:[#allocation2 + $0x18a] sm:$0xff]  ;;  %14824 = vmatprep.mubr.msk.f32.mxu1 %vm95_vm0, %v423_v40 }
 0x1e7   :  { %15207 = vmatprep.mubr.msk.f32.mxu0 %vm95_vm0, %v18576_v30  ;;  %v18708_v40 = vld [vmem:[#allocation2 + $0x288] sm:$0xff] }
 0x1e8   :  { %20538 = vst [vmem:[#allocation32_spill] sm:$0xff] %v18708_v40 }
 0x1e9   :  { %14825 = vmatmul.mubr.msk.f32.gmra.mrb[34].mxu1 %vm95_vm0, %v424_v61  ;;  %v18710_v61 = vld [vmem:[#allocation2 + $0x290] sm:$0xff] }
 0x1ea   :  { %15208 = vmatmul.mubr.msk.f32.gmra.mrb[28].mxu0 %vm95_vm0, %v18584_v54  ;;  %14827 = vmatprep.mubr.msk.f32.mxu1 %vm95_vm0, %v18596_v1  ;;  %20539 = vst [vmem:[#allocation33_spill] sm:$0xff] %v18710_v61  ;;  %v3873_v1 = vld [vmem:[#allocation2 + $0x332] sm:$0xff] }
 0x1eb   :  { %15210 = vmatprep.mubr.msk.f32.mxu0 %vm95_vm0, %v3841_v47  ;;  %v18702_v47 = vld [vmem:[#allocation2 + $0x272] sm:$0xff] }
 0x1ed   :  { %14828 = vmatmul.mubr.msk.f32.gmra.mrb[36].mxu1 %vm95_vm0, %v18598_v2  ;;  %v18810_v2 = vld [vmem:[#allocation2 + $0x30a] sm:$0xff] }
 0x1ee   :  { %15211 = vmatmul.mubr.msk.f32.gmra.mrb[30].mxu0 %vm95_vm0, %v3842_v49  ;;  %14830 = vmatprep.mubr.msk.f32.mxu1 %vm95_vm0, %v18612_v5  ;;  %v18714_v49 = vld [vmem:[#allocation2 + $0x27a] sm:$0xff] }
 0x1ef   :  { %15213 = vmatprep.mubr.msk.f32.mxu0 %vm95_vm0, %v18592_v63  ;;  %v18806_v5 = vld [vmem:[#allocation2 + $0x320] sm:$0xff] }
 0x1f0   :  { %20551 = vst [vmem:[#allocation45_spill] sm:$0xff] %v18806_v5 }
 0x1f1   :  { %14831 = vmatmul.mubr.msk.f32.gmra.mrb[38].mxu1 %vm95_vm0, %v18614_v6  ;;  %v18794_v6 = vld [vmem:[#allocation2 + $0x2f2] sm:$0xff] }
 0x1f2   :  { %15214 = vmatmul.mubr.msk.f32.gmra.mrb[32].mxu0 %vm95_vm0, %v18602_v3  ;;  %14833 = vmatprep.mubr.msk.f32.mxu1 %vm95_vm0, %v18628_v10  ;;  %v18790_v10 = vld [vmem:[#allocation2 + $0x308] sm:$0xff] }
 0x1f3   :  { %15216 = vmatprep.mubr.msk.f32.mxu0 %vm95_vm0, %v18606_v4  ;;  %20549 = vst [vmem:[#allocation43_spill] sm:$0xff] %v18790_v10 }
 0x1f5   :  { %14834 = vmatmul.mubr.msk.f32.gmra.mrb[40].mxu1 %vm95_vm0, %v18630_v11  ;;  %v18778_v11 = vld [vmem:[#allocation2 + $0x2da] sm:$0xff] }
 0x1f6   :  { %15217 = vmatmul.mubr.msk.f32.gmra.mrb[34].mxu0 %vm95_vm0, %v18618_v7  ;;  %14836 = vmatprep.mubr.msk.f32.mxu1 %vm95_vm0, %v18644_v18  ;;  %v18774_v18 = vld [vmem:[#allocation2 + $0x2f0] sm:$0xff] }
 0x1f7   :  { %15219 = vmatprep.mubr.msk.f32.mxu0 %vm95_vm0, %v18622_v8  ;;  %20547 = vst [vmem:[#allocation41_spill] sm:$0xff] %v18774_v18 }
 0x1f9   :  { %14837 = vmatmul.mubr.msk.f32.gmra.mrb[42].mxu1 %vm95_vm0, %v18646_v19  ;;  %v18762_v19 = vld [vmem:[#allocation2 + $0x2c2] sm:$0xff] }
 0x1fa   :  { %15220 = vmatmul.mubr.msk.f32.gmra.mrb[36].mxu0 %vm95_vm0, %v18634_v16  ;;  %14839 = vmatprep.mubr.msk.f32.mxu1 %vm95_vm0, %v18660_v22  ;;  %v18758_v22 = vld [vmem:[#allocation2 + $0x2d8] sm:$0xff] }
 0x1fb   :  { %15222 = vmatprep.mubr.msk.f32.mxu0 %vm95_vm0, %v18638_v17  ;;  %20545 = vst [vmem:[#allocation39_spill] sm:$0xff] %v18758_v22 }
 0x1fd   :  { %14840 = vmatmul.mubr.msk.f32.gmra.mrb[44].mxu1 %vm95_vm0, %v18662_v24  ;;  %v18746_v24 = vld [vmem:[#allocation2 + $0x2aa] sm:$0xff] }
 0x1fe   :  { %15223 = vmatmul.mubr.msk.f32.gmra.mrb[38].mxu0 %vm95_vm0, %v18650_v20  ;;  %14842 = vmatprep.mubr.msk.f32.mxu1 %vm95_vm0, %v18676_v37  ;;  %v18742_v37 = vld [vmem:[#allocation2 + $0x2c0] sm:$0xff] }
 0x1ff   :  { %15225 = vmatprep.mubr.msk.f32.mxu0 %vm95_vm0, %v18654_v21  ;;  %20543 = vst [vmem:[#allocation37_spill] sm:$0xff] %v18742_v37 }
 0x201   :  { %14843 = vmatmul.mubr.msk.f32.gmra.mrb[46].mxu1 %vm95_vm0, %v18678_v39  ;;  %v18730_v39 = vld [vmem:[#allocation2 + $0x292] sm:$0xff] }
 0x202   :  { %15226 = vmatmul.mubr.msk.f32.gmra.mrb[40].mxu0 %vm95_vm0, %v18666_v26  ;;  %14845 = vmatprep.mubr.msk.f32.mxu1 %vm95_vm0, %v18692_v53  ;;  %v18726_v53 = vld [vmem:[#allocation2 + $0x2a8] sm:$0xff] }
 0x203   :  { %15228 = vmatprep.mubr.msk.f32.mxu0 %vm95_vm0, %v18670_v27  ;;  %20541 = vst [vmem:[#allocation35_spill] sm:$0xff] %v18726_v53 }
 0x205   :  { %14846 = vmatmul.mubr.msk.f32.gmra.mrb[48].mxu1 %vm95_vm0, %v18694_v32  ;;  %v18724_v32 = vld [vmem:[#allocation2 + $0x2a0] sm:$0xff] }
 0x206   :  { %15229 = vmatmul.mubr.msk.f32.gmra.mrb[42].mxu0 %vm95_vm0, %v18682_v50  ;;  %14848 = vmatprep.mubr.msk.f32.mxu1 %vm95_vm0, %v18708_v40  ;;  %20540 = vst [vmem:[#allocation34_spill] sm:$0xff] %v18724_v32  ;;  %v18734_v40 = vld [vmem:[#allocation2 + $0x2a2] sm:$0xff] }
 0x207   :  { %15231 = vmatprep.mubr.msk.f32.mxu0 %vm95_vm0, %v18686_v51 }
 0x209   :  { %14849 = vmatmul.mubr.msk.f32.gmra.mrb[50].mxu1 %vm95_vm0, %v18710_v61  ;;  %v18740_v61 = vld [vmem:[#allocation2 + $0x2b8] sm:$0xff] }
 0x20a   :  { %15232 = vmatmul.mubr.msk.f32.gmra.mrb[44].mxu0 %vm95_vm0, %v18698_v38  ;;  %14851 = vmatprep.mubr.msk.f32.mxu1 %vm95_vm0, %v18724_v32  ;;  %20542 = vst [vmem:[#allocation36_spill] sm:$0xff] %v18740_v61  ;;  %v18750_v32 = vld [vmem:[#allocation2 + $0x2ba] sm:$0xff] }
 0x20b   :  { %15234 = vmatprep.mubr.msk.f32.mxu0 %vm95_vm0, %v18702_v47 }
 0x20d   :  { %14852 = vmatmul.mubr.msk.f32.gmra.mrb[52].mxu1 %vm95_vm0, %v18726_v53  ;;  %v18756_v53 = vld [vmem:[#allocation2 + $0x2d0] sm:$0xff] }
 0x20e   :  { %15235 = vmatmul.mubr.msk.f32.gmra.mrb[46].mxu0 %vm95_vm0, %v18714_v49  ;;  %14854 = vmatprep.mubr.msk.f32.mxu1 %vm95_vm0, %v18740_v61  ;;  %20544 = vst [vmem:[#allocation38_spill] sm:$0xff] %v18756_v53  ;;  %v18766_v61 = vld [vmem:[#allocation2 + $0x2d2] sm:$0xff] }
 0x20f   :  { %15237 = vmatprep.mubr.msk.f32.mxu0 %vm95_vm0, %v18718_v0 }
 0x211   :  { %14855 = vmatmul.mubr.msk.f32.gmra.mrb[54].mxu1 %vm95_vm0, %v18742_v37  ;;  %v18772_v37 = vld [vmem:[#allocation2 + $0x2e8] sm:$0xff] }
 0x212   :  { %15238 = vmatmul.mubr.msk.f32.gmra.mrb[48].mxu0 %vm95_vm0, %v18730_v39  ;;  %14857 = vmatprep.mubr.msk.f32.mxu1 %vm95_vm0, %v18756_v53  ;;  %20546 = vst [vmem:[#allocation40_spill] sm:$0xff] %v18772_v37  ;;  %v18782_v53 = vld [vmem:[#allocation2 + $0x2ea] sm:$0xff] }
 0x213   :  { %15240 = vmatprep.mubr.msk.f32.mxu0 %vm95_vm0, %v18734_v40 }
 0x215   :  { %14858 = vmatmul.mubr.msk.f32.gmra.mrb[56].mxu1 %vm95_vm0, %v18758_v22  ;;  %v18788_v22 = vld [vmem:[#allocation2 + $0x300] sm:$0xff] }
 0x216   :  { %15241 = vmatmul.mubr.msk.f32.gmra.mrb[50].mxu0 %vm95_vm0, %v18746_v24  ;;  %14860 = vmatprep.mubr.msk.f32.mxu1 %vm95_vm0, %v18772_v37  ;;  %20548 = vst [vmem:[#allocation42_spill] sm:$0xff] %v18788_v22  ;;  %v18798_v37 = vld [vmem:[#allocation2 + $0x302] sm:$0xff] }
 0x217   :  { %15243 = vmatprep.mubr.msk.f32.mxu0 %vm95_vm0, %v18750_v32 }
 0x219   :  { %14861 = vmatmul.mubr.msk.f32.gmra.mrb[58].mxu1 %vm95_vm0, %v18774_v18  ;;  %v18804_v18 = vld [vmem:[#allocation2 + $0x318] sm:$0xff] }
 0x21a   :  { %15244 = vmatmul.mubr.msk.f32.gmra.mrb[52].mxu0 %vm95_vm0, %v18762_v19  ;;  %14863 = vmatprep.mubr.msk.f32.mxu1 %vm95_vm0, %v18788_v22  ;;  %20550 = vst [vmem:[#allocation44_spill] sm:$0xff] %v18804_v18  ;;  %v18814_v22 = vld [vmem:[#allocation2 + $0x31a] sm:$0xff] }
 0x21b   :  { %15246 = vmatprep.mubr.msk.f32.mxu0 %vm95_vm0, %v18766_v61 }
 0x21d   :  { %14864 = vmatmul.mubr.msk.f32.gmra.mrb[60].mxu1 %vm95_vm0, %v18790_v10  ;;  %v18824_v10 = vld [vmem:[#allocation2 + $0x322] sm:$0xff] }
 0x21e   :  { %15247 = vmatmul.mubr.msk.f32.gmra.mrb[54].mxu0 %vm95_vm0, %v18778_v11  ;;  %14866 = vmatprep.mubr.msk.f32.mxu1 %vm95_vm0, %v18804_v18  ;;  %v1713_v18 = vld [vmem:[#allocation2 + $0x1b2] sm:$0xff] }
 0x21f   :  { %15249 = vmatprep.mubr.msk.f32.mxu0 %vm95_vm0, %v18782_v53 }
 0x221   :  { %14867 = vmatmul.mubr.msk.f32.gmra.mrb[62].mxu1 %vm95_vm0, %v18806_v5  ;;  %v1714_v5 = vld [vmem:[#allocation2 + $0x1ba] sm:$0xff] }
 0x222   :  { %15250 = vmatmul.mubr.msk.f32.gmra.mrb[56].mxu0 %vm95_vm0, %v18794_v6  ;;  %14916 = vmatprep.mubr.msk.f32.mxu1 %vm95_vm0, %v18576_v30  ;;  %v18840_v30 = vld [vmem:[#allocation7 + $0x20] sm:$0x7] }
 0x223   :  { %15252 = vmatprep.mubr.msk.f32.mxu0 %vm95_vm0, %v18798_v37 }
 0x225   :  { %14917 = vmatmul.mubr.msk.f32.vlgmr.msra.gmra.mrb[30].mxu1 %vm95_vm0, %v18584_v54  ;;  %v20578_v54 = vld [vmem:[#allocation43_spill] sm:$0xff] }
 0x226   :  { %15253 = vmatmul.mubr.msk.f32.gmra.mrb[58].mxu0 %vm95_vm0, %v18810_v2  ;;  %14919 = vmatprep.mubr.msk.f32.mxu1 %vm95_vm0, %v1713_v18  ;;  %v5239_v18 = vld [vmem:[#allocation2 + $0x81] sm:$0xff] }
 0x227   :  { %15255 = vmatprep.mubr.msk.f32.mxu0 %vm95_vm0, %v18814_v22 }
 0x229   :  { %14920 = vmatmul.mubr.msk.f32.gmra.mrb[32].mxu1 %vm95_vm0, %v1714_v5  ;;  %v4585_v5 = vld [vmem:[#allocation2 + $0x350] sm:$0xff] }
 0x22a   :  { %15256 = vmatmul.mubr.msk.f32.gmra.mrb[60].mxu0 %vm95_vm0, %v18824_v10  ;;  %14922 = vmatprep.mubr.msk.f32.mxu1 %vm95_vm0, %v18592_v63  ;;  %v20579_v63 = vld [vmem:[#allocation44_spill] sm:$0xff] }
 0x22b   :  { %15258 = vmatprep.mubr.msk.f32.mxu0 %vm95_vm0, %v3873_v1  ;;  %v4582_v1 = vld [vmem:[#allocation2 + $0x330] sm:$0xff] }
 0x22d   :  { %14923 = vmatmul.mubr.msk.f32.gmra.mrb[34].mxu1 %vm95_vm0, %v18602_v3  ;;  %v4583_v3 = vld [vmem:[#allocation2 + $0x338] sm:$0xff] }
 0x22e   :  { %15259 = vmatmul.mubr.msk.f32.gmra.mrb[62].mxu0 %vm95_vm0, %v3874_v25  ;;  %14925 = vmatprep.mubr.msk.f32.mxu1 %vm95_vm0, %v18606_v4  ;;  %v20577_v25 = vld [vmem:[#allocation42_spill] sm:$0xff] }
 0x22f   :  { %15263 = vmatprep.mubr.msk.f32.mxu0 %vm95_vm0, %v18406_v55  ;;  %v20552_v55 = vld [vmem:[#allocation17_spill] sm:$0xff] }
 0x230   :  { %v4584_v4 = vld [vmem:[#allocation2 + $0x348] sm:$0xff] }
 0x231   :  { %14926 = vmatmul.mubr.msk.f32.gmra.mrb[36].mxu1 %vm95_vm0, %v18618_v7  ;;  %v5233_v7 = vld [vmem:[#allocation2 + $0x39] sm:$0xff] }
 0x232   :  { %15264 = vmatmul.mubr.msk.f32.vlgmr.msra.gmra.mrb[0].mxu0 %vm95_vm0, %v18408_v57  ;;  %14928 = vmatprep.mubr.msk.f32.mxu1 %vm95_vm0, %v18622_v8  ;;  %v4551_v57 = vld [vmem:[#allocation2 + $0x188] sm:$0xff] }
 0x233   :  { %15360 = vmatpush3.msk.msra.mxu0 %vm712_vm2, %v18416_v58  ;;  %15266 = vmatprep.mubr.msk.f32.mxu0 %vm95_vm0, %v18424_v59  ;;  %v4552_v58 = vld [vmem:[#allocation2 + $0x198] sm:$0xff]  ;;  %v4553_v59 = vld [vmem:[#allocation2 + $0x1a0] sm:$0xff]  ;;  %v5234_v8 = vld [vmem:[#allocation2 + $0x49] sm:$0xff] }
 0x234   :  { %15457 = vmatprep.subr.msk.mxu0 %vm712_vm2, %v18840_v30 }
 0x235   :  { %14929 = vmatmul.mubr.msk.f32.gmra.mrb[38].mxu1 %vm95_vm0, %v18634_v16  ;;  %v5237_v16 = vld [vmem:[#allocation2 + $0x69] sm:$0xff] }
 0x236   :  { %15267 = vmatmul.mubr.msk.f32.gmra.mrb[2].mxu0 %vm95_vm0, %v18426_v28  ;;  %14931 = vmatprep.mubr.msk.f32.mxu1 %vm95_vm0, %v18638_v17  ;;  %v20553_v28 = vld [vmem:[#allocation18_spill] sm:$0xff]  ;;  %v5238_v17 = vld [vmem:[#allocation2 + $0x79] sm:$0xff] }
 0x237   :  { %15269 = vmatprep.mubr.msk.f32.mxu0 %vm95_vm0, %v18436_v29  ;;  %v20554_v29 = vld [vmem:[#allocation19_spill] sm:$0xff] }
 0x239   :  { %14932 = vmatmul.mubr.msk.f32.gmra.mrb[40].mxu1 %vm95_vm0, %v18650_v20 }
 0x23a   :  { %15270 = vmatmul.mubr.msk.f32.gmra.mrb[4].mxu0 %vm95_vm0, %v18438_v56  ;;  %14934 = vmatprep.mubr.msk.f32.mxu1 %vm95_vm0, %v18654_v21  ;;  %v20555_v56 = vld [vmem:[#allocation20_spill] sm:$0xff] }
 0x23b   :  { %15272 = vmatprep.mubr.msk.f32.mxu0 %vm95_vm0, %v18448_v31  ;;  %v20556_v31 = vld [vmem:[#allocation21_spill] sm:$0xff]  ;;  %v5241_v21 = vld [vmem:[#allocation2 + $0x99] sm:$0xff] }
 0x23d   :  { %14935 = vmatmul.mubr.msk.f32.gmra.mrb[42].mxu1 %vm95_vm0, %v18666_v26 }
 0x23e   :  { %15273 = vmatmul.mubr.msk.f32.gmra.mrb[6].mxu0 %vm95_vm0, %v18450_v60  ;;  %14937 = vmatprep.mubr.msk.f32.mxu1 %vm95_vm0, %v18670_v27  ;;  %v20557_v60 = vld [vmem:[#allocation22_spill] sm:$0xff] }
 0x23f   :  { %15275 = vmatprep.mubr.msk.f32.mxu0 %vm95_vm0, %v18460_v33  ;;  %v20558_v33 = vld [vmem:[#allocation23_spill] sm:$0xff] }
 0x240   :  { %v5243_v27 = vld [vmem:[#allocation2 + $0xb1] sm:$0xff] }
 0x241   :  { %14938 = vmatmul.mubr.msk.f32.gmra.mrb[44].mxu1 %vm95_vm0, %v18682_v50 }
 0x242   :  { %15276 = vmatmul.mubr.msk.f32.gmra.mrb[8].mxu0 %vm95_vm0, %v18462_v34  ;;  %14940 = vmatprep.mubr.msk.f32.mxu1 %vm95_vm0, %v18686_v51  ;;  %v20559_v34 = vld [vmem:[#allocation24_spill] sm:$0xff]  ;;  %v5245_v51 = vld [vmem:[#allocation2 + $0xc9] sm:$0xff] }
 0x243   :  { %15278 = vmatprep.mubr.msk.f32.mxu0 %vm95_vm0, %v18472_v35  ;;  %v20560_v35 = vld [vmem:[#allocation25_spill] sm:$0xff] }
 0x245   :  { %14941 = vmatmul.mubr.msk.f32.gmra.mrb[46].mxu1 %vm95_vm0, %v18698_v38 }
 0x246   :  { %15279 = vmatmul.mubr.msk.f32.gmra.mrb[10].mxu0 %vm95_vm0, %v18474_v36  ;;  %14943 = vmatprep.mubr.msk.f32.mxu1 %vm95_vm0, %v18702_v47  ;;  %v20561_v36 = vld [vmem:[#allocation26_spill] sm:$0xff]  ;;  %v5247_v47 = vld [vmem:[#allocation2 + $0xe1] sm:$0xff] }
 0x247   :  { %15281 = vmatprep.mubr.msk.f32.mxu0 %vm95_vm0, %v18484_v41  ;;  %v20562_v41 = vld [vmem:[#allocation27_spill] sm:$0xff] }
 0x249   :  { %14944 = vmatmul.mubr.msk.f32.gmra.mrb[48].mxu1 %vm95_vm0, %v18714_v49 }
 0x24a   :  { %15282 = vmatmul.mubr.msk.f32.gmra.mrb[12].mxu0 %vm95_vm0, %v18486_v42  ;;  %14946 = vmatprep.mubr.msk.f32.mxu1 %vm95_vm0, %v18718_v0  ;;  %v4550_v0 = vld [vmem:[#allocation2 + $0x180] sm:$0xff] }
 0x24b   :  { %15284 = vmatprep.mubr.msk.f32.mxu0 %vm95_vm0, %v18496_v43  ;;  %v20563_v42 = vld [vmem:[#allocation28_spill] sm:$0xff]  ;;  %v20564_v43 = vld [vmem:[#allocation29_spill] sm:$0xff] }
 0x24d   :  { %14947 = vmatmul.mubr.msk.f32.gmra.mrb[50].mxu1 %vm95_vm0, %v18730_v39  ;;  %v5244_v39 = vld [vmem:[#allocation2 + $0xc1] sm:$0xff] }
 0x24e   :  { %15285 = vmatmul.mubr.msk.f32.gmra.mrb[14].mxu0 %vm95_vm0, %v18498_v44  ;;  %14949 = vmatprep.mubr.msk.f32.mxu1 %vm95_vm0, %v18734_v40  ;;  %v20565_v44 = vld [vmem:[#allocation30_spill] sm:$0xff] }
 0x24f   :  { %15287 = vmatprep.mubr.msk.f32.mxu0 %vm95_vm0, %v18508_v45  ;;  %v20566_v45 = vld [vmem:[#allocation31_spill] sm:$0xff] }
 0x251   :  { %14950 = vmatmul.mubr.msk.f32.gmra.mrb[52].mxu1 %vm95_vm0, %v18746_v24  ;;  %v5242_v24 = vld [vmem:[#allocation2 + $0xa9] sm:$0xff] }
 0x252   :  { %15288 = vmatmul.mubr.msk.f32.gmra.mrb[16].mxu0 %vm95_vm0, %v18510_v46  ;;  %14952 = vmatprep.mubr.msk.f32.mxu1 %vm95_vm0, %v18750_v32  ;;  %v20567_v46 = vld [vmem:[#allocation32_spill] sm:$0xff] }
 0x253   :  { %15290 = vmatprep.mubr.msk.f32.mxu0 %vm95_vm0, %v18520_v48  ;;  %v20568_v48 = vld [vmem:[#allocation33_spill] sm:$0xff]  ;;  %v5246_v32 = vld [vmem:[#allocation2 + $0xd9] sm:$0xff] }
 0x255   :  { %14953 = vmatmul.mubr.msk.f32.gmra.mrb[54].mxu1 %vm95_vm0, %v18762_v19  ;;  %v5240_v19 = vld [vmem:[#allocation2 + $0x91] sm:$0xff] }
 0x256   :  { %15291 = vmatmul.mubr.msk.f32.gmra.mrb[18].mxu0 %vm95_vm0, %v18522_v52  ;;  %14955 = vmatprep.mubr.msk.f32.mxu1 %vm95_vm0, %v18766_v61  ;;  %v20569_v52 = vld [vmem:[#allocation34_spill] sm:$0xff] }
 0x257   :  { %15293 = vmatprep.mubr.msk.f32.mxu0 %vm95_vm0, %v18532_v62  ;;  %v20570_v62 = vld [vmem:[#allocation35_spill] sm:$0xff] }
 0x258   :  { %v5248_v61 = vld [vmem:[#allocation2 + $0xf1] sm:$0xff] }
 0x259   :  { %14956 = vmatmul.mubr.msk.f32.gmra.mrb[56].mxu1 %vm95_vm0, %v18778_v11  ;;  %v5236_v11 = vld [vmem:[#allocation2 + $0x61] sm:$0xff] }
 0x25a   :  { %15294 = vmatmul.mubr.msk.f32.gmra.mrb[20].mxu0 %vm95_vm0, %v18534_v9  ;;  %14958 = vmatprep.mubr.msk.f32.mxu1 %vm95_vm0, %v18782_v53  ;;  %v20571_v9 = vld [vmem:[#allocation36_spill] sm:$0xff] }
 0x25b   :  { %15296 = vmatprep.mubr.msk.f32.mxu0 %vm95_vm0, %v18544_v12  ;;  %v20572_v12 = vld [vmem:[#allocation37_spill] sm:$0xff] }
 0x25d   :  { %14959 = vmatmul.mubr.msk.f32.gmra.mrb[58].mxu1 %vm95_vm0, %v18794_v6  ;;  %v5232_v6 = vld [vmem:[#allocation2 + $0x31] sm:$0xff] }
 0x25e   :  { %15297 = vmatmul.mubr.msk.f32.gmra.mrb[22].mxu0 %vm95_vm0, %v18546_v13  ;;  %14961 = vmatprep.mubr.msk.f32.mxu1 %vm95_vm0, %v18798_v37  ;;  %v20573_v13 = vld [vmem:[#allocation38_spill] sm:$0xff] }
 0x25f   :  { %15299 = vmatprep.mubr.msk.f32.mxu0 %vm95_vm0, %v18556_v14  ;;  %v20574_v14 = vld [vmem:[#allocation39_spill] sm:$0xff] }
 0x261   :  { %14962 = vmatmul.mubr.msk.f32.gmra.mrb[60].mxu1 %vm95_vm0, %v18810_v2  ;;  %v20580_v2 = vld [vmem:[#allocation45_spill] sm:$0xff] }
 0x262   :  { %15300 = vmatmul.mubr.msk.f32.gmra.mrb[24].mxu0 %vm95_vm0, %v18558_v15  ;;  %14964 = vmatprep.mubr.msk.f32.mxu1 %vm95_vm0, %v18814_v22  ;;  %v20575_v15 = vld [vmem:[#allocation40_spill] sm:$0xff] }
 0x263   :  { %15302 = vmatprep.mubr.msk.f32.mxu0 %vm95_vm0, %v18568_v23  ;;  %v20576_v23 = vld [vmem:[#allocation41_spill] sm:$0xff] }
 0x265   :  { %14965 = vmatmul.mubr.msk.f32.gmra.mrb[62].mxu1 %vm95_vm0, %v18824_v10  ;;  %v5235_v10 = vld [vmem:[#allocation2 + $0x51] sm:$0xff] }
 0x266   :  { %15303 = vmatmul.mubr.msk.f32.gmra.mrb[26].mxu0 %vm95_vm0, %v20552_v55  ;;  %v5250_v55 = vld [vmem:[#allocation2 + $0x109] sm:$0xff] }
 0x267   :  { %15305 = vmatprep.mubr.msk.f32.mxu0 %vm95_vm0, %v4550_v0 }
 0x26a   :  { %15306 = vmatmul.mubr.msk.f32.gmra.mrb[28].mxu0 %vm95_vm0, %v4551_v57 }
 0x26b   :  { %15308 = vmatprep.mubr.msk.f32.mxu0 %vm95_vm0, %v4552_v58  ;;  %v5251_v58 = vld [vmem:[#allocation2 + $0x111] sm:$0xff] }
 0x26e   :  { %15309 = vmatmul.mubr.msk.f32.gmra.mrb[30].mxu0 %vm95_vm0, %v4553_v59 }
 0x26f   :  { %15311 = vmatprep.mubr.msk.f32.mxu0 %vm95_vm0, %v20553_v28  ;;  %v5252_v28 = vld [vmem:[#allocation2 + $0x121] sm:$0xff] }
 0x272   :  { %15312 = vmatmul.mubr.msk.f32.gmra.mrb[32].mxu0 %vm95_vm0, %v20554_v29 }
 0x273   :  { %15314 = vmatprep.mubr.msk.f32.mxu0 %vm95_vm0, %v20555_v56  ;;  %v19030_v20 = vpop.f32.mrb[0].mxu1  ;;  %v5253_v56 = vld [vmem:[#allocation2 + $0x129] sm:$0xff] }
 0x274   :  { %v19033_v22 = vpop.f32.mrb[1].mxu1 }
 0x276   :  { %15315 = vmatmul.mubr.msk.f32.gmra.mrb[34].mxu0 %vm95_vm0, %v20556_v31 }
 0x277   :  { %15317 = vmatprep.mubr.msk.f32.mxu0 %vm95_vm0, %v20557_v60  ;;  %v19036_v26 = vpop.f32.mrb[2].mxu1  ;;  %v5254_v60 = vld [vmem:[#allocation2 + $0x139] sm:$0xff] }
 0x278   :  { %v19039_v37 = vpop.f32.mrb[3].mxu1 }
 0x27a   :  { %15318 = vmatmul.mubr.msk.f32.gmra.mrb[36].mxu0 %vm95_vm0, %v20558_v33 }
 0x27b   :  { %15320 = vmatprep.mubr.msk.f32.mxu0 %vm95_vm0, %v20559_v34  ;;  %v19042_v50 = vpop.f32.mrb[4].mxu1  ;;  %v5255_v34 = vld [vmem:[#allocation2 + $0x141] sm:$0xff] }
 0x27c   :  { %v19045_v53 = vpop.f32.mrb[5].mxu1 }
 0x27e   :  { %15321 = vmatmul.mubr.msk.f32.gmra.mrb[38].mxu0 %vm95_vm0, %v20560_v35 }
 0x27f   :  { %15323 = vmatprep.mubr.msk.f32.mxu0 %vm95_vm0, %v20561_v36  ;;  %v5256_v36 = vld [vmem:[#allocation2 + $0x151] sm:$0xff] }
 0x282   :  { %15324 = vmatmul.mubr.msk.f32.gmra.mrb[40].mxu0 %vm95_vm0, %v20562_v41 }
 0x283   :  { %15326 = vmatprep.mubr.msk.f32.mxu0 %vm95_vm0, %v20563_v42  ;;  %v19048_v38 = vpop.f32.mrb[6].mxu1  ;;  %v5257_v42 = vld [vmem:[#allocation2 + $0x159] sm:$0xff] }
 0x284   :  { %v19051_v40 = vpop.f32.mrb[7].mxu1 }
 0x286   :  { %15327 = vmatmul.mubr.msk.f32.gmra.mrb[42].mxu0 %vm95_vm0, %v20564_v43 }
 0x287   :  { %15329 = vmatprep.mubr.msk.f32.mxu0 %vm95_vm0, %v20565_v44  ;;  %v5258_v44 = vld [vmem:[#allocation2 + $0x169] sm:$0xff] }
 0x288   :  { %v19054_v49 = vpop.f32.mrb[8].mxu1 }
 0x289   :  { %v19057_v0 = vpop.f32.mrb[9].mxu1 }
 0x28a   :  { %15330 = vmatmul.mubr.msk.f32.gmra.mrb[44].mxu0 %vm95_vm0, %v20566_v45 }
 0x28b   :  { %15332 = vmatprep.mubr.msk.f32.mxu0 %vm95_vm0, %v20567_v46  ;;  %v5259_v46 = vld [vmem:[#allocation2 + $0x171] sm:$0xff] }
 0x28c   :  { %v19060_v57 = vpop.f32.mrb[10].mxu1 }
 0x28d   :  { %v19063_v59 = vpop.f32.mrb[11].mxu1 }
 0x28e   :  { %15333 = vmatmul.mubr.msk.f32.gmra.mrb[46].mxu0 %vm95_vm0, %v20568_v48 }
 0x28f   :  { %15335 = vmatprep.mubr.msk.f32.mxu0 %vm95_vm0, %v20569_v52  ;;  %v5260_v52 = vld [vmem:[#allocation2 + $0x181] sm:$0xff] }
 0x290   :  { %v19066_v29 = vpop.f32.mrb[12].mxu1 }
 0x291   :  { %v19069_v31 = vpop.f32.mrb[13].mxu1 }
 0x292   :  { %15336 = vmatmul.mubr.msk.f32.gmra.mrb[48].mxu0 %vm95_vm0, %v20570_v62 }
 0x293   :  { %15338 = vmatprep.mubr.msk.f32.mxu0 %vm95_vm0, %v20571_v9  ;;  %v5261_v9 = vld [vmem:[#allocation2 + $0x189] sm:$0xff] }
 0x294   :  { %v19072_v33 = vpop.f32.mrb[14].mxu1 }
 0x295   :  { %v19075_v35 = vpop.f32.mrb[15].mxu1 }
 0x296   :  { %15339 = vmatmul.mubr.msk.f32.gmra.mrb[50].mxu0 %vm95_vm0, %v20572_v12 }
 0x297   :  { %15341 = vmatprep.mubr.msk.f32.mxu0 %vm95_vm0, %v20573_v13  ;;  %v5262_v13 = vld [vmem:[#allocation2 + $0x199] sm:$0xff] }
 0x298   :  { %v19078_v41 = vpop.f32.mrb[16].mxu1 }
 0x299   :  { %v19081_v43 = vpop.f32.mrb[17].mxu1 }
 0x29a   :  { %15342 = vmatmul.mubr.msk.f32.gmra.mrb[52].mxu0 %vm95_vm0, %v20574_v14 }
 0x29b   :  { %15344 = vmatprep.mubr.msk.f32.mxu0 %vm95_vm0, %v20575_v15  ;;  %v5263_v15 = vld [vmem:[#allocation2 + $0x1a1] sm:$0xff] }
 0x29c   :  { %v19084_v45 = vpop.f32.mrb[18].mxu1 }
 0x29d   :  { %v19087_v48 = vpop.f32.mrb[19].mxu1 }
 0x29e   :  { %15345 = vmatmul.mubr.msk.f32.gmra.mrb[54].mxu0 %vm95_vm0, %v20576_v23 }
 0x29f   :  { %15347 = vmatprep.mubr.msk.f32.mxu0 %vm95_vm0, %v20577_v25  ;;  %v5264_v25 = vld [vmem:[#allocation2 + $0x1e1] sm:$0xff] }
 0x2a0   :  { %v19090_v62 = vpop.f32.mrb[20].mxu1 }
 0x2a1   :  { %v19093_v12 = vpop.f32.mrb[21].mxu1 }
 0x2a2   :  { %15348 = vmatmul.mubr.msk.f32.gmra.mrb[56].mxu0 %vm95_vm0, %v20578_v54 }
 0x2a3   :  { %15350 = vmatprep.mubr.msk.f32.mxu0 %vm95_vm0, %v20579_v63  ;;  %v5265_v63 = vld [vmem:[#allocation2 + $0x1e9] sm:$0xff] }
 0x2a4   :  { %v19096_v14 = vpop.f32.mrb[22].mxu1 }
 0x2a5   :  { %v19099_v23 = vpop.f32.mrb[23].mxu1 }
 0x2a6   :  { %15351 = vmatmul.mubr.msk.f32.gmra.mrb[58].mxu0 %vm95_vm0, %v20580_v2  ;;  %v5266_v2 = vld [vmem:[#allocation2 + $0x1f9] sm:$0xff] }
 0x2a7   :  { %15353 = vmatprep.mubr.msk.f32.mxu0 %vm95_vm0, %v4582_v1 }
 0x2a8   :  { %v19102_v54 = vpop.f32.mrb[24].mxu1 }
 0x2a9   :  { %v19105_v1 = vpop.f32.mrb[25].mxu1 }
 0x2aa   :  { %15354 = vmatmul.mubr.msk.f32.gmra.mrb[60].mxu0 %vm95_vm0, %v4583_v3 }
 0x2ab   :  { %15356 = vmatprep.mubr.msk.f32.mxu0 %vm95_vm0, %v4584_v4  ;;  %v5267_v4 = vld [vmem:[#allocation2 + $0x201] sm:$0xff] }
 0x2ac   :  { %v19108_v3 = vpop.f32.mrb[26].mxu1 }
 0x2ae   :  { %15357 = vmatmul.mubr.msk.f32.gmra.mrb[62].mxu0 %vm95_vm0, %v4585_v5  ;;  %v19111_v5 = vpop.f32.mrb[27].mxu1 }
 0x2af   :  { %15361 = vmatprep.mubr.msk.f32.mxu0 %vm95_vm0, %v5232_v6  ;;  %v5268_v6 = vld [vmem:[#allocation2 + $0x211] sm:$0xff] }
 0x2b2   :  { %15362 = vmatmul.mubr.msk.f32.vlgmr.msra.gmra.mrb[0].mxu0 %vm95_vm0, %v5233_v7  ;;  %v19114_v7 = vpop.f32.mrb[28].mxu1 }
 0x2b3   :  { %15458 = vmatpush3.msk.msra.mxu0 %vm712_vm2, %v18840_v30  ;;  %15364 = vmatprep.mubr.msk.f32.mxu0 %vm95_vm0, %v5234_v8  ;;  %v5249_v30 = vld [vmem:[#allocation2 + $0xf9] sm:$0xff] }
 0x2b4   :  { %v5269_v8 = vld [vmem:[#allocation2 + $0x219] sm:$0xff] }
 0x2b6   :  { %15365 = vmatmul.mubr.msk.f32.gmra.mrb[2].mxu0 %vm95_vm0, %v5235_v10  ;;  %v19117_v10 = vpop.f32.mrb[29].mxu1 }
 0x2b7   :  { %15367 = vmatprep.mubr.msk.f32.mxu0 %vm95_vm0, %v5236_v11  ;;  %v5270_v11 = vld [vmem:[#allocation2 + $0x229] sm:$0xff] }
 0x2ba   :  { %15368 = vmatmul.mubr.msk.f32.gmra.mrb[4].mxu0 %vm95_vm0, %v5237_v16  ;;  %v5271_v16 = vld [vmem:[#allocation2 + $0x231] sm:$0xff] }
 0x2bb   :  { %15370 = vmatprep.mubr.msk.f32.mxu0 %vm95_vm0, %v5238_v17  ;;  %v5272_v17 = vld [vmem:[#allocation2 + $0x241] sm:$0xff] }
 0x2be   :  { %15371 = vmatmul.mubr.msk.f32.gmra.mrb[6].mxu0 %vm95_vm0, %v5239_v18 }
 0x2bf   :  { %15373 = vmatprep.mubr.msk.f32.mxu0 %vm95_vm0, %v5240_v19 }
 0x2c2   :  { %15374 = vmatmul.mubr.msk.f32.gmra.mrb[8].mxu0 %vm95_vm0, %v5241_v21  ;;  %v5273_v21 = vld [vmem:[#allocation2 + $0x249] sm:$0xff] }
 0x2c3   :  { %15376 = vmatprep.mubr.msk.f32.mxu0 %vm95_vm0, %v5242_v24  ;;  %v5274_v24 = vld [vmem:[#allocation2 + $0x259] sm:$0xff] }
 0x2c6   :  { %15377 = vmatmul.mubr.msk.f32.gmra.mrb[10].mxu0 %vm95_vm0, %v5243_v27 }
 0x2c7   :  { %15379 = vmatprep.mubr.msk.f32.mxu0 %vm95_vm0, %v5244_v39 }
 0x2ca   :  { %15380 = vmatmul.mubr.msk.f32.gmra.mrb[12].mxu0 %vm95_vm0, %v5245_v51  ;;  %v5275_v51 = vld [vmem:[#allocation2 + $0x261] sm:$0xff] }
 0x2cb   :  { %15382 = vmatprep.mubr.msk.f32.mxu0 %vm95_vm0, %v5246_v32  ;;  %v5276_v32 = vld [vmem:[#allocation2 + $0x271] sm:$0xff] }
 0x2ce   :  { %15383 = vmatmul.mubr.msk.f32.gmra.mrb[14].mxu0 %vm95_vm0, %v5247_v47 }
 0x2cf   :  { %15385 = vmatprep.mubr.msk.f32.mxu0 %vm95_vm0, %v5248_v61 }
 0x2d2   :  { %15386 = vmatmul.mubr.msk.f32.gmra.mrb[16].mxu0 %vm95_vm0, %v5249_v30  ;;  %v5277_v30 = vld [vmem:[#allocation2 + $0x279] sm:$0xff] }
 0x2d3   :  { %15388 = vmatprep.mubr.msk.f32.mxu0 %vm95_vm0, %v5250_v55  ;;  %v5278_v55 = vld [vmem:[#allocation2 + $0x289] sm:$0xff] }
 0x2d6   :  { %15389 = vmatmul.mubr.msk.f32.gmra.mrb[18].mxu0 %vm95_vm0, %v5251_v58 }
 0x2d7   :  { %15391 = vmatprep.mubr.msk.f32.mxu0 %vm95_vm0, %v5252_v28 }
 0x2da   :  { %15392 = vmatmul.mubr.msk.f32.gmra.mrb[20].mxu0 %vm95_vm0, %v5253_v56  ;;  %v5279_v56 = vld [vmem:[#allocation2 + $0x291] sm:$0xff] }
 0x2db   :  { %15394 = vmatprep.mubr.msk.f32.mxu0 %vm95_vm0, %v5254_v60  ;;  %v5280_v60 = vld [vmem:[#allocation2 + $0x2a1] sm:$0xff] }
 0x2de   :  { %15395 = vmatmul.mubr.msk.f32.gmra.mrb[22].mxu0 %vm95_vm0, %v5255_v34 }
 0x2df   :  { %15397 = vmatprep.mubr.msk.f32.mxu0 %vm95_vm0, %v5256_v36 }
 0x2e2   :  { %15398 = vmatmul.mubr.msk.f32.gmra.mrb[24].mxu0 %vm95_vm0, %v5257_v42  ;;  %v5281_v42 = vld [vmem:[#allocation2 + $0x2a9] sm:$0xff] }
 0x2e3   :  { %15400 = vmatprep.mubr.msk.f32.mxu0 %vm95_vm0, %v5258_v44  ;;  %v5282_v44 = vld [vmem:[#allocation2 + $0x2b9] sm:$0xff] }
 0x2e6   :  { %15401 = vmatmul.mubr.msk.f32.gmra.mrb[26].mxu0 %vm95_vm0, %v5259_v46 }
 0x2e7   :  { %15403 = vmatprep.mubr.msk.f32.mxu0 %vm95_vm0, %v5260_v52 }
 0x2ea   :  { %15404 = vmatmul.mubr.msk.f32.gmra.mrb[28].mxu0 %vm95_vm0, %v5261_v9  ;;  %v5283_v9 = vld [vmem:[#allocation2 + $0x2c1] sm:$0xff] }
 0x2eb   :  { %15406 = vmatprep.mubr.msk.f32.mxu0 %vm95_vm0, %v5262_v13  ;;  %v5284_v13 = vld [vmem:[#allocation2 + $0x2d1] sm:$0xff] }
 0x2ee   :  { %15407 = vmatmul.mubr.msk.f32.gmra.mrb[30].mxu0 %vm95_vm0, %v5263_v15 }
 0x2ef   :  { %15409 = vmatprep.mubr.msk.f32.mxu0 %vm95_vm0, %v5264_v25 }
 0x2f2   :  { %15410 = vmatmul.mubr.msk.f32.gmra.mrb[32].mxu0 %vm95_vm0, %v5265_v63  ;;  %v5285_v63 = vld [vmem:[#allocation2 + $0x2d9] sm:$0xff] }
 0x2f3   :  { %15412 = vmatprep.mubr.msk.f32.mxu0 %vm95_vm0, %v5266_v2  ;;  %v5286_v2 = vld [vmem:[#allocation2 + $0x2e9] sm:$0xff] }
 0x2f6   :  { %15413 = vmatmul.mubr.msk.f32.gmra.mrb[34].mxu0 %vm95_vm0, %v5267_v4 }
 0x2f7   :  { %15415 = vmatprep.mubr.msk.f32.mxu0 %vm95_vm0, %v5268_v6 }
 0x2f8   :  { %v19121_v18 = vpop.f32.mrb[30].mxu1 }
 0x2f9   :  { %v19123_v19 = vpop.f32.mrb[31].mxu1 }
 0x2fa   :  { %15416 = vmatmul.mubr.msk.f32.gmra.mrb[36].mxu0 %vm95_vm0, %v5269_v8  ;;  %v5287_v8 = vld [vmem:[#allocation2 + $0x2f1] sm:$0xff] }
 0x2fb   :  { %15418 = vmatprep.mubr.msk.f32.mxu0 %vm95_vm0, %v5270_v11  ;;  %v5288_v11 = vld [vmem:[#allocation2 + $0x301] sm:$0xff] }
 0x2fc   :  { %v19127_v27 = vpop.f32.mrb[32].mxu1 }
 0x2fd   :  { %v19129_v39 = vpop.f32.mrb[33].mxu1 }
 0x2fe   :  { %15419 = vmatmul.mubr.msk.f32.gmra.mrb[38].mxu0 %vm95_vm0, %v5271_v16 }
 0x2ff   :  { %15421 = vmatprep.mubr.msk.f32.mxu0 %vm95_vm0, %v5272_v17 }
 0x300   :  { %v19133_v47 = vpop.f32.mrb[34].mxu1 }
 0x301   :  { %v19135_v61 = vpop.f32.mrb[35].mxu1 }
 0x302   :  { %15422 = vmatmul.mubr.msk.f32.gmra.mrb[40].mxu0 %vm95_vm0, %v5273_v21  ;;  %v5289_v21 = vld [vmem:[#allocation2 + $0x309] sm:$0xff] }
 0x303   :  { %15424 = vmatprep.mubr.msk.f32.mxu0 %vm95_vm0, %v5274_v24  ;;  %v5290_v24 = vld [vmem:[#allocation2 + $0x319] sm:$0xff] }
 0x304   :  { %v19139_v58 = vpop.f32.mrb[36].mxu1 }
 0x305   :  { %v19141_v28 = vpop.f32.mrb[37].mxu1 }
 0x306   :  { %15425 = vmatmul.mubr.msk.f32.gmra.mrb[42].mxu0 %vm95_vm0, %v5275_v51 }
 0x307   :  { %15427 = vmatprep.mubr.msk.f32.mxu0 %vm95_vm0, %v5276_v32 }
 0x308   :  { %v19145_v34 = vpop.f32.mrb[38].mxu1 }
 0x309   :  { %v19147_v36 = vpop.f32.mrb[39].mxu1 }
 0x30a   :  { %15428 = vmatmul.mubr.msk.f32.gmra.mrb[44].mxu0 %vm95_vm0, %v5277_v30  ;;  %v5291_v30 = vld [vmem:[#allocation2 + $0x321] sm:$0xff] }
 0x30b   :  { %15430 = vmatprep.mubr.msk.f32.mxu0 %vm95_vm0, %v5278_v55  ;;  %v5292_v55 = vld [vmem:[#allocation2 + $0x331] sm:$0xff] }
 0x30c   :  { %v19151_v46 = vpop.f32.mrb[40].mxu1 }
 0x30d   :  { %v19153_v52 = vpop.f32.mrb[41].mxu1 }
 0x30e   :  { %15431 = vmatmul.mubr.msk.f32.gmra.mrb[46].mxu0 %vm95_vm0, %v5279_v56 }
 0x30f   :  { %15433 = vmatprep.mubr.msk.f32.mxu0 %vm95_vm0, %v5280_v60 }
 0x310   :  { %v19157_v15 = vpop.f32.mrb[42].mxu1 }
 0x311   :  { %v19159_v25 = vpop.f32.mrb[43].mxu1 }
 0x312   :  { %15434 = vmatmul.mubr.msk.f32.gmra.mrb[48].mxu0 %vm95_vm0, %v5281_v42  ;;  %v5293_v42 = vld [vmem:[#allocation2 + $0x339] sm:$0xff] }
 0x313   :  { %15436 = vmatprep.mubr.msk.f32.mxu0 %vm95_vm0, %v5282_v44  ;;  %v5294_v44 = vld [vmem:[#allocation2 + $0x349] sm:$0xff] }
 0x314   :  { %v19163_v4 = vpop.f32.mrb[44].mxu1 }
 0x315   :  { %v19165_v6 = vpop.f32.mrb[45].mxu1 }
 0x316   :  { %15437 = vmatmul.mubr.msk.f32.gmra.mrb[50].mxu0 %vm95_vm0, %v5283_v9 }
 0x317   :  { %15439 = vmatprep.mubr.msk.f32.mxu0 %vm95_vm0, %v5284_v13 }
 0x318   :  { %v19169_v16 = vpop.f32.mrb[46].mxu1 }
 0x319   :  { %v19171_v17 = vpop.f32.mrb[47].mxu1 }
 0x31a   :  { %15440 = vmatmul.mubr.msk.f32.gmra.mrb[52].mxu0 %vm95_vm0, %v5285_v63  ;;  %v5295_v63 = vld [vmem:[#allocation2 + $0x351] sm:$0xff] }
 0x31b   :  { %15442 = vmatprep.mubr.msk.f32.mxu0 %vm95_vm0, %v5286_v2  ;;  %v5942_v2 = vld [vmem:[#allocation2 + $0x32] sm:$0xff] }
 0x31c   :  { %v19175_v51 = vpop.f32.mrb[48].mxu1 }
 0x31d   :  { %v19177_v32 = vpop.f32.mrb[49].mxu1 }
 0x31e   :  { %15443 = vmatmul.mubr.msk.f32.gmra.mrb[54].mxu0 %vm95_vm0, %v5287_v8  ;;  %20581 = vst [vmem:[#allocation17_spill] sm:$0xff] %v19177_v32 }
 0x31f   :  { %15445 = vmatprep.mubr.msk.f32.mxu0 %vm95_vm0, %v5288_v11 }
 0x320   :  { %v19181_v56 = vpop.f32.mrb[50].mxu1 }
 0x321   :  { %20582 = vst [vmem:[#allocation18_spill] sm:$0xff] %v19181_v56  ;;  %v19183_v60 = vpop.f32.mrb[51].mxu1 }
 0x322   :  { %15446 = vmatmul.mubr.msk.f32.gmra.mrb[56].mxu0 %vm95_vm0, %v5289_v21  ;;  %20583 = vst [vmem:[#allocation19_spill] sm:$0xff] %v19183_v60  ;;  %v5943_v21 = vld [vmem:[#allocation2 + $0x3a] sm:$0xff] }
 0x323   :  { %15448 = vmatprep.mubr.msk.f32.mxu0 %vm95_vm0, %v5290_v24  ;;  %v20588_v24 = vmov 0.0  }
 0x324   :  { %v19187_v9 = vpop.f32.mrb[52].mxu1  ;;  %206 = vst.msk [vmem:[#allocation3] sm:$0xff] %vm205_vm3, %v20588_v24  ;;  %209 = vst.msk [vmem:[#allocation3 + $0x10] sm:$0xff] %vm205_vm3, %v20588_v24 }
 0x325   :  { %20584 = vst [vmem:[#allocation20_spill] sm:$0xff] %v19187_v9  ;;  %v19189_v13 = vpop.f32.mrb[53].mxu1  ;;  %211 = vst.msk [vmem:[#allocation3 + $0x20] sm:$0xff] %vm205_vm3, %v20588_v24 }
 0x326   :  { %15449 = vmatmul.mubr.msk.f32.gmra.mrb[58].mxu0 %vm95_vm0, %v5291_v30  ;;  %20585 = vst [vmem:[#allocation21_spill] sm:$0xff] %v19189_v13  ;;  %213 = vst.msk [vmem:[#allocation3 + $0x30] sm:$0xff] %vm205_vm3, %v20588_v24  ;;  %v5944_v30 = vld [vmem:[#allocation2 + $0x4a] sm:$0xff]  ;;  %v5948_v13 = vld [vmem:[#allocation2 + $0x7a] sm:$0xff] }
 0x327   :  { %15451 = vmatprep.mubr.msk.f32.mxu0 %vm95_vm0, %v5292_v55  ;;  %215 = vst.msk [vmem:[#allocation3 + $0x40] sm:$0xff] %vm205_vm3, %v20588_v24  ;;  %217 = vst.msk [vmem:[#allocation3 + $0x50] sm:$0xff] %vm205_vm3, %v20588_v24 }
 0x328   :  { %v19193_v8 = vpop.f32.mrb[54].mxu1  ;;  %219 = vst.msk [vmem:[#allocation3 + $0x60] sm:$0xff] %vm205_vm3, %v20588_v24  ;;  %221 = vst.msk [vmem:[#allocation3 + $0x70] sm:$0xff] %vm205_vm3, %v20588_v24 }
 0x329   :  { %20586 = vst [vmem:[#allocation22_spill] sm:$0xff] %v19193_v8  ;;  %v19195_v11 = vpop.f32.mrb[55].mxu1  ;;  %223 = vst.msk [vmem:[#allocation3 + $0x80] sm:$0xff] %vm205_vm3, %v20588_v24  ;;  %v5947_v8 = vld [vmem:[#allocation2 + $0x6a] sm:$0xff] }
 0x32a   :  { %15452 = vmatmul.mubr.msk.f32.gmra.mrb[60].mxu0 %vm95_vm0, %v5293_v42  ;;  %20587 = vst [vmem:[#allocation23_spill] sm:$0xff] %v19195_v11  ;;  %225 = vst.msk [vmem:[#allocation3 + $0x90] sm:$0xff] %vm205_vm3, %v20588_v24 }
 0x32b   :  { %15454 = vmatprep.mubr.msk.f32.mxu0 %vm95_vm0, %v5294_v44  ;;  %227 = vst.msk [vmem:[#allocation3 + $0xa0] sm:$0xff] %vm205_vm3, %v20588_v24  ;;  %229 = vst.msk [vmem:[#allocation3 + $0xb0] sm:$0xff] %vm205_vm3, %v20588_v24  ;;  %v5945_v44 = vld [vmem:[#allocation2 + $0x52] sm:$0xff] }
 0x32c   :  { %231 = vst.msk [vmem:[#allocation3 + $0xc0] sm:$0xff] %vm205_vm3, %v20588_v24  ;;  %233 = vst.msk [vmem:[#allocation3 + $0xd0] sm:$0xff] %vm205_vm3, %v20588_v24  ;;  %v19239_v55 = vpop.f32.mrb[56].mxu1 }
 0x32d   :  { %235 = vst.msk [vmem:[#allocation3 + $0xe0] sm:$0xff] %vm205_vm3, %v20588_v24  ;;  %237 = vst.msk [vmem:[#allocation3 + $0xf0] sm:$0xff] %vm205_vm3, %v20588_v24  ;;  %v19241_v42 = vpop.f32.mrb[57].mxu1 }
 0x32e   :  { %15455 = vmatmul.mubr.msk.f32.gmra.mrb[62].mxu0 %vm95_vm0, %v5295_v63  ;;  %239 = vst.msk [vmem:[#allocation3 + $0x100] sm:$0xff] %vm205_vm3, %v20588_v24  ;;  %241 = vst.msk [vmem:[#allocation3 + $0x110] sm:$0xff] %vm205_vm3, %v20588_v24  ;;  %v5946_v63 = vld [vmem:[#allocation2 + $0x62] sm:$0xff] }
 0x32f   :  { %15459 = vmatprep.mubr.msk.f32.mxu0 %vm95_vm0, %v5942_v2  ;;  %243 = vst.msk [vmem:[#allocation3 + $0x120] sm:$0xff] %vm205_vm3, %v20588_v24  ;;  %245 = vst.msk [vmem:[#allocation3 + $0x130] sm:$0xff] %vm205_vm3, %v20588_v24 }
 0x330   :  { %20589 = vst [vmem:[#allocation24_spill] sm:$0xff] %v19239_v55  ;;  %20590 = vst [vmem:[#allocation25_spill] sm:$0xff] %v19241_v42  ;;  %v19245_v2 = vpop.f32.mrb[58].mxu1 }
 0x331   :  { %20591 = vst [vmem:[#allocation26_spill] sm:$0xff] %v19245_v2  ;;  %v19247_v11 = vpop.f32.mrb[59].mxu1  ;;  %208 = vst.msk [vmem:[#allocation3 + $0x8] sm:$0x3] %vm207_vm4, %v20588_v24 }
 0x332   :  { %15460 = vmatmul.mubr.msk.f32.vlgmr.msra.gmra.mrb[0].mxu0 %vm95_vm0, %v5943_v21  ;;  %20592 = vst [vmem:[#allocation27_spill] sm:$0xff] %v19247_v11  ;;  %v5949_v21 = vld [vmem:[#allocation2 + $0x82] sm:$0xff]  ;;  %210 = vst.msk [vmem:[#allocation3 + $0x18] sm:$0x3] %vm207_vm4, %v20588_v24 }
 0x333   :  { %15462 = vmatprep.mubr.msk.f32.mxu0 %vm95_vm0, %v5944_v30  ;;  %v5950_v30 = vld [vmem:[#allocation2 + $0x92] sm:$0xff]  ;;  %212 = vst.msk [vmem:[#allocation3 + $0x28] sm:$0x3] %vm207_vm4, %v20588_v24  ;;  %214 = vst.msk [vmem:[#allocation3 + $0x38] sm:$0x3] %vm207_vm4, %v20588_v24 }
 0x334   :  { %v19251_v9 = vpop.f32.mrb[60].mxu1  ;;  %216 = vst.msk [vmem:[#allocation3 + $0x48] sm:$0x3] %vm207_vm4, %v20588_v24  ;;  %218 = vst.msk [vmem:[#allocation3 + $0x58] sm:$0x3] %vm207_vm4, %v20588_v24 }
 0x335   :  { %20593 = vst [vmem:[#allocation28_spill] sm:$0xff] %v19251_v9  ;;  %v19253_v55 = vpop.f32.mrb[61].mxu1  ;;  %220 = vst.msk [vmem:[#allocation3 + $0x68] sm:$0x3] %vm207_vm4, %v20588_v24 }
 0x336   :  { %15463 = vmatmul.mubr.msk.f32.gmra.mrb[2].mxu0 %vm95_vm0, %v5945_v44  ;;  %20594 = vst [vmem:[#allocation29_spill] sm:$0xff] %v19253_v55  ;;  %v5951_v44 = vld [vmem:[#allocation2 + $0x9a] sm:$0xff]  ;;  %v5953_v55 = vld [vmem:[#allocation2 + $0xb2] sm:$0xff]  ;;  %222 = vst.msk [vmem:[#allocation3 + $0x78] sm:$0x3] %vm207_vm4, %v20588_v24 }
 0x337   :  { %15465 = vmatprep.mubr.msk.f32.mxu0 %vm95_vm0, %v5946_v63  ;;  %v5952_v63 = vld [vmem:[#allocation2 + $0xaa] sm:$0xff]  ;;  %224 = vst.msk [vmem:[#allocation3 + $0x88] sm:$0x3] %vm207_vm4, %v20588_v24  ;;  %226 = vst.msk [vmem:[#allocation3 + $0x98] sm:$0x3] %vm207_vm4, %v20588_v24 }
 0x338   :  { %v19257_v42 = vpop.f32.mrb[62].mxu1  ;;  %228 = vst.msk [vmem:[#allocation3 + $0xa8] sm:$0x3] %vm207_vm4, %v20588_v24  ;;  %230 = vst.msk [vmem:[#allocation3 + $0xb8] sm:$0x3] %vm207_vm4, %v20588_v24 }
 0x339   :  { %20595 = vst [vmem:[#allocation30_spill] sm:$0xff] %v19257_v42  ;;  %v19259_v2 = vpop.f32.mrb[63].mxu1  ;;  %v5956_v42 = vld [vmem:[#allocation2 + $0xda] sm:$0xff]  ;;  %232 = vst.msk [vmem:[#allocation3 + $0xc8] sm:$0x3] %vm207_vm4, %v20588_v24 }
 0x33a   :  { %15466 = vmatmul.mubr.msk.f32.gmra.mrb[4].mxu0 %vm95_vm0, %v5947_v8  ;;  %20596 = vst [vmem:[#allocation31_spill] sm:$0xff] %v19259_v2  ;;  %v5954_v8 = vld [vmem:[#allocation2 + $0xc2] sm:$0xff]  ;;  %234 = vst.msk [vmem:[#allocation3 + $0xd8] sm:$0x3] %vm207_vm4, %v20588_v24 }
 0x33b   :  { %15468 = vmatprep.mubr.msk.f32.mxu0 %vm95_vm0, %v5948_v13  ;;  %v5955_v13 = vld [vmem:[#allocation2 + $0xca] sm:$0xff]  ;;  %236 = vst.msk [vmem:[#allocation3 + $0xe8] sm:$0x3] %vm207_vm4, %v20588_v24  ;;  %238 = vst.msk [vmem:[#allocation3 + $0xf8] sm:$0x3] %vm207_vm4, %v20588_v24 }
 0x33c   :  { %240 = vst.msk [vmem:[#allocation3 + $0x108] sm:$0x3] %vm207_vm4, %v20588_v24  ;;  %242 = vst.msk [vmem:[#allocation3 + $0x118] sm:$0x3] %vm207_vm4, %v20588_v24 }
 0x33d   :  { %244 = vst.msk [vmem:[#allocation3 + $0x128] sm:$0x3] %vm207_vm4, %v20588_v24  ;;  %246 = vst.msk [vmem:[#allocation3 + $0x138] sm:$0x3] %vm207_vm4, %v20588_v24  ;;  %v6004_v24 = vld [vmem:[#allocation2 + $0x34a] sm:$0xff] }
 0x33e   :  { %15469 = vmatmul.mubr.msk.f32.gmra.mrb[6].mxu0 %vm95_vm0, %v5949_v21  ;;  %v5957_v21 = vld [vmem:[#allocation2 + $0xe2] sm:$0xff] }
 0x33f   :  { %15471 = vmatprep.mubr.msk.f32.mxu0 %vm95_vm0, %v5950_v30  ;;  %v5958_v30 = vld [vmem:[#allocation2 + $0xf2] sm:$0xff] }
 0x342   :  { %15472 = vmatmul.mubr.msk.f32.gmra.mrb[8].mxu0 %vm95_vm0, %v5951_v44  ;;  %v5959_v44 = vld [vmem:[#allocation2 + $0xfa] sm:$0xff] }
 0x343   :  { %15474 = vmatprep.mubr.msk.f32.mxu0 %vm95_vm0, %v5952_v63  ;;  %v5960_v63 = vld [vmem:[#allocation2 + $0x10a] sm:$0xff] }
 0x346   :  { %15475 = vmatmul.mubr.msk.f32.gmra.mrb[10].mxu0 %vm95_vm0, %v5953_v55  ;;  %v5961_v55 = vld [vmem:[#allocation2 + $0x112] sm:$0xff] }
 0x347   :  { %15477 = vmatprep.mubr.msk.f32.mxu0 %vm95_vm0, %v5954_v8  ;;  %v5962_v8 = vld [vmem:[#allocation2 + $0x122] sm:$0xff] }
 0x34a   :  { %15478 = vmatmul.mubr.msk.f32.gmra.mrb[12].mxu0 %vm95_vm0, %v5955_v13  ;;  %v5963_v13 = vld [vmem:[#allocation2 + $0x12a] sm:$0xff] }
 0x34b   :  { %15480 = vmatprep.mubr.msk.f32.mxu0 %vm95_vm0, %v5956_v42  ;;  %v5964_v42 = vld [vmem:[#allocation2 + $0x13a] sm:$0xff] }
 0x34e   :  { %15481 = vmatmul.mubr.msk.f32.gmra.mrb[14].mxu0 %vm95_vm0, %v5957_v21  ;;  %v5965_v21 = vld [vmem:[#allocation2 + $0x142] sm:$0xff] }
 0x34f   :  { %15483 = vmatprep.mubr.msk.f32.mxu0 %vm95_vm0, %v5958_v30  ;;  %v5966_v30 = vld [vmem:[#allocation2 + $0x152] sm:$0xff] }
 0x352   :  { %15484 = vmatmul.mubr.msk.f32.gmra.mrb[16].mxu0 %vm95_vm0, %v5959_v44  ;;  %v5967_v44 = vld [vmem:[#allocation2 + $0x15a] sm:$0xff] }
 0x353   :  { %15486 = vmatprep.mubr.msk.f32.mxu0 %vm95_vm0, %v5960_v63  ;;  %v5968_v63 = vld [vmem:[#allocation2 + $0x16a] sm:$0xff] }
 0x356   :  { %15487 = vmatmul.mubr.msk.f32.gmra.mrb[18].mxu0 %vm95_vm0, %v5961_v55  ;;  %v5969_v55 = vld [vmem:[#allocation2 + $0x172] sm:$0xff] }
 0x357   :  { %15489 = vmatprep.mubr.msk.f32.mxu0 %vm95_vm0, %v5962_v8  ;;  %v5970_v8 = vld [vmem:[#allocation2 + $0x182] sm:$0xff] }
 0x35a   :  { %15490 = vmatmul.mubr.msk.f32.gmra.mrb[20].mxu0 %vm95_vm0, %v5963_v13  ;;  %v5971_v13 = vld [vmem:[#allocation2 + $0x18a] sm:$0xff] }
 0x35b   :  { %15492 = vmatprep.mubr.msk.f32.mxu0 %vm95_vm0, %v5964_v42  ;;  %v5972_v42 = vld [vmem:[#allocation2 + $0x19a] sm:$0xff] }
 0x35e   :  { %15493 = vmatmul.mubr.msk.f32.gmra.mrb[22].mxu0 %vm95_vm0, %v5965_v21  ;;  %v5973_v21 = vld [vmem:[#allocation2 + $0x1a2] sm:$0xff] }
 0x35f   :  { %15495 = vmatprep.mubr.msk.f32.mxu0 %vm95_vm0, %v5966_v30  ;;  %v5974_v30 = vld [vmem:[#allocation2 + $0x1e2] sm:$0xff] }
 0x362   :  { %15496 = vmatmul.mubr.msk.f32.gmra.mrb[24].mxu0 %vm95_vm0, %v5967_v44  ;;  %v5975_v44 = vld [vmem:[#allocation2 + $0x1ea] sm:$0xff] }
 0x363   :  { %15498 = vmatprep.mubr.msk.f32.mxu0 %vm95_vm0, %v5968_v63  ;;  %v5976_v63 = vld [vmem:[#allocation2 + $0x1fa] sm:$0xff] }
 0x366   :  { %15499 = vmatmul.mubr.msk.f32.gmra.mrb[26].mxu0 %vm95_vm0, %v5969_v55  ;;  %v5977_v55 = vld [vmem:[#allocation2 + $0x202] sm:$0xff] }
 0x367   :  { %15501 = vmatprep.mubr.msk.f32.mxu0 %vm95_vm0, %v5970_v8  ;;  %v5978_v8 = vld [vmem:[#allocation2 + $0x212] sm:$0xff] }
 0x36a   :  { %15502 = vmatmul.mubr.msk.f32.gmra.mrb[28].mxu0 %vm95_vm0, %v5971_v13  ;;  %v5979_v13 = vld [vmem:[#allocation2 + $0x21a] sm:$0xff] }
 0x36b   :  { %15504 = vmatprep.mubr.msk.f32.mxu0 %vm95_vm0, %v5972_v42  ;;  %v5980_v42 = vld [vmem:[#allocation2 + $0x22a] sm:$0xff] }
 0x36e   :  { %15505 = vmatmul.mubr.msk.f32.gmra.mrb[30].mxu0 %vm95_vm0, %v5973_v21  ;;  %v5981_v21 = vld [vmem:[#allocation2 + $0x232] sm:$0xff] }
 0x36f   :  { %15507 = vmatprep.mubr.msk.f32.mxu0 %vm95_vm0, %v5974_v30  ;;  %v5982_v30 = vld [vmem:[#allocation2 + $0x242] sm:$0xff] }
 0x372   :  { %15508 = vmatmul.mubr.msk.f32.gmra.mrb[32].mxu0 %vm95_vm0, %v5975_v44  ;;  %v5983_v44 = vld [vmem:[#allocation2 + $0x24a] sm:$0xff] }
 0x373   :  { %15510 = vmatprep.mubr.msk.f32.mxu0 %vm95_vm0, %v5976_v63  ;;  %v5984_v63 = vld [vmem:[#allocation2 + $0x25a] sm:$0xff] }
 0x376   :  { %15511 = vmatmul.mubr.msk.f32.gmra.mrb[34].mxu0 %vm95_vm0, %v5977_v55  ;;  %v5985_v55 = vld [vmem:[#allocation2 + $0x262] sm:$0xff] }
 0x377   :  { %15513 = vmatprep.mubr.msk.f32.mxu0 %vm95_vm0, %v5978_v8  ;;  %v5986_v8 = vld [vmem:[#allocation2 + $0x272] sm:$0xff] }
 0x37a   :  { %15514 = vmatmul.mubr.msk.f32.gmra.mrb[36].mxu0 %vm95_vm0, %v5979_v13  ;;  %v5987_v13 = vld [vmem:[#allocation2 + $0x27a] sm:$0xff] }
 0x37b   :  { %15516 = vmatprep.mubr.msk.f32.mxu0 %vm95_vm0, %v5980_v42  ;;  %v5988_v42 = vld [vmem:[#allocation2 + $0x28a] sm:$0xff] }
 0x37e   :  { %15517 = vmatmul.mubr.msk.f32.gmra.mrb[38].mxu0 %vm95_vm0, %v5981_v21  ;;  %v5989_v21 = vld [vmem:[#allocation2 + $0x292] sm:$0xff] }
 0x37f   :  { %15519 = vmatprep.mubr.msk.f32.mxu0 %vm95_vm0, %v5982_v30  ;;  %v5990_v30 = vld [vmem:[#allocation2 + $0x2a2] sm:$0xff] }
 0x382   :  { %15520 = vmatmul.mubr.msk.f32.gmra.mrb[40].mxu0 %vm95_vm0, %v5983_v44  ;;  %v5991_v44 = vld [vmem:[#allocation2 + $0x2aa] sm:$0xff] }
 0x383   :  { %15522 = vmatprep.mubr.msk.f32.mxu0 %vm95_vm0, %v5984_v63  ;;  %v5992_v63 = vld [vmem:[#allocation2 + $0x2ba] sm:$0xff] }
 0x386   :  { %15523 = vmatmul.mubr.msk.f32.gmra.mrb[42].mxu0 %vm95_vm0, %v5985_v55  ;;  %v5993_v55 = vld [vmem:[#allocation2 + $0x2c2] sm:$0xff] }
 0x387   :  { %15525 = vmatprep.mubr.msk.f32.mxu0 %vm95_vm0, %v5986_v8  ;;  %v5994_v8 = vld [vmem:[#allocation2 + $0x2d2] sm:$0xff] }
 0x38a   :  { %15526 = vmatmul.mubr.msk.f32.gmra.mrb[44].mxu0 %vm95_vm0, %v5987_v13  ;;  %v5995_v13 = vld [vmem:[#allocation2 + $0x2da] sm:$0xff] }
 0x38b   :  { %15528 = vmatprep.mubr.msk.f32.mxu0 %vm95_vm0, %v5988_v42  ;;  %v5996_v42 = vld [vmem:[#allocation2 + $0x2ea] sm:$0xff] }
 0x38e   :  { %15529 = vmatmul.mubr.msk.f32.gmra.mrb[46].mxu0 %vm95_vm0, %v5989_v21  ;;  %v5997_v21 = vld [vmem:[#allocation2 + $0x2f2] sm:$0xff] }
 0x38f   :  { %15531 = vmatprep.mubr.msk.f32.mxu0 %vm95_vm0, %v5990_v30  ;;  %v5998_v30 = vld [vmem:[#allocation2 + $0x302] sm:$0xff] }
 0x392   :  { %15532 = vmatmul.mubr.msk.f32.gmra.mrb[48].mxu0 %vm95_vm0, %v5991_v44  ;;  %v13368_v44 = vld [vmem:[%s20472_s4 + $0x20] sm:$0xff] }
 0x393   :  { %15534 = vmatprep.mubr.msk.f32.mxu0 %vm95_vm0, %v5992_v63  ;;  %v13369_v63 = vld [vmem:[%s20472_s4 + $0x28] sm:$0xff] }
 0x394   :  { %v16221_v2 = vpack.c.bf16 %v13369_v63, %v13368_v44  ;;  %v6001_v44 = vld [vmem:[#allocation2 + $0x322] sm:$0xff] }
 0x395   :  { %v7134_v63 = vld [vmem:[#allocation3 + $0x1] sm:$0xff] }
 0x396   :  { %15535 = vmatmul.mubr.msk.f32.gmra.mrb[50].mxu0 %vm95_vm0, %v5993_v55  ;;  %v5999_v55 = vld [vmem:[#allocation2 + $0x30a] sm:$0xff]  ;;  %16222 = vmatprep.subr.bf16.mxu1 %v16221_v2 }
 0x397   :  { %15537 = vmatprep.mubr.msk.f32.mxu0 %vm95_vm0, %v5994_v8  ;;  %v6000_v8 = vld [vmem:[#allocation2 + $0x31a] sm:$0xff]  ;;  %16224 = vmatpush3.bf16.msra.mxu1 %v16221_v2 }
 0x398   :  { %15563 = vmatprep.mubr.msk.f32.mxu1 %vm205_vm3, %v7134_v63  ;;  %v6003_v2 = vld [vmem:[#allocation2 + $0x33a] sm:$0xff] }
 0x39a   :  { %15538 = vmatmul.mubr.msk.f32.gmra.mrb[52].mxu0 %vm95_vm0, %v5995_v13  ;;  %v13370_v13 = vld [vmem:[%s20472_s4 + $0x30] sm:$0xff] }
 0x39b   :  { %15540 = vmatprep.mubr.msk.f32.mxu0 %vm95_vm0, %v5996_v42  ;;  %v13371_v42 = vld [vmem:[%s20472_s4 + $0x38] sm:$0xff] }
 0x39e   :  { %15541 = vmatmul.mubr.msk.f32.gmra.mrb[54].mxu0 %vm95_vm0, %v5997_v21  ;;  %v16225_v21 = vpack.c.bf16 %v13371_v42, %v13370_v13  ;;  %v19374_v13 = vld [vmem:[%s20470_s2] ss:$0 sm:$0xff] }
 0x39f   :  { %15543 = vmatprep.mubr.msk.f32.mxu0 %vm95_vm0, %v5998_v30  ;;  %v6002_v30 = vld [vmem:[#allocation2 + $0x332] sm:$0xff] }
 0x3a0   :  { %16226 = vmatprep.subr.bf16.mxu1 %v16225_v21 }
 0x3a1   :  { %16228 = vmatpush3.bf16.msra.mxu1 %v16225_v21 }
 0x3a2   :  { %15544 = vmatmul.mubr.msk.f32.gmra.mrb[56].mxu0 %vm95_vm0, %v5999_v55  ;;  %v6005_v55 = vld [vmem:[#allocation2 + $0x352] sm:$0xff] }
 0x3a3   :  { %15546 = vmatprep.mubr.msk.f32.mxu0 %vm95_vm0, %v6000_v8 }
 0x3a6   :  { %15547 = vmatmul.mubr.msk.f32.gmra.mrb[58].mxu0 %vm95_vm0, %v6001_v44  ;;  %v19380_v44 = vld [vmem:[%s20471_s3] ss:$0 sm:$0xff] }
 0x3a7   :  { %15549 = vmatprep.mubr.msk.f32.mxu0 %vm95_vm0, %v6002_v30 }
 0x3aa   :  { %15550 = vmatmul.mubr.msk.f32.gmra.mrb[60].mxu0 %vm95_vm0, %v6003_v2 }
 0x3ab   :  { %15552 = vmatprep.mubr.msk.f32.mxu0 %vm95_vm0, %v6004_v24 }
 0x3ae   :  { %15553 = vmatmul.mubr.msk.f32.gmra.mrb[62].mxu0 %vm95_vm0, %v6005_v55 }
 0x405   :  { %v15461_v8 = vpop.f32.mrb[0].mxu0 }
 0x406   :  { %v16511_v42 = vadd.f32 %v15461_v8, %v19030_v20  ;;  %v6269_v21 = vpop.f32.mrb[1].mxu0 }
 0x407   :  { %v16512_v30 = vadd.f32 %v6269_v21, %v19033_v22 }
 0x408   :  { %v6660_v24 = vmul.f32 %v16511_v42, %v19374_v13 }
 0x409   :  { %v6659_v63 = vmul.f32 %v16512_v30, %v19374_v13  ;;  %v15464_v2 = vpop.f32.mrb[2].mxu0 }
 0x40a   :  { %v6731_v55 = vadd.f32 %v19380_v44, %v6660_v24  ;;  %v16513_v9 = vadd.f32 %v15464_v2, %v19036_v26  ;;  %v6279_v11 = vpop.f32.mrb[3].mxu0 }
 0x40b   :  { %v6730_v20 = vadd.f32 %v19380_v44, %v6659_v63  ;;  %v16514_v8 = vadd.f32 %v6279_v11, %v19039_v37  ;;  %v7131_v11 = vld [vmem:[%s20472_s4 + $0x8] sm:$0xff] }
 0x40c   :  { %v6795_v60 = vmax.f32 %v6731_v55, 0.0  ;;  %v6662_v56 = vmul.f32 %v16513_v9, %v19374_v13  ;;  %v7130_v9 = vld [vmem:[%s20472_s4] sm:$0xff] }
 0x40d   :  { %v6794_v32 = vmax.f32 %v6730_v20, 0.0  ;;  %v6661_v22 = vmul.f32 %v16514_v8, %v19374_v13  ;;  %v15467_v21 = vpop.f32.mrb[4].mxu0  ;;  %v19404_v63 = vpack.c.bf16 %v7131_v11, %v7130_v9 }
 0x40e   :  { %6859 = vst.msk [vmem:[#allocation5 + $0x8] sm:$0xff] %vm205_vm3, %v6795_v60  ;;  %v6733_v42 = vadd.f32 %v19380_v44, %v6662_v56  ;;  %v16515_v30 = vadd.f32 %v15467_v21, %v19042_v50  ;;  %v6289_v24 = vpop.f32.mrb[5].mxu0 }
 0x40f   :  { %6858 = vst.msk [vmem:[#allocation5] sm:$0xff] %vm205_vm3, %v6794_v32  ;;  %v6732_v26 = vadd.f32 %v19380_v44, %v6661_v22  ;;  %v16516_v37 = vadd.f32 %v6289_v24, %v19045_v53  ;;  %16230 = vmatprep.subr.bf16.mxu1 %v19404_v63 }
 0x410   :  { %v6797_v60 = vmax.f32 %v6733_v42, 0.0  ;;  %v6664_v56 = vmul.f32 %v16515_v30, %v19374_v13 }
 0x411   :  { %v6796_v50 = vmax.f32 %v6732_v26, 0.0  ;;  %v6663_v32 = vmul.f32 %v16516_v37, %v19374_v13  ;;  %v15470_v2 = vpop.f32.mrb[6].mxu0 }
 0x412   :  { %6861 = vst.msk [vmem:[#allocation5 + $0x18] sm:$0xff] %vm205_vm3, %v6797_v60  ;;  %v6735_v53 = vadd.f32 %v19380_v44, %v6664_v56  ;;  %v16517_v55 = vadd.f32 %v15470_v2, %v19048_v38  ;;  %v6299_v20 = vpop.f32.mrb[7].mxu0 }
 0x413   :  { %6860 = vst.msk [vmem:[#allocation5 + $0x10] sm:$0xff] %vm205_vm3, %v6796_v50  ;;  %v6734_v8 = vadd.f32 %v19380_v44, %v6663_v32  ;;  %v16518_v22 = vadd.f32 %v6299_v20, %v19051_v40 }
 0x414   :  { %v6799_v21 = vmax.f32 %v6735_v53, 0.0  ;;  %v6666_v42 = vmul.f32 %v16517_v55, %v19374_v13 }
 0x415   :  { %v6798_v30 = vmax.f32 %v6734_v8, 0.0  ;;  %v6665_v24 = vmul.f32 %v16518_v22, %v19374_v13  ;;  %v15473_v26 = vpop.f32.mrb[8].mxu0 }
 0x416   :  { %6863 = vst.msk [vmem:[#allocation5 + $0x28] sm:$0xff] %vm205_vm3, %v6799_v21  ;;  %v6737_v38 = vadd.f32 %v19380_v44, %v6666_v42  ;;  %v16519_v37 = vadd.f32 %v15473_v26, %v19054_v49  ;;  %v6309_v9 = vpop.f32.mrb[9].mxu0  ;;  %v6922_v60 = vld [vmem:[#allocation5] ss:$2 sm:$0xff]  ;;  %v6954_v56 = vld [vmem:[#allocation5 + $0x1] ss:$2 sm:$0xff] }
 0x417   :  { %6862 = vst.msk [vmem:[#allocation5 + $0x20] sm:$0xff] %vm205_vm3, %v6798_v30  ;;  %v6736_v11 = vadd.f32 %v19380_v44, %v6665_v24  ;;  %v16520_v40 = vadd.f32 %v6309_v9, %v19057_v0  ;;  %v7049_v42 = vmax.f32 %v6922_v60, %v6954_v56 }
 0x418   :  { %v6801_v50 = vmax.f32 %v6737_v38, 0.0  ;;  %v6668_v32 = vmul.f32 %v16519_v37, %v19374_v13 }
 0x419   :  { %v6800_v2 = vmax.f32 %v6736_v11, 0.0  ;;  %v6667_v53 = vmul.f32 %v16520_v40, %v19374_v13  ;;  %v15476_v55 = vpop.f32.mrb[10].mxu0 }
 0x41a   :  { %v6986_v20 = vld [vmem:[#allocation5 + $0x10] ss:$2 sm:$0xff]  ;;  %v7018_v8 = vld [vmem:[#allocation5 + $0x11] ss:$2 sm:$0xff]  ;;  %6865 = vst.msk [vmem:[#allocation5 + $0x38] sm:$0xff] %vm205_vm3, %v6801_v50  ;;  %v6739_v49 = vadd.f32 %v19380_v44, %v6668_v32  ;;  %v16521_v22 = vadd.f32 %v15476_v55, %v19060_v57  ;;  %v6319_v21 = vpop.f32.mrb[11].mxu0 }
 0x41b   :  { %v7065_v0 = vmax.f32 %v6986_v20, %v7018_v8  ;;  %6864 = vst.msk [vmem:[#allocation5 + $0x30] sm:$0xff] %vm205_vm3, %v6800_v2  ;;  %v6738_v30 = vadd.f32 %v19380_v44, %v6667_v53  ;;  %v16522_v24 = vadd.f32 %v6319_v21, %v19063_v59 }
 0x41c   :  { %v6803_v26 = vmax.f32 %v6739_v49, 0.0  ;;  %v6670_v38 = vmul.f32 %v16521_v22, %v19374_v13 }
 0x41d   :  { %v7081_v37 = vmax.f32 %v7049_v42, %v7065_v0  ;;  %v6802_v9 = vmax.f32 %v6738_v30, 0.0  ;;  %v6669_v11 = vmul.f32 %v16522_v24, %v19374_v13  ;;  %v15479_v40 = vpop.f32.mrb[12].mxu0  ;;  %v7133_v30 = vld [vmem:[%s20472_s4 + $0x18] sm:$0xff] }
 0x41e   :  { %6867 = vst.msk [vmem:[#allocation5 + $0x48] sm:$0xff] %vm205_vm3, %v6803_v26  ;;  %v6741_v57 = vadd.f32 %v19380_v44, %v6670_v38  ;;  %v16523_v60 = vadd.f32 %v15479_v40, %v19066_v29  ;;  %v6329_v56 = vpop.f32.mrb[13].mxu0  ;;  %v6924_v32 = vld [vmem:[#allocation5 + $0x20] ss:$2 sm:$0xff]  ;;  %v6956_v2 = vld [vmem:[#allocation5 + $0x21] ss:$2 sm:$0xff] }
 0x41f   :  { %6866 = vst.msk [vmem:[#allocation5 + $0x40] sm:$0xff] %vm205_vm3, %v6802_v9  ;;  %v6740_v50 = vadd.f32 %v19380_v44, %v6669_v11  ;;  %v16524_v59 = vadd.f32 %v6329_v56, %v19069_v31  ;;  %7098 = vst.msk [vmem:[#allocation3 + $0x11] sm:$0xff] %vm205_vm3, %v7081_v37  ;;  %v7132_v29 = vld [vmem:[%s20472_s4 + $0x10] sm:$0xff]  ;;  %v7050_v24 = vmax.f32 %v6924_v32, %v6956_v2 }
 0x420   :  { %v6805_v53 = vmax.f32 %v6741_v57, 0.0  ;;  %v6672_v55 = vmul.f32 %v16523_v60, %v19374_v13  ;;  %v16233_v56 = vpack.c.bf16 %v7133_v30, %v7132_v29 }
 0x421   :  { %v6804_v20 = vmax.f32 %v6740_v50, 0.0  ;;  %v6671_v8 = vmul.f32 %v16524_v59, %v19374_v13  ;;  %v15482_v49 = vpop.f32.mrb[14].mxu0 }
 0x422   :  { %v6988_v22 = vld [vmem:[#allocation5 + $0x30] ss:$2 sm:$0xff]  ;;  %v7020_v21 = vld [vmem:[#allocation5 + $0x31] ss:$2 sm:$0xff]  ;;  %6869 = vst.msk [vmem:[#allocation5 + $0x58] sm:$0xff] %vm205_vm3, %v6805_v53  ;;  %v6743_v31 = vadd.f32 %v19380_v44, %v6672_v55  ;;  %v16525_v42 = vadd.f32 %v15482_v49, %v19072_v33  ;;  %v6339_v0 = vpop.f32.mrb[15].mxu0 }
 0x423   :  { %v7066_v26 = vmax.f32 %v6988_v22, %v7020_v21  ;;  %6868 = vst.msk [vmem:[#allocation5 + $0x50] sm:$0xff] %vm205_vm3, %v6804_v20  ;;  %v6742_v38 = vadd.f32 %v19380_v44, %v6671_v8  ;;  %v16526_v37 = vadd.f32 %v6339_v0, %v19075_v35  ;;  %v13404_v35 = vld [vmem:[%s20472_s4 + $0x40] sm:$0xff]  ;;  %v13405_v53 = vld [vmem:[%s20472_s4 + $0x48] sm:$0xff] }
 0x424   :  { %v6807_v9 = vmax.f32 %v6743_v31, 0.0  ;;  %v6674_v11 = vmul.f32 %v16525_v42, %v19374_v13  ;;  %v19472_v42 = vpack.c.bf16 %v13405_v53, %v13404_v35 }
 0x425   :  { %v7082_v40 = vmax.f32 %v7050_v24, %v7066_v26  ;;  %v6806_v57 = vmax.f32 %v6742_v38, 0.0  ;;  %v6673_v33 = vmul.f32 %v16526_v37, %v19374_v13  ;;  %v15485_v60 = vpop.f32.mrb[16].mxu0 }
 0x426   :  { %6871 = vst.msk [vmem:[#allocation5 + $0x68] sm:$0xff] %vm205_vm3, %v6807_v9  ;;  %v6745_v50 = vadd.f32 %v19380_v44, %v6674_v11  ;;  %v16527_v59 = vadd.f32 %v15485_v60, %v19078_v41  ;;  %v6349_v32 = vpop.f32.mrb[17].mxu0  ;;  %v7135_v2 = vld [vmem:[#allocation3 + $0x11] sm:$0xff]  ;;  %v6926_v41 = vld [vmem:[#allocation5 + $0x40] ss:$2 sm:$0xff] }
 0x427   :  { %6870 = vst.msk [vmem:[#allocation5 + $0x60] sm:$0xff] %vm205_vm3, %v6806_v57  ;;  %v6744_v55 = vadd.f32 %v19380_v44, %v6673_v33  ;;  %v16528_v20 = vadd.f32 %v6349_v32, %v19081_v43  ;;  %15564 = vmatmul.mubr.msk.f32.vlgmr.msra.gmra.mrb[64].mxu1 %vm205_vm3, %v7135_v2  ;;  %7099 = vst.msk [vmem:[#allocation3 + $0x21] sm:$0xff] %vm205_vm3, %v7082_v40  ;;  %v6958_v8 = vld [vmem:[#allocation5 + $0x41] ss:$2 sm:$0xff] }
 0x428   :  { %v6809_v49 = vmax.f32 %v6745_v50, 0.0  ;;  %v6676_v29 = vmul.f32 %v16527_v59, %v19374_v13  ;;  %16232 = vmatpush3.bf16.msra.mxu1 %v19404_v63  ;;  %v7051_v38 = vmax.f32 %v6926_v41, %v6958_v8 }
 0x429   :  { %v6808_v22 = vmax.f32 %v6744_v55, 0.0  ;;  %v6675_v21 = vmul.f32 %v16528_v20, %v19374_v13  ;;  %v15488_v31 = vpop.f32.mrb[18].mxu0  ;;  %16234 = vmatprep.subr.bf16.mxu1 %v16233_v56 }
 0x42a   :  { %v6990_v0 = vld [vmem:[#allocation5 + $0x50] ss:$2 sm:$0xff]  ;;  %v7022_v43 = vld [vmem:[#allocation5 + $0x51] ss:$2 sm:$0xff]  ;;  %6873 = vst.msk [vmem:[#allocation5 + $0x78] sm:$0xff] %vm205_vm3, %v6809_v49  ;;  %v6747_v30 = vadd.f32 %v19380_v44, %v6676_v29  ;;  %v16529_v24 = vadd.f32 %v15488_v31, %v19084_v45  ;;  %v6359_v26 = vpop.f32.mrb[19].mxu0 }
 0x42b   :  { %v7067_v37 = vmax.f32 %v6990_v0, %v7022_v43  ;;  %6872 = vst.msk [vmem:[#allocation5 + $0x70] sm:$0xff] %vm205_vm3, %v6808_v22  ;;  %v6746_v63 = vadd.f32 %v19380_v44, %v6675_v21  ;;  %v16530_v9 = vadd.f32 %v6359_v26, %v19087_v48 }
 0x42c   :  { %v6811_v11 = vmax.f32 %v6747_v30, 0.0  ;;  %v6678_v40 = vmul.f32 %v16529_v24, %v19374_v13  ;;  %16236 = vmatpush3.bf16.msra.mxu1 %v16233_v56 }
 0x42d   :  { %v7083_v57 = vmax.f32 %v7051_v38, %v7067_v37  ;;  %v6810_v33 = vmax.f32 %v6746_v63, 0.0  ;;  %v6677_v60 = vmul.f32 %v16530_v9, %v19374_v13  ;;  %v15491_v50 = vpop.f32.mrb[20].mxu0  ;;  %16238 = vmatprep.subr.bf16.mxu1 %v19472_v42 }
 0x42e   :  { %6875 = vst.msk [vmem:[#allocation5 + $0x88] sm:$0xff] %vm205_vm3, %v6811_v11  ;;  %v6749_v45 = vadd.f32 %v19380_v44, %v6678_v40  ;;  %v16531_v59 = vadd.f32 %v15491_v50, %v19090_v62  ;;  %v6369_v32 = vpop.f32.mrb[21].mxu0  ;;  %v7136_v2 = vld [vmem:[#allocation3 + $0x21] sm:$0xff] }
 0x42f   :  { %6874 = vst.msk [vmem:[#allocation5 + $0x80] sm:$0xff] %vm205_vm3, %v6810_v33  ;;  %7100 = vst.msk [vmem:[#allocation3 + $0x31] sm:$0xff] %vm205_vm3, %v7083_v57  ;;  %v6748_v48 = vadd.f32 %v19380_v44, %v6677_v60  ;;  %v16532_v56 = vadd.f32 %v6369_v32, %v19093_v12  ;;  %15566 = vmatprep.mubr.msk.f32.mxu1 %vm205_vm3, %v7136_v2  ;;  %v6928_v35 = vld [vmem:[#allocation5 + $0x60] ss:$2 sm:$0xff]  ;;  %v6960_v53 = vld [vmem:[#allocation5 + $0x61] ss:$2 sm:$0xff] }
 0x430   :  { %v6813_v55 = vmax.f32 %v6749_v45, 0.0  ;;  %v6680_v20 = vmul.f32 %v16531_v59, %v19374_v13  ;;  %v7052_v31 = vmax.f32 %v6928_v35, %v6960_v53 }
 0x431   :  { %v6812_v41 = vmax.f32 %v6748_v48, 0.0  ;;  %v6679_v62 = vmul.f32 %v16532_v56, %v19374_v13  ;;  %v15494_v8 = vpop.f32.mrb[22].mxu0 }
 0x432   :  { %v6992_v49 = vld [vmem:[#allocation5 + $0x70] ss:$2 sm:$0xff]  ;;  %v7024_v29 = vld [vmem:[#allocation5 + $0x71] ss:$2 sm:$0xff]  ;;  %6877 = vst.msk [vmem:[#allocation5 + $0x98] sm:$0xff] %vm205_vm3, %v6813_v55  ;;  %v6751_v22 = vadd.f32 %v19380_v44, %v6680_v20  ;;  %v16533_v21 = vadd.f32 %v15494_v8, %v19096_v14  ;;  %v6379_v12 = vpop.f32.mrb[23].mxu0 }
 0x433   :  { %v7068_v0 = vmax.f32 %v6992_v49, %v7024_v29  ;;  %6876 = vst.msk [vmem:[#allocation5 + $0x90] sm:$0xff] %vm205_vm3, %v6812_v41  ;;  %v6750_v43 = vadd.f32 %v19380_v44, %v6679_v62  ;;  %v16534_v30 = vadd.f32 %v6379_v12, %v19099_v23 }
 0x434   :  { %v6815_v24 = vmax.f32 %v6751_v22, 0.0  ;;  %v6682_v26 = vmul.f32 %v16533_v21, %v19374_v13 }
 0x435   :  { %v7084_v38 = vmax.f32 %v7052_v31, %v7068_v0  ;;  %v6814_v37 = vmax.f32 %v6750_v43, 0.0  ;;  %v6681_v63 = vmul.f32 %v16534_v30, %v19374_v13  ;;  %v15497_v9 = vpop.f32.mrb[24].mxu0 }
 0x436   :  { %6879 = vst.msk [vmem:[#allocation5 + $0xa8] sm:$0xff] %vm205_vm3, %v6815_v24  ;;  %v6753_v14 = vadd.f32 %v19380_v44, %v6682_v26  ;;  %v16535_v11 = vadd.f32 %v15497_v9, %v19102_v54  ;;  %v6389_v40 = vpop.f32.mrb[25].mxu0  ;;  %v19504_v57 = vld [vmem:[#allocation3 + $0x31] sm:$0xff]  ;;  %v6930_v60 = vld [vmem:[#allocation5 + $0x80] ss:$2 sm:$0xff] }
 0x437   :  { %7101 = vst.msk [vmem:[#allocation3 + $0x41] sm:$0xff] %vm205_vm3, %v7084_v38  ;;  %6878 = vst.msk [vmem:[#allocation5 + $0xa0] sm:$0xff] %vm205_vm3, %v6814_v37  ;;  %v6752_v23 = vadd.f32 %v19380_v44, %v6681_v63  ;;  %v16536_v33 = vadd.f32 %v6389_v40, %v19105_v1  ;;  %15567 = vmatmul.mubr.msk.f32.gmra.mrb[66].mxu1 %vm205_vm3, %v19504_v57  ;;  %v6962_v50 = vld [vmem:[#allocation5 + $0x81] ss:$2 sm:$0xff] }
 0x438   :  { %v6817_v45 = vmax.f32 %v6753_v14, 0.0  ;;  %v6684_v59 = vmul.f32 %v16535_v11, %v19374_v13  ;;  %v7053_v55 = vmax.f32 %v6930_v60, %v6962_v50 }
 0x439   :  { %v6816_v54 = vmax.f32 %v6752_v23, 0.0  ;;  %v6683_v32 = vmul.f32 %v16536_v33, %v19374_v13  ;;  %v15500_v2 = vpop.f32.mrb[26].mxu0 }
 0x43a   :  { %v6994_v48 = vld [vmem:[#allocation5 + $0x90] ss:$2 sm:$0xff]  ;;  %v7026_v56 = vld [vmem:[#allocation5 + $0x91] ss:$2 sm:$0xff]  ;;  %6881 = vst.msk [vmem:[#allocation5 + $0xb8] sm:$0xff] %vm205_vm3, %v6817_v45  ;;  %v6755_v35 = vadd.f32 %v19380_v44, %v6684_v59  ;;  %v16537_v1 = vadd.f32 %v15500_v2, %v19108_v3  ;;  %v6399_v53 = vpop.f32.mrb[27].mxu0 }
 0x43b   :  { %v7069_v20 = vmax.f32 %v6994_v48, %v7026_v56  ;;  %6880 = vst.msk [vmem:[#allocation5 + $0xb0] sm:$0xff] %vm205_vm3, %v6816_v54  ;;  %v6754_v41 = vadd.f32 %v19380_v44, %v6683_v32  ;;  %v16538_v62 = vadd.f32 %v6399_v53, %v19111_v5 }
 0x43c   :  { %v6819_v8 = vmax.f32 %v6755_v35, 0.0  ;;  %v6686_v49 = vmul.f32 %v16537_v1, %v19374_v13 }
 0x43d   :  { %v7085_v29 = vmax.f32 %v7053_v55, %v7069_v20  ;;  %v6818_v22 = vmax.f32 %v6754_v41, 0.0  ;;  %v6685_v21 = vmul.f32 %v16538_v62, %v19374_v13  ;;  %v15503_v12 = vpop.f32.mrb[28].mxu0 }
 0x43e   :  { %6883 = vst.msk [vmem:[#allocation5 + $0xc8] sm:$0xff] %vm205_vm3, %v6819_v8  ;;  %v6757_v3 = vadd.f32 %v19380_v44, %v6686_v49  ;;  %v16539_v31 = vadd.f32 %v15503_v12, %v19114_v7  ;;  %v6409_v0 = vpop.f32.mrb[29].mxu0  ;;  %v19525_v43 = vld [vmem:[#allocation3 + $0x41] sm:$0xff] }
 0x43f   :  { %7102 = vst.msk [vmem:[#allocation3 + $0x51] sm:$0xff] %vm205_vm3, %v7085_v29  ;;  %6882 = vst.msk [vmem:[#allocation5 + $0xc0] sm:$0xff] %vm205_vm3, %v6818_v22  ;;  %v6756_v5 = vadd.f32 %v19380_v44, %v6685_v21  ;;  %v16540_v30 = vadd.f32 %v6409_v0, %v19117_v10  ;;  %15569 = vmatprep.mubr.msk.f32.mxu1 %vm205_vm3, %v19525_v43  ;;  %v6932_v24 = vld [vmem:[#allocation5 + $0xa0] ss:$2 sm:$0xff]  ;;  %v6964_v26 = vld [vmem:[#allocation5 + $0xa1] ss:$2 sm:$0xff] }
 0x440   :  { %v6821_v38 = vmax.f32 %v6757_v3, 0.0  ;;  %v6688_v37 = vmul.f32 %v16539_v31, %v19374_v13  ;;  %v7054_v33 = vmax.f32 %v6932_v24, %v6964_v26 }
 0x441   :  { %v6820_v7 = vmax.f32 %v6756_v5, 0.0  ;;  %v6687_v63 = vmul.f32 %v16540_v30, %v19374_v13  ;;  %v15506_v9 = vpop.f32.mrb[30].mxu0 }
 0x442   :  { %v6996_v14 = vld [vmem:[#allocation5 + $0xb0] ss:$2 sm:$0xff]  ;;  %v7028_v11 = vld [vmem:[#allocation5 + $0xb1] ss:$2 sm:$0xff]  ;;  %6885 = vst.msk [vmem:[#allocation5 + $0xd8] sm:$0xff] %vm205_vm3, %v6821_v38  ;;  %v6759_v40 = vadd.f32 %v19380_v44, %v6688_v37  ;;  %v16541_v10 = vadd.f32 %v15506_v9, %v19121_v18  ;;  %v6419_v23 = vpop.f32.mrb[31].mxu0 }
 0x443   :  { %v7070_v60 = vmax.f32 %v6996_v14, %v7028_v11  ;;  %6884 = vst.msk [vmem:[#allocation5 + $0xd0] sm:$0xff] %vm205_vm3, %v6820_v7  ;;  %v6758_v50 = vadd.f32 %v19380_v44, %v6687_v63  ;;  %v16542_v45 = vadd.f32 %v6419_v23, %v19123_v19 }
 0x444   :  { %v6823_v59 = vmax.f32 %v6759_v40, 0.0  ;;  %v6690_v54 = vmul.f32 %v16541_v10, %v19374_v13 }
 0x445   :  { %v7086_v32 = vmax.f32 %v7054_v33, %v7070_v60  ;;  %v6822_v2 = vmax.f32 %v6758_v50, 0.0  ;;  %v6689_v48 = vmul.f32 %v16542_v45, %v19374_v13  ;;  %v15509_v56 = vpop.f32.mrb[32].mxu0 }
 0x446   :  { %6887 = vst.msk [vmem:[#allocation5 + $0xe8] sm:$0xff] %vm205_vm3, %v6823_v59  ;;  %v6761_v18 = vadd.f32 %v19380_v44, %v6690_v54  ;;  %v16543_v35 = vadd.f32 %v15509_v56, %v19127_v27  ;;  %v6429_v1 = vpop.f32.mrb[33].mxu0  ;;  %v19546_v53 = vld [vmem:[#allocation3 + $0x51] sm:$0xff]  ;;  %v6934_v20 = vld [vmem:[#allocation5 + $0xc0] ss:$2 sm:$0xff] }
 0x447   :  { %7103 = vst.msk [vmem:[#allocation3 + $0x61] sm:$0xff] %vm205_vm3, %v7086_v32  ;;  %6886 = vst.msk [vmem:[#allocation5 + $0xe0] sm:$0xff] %vm205_vm3, %v6822_v2  ;;  %v6760_v19 = vadd.f32 %v19380_v44, %v6689_v48  ;;  %v16544_v55 = vadd.f32 %v6429_v1, %v19129_v39  ;;  %15570 = vmatmul.mubr.msk.f32.gmra.mrb[68].mxu1 %vm205_vm3, %v19546_v53  ;;  %v6966_v41 = vld [vmem:[#allocation5 + $0xc1] ss:$2 sm:$0xff] }
 0x448   :  { %v6825_v62 = vmax.f32 %v6761_v18, 0.0  ;;  %v6692_v8 = vmul.f32 %v16543_v35, %v19374_v13  ;;  %v7055_v31 = vmax.f32 %v6934_v20, %v6966_v41 }
 0x449   :  { %v6824_v27 = vmax.f32 %v6760_v19, 0.0  ;;  %v6691_v49 = vmul.f32 %v16544_v55, %v19374_v13  ;;  %v15512_v29 = vpop.f32.mrb[34].mxu0 }
 0x44a   :  { %v6998_v22 = vld [vmem:[#allocation5 + $0xd0] ss:$2 sm:$0xff]  ;;  %v7030_v21 = vld [vmem:[#allocation5 + $0xd1] ss:$2 sm:$0xff]  ;;  %6889 = vst.msk [vmem:[#allocation5 + $0xf8] sm:$0xff] %vm205_vm3, %v6825_v62  ;;  %v6763_v12 = vadd.f32 %v19380_v44, %v6692_v8  ;;  %v16545_v39 = vadd.f32 %v15512_v29, %v19133_v47  ;;  %v6439_v3 = vpop.f32.mrb[35].mxu0 }
 0x44b   :  { %v7071_v0 = vmax.f32 %v6998_v22, %v7030_v21  ;;  %6888 = vst.msk [vmem:[#allocation5 + $0xf0] sm:$0xff] %vm205_vm3, %v6824_v27  ;;  %v6762_v5 = vadd.f32 %v19380_v44, %v6691_v49  ;;  %v16546_v30 = vadd.f32 %v6439_v3, %v19135_v61  ;;  %v7142_v8 = vld [vmem:[#allocation3 + $0xa1] sm:$0xff] }
 0x44c   :  { %v6827_v24 = vmax.f32 %v6763_v12, 0.0  ;;  %v6694_v26 = vmul.f32 %v16545_v39, %v19374_v13 }
 0x44d   :  { %v7087_v38 = vmax.f32 %v7055_v31, %v7071_v0  ;;  %v6826_v37 = vmax.f32 %v6762_v5, 0.0  ;;  %v6693_v7 = vmul.f32 %v16546_v30, %v19374_v13  ;;  %v15515_v63 = vpop.f32.mrb[36].mxu0 }
 0x44e   :  { %6891 = vst.msk [vmem:[#allocation5 + $0x108] sm:$0xff] %vm205_vm3, %v6827_v24  ;;  %v6765_v47 = vadd.f32 %v19380_v44, %v6694_v26  ;;  %v16547_v9 = vadd.f32 %v15515_v63, %v19139_v58  ;;  %v6449_v14 = vpop.f32.mrb[37].mxu0  ;;  %v19567_v11 = vld [vmem:[#allocation3 + $0x61] sm:$0xff] }
 0x44f   :  { %7104 = vst.msk [vmem:[#allocation3 + $0x71] sm:$0xff] %vm205_vm3, %v7087_v38  ;;  %6890 = vst.msk [vmem:[#allocation5 + $0x100] sm:$0xff] %vm205_vm3, %v6826_v37  ;;  %v6764_v61 = vadd.f32 %v19380_v44, %v6693_v7  ;;  %v16548_v40 = vadd.f32 %v6449_v14, %v19141_v28  ;;  %15572 = vmatprep.mubr.msk.f32.mxu1 %vm205_vm3, %v19567_v11  ;;  %v6936_v10 = vld [vmem:[#allocation5 + $0xe0] ss:$2 sm:$0xff]  ;;  %v6968_v23 = vld [vmem:[#allocation5 + $0xe1] ss:$2 sm:$0xff] }
 0x450   :  { %v6829_v33 = vmax.f32 %v6765_v47, 0.0  ;;  %v6696_v60 = vmul.f32 %v16547_v9, %v19374_v13  ;;  %v7056_v48 = vmax.f32 %v6936_v10, %v6968_v23 }
 0x451   :  { %v6828_v58 = vmax.f32 %v6764_v61, 0.0  ;;  %v6695_v50 = vmul.f32 %v16548_v40, %v19374_v13  ;;  %v15518_v45 = vpop.f32.mrb[38].mxu0 }
 0x452   :  { %v7000_v59 = vld [vmem:[#allocation5 + $0xf0] ss:$2 sm:$0xff]  ;;  %v7032_v54 = vld [vmem:[#allocation5 + $0xf1] ss:$2 sm:$0xff]  ;;  %6893 = vst.msk [vmem:[#allocation5 + $0x118] sm:$0xff] %vm205_vm3, %v6829_v33  ;;  %v6767_v32 = vadd.f32 %v19380_v44, %v6696_v60  ;;  %v16549_v28 = vadd.f32 %v15518_v45, %v19145_v34  ;;  %v6459_v2 = vpop.f32.mrb[39].mxu0 }
 0x453   :  { %v7072_v56 = vmax.f32 %v7000_v59, %v7032_v54  ;;  %6892 = vst.msk [vmem:[#allocation5 + $0x110] sm:$0xff] %vm205_vm3, %v6828_v58  ;;  %v6766_v18 = vadd.f32 %v19380_v44, %v6695_v50  ;;  %v16550_v35 = vadd.f32 %v6459_v2, %v19147_v36 }
 0x454   :  { %v6831_v1 = vmax.f32 %v6767_v32, 0.0  ;;  %v6698_v19 = vmul.f32 %v16549_v28, %v19374_v13 }
 0x455   :  { %v7088_v55 = vmax.f32 %v7056_v48, %v7072_v56  ;;  %v6830_v20 = vmax.f32 %v6766_v18, 0.0  ;;  %v6697_v41 = vmul.f32 %v16550_v35, %v19374_v13  ;;  %v15521_v62 = vpop.f32.mrb[40].mxu0 }
 0x456   :  { %6895 = vst.msk [vmem:[#allocation5 + $0x128] sm:$0xff] %vm205_vm3, %v6831_v1  ;;  %v6769_v34 = vadd.f32 %v19380_v44, %v6698_v19  ;;  %v16551_v27 = vadd.f32 %v15521_v62, %v19151_v46  ;;  %v6469_v49 = vpop.f32.mrb[41].mxu0  ;;  %v19588_v29 = vld [vmem:[#allocation3 + $0x71] sm:$0xff]  ;;  %v6938_v21 = vld [vmem:[#allocation5 + $0x100] ss:$2 sm:$0xff] }
 0x457   :  { %7105 = vst.msk [vmem:[#allocation3 + $0x81] sm:$0xff] %vm205_vm3, %v7088_v55  ;;  %6894 = vst.msk [vmem:[#allocation5 + $0x120] sm:$0xff] %vm205_vm3, %v6830_v20  ;;  %v6768_v36 = vadd.f32 %v19380_v44, %v6697_v41  ;;  %v16552_v22 = vadd.f32 %v6469_v49, %v19153_v52  ;;  %15573 = vmatmul.mubr.msk.f32.gmra.mrb[70].mxu1 %vm205_vm3, %v19588_v29  ;;  %v6970_v12 = vld [vmem:[#allocation5 + $0x101] ss:$2 sm:$0xff] }
 0x458   :  { %v6833_v39 = vmax.f32 %v6769_v34, 0.0  ;;  %v6700_v3 = vmul.f32 %v16551_v27, %v19374_v13  ;;  %15575 = vmatprep.mubr.msk.f32.mxu1 %vm205_vm3, %v7142_v8  ;;  %v7057_v38 = vmax.f32 %v6938_v21, %v6970_v12 }
 0x459   :  { %v6832_v46 = vmax.f32 %v6768_v36, 0.0  ;;  %v6699_v31 = vmul.f32 %v16552_v22, %v19374_v13  ;;  %v15524_v0 = vpop.f32.mrb[42].mxu0  ;;  %v20597_v22 = vld [vmem:[#allocation17_spill] sm:$0xff] }
 0x45a   :  { %v7002_v5 = vld [vmem:[#allocation5 + $0x110] ss:$2 sm:$0xff]  ;;  %v7034_v30 = vld [vmem:[#allocation5 + $0x111] ss:$2 sm:$0xff]  ;;  %6897 = vst.msk [vmem:[#allocation5 + $0x138] sm:$0xff] %vm205_vm3, %v6833_v39  ;;  %v6771_v52 = vadd.f32 %v19380_v44, %v6700_v3  ;;  %v16553_v24 = vadd.f32 %v15524_v0, %v19157_v15  ;;  %v6479_v26 = vpop.f32.mrb[43].mxu0 }
 0x45b   :  { %v7073_v37 = vmax.f32 %v7002_v5, %v7034_v30  ;;  %6896 = vst.msk [vmem:[#allocation5 + $0x130] sm:$0xff] %vm205_vm3, %v6832_v46  ;;  %v6770_v7 = vadd.f32 %v19380_v44, %v6699_v31  ;;  %v16554_v63 = vadd.f32 %v6479_v26, %v19159_v25 }
 0x45c   :  { %v6835_v47 = vmax.f32 %v6771_v52, 0.0  ;;  %v6702_v9 = vmul.f32 %v16553_v24, %v19374_v13  ;;  %v20598_v24 = vld [vmem:[#allocation18_spill] sm:$0xff] }
 0x45d   :  { %v7089_v14 = vmax.f32 %v7057_v38, %v7073_v37  ;;  %v6834_v61 = vmax.f32 %v6770_v7, 0.0  ;;  %v6701_v40 = vmul.f32 %v16554_v63, %v19374_v13  ;;  %v15527_v10 = vpop.f32.mrb[44].mxu0 }
 0x45e   :  { %6899 = vst.msk [vmem:[#allocation5 + $0x148] sm:$0xff] %vm205_vm3, %v6835_v47  ;;  %v6773_v15 = vadd.f32 %v19380_v44, %v6702_v9  ;;  %v16555_v23 = vadd.f32 %v15527_v10, %v19163_v4  ;;  %v6489_v33 = vpop.f32.mrb[45].mxu0  ;;  %v6940_v58 = vld [vmem:[#allocation5 + $0x120] ss:$2 sm:$0xff]  ;;  %v6972_v50 = vld [vmem:[#allocation5 + $0x121] ss:$2 sm:$0xff] }
 0x45f   :  { %7106 = vst.msk [vmem:[#allocation3 + $0xb1] sm:$0xff] %vm205_vm3, %v7089_v14  ;;  %6898 = vst.msk [vmem:[#allocation5 + $0x140] sm:$0xff] %vm205_vm3, %v6834_v61  ;;  %v6772_v25 = vadd.f32 %v19380_v44, %v6701_v40  ;;  %v16556_v60 = vadd.f32 %v6489_v33, %v19165_v6  ;;  %v7058_v35 = vmax.f32 %v6940_v58, %v6972_v50  ;;  %v20599_v47 = vld [vmem:[#allocation19_spill] sm:$0xff] }
 0x460   :  { %v6837_v45 = vmax.f32 %v6773_v15, 0.0  ;;  %v6704_v59 = vmul.f32 %v16555_v23, %v19374_v13 }
 0x461   :  { %v6836_v54 = vmax.f32 %v6772_v25, 0.0  ;;  %v6703_v32 = vmul.f32 %v16556_v60, %v19374_v13  ;;  %v15530_v28 = vpop.f32.mrb[46].mxu0  ;;  %v20600_v25 = vld [vmem:[#allocation20_spill] sm:$0xff] }
 0x462   :  { %v7004_v2 = vld [vmem:[#allocation5 + $0x130] ss:$2 sm:$0xff]  ;;  %v7036_v4 = vld [vmem:[#allocation5 + $0x131] ss:$2 sm:$0xff]  ;;  %6901 = vst.msk [vmem:[#allocation5 + $0x158] sm:$0xff] %vm205_vm3, %v6837_v45  ;;  %v6775_v48 = vadd.f32 %v19380_v44, %v6704_v59  ;;  %v16557_v56 = vadd.f32 %v15530_v28, %v19169_v16  ;;  %v6499_v18 = vpop.f32.mrb[47].mxu0 }
 0x463   :  { %v7074_v6 = vmax.f32 %v7004_v2, %v7036_v4  ;;  %6900 = vst.msk [vmem:[#allocation5 + $0x150] sm:$0xff] %vm205_vm3, %v6836_v54  ;;  %v6774_v1 = vadd.f32 %v19380_v44, %v6703_v32  ;;  %v16558_v19 = vadd.f32 %v6499_v18, %v19171_v17  ;;  %v20601_v59 = vld [vmem:[#allocation21_spill] sm:$0xff] }
 0x464   :  { %v6839_v55 = vmax.f32 %v6775_v48, 0.0  ;;  %v6706_v20 = vmul.f32 %v16557_v56, %v19374_v13 }
 0x465   :  { %v7090_v41 = vmax.f32 %v7058_v35, %v7074_v6  ;;  %v6838_v62 = vmax.f32 %v6774_v1, 0.0  ;;  %v6705_v8 = vmul.f32 %v16558_v19, %v19374_v13  ;;  %v15533_v34 = vpop.f32.mrb[48].mxu0  ;;  %v20602_v19 = vld [vmem:[#allocation22_spill] sm:$0xff] }
 0x466   :  { %6903 = vst.msk [vmem:[#allocation5 + $0x168] sm:$0xff] %vm205_vm3, %v6839_v55  ;;  %v6777_v16 = vadd.f32 %v19380_v44, %v6706_v20  ;;  %v16559_v27 = vadd.f32 %v15533_v34, %v19175_v51  ;;  %v6509_v49 = vpop.f32.mrb[49].mxu0  ;;  %v19627_v36 = vld [vmem:[#allocation3 + $0xb1] sm:$0xff]  ;;  %v6942_v12 = vld [vmem:[#allocation5 + $0x140] ss:$2 sm:$0xff] }
 0x467   :  { %7107 = vst.msk [vmem:[#allocation3 + $0xc1] sm:$0xff] %vm205_vm3, %v7090_v41  ;;  %6902 = vst.msk [vmem:[#allocation5 + $0x160] sm:$0xff] %vm205_vm3, %v6838_v62  ;;  %v6776_v17 = vadd.f32 %v19380_v44, %v6705_v8  ;;  %v16560_v21 = vadd.f32 %v6509_v49, %v20597_v22  ;;  %15576 = vmatmul.mubr.msk.f32.gmra.mrb[72].mxu1 %vm205_vm3, %v19627_v36  ;;  %v6974_v39 = vld [vmem:[#allocation5 + $0x141] ss:$2 sm:$0xff]  ;;  %v20603_v34 = vld [vmem:[#allocation23_spill] sm:$0xff] }
 0x468   :  { %v6841_v3 = vmax.f32 %v6777_v16, 0.0  ;;  %v6708_v46 = vmul.f32 %v16559_v27, %v19374_v13  ;;  %v7059_v37 = vmax.f32 %v6942_v12, %v6974_v39 }
 0x469   :  { %v6840_v51 = vmax.f32 %v6776_v17, 0.0  ;;  %v6707_v31 = vmul.f32 %v16560_v21, %v19374_v13  ;;  %v15536_v0 = vpop.f32.mrb[50].mxu0 }
 0x46a   :  { %v7006_v5 = vld [vmem:[#allocation5 + $0x150] ss:$2 sm:$0xff]  ;;  %v7038_v30 = vld [vmem:[#allocation5 + $0x151] ss:$2 sm:$0xff]  ;;  %6905 = vst.msk [vmem:[#allocation5 + $0x178] sm:$0xff] %vm205_vm3, %v6841_v3  ;;  %v6779_v52 = vadd.f32 %v19380_v44, %v6708_v46  ;;  %v16561_v26 = vadd.f32 %v15536_v0, %v20598_v24  ;;  %v6519_v38 = vpop.f32.mrb[51].mxu0 }
 0x46b   :  { %v7075_v7 = vmax.f32 %v7006_v5, %v7038_v30  ;;  %6904 = vst.msk [vmem:[#allocation5 + $0x170] sm:$0xff] %vm205_vm3, %v6840_v51  ;;  %v6778_v63 = vadd.f32 %v19380_v44, %v6707_v31  ;;  %v16562_v9 = vadd.f32 %v6519_v38, %v20599_v47  ;;  %v20604_v3 = vld [vmem:[#allocation24_spill] sm:$0xff]  ;;  %v20605_v5 = vld [vmem:[#allocation25_spill] sm:$0xff] }
 0x46c   :  { %v6843_v14 = vmax.f32 %v6779_v52, 0.0  ;;  %v6710_v61 = vmul.f32 %v16561_v26, %v19374_v13 }
 0x46d   :  { %v7091_v40 = vmax.f32 %v7059_v37, %v7075_v7  ;;  %v6842_v10 = vmax.f32 %v6778_v63, 0.0  ;;  %v6709_v15 = vmul.f32 %v16562_v9, %v19374_v13  ;;  %v15539_v23 = vpop.f32.mrb[52].mxu0 }
 0x46e   :  { %6907 = vst.msk [vmem:[#allocation5 + $0x188] sm:$0xff] %vm205_vm3, %v6843_v14  ;;  %v6781_v33 = vadd.f32 %v19380_v44, %v6710_v61  ;;  %v16563_v60 = vadd.f32 %v15539_v23, %v20600_v25  ;;  %v6529_v58 = vpop.f32.mrb[53].mxu0  ;;  %v19648_v50 = vld [vmem:[#allocation3 + $0xc1] sm:$0xff]  ;;  %v20606_v61 = vld [vmem:[#allocation26_spill] sm:$0xff]  ;;  %v20607_v25 = vld [vmem:[#allocation27_spill] sm:$0xff] }
 0x46f   :  { %7108 = vst.msk [vmem:[#allocation3 + $0xd1] sm:$0xff] %vm205_vm3, %v7091_v40  ;;  %6906 = vst.msk [vmem:[#allocation5 + $0x180] sm:$0xff] %vm205_vm3, %v6842_v10  ;;  %v6780_v45 = vadd.f32 %v19380_v44, %v6709_v15  ;;  %v16564_v54 = vadd.f32 %v6529_v58, %v20601_v59  ;;  %15578 = vmatprep.mubr.msk.f32.mxu1 %vm205_vm3, %v19648_v50  ;;  %v6944_v32 = vld [vmem:[#allocation5 + $0x160] ss:$2 sm:$0xff]  ;;  %v6976_v28 = vld [vmem:[#allocation5 + $0x161] ss:$2 sm:$0xff] }
 0x470   :  { %v6845_v2 = vmax.f32 %v6781_v33, 0.0  ;;  %v6712_v4 = vmul.f32 %v16563_v60, %v19374_v13  ;;  %v7060_v41 = vmax.f32 %v6944_v32, %v6976_v28 }
 0x471   :  { %v6844_v48 = vmax.f32 %v6780_v45, 0.0  ;;  %v6711_v56 = vmul.f32 %v16564_v54, %v19374_v13  ;;  %v15542_v18 = vpop.f32.mrb[54].mxu0 }
 0x472   :  { %v7008_v35 = vld [vmem:[#allocation5 + $0x170] ss:$2 sm:$0xff]  ;;  %v7040_v6 = vld [vmem:[#allocation5 + $0x171] ss:$2 sm:$0xff]  ;;  %6909 = vst.msk [vmem:[#allocation5 + $0x198] sm:$0xff] %vm205_vm3, %v6845_v2  ;;  %v6783_v1 = vadd.f32 %v19380_v44, %v6712_v4  ;;  %v16565_v55 = vadd.f32 %v15542_v18, %v20602_v19  ;;  %v6539_v20 = vpop.f32.mrb[55].mxu0 }
 0x473   :  { %v7076_v62 = vmax.f32 %v7008_v35, %v7040_v6  ;;  %6908 = vst.msk [vmem:[#allocation5 + $0x190] sm:$0xff] %vm205_vm3, %v6844_v48  ;;  %v6782_v8 = vadd.f32 %v19380_v44, %v6711_v56  ;;  %v16566_v16 = vadd.f32 %v6539_v20, %v20603_v34  ;;  %v20608_v4 = vld [vmem:[#allocation28_spill] sm:$0xff]  ;;  %v20609_v6 = vld [vmem:[#allocation29_spill] sm:$0xff] }
 0x474   :  { %v6847_v27 = vmax.f32 %v6783_v1, 0.0  ;;  %v6714_v49 = vmul.f32 %v16565_v55, %v19374_v13 }
 0x475   :  { %v7092_v17 = vmax.f32 %v7060_v41, %v7076_v62  ;;  %v6846_v22 = vmax.f32 %v6782_v8, 0.0  ;;  %v6713_v21 = vmul.f32 %v16566_v16, %v19374_v13  ;;  %v15545_v12 = vpop.f32.mrb[56].mxu0 }
 0x476   :  { %6911 = vst.msk [vmem:[#allocation5 + $0x1a8] sm:$0xff] %vm205_vm3, %v6847_v27  ;;  %v6785_v39 = vadd.f32 %v19380_v44, %v6714_v49  ;;  %v16567_v46 = vadd.f32 %v15545_v12, %v20604_v3  ;;  %v6549_v51 = vpop.f32.mrb[57].mxu0  ;;  %v19669_v31 = vld [vmem:[#allocation3 + $0xd1] sm:$0xff]  ;;  %v6946_v52 = vld [vmem:[#allocation5 + $0x180] ss:$2 sm:$0xff] }
 0x477   :  { %7109 = vst.msk [vmem:[#allocation3 + $0xe1] sm:$0xff] %vm205_vm3, %v7092_v17  ;;  %6910 = vst.msk [vmem:[#allocation5 + $0x1a0] sm:$0xff] %vm205_vm3, %v6846_v22  ;;  %v6784_v0 = vadd.f32 %v19380_v44, %v6713_v21  ;;  %v16568_v30 = vadd.f32 %v6549_v51, %v20605_v5  ;;  %15579 = vmatmul.mubr.msk.f32.gmra.mrb[74].mxu1 %vm205_vm3, %v19669_v31  ;;  %v6978_v24 = vld [vmem:[#allocation5 + $0x181] ss:$2 sm:$0xff]  ;;  %v17365_v3 = vld [vmem:[%s20471_s3] ss:$0 sm:$0xff] }
 0x478   :  { %v6849_v26 = vmax.f32 %v6785_v39, 0.0  ;;  %v6716_v38 = vmul.f32 %v16567_v46, %v19374_v13  ;;  %v7061_v15 = vmax.f32 %v6946_v52, %v6978_v24  ;;  %v20610_v17 = vld [vmem:[#allocation30_spill] sm:$0xff]  ;;  %v17366_v5 = vld [vmem:[%s20470_s2] ss:$0 sm:$0xff] }
 0x479   :  { %v6848_v37 = vmax.f32 %v6784_v0, 0.0  ;;  %v6715_v7 = vmul.f32 %v16568_v30, %v19374_v13  ;;  %v15548_v63 = vpop.f32.mrb[58].mxu0 }
 0x47a   :  { %v7010_v47 = vld [vmem:[#allocation5 + $0x190] ss:$2 sm:$0xff]  ;;  %v7042_v9 = vld [vmem:[#allocation5 + $0x191] ss:$2 sm:$0xff]  ;;  %6913 = vst.msk [vmem:[#allocation5 + $0x1b8] sm:$0xff] %vm205_vm3, %v6849_v26  ;;  %v6787_v14 = vadd.f32 %v19380_v44, %v6716_v38  ;;  %v16569_v40 = vadd.f32 %v15548_v63, %v20606_v61  ;;  %v6559_v10 = vpop.f32.mrb[59].mxu0 }
 0x47b   :  { %v7077_v23 = vmax.f32 %v7010_v47, %v7042_v9  ;;  %6912 = vst.msk [vmem:[#allocation5 + $0x1b0] sm:$0xff] %vm205_vm3, %v6848_v37  ;;  %v6786_v33 = vadd.f32 %v19380_v44, %v6715_v7  ;;  %v16570_v60 = vadd.f32 %v6559_v10, %v20607_v25 }
 0x47c   :  { %v6851_v58 = vmax.f32 %v6787_v14, 0.0  ;;  %v6718_v45 = vmul.f32 %v16569_v40, %v19374_v13 }
 0x47d   :  { %v7093_v59 = vmax.f32 %v7061_v15, %v7077_v23  ;;  %v6850_v54 = vmax.f32 %v6786_v33, 0.0  ;;  %v6717_v32 = vmul.f32 %v16570_v60, %v19374_v13  ;;  %v15551_v28 = vpop.f32.mrb[60].mxu0 }
 0x47e   :  { %6915 = vst.msk [vmem:[#allocation5 + $0x1c8] sm:$0xff] %vm205_vm3, %v6851_v58  ;;  %v6789_v2 = vadd.f32 %v19380_v44, %v6718_v45  ;;  %v16571_v48 = vadd.f32 %v15551_v28, %v20608_v4  ;;  %v6569_v56 = vpop.f32.mrb[61].mxu0  ;;  %v19690_v18 = vld [vmem:[#allocation3 + $0xe1] sm:$0xff]  ;;  %v13407_v4 = vld [vmem:[%s20472_s4 + $0x58] sm:$0xff] }
 0x47f   :  { %7110 = vst.msk [vmem:[#allocation3 + $0xf1] sm:$0xff] %vm205_vm3, %v7093_v59  ;;  %6914 = vst.msk [vmem:[#allocation5 + $0x1c0] sm:$0xff] %vm205_vm3, %v6850_v54  ;;  %v6788_v35 = vadd.f32 %v19380_v44, %v6717_v32  ;;  %v16572_v1 = vadd.f32 %v6569_v56, %v20609_v6  ;;  %15581 = vmatprep.mubr.msk.f32.mxu1 %vm205_vm3, %v19690_v18  ;;  %v6948_v19 = vld [vmem:[#allocation5 + $0x1a0] ss:$2 sm:$0xff]  ;;  %v6980_v55 = vld [vmem:[#allocation5 + $0x1a1] ss:$2 sm:$0xff] }
 0x480   :  { %v6853_v20 = vmax.f32 %v6789_v2, 0.0  ;;  %v6720_v41 = vmul.f32 %v16571_v48, %v19374_v13  ;;  %v7062_v12 = vmax.f32 %v6948_v19, %v6980_v55  ;;  %v7114_v32 = vld [vmem:[#allocation3] sm:$0xff]  ;;  %v13406_v2 = vld [vmem:[%s20472_s4 + $0x50] sm:$0xff]  ;;  %v13425_v6 = vld [vmem:[%s20472_s4 + $0x68] sm:$0xff] }
 0x481   :  { %v6852_v62 = vmax.f32 %v6788_v35, 0.0  ;;  %v6719_v8 = vmul.f32 %v16572_v1, %v19374_v13  ;;  %v15554_v34 = vpop.f32.mrb[62].mxu0  ;;  %v20611_v13 = vld [vmem:[#allocation31_spill] sm:$0xff]  ;;  %v16241_v48 = vpack.c.bf16 %v13407_v4, %v13406_v2  ;;  %v13424_v35 = vld [vmem:[%s20472_s4 + $0x60] sm:$0xff] }
 0x482   :  { %v7012_v16 = vld [vmem:[#allocation5 + $0x1b0] ss:$2 sm:$0xff]  ;;  %v7044_v27 = vld [vmem:[#allocation5 + $0x1b1] ss:$2 sm:$0xff]  ;;  %6917 = vst.msk [vmem:[#allocation5 + $0x1d8] sm:$0xff] %vm205_vm3, %v6853_v20  ;;  %v6791_v49 = vadd.f32 %v19380_v44, %v6720_v41  ;;  %v16573_v22 = vadd.f32 %v15554_v34, %v20610_v17  ;;  %v6579_v21 = vpop.f32.mrb[63].mxu0  ;;  %v16245_v19 = vpack.c.bf16 %v13425_v6, %v13424_v35 }
 0x483   :  { %v7078_v39 = vmax.f32 %v7012_v16, %v7044_v27  ;;  %6916 = vst.msk [vmem:[#allocation5 + $0x1d0] sm:$0xff] %vm205_vm3, %v6852_v62  ;;  %v6790_v46 = vadd.f32 %v17365_v3, %v6719_v8  ;;  %v16574_v51 = vadd.f32 %v6579_v21, %v20611_v13  ;;  %v19737_v56 = vld [vmem:[#allocation3 + $0x10] sm:$0xff]  ;;  %v19747_v1 = vld [vmem:[#allocation3 + $0x20] sm:$0xff]  ;;  %v13467_v2 = vld [vmem:[%s20472_s4 + $0xb8] sm:$0xff] }
 0x484   :  { %v6855_v0 = vmax.f32 %v6791_v49, 0.0  ;;  %v6722_v44 = vmul.f32 %v17366_v5, %v16573_v22  ;;  %v19752_v55 = vld [vmem:[#allocation3 + $0x30] sm:$0xff]  ;;  %v19756_v20 = vld [vmem:[#allocation3 + $0x40] sm:$0xff]  ;;  %v13485_v35 = vld [vmem:[%s20472_s4 + $0xc8] sm:$0xff] }
 0x485   :  { %v7094_v30 = vmax.f32 %v7062_v12, %v7078_v39  ;;  %v6854_v52 = vmax.f32 %v6790_v46, 0.0  ;;  %v6721_v24 = vmul.f32 %v17366_v5, %v16574_v51  ;;  %v19760_v41 = vld [vmem:[#allocation3 + $0x50] sm:$0xff]  ;;  %v7122_v62 = vld [vmem:[#allocation3 + $0xa0] sm:$0xff] }
 0x486   :  { %6919 = vst.msk [vmem:[#allocation5 + $0x1e8] sm:$0xff] %vm205_vm3, %v6855_v0  ;;  %v6793_v26 = vadd.f32 %v17365_v3, %v6722_v44  ;;  %v19712_v38 = vld [vmem:[#allocation3 + $0xf1] sm:$0xff]  ;;  %v6950_v7 = vld [vmem:[#allocation5 + $0x1c0] ss:$2 sm:$0xff]  ;;  %v6982_v63 = vld [vmem:[#allocation5 + $0x1c1] ss:$2 sm:$0xff] }
 0x487   :  { %7111 = vst.msk [vmem:[#allocation3 + $0x101] sm:$0xff] %vm205_vm3, %v7094_v30  ;;  %6918 = vst.msk [vmem:[#allocation5 + $0x1e0] sm:$0xff] %vm205_vm3, %v6854_v52  ;;  %v6792_v37 = vadd.f32 %v17365_v3, %v6721_v24  ;;  %15582 = vmatmul.mubr.msk.f32.gmra.mrb[76].mxu1 %vm205_vm3, %v19712_v38  ;;  %v7063_v40 = vmax.f32 %v6950_v7, %v6982_v63  ;;  %v19768_v8 = vld [vmem:[#allocation3 + $0x70] sm:$0xff]  ;;  %v19777_v16 = vld [vmem:[#allocation3 + $0xc0] sm:$0xff] }
 0x488   :  { %v6857_v47 = vmax.f32 %v6793_v26, 0.0  ;;  %v19773_v34 = vld [vmem:[#allocation3 + $0xb0] sm:$0xff]  ;;  %v19785_v49 = vld [vmem:[#allocation3 + $0xe0] sm:$0xff]  ;;  %v13427_v3 = vld [vmem:[%s20472_s4 + $0x78] sm:$0xff] }
 0x489   :  { %v6856_v9 = vmax.f32 %v6792_v37, 0.0  ;;  %v19781_v27 = vld [vmem:[#allocation3 + $0xd0] sm:$0xff]  ;;  %v7541_v21 = vld [vmem:[#allocation3 + $0x2] sm:$0xff] }
 0x48a   :  { %v7014_v14 = vld [vmem:[#allocation5 + $0x1d0] ss:$2 sm:$0xff]  ;;  %v7046_v61 = vld [vmem:[#allocation5 + $0x1d1] ss:$2 sm:$0xff]  ;;  %6921 = vst.msk [vmem:[#allocation5 + $0x1f8] sm:$0xff] %vm205_vm3, %v6857_v47  ;;  %v13444_v51 = vld [vmem:[%s20472_s4 + $0x80] sm:$0xff] }
 0x48b   :  { %v7079_v10 = vmax.f32 %v7014_v14, %v7046_v61  ;;  %6920 = vst.msk [vmem:[#allocation5 + $0x1f0] sm:$0xff] %vm205_vm3, %v6856_v9  ;;  %v19789_v17 = vld [vmem:[#allocation3 + $0xf0] sm:$0xff]  ;;  %v13445_v0 = vld [vmem:[%s20472_s4 + $0x88] sm:$0xff] }
 0x48c   :  { %v13426_v39 = vld [vmem:[%s20472_s4 + $0x70] sm:$0xff]  ;;  %v19818_v5 = vld [vmem:[#allocation3 + $0x22] sm:$0xff]  ;;  %v16253_v44 = vpack.c.bf16 %v13445_v0, %v13444_v51  ;;  %v13507_v51 = vld [vmem:[%s20472_s4 + $0xf8] sm:$0xff] }
 0x48d   :  { %v7095_v15 = vmax.f32 %v7063_v40, %v7079_v10  ;;  %v16249_v46 = vpack.c.bf16 %v13427_v3, %v13426_v39  ;;  %v19808_v13 = vld [vmem:[#allocation3 + $0x12] sm:$0xff]  ;;  %v19826_v52 = vld [vmem:[#allocation3 + $0x42] sm:$0xff] }
 0x48e   :  { %v19720_v23 = vld [vmem:[#allocation3 + $0x101] sm:$0xff]  ;;  %v19822_v30 = vld [vmem:[#allocation3 + $0x32] sm:$0xff] }
 0x48f   :  { %7112 = vst.msk [vmem:[#allocation3 + $0x111] sm:$0xff] %vm205_vm3, %v7095_v15  ;;  %15584 = vmatprep.mubr.msk.f32.mxu1 %vm205_vm3, %v19720_v23  ;;  %v6952_v33 = vld [vmem:[#allocation5 + $0x1e0] ss:$2 sm:$0xff]  ;;  %v6984_v25 = vld [vmem:[#allocation5 + $0x1e1] ss:$2 sm:$0xff]  ;;  %v19830_v24 = vld [vmem:[#allocation3 + $0x52] sm:$0xff] }
 0x490   :  { %v7064_v45 = vmax.f32 %v6952_v33, %v6984_v25  ;;  %v19793_v22 = vld [vmem:[#allocation3 + $0x100] sm:$0xff]  ;;  %v19838_v7 = vld [vmem:[#allocation3 + $0x72] sm:$0xff] }
 0x491   :  { %v19834_v26 = vld [vmem:[#allocation3 + $0x62] sm:$0xff]  ;;  %v19843_v63 = vld [vmem:[#allocation3 + $0xb2] sm:$0xff] }
 0x492   :  { %v7016_v60 = vld [vmem:[#allocation5 + $0x1f0] ss:$2 sm:$0xff]  ;;  %v7048_v58 = vld [vmem:[#allocation5 + $0x1f1] ss:$2 sm:$0xff]  ;;  %v7549_v37 = vld [vmem:[#allocation3 + $0xa2] sm:$0xff] }
 0x493   :  { %v7080_v59 = vmax.f32 %v7016_v60, %v7048_v58  ;;  %v19847_v47 = vld [vmem:[#allocation3 + $0xc2] sm:$0xff]  ;;  %v19851_v9 = vld [vmem:[#allocation3 + $0xd2] sm:$0xff] }
 0x494   :  { %v19855_v14 = vld [vmem:[#allocation3 + $0xe2] sm:$0xff]  ;;  %v19859_v61 = vld [vmem:[#allocation3 + $0xf2] sm:$0xff] }
 0x495   :  { %v7096_v54 = vmax.f32 %v7064_v45, %v7080_v59  ;;  %v19863_v40 = vld [vmem:[#allocation3 + $0x102] sm:$0xff]  ;;  %v13446_v15 = vld [vmem:[%s20472_s4 + $0x90] sm:$0xff]  ;;  %v13447_v33 = vld [vmem:[%s20472_s4 + $0x98] sm:$0xff] }
 0x496   :  { %v19725_v28 = vld [vmem:[#allocation3 + $0x111] sm:$0xff]  ;;  %v16257_v25 = vpack.c.bf16 %v13447_v33, %v13446_v15  ;;  %v13464_v60 = vld [vmem:[%s20472_s4 + $0xa0] sm:$0xff]  ;;  %v13465_v58 = vld [vmem:[%s20472_s4 + $0xa8] sm:$0xff] }
 0x497   :  { %7113 = vst.msk [vmem:[#allocation3 + $0x121] sm:$0xff] %vm205_vm3, %v7096_v54  ;;  %15585 = vmatmul.mubr.msk.f32.gmra.mrb[78].mxu1 %vm205_vm3, %v19725_v28  ;;  %v19797_v12 = vld [vmem:[#allocation3 + $0x110] sm:$0xff]  ;;  %v16261_v45 = vpack.c.bf16 %v13465_v58, %v13464_v60  ;;  %v19897_v59 = vld [vmem:[#allocation3 + $0x80] sm:$0xff] }
 0x498   :  { %15595 = vmatprep.mubr.msk.f32.mxu1 %vm205_vm3, %v7114_v32  ;;  %v19867_v10 = vld [vmem:[#allocation3 + $0x112] sm:$0xff]  ;;  %v17367_v6 = vld [vmem:[#allocation3 + $0x21] sm:$0xff] }
 0x499   :  { %v13466_v32 = vld [vmem:[%s20472_s4 + $0xb0] sm:$0xff]  ;;  %v19991_v3 = vld [vmem:[#allocation3 + $0x82] sm:$0xff] }
 0x49a   :  { %v8001_v4 = vld [vmem:[#allocation3 + $0x11] sm:$0xff] }
 0x49b   :  { %15596 = vmatmul.mubr.msk.f32.vlgmr.msra.gmra.mrb[64].mxu1 %vm205_vm3, %v19737_v56 }
 0x49c   :  { %16240 = vmatpush3.bf16.msra.mxu1 %v19472_v42  ;;  %15598 = vmatprep.mubr.msk.f32.mxu1 %vm205_vm3, %v19747_v1  ;;  %v19764_v42 = vld [vmem:[#allocation3 + $0x60] sm:$0xff] }
 0x49d   :  { %16242 = vmatprep.subr.bf16.mxu1 %v16241_v48 }
 0x49e   :  { %v19915_v54 = vld [vmem:[#allocation3 + $0x120] sm:$0xff] }
 0x49f   :  { %15599 = vmatmul.mubr.msk.f32.gmra.mrb[66].mxu1 %vm205_vm3, %v19752_v55 }
 0x4a0   :  { %15601 = vmatprep.mubr.msk.f32.mxu1 %vm205_vm3, %v19756_v20  ;;  %16244 = vmatpush3.bf16.msra.mxu1 %v16241_v48  ;;  %v16265_v48 = vpack.c.bf16 %v13467_v2, %v13466_v32 }
 0x4a1   :  { %16246 = vmatprep.subr.bf16.mxu1 %v16245_v19 }
 0x4a3   :  { %15602 = vmatmul.mubr.msk.f32.gmra.mrb[68].mxu1 %vm205_vm3, %v19760_v41 }
 0x4a4   :  { %15604 = vmatprep.mubr.msk.f32.mxu1 %vm205_vm3, %v19764_v42 }
 0x4a7   :  { %15605 = vmatmul.mubr.msk.f32.gmra.mrb[70].mxu1 %vm205_vm3, %v19768_v8 }
 0x4a8   :  { %15607 = vmatprep.mubr.msk.f32.mxu1 %vm205_vm3, %v7122_v62  ;;  %v19943_v62 = vld [vmem:[#allocation3 + $0x81] sm:$0xff] }
 0x4ab   :  { %15608 = vmatmul.mubr.msk.f32.gmra.mrb[72].mxu1 %vm205_vm3, %v19773_v34 }
 0x4ac   :  { %15610 = vmatprep.mubr.msk.f32.mxu1 %vm205_vm3, %v19777_v16 }
 0x4af   :  { %15611 = vmatmul.mubr.msk.f32.gmra.mrb[74].mxu1 %vm205_vm3, %v19781_v27 }
 0x4b0   :  { %15613 = vmatprep.mubr.msk.f32.mxu1 %vm205_vm3, %v19785_v49 }
 0x4b3   :  { %15614 = vmatmul.mubr.msk.f32.gmra.mrb[76].mxu1 %vm205_vm3, %v19789_v17 }
 0x4b4   :  { %15616 = vmatprep.mubr.msk.f32.mxu1 %vm205_vm3, %v19793_v22 }
 0x4b7   :  { %15617 = vmatmul.mubr.msk.f32.gmra.mrb[78].mxu1 %vm205_vm3, %v19797_v12 }
 0x4b8   :  { %15627 = vmatprep.mubr.msk.f32.mxu1 %vm205_vm3, %v7541_v21  ;;  %v13505_v21 = vld [vmem:[%s20472_s4 + $0xe8] sm:$0xff] }
 0x4bb   :  { %15628 = vmatmul.mubr.msk.f32.vlgmr.msra.gmra.mrb[64].mxu1 %vm205_vm3, %v19808_v13 }
 0x4bc   :  { %16248 = vmatpush3.bf16.msra.mxu1 %v16245_v19  ;;  %15630 = vmatprep.mubr.msk.f32.mxu1 %vm205_vm3, %v19818_v5 }
 0x4bd   :  { %16250 = vmatprep.subr.bf16.mxu1 %v16249_v46 }
 0x4bf   :  { %15631 = vmatmul.mubr.msk.f32.gmra.mrb[66].mxu1 %vm205_vm3, %v19822_v30 }
 0x4c0   :  { %15633 = vmatprep.mubr.msk.f32.mxu1 %vm205_vm3, %v19826_v52  ;;  %16252 = vmatpush3.bf16.msra.mxu1 %v16249_v46  ;;  %v20009_v46 = vld [vmem:[#allocation3 + $0x122] sm:$0xff] }
 0x4c1   :  { %16254 = vmatprep.subr.bf16.mxu1 %v16253_v44 }
 0x4c3   :  { %15634 = vmatmul.mubr.msk.f32.gmra.mrb[68].mxu1 %vm205_vm3, %v19830_v24 }
 0x4c4   :  { %15636 = vmatprep.mubr.msk.f32.mxu1 %vm205_vm3, %v19834_v26 }
 0x4c7   :  { %15637 = vmatmul.mubr.msk.f32.gmra.mrb[70].mxu1 %vm205_vm3, %v19838_v7 }
 0x4c8   :  { %15639 = vmatprep.mubr.msk.f32.mxu1 %vm205_vm3, %v7549_v37  ;;  %v13525_v37 = vld [vmem:[%s20472_s4 + $0x108] sm:$0xff] }
 0x4cb   :  { %15640 = vmatmul.mubr.msk.f32.gmra.mrb[72].mxu1 %vm205_vm3, %v19843_v63 }
 0x4cc   :  { %15642 = vmatprep.mubr.msk.f32.mxu1 %vm205_vm3, %v19847_v47 }
 0x4cf   :  { %15643 = vmatmul.mubr.msk.f32.gmra.mrb[74].mxu1 %vm205_vm3, %v19851_v9 }
 0x4d0   :  { %15645 = vmatprep.mubr.msk.f32.mxu1 %vm205_vm3, %v19855_v14 }
 0x4d3   :  { %15646 = vmatmul.mubr.msk.f32.gmra.mrb[76].mxu1 %vm205_vm3, %v19859_v61 }
 0x4d4   :  { %15648 = vmatprep.mubr.msk.f32.mxu1 %vm205_vm3, %v19863_v40 }
 0x4d7   :  { %15649 = vmatmul.mubr.msk.f32.gmra.mrb[78].mxu1 %vm205_vm3, %v19867_v10 }
 0x4d8   :  { %15659 = vmatprep.mubr.msk.f32.mxu1 %vm205_vm3, %v19737_v56  ;;  %v13484_v56 = vld [vmem:[%s20472_s4 + $0xc0] sm:$0xff] }
 0x4d9   :  { %v16269_v19 = vpack.c.bf16 %v13485_v35, %v13484_v56 }
 0x4db   :  { %15660 = vmatmul.mubr.msk.f32.vlgmr.msra.gmra.mrb[64].mxu1 %vm205_vm3, %v19747_v1 }
 0x4dc   :  { %16256 = vmatpush3.bf16.msra.mxu1 %v16253_v44  ;;  %15662 = vmatprep.mubr.msk.f32.mxu1 %vm205_vm3, %v19752_v55  ;;  %v13524_v44 = vld [vmem:[%s20472_s4 + $0x100] sm:$0xff] }
 0x4dd   :  { %16258 = vmatprep.subr.bf16.mxu1 %v16257_v25 }
 0x4df   :  { %15663 = vmatmul.mubr.msk.f32.gmra.mrb[66].mxu1 %vm205_vm3, %v19756_v20 }
 0x4e0   :  { %15665 = vmatprep.mubr.msk.f32.mxu1 %vm205_vm3, %v19760_v41  ;;  %16260 = vmatpush3.bf16.msra.mxu1 %v16257_v25 }
 0x4e1   :  { %16262 = vmatprep.subr.bf16.mxu1 %v16261_v45 }
 0x4e3   :  { %15666 = vmatmul.mubr.msk.f32.gmra.mrb[68].mxu1 %vm205_vm3, %v19764_v42 }
 0x4e4   :  { %15668 = vmatprep.mubr.msk.f32.mxu1 %vm205_vm3, %v19768_v8 }
 0x4e7   :  { %15669 = vmatmul.mubr.msk.f32.gmra.mrb[70].mxu1 %vm205_vm3, %v19897_v59 }
 0x4e8   :  { %15671 = vmatprep.mubr.msk.f32.mxu1 %vm205_vm3, %v19773_v34  ;;  %v13504_v34 = vld [vmem:[%s20472_s4 + $0xe0] sm:$0xff] }
 0x4e9   :  { %v16277_v39 = vpack.c.bf16 %v13505_v21, %v13504_v34 }
 0x4eb   :  { %15672 = vmatmul.mubr.msk.f32.gmra.mrb[72].mxu1 %vm205_vm3, %v19777_v16 }
 0x4ec   :  { %15674 = vmatprep.mubr.msk.f32.mxu1 %vm205_vm3, %v19781_v27 }
 0x4ef   :  { %15675 = vmatmul.mubr.msk.f32.gmra.mrb[74].mxu1 %vm205_vm3, %v19785_v49 }
 0x4f0   :  { %15677 = vmatprep.mubr.msk.f32.mxu1 %vm205_vm3, %v19789_v17 }
 0x4f3   :  { %15678 = vmatmul.mubr.msk.f32.gmra.mrb[76].mxu1 %vm205_vm3, %v19793_v22 }
 0x4f4   :  { %15680 = vmatprep.mubr.msk.f32.mxu1 %vm205_vm3, %v19797_v12 }
 0x4f7   :  { %15681 = vmatmul.mubr.msk.f32.gmra.mrb[78].mxu1 %vm205_vm3, %v19915_v54 }
 0x4f8   :  { %15691 = vmatprep.mubr.msk.f32.mxu1 %vm205_vm3, %v8001_v4 }
 0x4fb   :  { %15692 = vmatmul.mubr.msk.f32.vlgmr.msra.gmra.mrb[64].mxu1 %vm205_vm3, %v17367_v6 }
 0x4fc   :  { %16264 = vmatpush3.bf16.msra.mxu1 %v16261_v45  ;;  %15694 = vmatprep.mubr.msk.f32.mxu1 %vm205_vm3, %v19504_v57  ;;  %v19961_v57 = vld [vmem:[#allocation3 + $0x121] sm:$0xff] }
 0x4fd   :  { %16266 = vmatprep.subr.bf16.mxu1 %v16265_v48 }
 0x4ff   :  { %15695 = vmatmul.mubr.msk.f32.gmra.mrb[66].mxu1 %vm205_vm3, %v19525_v43  ;;  %v13486_v43 = vld [vmem:[%s20472_s4 + $0xd0] sm:$0xff] }
 0x500   :  { %15697 = vmatprep.mubr.msk.f32.mxu1 %vm205_vm3, %v19546_v53  ;;  %16268 = vmatpush3.bf16.msra.mxu1 %v16265_v48  ;;  %v13487_v53 = vld [vmem:[%s20472_s4 + $0xd8] sm:$0xff] }
 0x501   :  { %16270 = vmatprep.subr.bf16.mxu1 %v16269_v19 }
 0x503   :  { %15698 = vmatmul.mubr.msk.f32.gmra.mrb[68].mxu1 %vm205_vm3, %v19567_v11 }
 0x504   :  { %15700 = vmatprep.mubr.msk.f32.mxu1 %vm205_vm3, %v19588_v29 }
 0x507   :  { %15701 = vmatmul.mubr.msk.f32.gmra.mrb[70].mxu1 %vm205_vm3, %v19943_v62 }
 0x508   :  { %15703 = vmatprep.mubr.msk.f32.mxu1 %vm205_vm3, %v19627_v36  ;;  %v16273_v36 = vpack.c.bf16 %v13487_v53, %v13486_v43 }
 0x50b   :  { %15704 = vmatmul.mubr.msk.f32.gmra.mrb[72].mxu1 %vm205_vm3, %v19648_v50 }
 0x50c   :  { %15706 = vmatprep.mubr.msk.f32.mxu1 %vm205_vm3, %v19669_v31 }
 0x50f   :  { %15707 = vmatmul.mubr.msk.f32.gmra.mrb[74].mxu1 %vm205_vm3, %v19690_v18 }
 0x510   :  { %15709 = vmatprep.mubr.msk.f32.mxu1 %vm205_vm3, %v19712_v38 }
 0x513   :  { %15710 = vmatmul.mubr.msk.f32.gmra.mrb[76].mxu1 %vm205_vm3, %v19720_v23 }
 0x514   :  { %15712 = vmatprep.mubr.msk.f32.mxu1 %vm205_vm3, %v19725_v28 }
 0x517   :  { %15713 = vmatmul.mubr.msk.f32.gmra.mrb[78].mxu1 %vm205_vm3, %v19961_v57 }
 0x518   :  { %15723 = vmatprep.mubr.msk.f32.mxu1 %vm205_vm3, %v19808_v13  ;;  %v13506_v13 = vld [vmem:[%s20472_s4 + $0xf0] sm:$0xff] }
 0x519   :  { %v16281_v0 = vpack.c.bf16 %v13507_v51, %v13506_v13 }
 0x51b   :  { %15724 = vmatmul.mubr.msk.f32.vlgmr.msra.gmra.mrb[64].mxu1 %vm205_vm3, %v19818_v5 }
 0x51c   :  { %16272 = vmatpush3.bf16.msra.mxu1 %v16269_v19  ;;  %15726 = vmatprep.mubr.msk.f32.mxu1 %vm205_vm3, %v19822_v30 }
 0x51d   :  { %16274 = vmatprep.subr.bf16.mxu1 %v16273_v36 }
 0x51f   :  { %15727 = vmatmul.mubr.msk.f32.gmra.mrb[66].mxu1 %vm205_vm3, %v19826_v52 }
 0x520   :  { %15729 = vmatprep.mubr.msk.f32.mxu1 %vm205_vm3, %v19830_v24  ;;  %16276 = vmatpush3.bf16.msra.mxu1 %v16273_v36 }
 0x521   :  { %16278 = vmatprep.subr.bf16.mxu1 %v16277_v39 }
 0x523   :  { %15730 = vmatmul.mubr.msk.f32.gmra.mrb[68].mxu1 %vm205_vm3, %v19834_v26 }
 0x524   :  { %15732 = vmatprep.mubr.msk.f32.mxu1 %vm205_vm3, %v19838_v7 }
 0x527   :  { %15733 = vmatmul.mubr.msk.f32.gmra.mrb[70].mxu1 %vm205_vm3, %v19991_v3 }
 0x528   :  { %15735 = vmatprep.mubr.msk.f32.mxu1 %vm205_vm3, %v19843_v63  ;;  %v16285_v63 = vpack.c.bf16 %v13525_v37, %v13524_v44 }
 0x52b   :  { %15736 = vmatmul.mubr.msk.f32.gmra.mrb[72].mxu1 %vm205_vm3, %v19847_v47 }
 0x52c   :  { %15738 = vmatprep.mubr.msk.f32.mxu1 %vm205_vm3, %v19851_v9 }
 0x52f   :  { %15739 = vmatmul.mubr.msk.f32.gmra.mrb[74].mxu1 %vm205_vm3, %v19855_v14 }
 0x530   :  { %15741 = vmatprep.mubr.msk.f32.mxu1 %vm205_vm3, %v19859_v61 }
 0x533   :  { %15742 = vmatmul.mubr.msk.f32.gmra.mrb[76].mxu1 %vm205_vm3, %v19863_v40 }
 0x534   :  { %15744 = vmatprep.mubr.msk.f32.mxu1 %vm205_vm3, %v19867_v10 }
 0x537   :  { %15745 = vmatmul.mubr.msk.f32.gmra.mrb[78].mxu1 %vm205_vm3, %v20009_v46 }
 0x538   :  { %15755 = vmatprep.mubr.msk.f32.mxu1 %vm205_vm3, %v19747_v1  ;;  %v8469_v1 = vld [vmem:[#allocation3 + $0x90] sm:$0xff] }
 0x53b   :  { %15756 = vmatmul.mubr.msk.f32.vlgmr.msra.gmra.mrb[64].mxu1 %vm205_vm3, %v19752_v55  ;;  %v8477_v55 = vld [vmem:[#allocation3 + $0x130] sm:$0xff] }
 0x53c   :  { %16280 = vmatpush3.bf16.msra.mxu1 %v16277_v39  ;;  %15758 = vmatprep.mubr.msk.f32.mxu1 %vm205_vm3, %v19756_v20  ;;  %v13526_v20 = vld [vmem:[%s20472_s4 + $0x110] sm:$0xff] }
 0x53d   :  { %16282 = vmatprep.subr.bf16.mxu1 %v16281_v0 }
 0x53f   :  { %15759 = vmatmul.mubr.msk.f32.gmra.mrb[66].mxu1 %vm205_vm3, %v19760_v41  ;;  %v13527_v41 = vld [vmem:[%s20472_s4 + $0x118] sm:$0xff] }
 0x540   :  { %15761 = vmatprep.mubr.msk.f32.mxu1 %vm205_vm3, %v19764_v42  ;;  %16284 = vmatpush3.bf16.msra.mxu1 %v16281_v0  ;;  %v8692_v42 = vld [vmem:[#allocation3 + $0x21] sm:$0xff] }
 0x541   :  { %16286 = vmatprep.subr.bf16.mxu1 %v16285_v63 }
 0x543   :  { %15762 = vmatmul.mubr.msk.f32.gmra.mrb[68].mxu1 %vm205_vm3, %v19768_v8  ;;  %v16289_v8 = vpack.c.bf16 %v13527_v41, %v13526_v20 }
 0x544   :  { %15764 = vmatprep.mubr.msk.f32.mxu1 %vm205_vm3, %v19897_v59 }
 0x547   :  { %15765 = vmatmul.mubr.msk.f32.gmra.mrb[70].mxu1 %vm205_vm3, %v8469_v1 }
 0x548   :  { %15767 = vmatprep.mubr.msk.f32.mxu1 %vm205_vm3, %v19777_v16  ;;  %v8693_v16 = vld [vmem:[#allocation3 + $0x31] sm:$0xff] }
 0x54b   :  { %15768 = vmatmul.mubr.msk.f32.gmra.mrb[72].mxu1 %vm205_vm3, %v19781_v27  ;;  %v8694_v27 = vld [vmem:[#allocation3 + $0x41] sm:$0xff] }
 0x54c   :  { %15770 = vmatprep.mubr.msk.f32.mxu1 %vm205_vm3, %v19785_v49  ;;  %v8695_v49 = vld [vmem:[#allocation3 + $0x51] sm:$0xff] }
 0x54f   :  { %15771 = vmatmul.mubr.msk.f32.gmra.mrb[74].mxu1 %vm205_vm3, %v19789_v17  ;;  %v8699_v17 = vld [vmem:[#allocation3 + $0x91] sm:$0xff] }
 0x550   :  { %15773 = vmatprep.mubr.msk.f32.mxu1 %vm205_vm3, %v19793_v22  ;;  %v13549_v22 = vld [vmem:[%s20475_s7 + $0x38] sm:$0xff] }
 0x553   :  { %15774 = vmatmul.mubr.msk.f32.gmra.mrb[76].mxu1 %vm205_vm3, %v19797_v12 }
 0x554   :  { %15776 = vmatprep.mubr.msk.f32.mxu1 %vm205_vm3, %v19915_v54 }
 0x557   :  { %15777 = vmatmul.mubr.msk.f32.gmra.mrb[78].mxu1 %vm205_vm3, %v8477_v55 }
 0x558   :  { %15787 = vmatprep.mubr.msk.f32.mxu1 %vm205_vm3, %v8692_v42 }
 0x55b   :  { %15788 = vmatmul.mubr.msk.f32.vlgmr.msra.gmra.mrb[64].mxu1 %vm205_vm3, %v8693_v16 }
 0x55c   :  { %16288 = vmatpush3.bf16.msra.mxu1 %v16285_v63  ;;  %15790 = vmatprep.mubr.msk.f32.mxu1 %vm205_vm3, %v8694_v27 }
 0x55d   :  { %16290 = vmatprep.subr.bf16.mxu1 %v16289_v8 }
 0x55f   :  { %15791 = vmatmul.mubr.msk.f32.gmra.mrb[66].mxu1 %vm205_vm3, %v8695_v49 }
 0x560   :  { %15793 = vmatprep.mubr.msk.f32.mxu1 %vm205_vm3, %v19567_v11  ;;  %16292 = vmatpush3.bf16.msra.mxu1 %v16289_v8  ;;  %v8707_v11 = vld [vmem:[#allocation3 + $0x131] sm:$0xff] }
 0x563   :  { %15794 = vmatmul.mubr.msk.f32.gmra.mrb[68].mxu1 %vm205_vm3, %v19588_v29  ;;  %v8929_v29 = vld [vmem:[#allocation3 + $0x92] sm:$0xff] }
 0x564   :  { %15796 = vmatprep.mubr.msk.f32.mxu1 %vm205_vm3, %v19943_v62 }
 0x567   :  { %15797 = vmatmul.mubr.msk.f32.gmra.mrb[70].mxu1 %vm205_vm3, %v8699_v17 }
 0x568   :  { %15799 = vmatprep.mubr.msk.f32.mxu1 %vm205_vm3, %v19648_v50  ;;  %v8937_v50 = vld [vmem:[#allocation3 + $0x132] sm:$0xff] }
 0x56b   :  { %15800 = vmatmul.mubr.msk.f32.gmra.mrb[72].mxu1 %vm205_vm3, %v19669_v31  ;;  %v20612_v31 = vmov 0.0  }
 0x56c   :  { %15802 = vmatprep.mubr.msk.f32.mxu1 %vm205_vm3, %v19690_v18  ;;  %250 = vst.msk [vmem:[#allocation4 + $0x10] sm:$0x3f] %vm247_vm5, %v20612_v31  ;;  %248 = vst.msk [vmem:[#allocation4] sm:$0x3f] %vm247_vm5, %v20612_v31  ;;  %v13546_v18 = vld [vmem:[%s20475_s7 + $0x20] sm:$0xff] }
 0x56d   :  { %249 = vst.msk [vmem:[#allocation4 + $0x8] sm:$0x3f] %vm247_vm5, %v20612_v31  ;;  %251 = vst.msk [vmem:[#allocation4 + $0x18] sm:$0x3f] %vm247_vm5, %v20612_v31 }
 0x56e   :  { %252 = vst.msk [vmem:[#allocation4 + $0x20] sm:$0x3f] %vm247_vm5, %v20612_v31  ;;  %253 = vst.msk [vmem:[#allocation4 + $0x28] sm:$0x3f] %vm247_vm5, %v20612_v31 }
 0x56f   :  { %15803 = vmatmul.mubr.msk.f32.gmra.mrb[74].mxu1 %vm205_vm3, %v19712_v38  ;;  %254 = vst.msk [vmem:[#allocation4 + $0x30] sm:$0x3f] %vm247_vm5, %v20612_v31  ;;  %255 = vst.msk [vmem:[#allocation4 + $0x38] sm:$0x3f] %vm247_vm5, %v20612_v31  ;;  %v13547_v38 = vld [vmem:[%s20475_s7 + $0x28] sm:$0xff] }
 0x570   :  { %15805 = vmatprep.mubr.msk.f32.mxu1 %vm205_vm3, %v19720_v23  ;;  %256 = vst.msk [vmem:[#allocation4 + $0x40] sm:$0x3f] %vm247_vm5, %v20612_v31  ;;  %257 = vst.msk [vmem:[#allocation4 + $0x48] sm:$0x3f] %vm247_vm5, %v20612_v31  ;;  %v16293_v23 = vpack.c.bf16 %v13547_v38, %v13546_v18 }
 0x571   :  { %258 = vst.msk [vmem:[#allocation4 + $0x50] sm:$0x3f] %vm247_vm5, %v20612_v31  ;;  %259 = vst.msk [vmem:[#allocation4 + $0x58] sm:$0x3f] %vm247_vm5, %v20612_v31 }
 0x572   :  { %16294 = vmatprep.subr.bf16.mxu1 %v16293_v23 }
 0x573   :  { %15806 = vmatmul.mubr.msk.f32.gmra.mrb[76].mxu1 %vm205_vm3, %v19725_v28  ;;  %v13548_v28 = vld [vmem:[%s20475_s7 + $0x30] sm:$0xff] }
 0x574   :  { %15808 = vmatprep.mubr.msk.f32.mxu1 %vm205_vm3, %v19961_v57  ;;  %v16297_v12 = vpack.c.bf16 %v13549_v22, %v13548_v28 }
 0x577   :  { %15809 = vmatmul.mubr.msk.f32.gmra.mrb[78].mxu1 %vm205_vm3, %v8707_v11 }
 0x578   :  { %15819 = vmatprep.mubr.msk.f32.mxu1 %vm205_vm3, %v19818_v5  ;;  %v9335_v5 = vld [vmem:[%s20475_s7] sm:$0xff] }
 0x57b   :  { %15820 = vmatmul.mubr.msk.f32.vlgmr.msra.gmra.mrb[64].mxu1 %vm205_vm3, %v19822_v30  ;;  %v9336_v30 = vld [vmem:[%s20475_s7 + $0x8] sm:$0xff] }
 0x57c   :  { %15822 = vmatprep.mubr.msk.f32.mxu1 %vm205_vm3, %v19826_v52  ;;  %16296 = vmatpush3.bf16.msra.mxu1 %v16293_v23  ;;  %v20147_v52 = vpack.c.bf16 %v9336_v30, %v9335_v5 }
 0x57d   :  { %16298 = vmatprep.subr.bf16.mxu1 %v16297_v12 }
 0x57f   :  { %15823 = vmatmul.mubr.msk.f32.gmra.mrb[66].mxu1 %vm205_vm3, %v19830_v24  ;;  %v20153_v24 = vld [vmem:[%s20473_s5] ss:$0 sm:$0xff] }
 0x580   :  { %15825 = vmatprep.mubr.msk.f32.mxu1 %vm205_vm3, %v19834_v26  ;;  %16300 = vmatpush3.bf16.msra.mxu1 %v16297_v12 }
 0x581   :  { %16302 = vmatprep.subr.bf16.mxu1 %v20147_v52 }
 0x583   :  { %15826 = vmatmul.mubr.msk.f32.gmra.mrb[68].mxu1 %vm205_vm3, %v19838_v7  ;;  %v20158_v7 = vld [vmem:[%s20474_s6] ss:$0 sm:$0xff] }
 0x584   :  { %15828 = vmatprep.mubr.msk.f32.mxu1 %vm205_vm3, %v19991_v3 }
 0x587   :  { %15829 = vmatmul.mubr.msk.f32.gmra.mrb[70].mxu1 %vm205_vm3, %v8929_v29 }
 0x588   :  { %15831 = vmatprep.mubr.msk.f32.mxu1 %vm205_vm3, %v19847_v47 }
 0x58b   :  { %15832 = vmatmul.mubr.msk.f32.gmra.mrb[72].mxu1 %vm205_vm3, %v19851_v9 }
 0x58c   :  { %15834 = vmatprep.mubr.msk.f32.mxu1 %vm205_vm3, %v19855_v14 }
 0x58f   :  { %15835 = vmatmul.mubr.msk.f32.gmra.mrb[74].mxu1 %vm205_vm3, %v19859_v61 }
 0x590   :  { %15837 = vmatprep.mubr.msk.f32.mxu1 %vm205_vm3, %v19863_v40 }
 0x593   :  { %15838 = vmatmul.mubr.msk.f32.gmra.mrb[76].mxu1 %vm205_vm3, %v19867_v10 }
 0x594   :  { %15840 = vmatprep.mubr.msk.f32.mxu1 %vm205_vm3, %v20009_v46 }
 0x597   :  { %15841 = vmatmul.mubr.msk.f32.gmra.mrb[78].mxu1 %vm205_vm3, %v8937_v50 }
 0x64e   :  { %v15821_v26 = vpop.f32.mrb[64].mxu1 }
 0x64f   :  { %v9160_v47 = vmul.f32 %v15821_v26, %v20153_v24  ;;  %v9057_v9 = vpop.f32.mrb[65].mxu1 }
 0x650   :  { %v9159_v14 = vmul.f32 %v20153_v24, %v9057_v9 }
 0x651   :  { %v9183_v61 = vadd.f32 %v20158_v7, %v9160_v47 }
 0x652   :  { %v9182_v40 = vadd.f32 %v20158_v7, %v9159_v14  ;;  %v15824_v10 = vpop.f32.mrb[66].mxu1 }
 0x653   :  { %v9199_v15 = vmax.f32 %v9183_v61, 0.0  ;;  %v9162_v33 = vmul.f32 %v15824_v10, %v20153_v24  ;;  %v9067_v25 = vpop.f32.mrb[67].mxu1 }
 0x654   :  { %v9198_v60 = vmax.f32 %v9182_v40, 0.0  ;;  %v9161_v58 = vmul.f32 %v20153_v24, %v9067_v25 }
 0x655   :  { %9215 = vst.msk [vmem:[#allocation6 + $0x8] sm:$0xff] %vm205_vm3, %v9199_v15  ;;  %v9185_v45 = vadd.f32 %v20158_v7, %v9162_v33 }
 0x656   :  { %9214 = vst.msk [vmem:[#allocation6] sm:$0xff] %vm205_vm3, %v9198_v60  ;;  %v9184_v59 = vadd.f32 %v20158_v7, %v9161_v58  ;;  %v15827_v54 = vpop.f32.mrb[68].mxu1 }
 0x657   :  { %v9201_v32 = vmax.f32 %v9185_v45, 0.0  ;;  %v9164_v2 = vmul.f32 %v15827_v54, %v20153_v24  ;;  %v9077_v4 = vpop.f32.mrb[69].mxu1 }
 0x658   :  { %v9200_v48 = vmax.f32 %v9184_v59, 0.0  ;;  %v9163_v56 = vmul.f32 %v20153_v24, %v9077_v4 }
 0x659   :  { %9217 = vst.msk [vmem:[#allocation6 + $0x18] sm:$0xff] %vm205_vm3, %v9201_v32  ;;  %v9187_v35 = vadd.f32 %v20158_v7, %v9164_v2 }
 0x65a   :  { %9216 = vst.msk [vmem:[#allocation6 + $0x10] sm:$0xff] %vm205_vm3, %v9200_v48  ;;  %v9186_v6 = vadd.f32 %v20158_v7, %v9163_v56  ;;  %v15830_v19 = vpop.f32.mrb[70].mxu1 }
 0x65b   :  { %v9203_v62 = vmax.f32 %v9187_v35, 0.0  ;;  %v9166_v57 = vmul.f32 %v15830_v19, %v20153_v24  ;;  %v9087_v43 = vpop.f32.mrb[71].mxu1 }
 0x65c   :  { %v9262_v53 = vld [vmem:[#allocation6 + $0x8] ss:$2 sm:$0xf]  ;;  %v9278_v36 = vld [vmem:[#allocation6 + $0x9] ss:$2 sm:$0xf]  ;;  %v9165_v34 = vmul.f32 %v20153_v24, %v9087_v43 }
 0x65d   :  { %v9301_v21 = vmax.f32 %v9262_v53, %v9278_v36  ;;  %v9230_v39 = vld [vmem:[#allocation6] ss:$2 sm:$0xf]  ;;  %v9246_v3 = vld [vmem:[#allocation6 + $0x1] ss:$2 sm:$0xf]  ;;  %v9189_v46 = vadd.f32 %v20158_v7, %v9166_v57 }
 0x65e   :  { %9219 = vst.msk [vmem:[#allocation6 + $0x28] sm:$0xff] %vm205_vm3, %v9203_v62  ;;  %v9293_v13 = vmax.f32 %v9230_v39, %v9246_v3  ;;  %v9202_v51 = vmax.f32 %v9186_v6, 0.0  ;;  %v9188_v0 = vadd.f32 %v20158_v7, %v9165_v34  ;;  %v15833_v44 = vpop.f32.mrb[72].mxu1 }
 0x65f   :  { %v9205_v37 = vmax.f32 %v9189_v46, 0.0  ;;  %v9168_v63 = vmul.f32 %v15833_v44, %v20153_v24  ;;  %v9097_v1 = vpop.f32.mrb[73].mxu1 }
 0x660   :  { %v9309_v55 = vmax.f32 %v9293_v13, %v9301_v21  ;;  %v9264_v20 = vld [vmem:[#allocation6 + $0x18] ss:$2 sm:$0xf]  ;;  %v9280_v41 = vld [vmem:[#allocation6 + $0x19] ss:$2 sm:$0xf]  ;;  %v9167_v42 = vmul.f32 %v20153_v24, %v9097_v1 }
 0x661   :  { %9218 = vst.msk [vmem:[#allocation6 + $0x20] sm:$0xff] %vm205_vm3, %v9202_v51  ;;  %v9302_v8 = vmax.f32 %v9264_v20, %v9280_v41  ;;  %v9232_v16 = vld [vmem:[#allocation6 + $0x10] ss:$2 sm:$0xf]  ;;  %9221 = vst.msk [vmem:[#allocation6 + $0x38] sm:$0xff] %vm205_vm3, %v9205_v37  ;;  %v9191_v49 = vadd.f32 %v20158_v7, %v9168_v63  ;;  %v9204_v11 = vmax.f32 %v9188_v0, 0.0 }
 0x662   :  { %v9248_v27 = vld [vmem:[#allocation6 + $0x11] ss:$2 sm:$0xf]  ;;  %9319 = vst.msk [vmem:[#allocation4 + $0x9] sm:$0xf] %vm9318_vm6, %v9309_v55  ;;  %v9190_v29 = vadd.f32 %v20158_v7, %v9167_v42  ;;  %v15836_v50 = vpop.f32.mrb[74].mxu1 }
 0x663   :  { %v9294_v17 = vmax.f32 %v9232_v16, %v9248_v27  ;;  %v9207_v31 = vmax.f32 %v9191_v49, 0.0  ;;  %v9170_v18 = vmul.f32 %v15836_v50, %v20153_v24  ;;  %v9107_v38 = vpop.f32.mrb[75].mxu1  ;;  %9220 = vst.msk [vmem:[#allocation6 + $0x30] sm:$0xff] %vm205_vm3, %v9204_v11  ;;  %v9337_v37 = vld [vmem:[%s20475_s7 + $0x10] sm:$0xff]  ;;  %v13558_v49 = vld [vmem:[%s20475_s7 + $0x40] sm:$0xff] }
 0x664   :  { %v9169_v12 = vmul.f32 %v20153_v24, %v9107_v38  ;;  %v9206_v5 = vmax.f32 %v9190_v29, 0.0 }
 0x665   :  { %v9310_v23 = vmax.f32 %v9294_v17, %v9302_v8  ;;  %v9266_v28 = vld [vmem:[#allocation6 + $0x28] ss:$2 sm:$0xf]  ;;  %v9282_v22 = vld [vmem:[#allocation6 + $0x29] ss:$2 sm:$0xf]  ;;  %v9193_v30 = vadd.f32 %v20158_v7, %v9170_v18 }
 0x666   :  { %9223 = vst.msk [vmem:[#allocation6 + $0x48] sm:$0xff] %vm205_vm3, %v9207_v31  ;;  %v9303_v26 = vmax.f32 %v9266_v28, %v9282_v22  ;;  %v9192_v47 = vadd.f32 %v20158_v7, %v9169_v12  ;;  %v15839_v9 = vpop.f32.mrb[76].mxu1  ;;  %9222 = vst.msk [vmem:[#allocation6 + $0x40] sm:$0xff] %vm205_vm3, %v9206_v5  ;;  %v13559_v17 = vld [vmem:[%s20475_s7 + $0x48] sm:$0xff] }
 0x667   :  { %9320 = vst.msk [vmem:[#allocation4 + $0x11] sm:$0xf] %vm9318_vm6, %v9310_v23  ;;  %v9172_v40 = vmul.f32 %v15839_v9, %v20153_v24  ;;  %v9209_v25 = vmax.f32 %v9193_v30, 0.0  ;;  %v9117_v45 = vpop.f32.mrb[77].mxu1  ;;  %v16309_v23 = vpack.c.bf16 %v13559_v17, %v13558_v49 }
 0x668   :  { %v9234_v14 = vld [vmem:[#allocation6 + $0x20] ss:$2 sm:$0xf]  ;;  %v9250_v61 = vld [vmem:[#allocation6 + $0x21] ss:$2 sm:$0xf]  ;;  %v9171_v32 = vmul.f32 %v20153_v24, %v9117_v45 }
 0x669   :  { %v9295_v10 = vmax.f32 %v9234_v14, %v9250_v61  ;;  %v9268_v15 = vld [vmem:[#allocation6 + $0x38] ss:$2 sm:$0xf]  ;;  %v9284_v33 = vld [vmem:[#allocation6 + $0x39] ss:$2 sm:$0xf]  ;;  %v9195_v58 = vadd.f32 %v20158_v7, %v9172_v40 }
 0x66a   :  { %v9208_v60 = vmax.f32 %v9192_v47, 0.0  ;;  %v9304_v54 = vmax.f32 %v9268_v15, %v9284_v33  ;;  %v15842_v2 = vpop.f32.mrb[78].mxu1  ;;  %v17256_v4 = vld [vmem:[#allocation4 + $0x1] ss:$8 sps:$4 sm:$0xff]   ;;  %9225 = vst.msk [vmem:[#allocation6 + $0x58] sm:$0xff] %vm205_vm3, %v9209_v25  ;;  %v9194_v57 = vadd.f32 %v20158_v7, %v9171_v32  ;;  %v13560_v61 = vld [vmem:[%s20475_s7 + $0x50] sm:$0xff] }
 0x66b   :  { %v9311_v59 = vmax.f32 %v9295_v10, %v9303_v26  ;;  %v9236_v48 = vld [vmem:[#allocation6 + $0x30] ss:$2 sm:$0xf]  ;;  %v9252_v56 = vld [vmem:[#allocation6 + $0x31] ss:$2 sm:$0xf]  ;;  %v9174_v35 = vmul.f32 %v15842_v2, %v20153_v24  ;;  %15851 = vmatprep.mubr.msk.f32.mxu1 %vm205_vm3, %v17256_v4 }
 0x66c   :  { %9224 = vst.msk [vmem:[#allocation6 + $0x50] sm:$0xff] %vm205_vm3, %v9208_v60  ;;  %v9296_v6 = vmax.f32 %v9236_v48, %v9252_v56  ;;  %v9211_v53 = vmax.f32 %v9195_v58, 0.0  ;;  %v9127_v34 = vpop.f32.mrb[79].mxu1  ;;  %v9210_v51 = vmax.f32 %v9194_v57, 0.0  ;;  %v17260_v10 = vld [vmem:[#allocation4] ss:$8 sps:$4 sm:$0xff]  }
 0x66d   :  { %9321 = vst.msk [vmem:[#allocation4 + $0x19] sm:$0xf] %vm9318_vm6, %v9311_v59  ;;  %v9270_v19 = vld [vmem:[#allocation6 + $0x48] ss:$2 sm:$0xf]  ;;  %v9197_v36 = vadd.f32 %v20158_v7, %v9174_v35  ;;  %v9173_v46 = vmul.f32 %v20153_v24, %v9127_v34  ;;  %v9338_v24 = vld [vmem:[%s20475_s7 + $0x18] sm:$0xff] }
 0x66e   :  { %v9286_v62 = vld [vmem:[#allocation6 + $0x49] ss:$2 sm:$0xf]  ;;  %v9312_v21 = vmax.f32 %v9296_v6, %v9304_v54  ;;  %v9238_v39 = vld [vmem:[#allocation6 + $0x40] ss:$2 sm:$0xf]  ;;  %v16305_v27 = vpack.c.bf16 %v9338_v24, %v9337_v37 }
 0x66f   :  { %v9305_v43 = vmax.f32 %v9270_v19, %v9286_v62  ;;  %v9254_v3 = vld [vmem:[#allocation6 + $0x41] ss:$2 sm:$0xf]  ;;  %9227 = vst.msk [vmem:[#allocation6 + $0x68] sm:$0xff] %vm205_vm3, %v9211_v53  ;;  %v9213_v0 = vmax.f32 %v9197_v36, 0.0  ;;  %v9196_v44 = vadd.f32 %v20158_v7, %v9173_v46  ;;  %9226 = vst.msk [vmem:[#allocation6 + $0x60] sm:$0xff] %vm205_vm3, %v9210_v51 }
 0x670   :  { %v9297_v13 = vmax.f32 %v9238_v39, %v9254_v3  ;;  %9322 = vst.msk [vmem:[#allocation4 + $0x21] sm:$0xf] %vm9318_vm6, %v9312_v21  ;;  %v13561_v15 = vld [vmem:[%s20475_s7 + $0x58] sm:$0xff]  ;;  %v13566_v33 = vld [vmem:[%s20475_s7 + $0x60] sm:$0xff]  ;;  %v13567_v25 = vld [vmem:[%s20475_s7 + $0x68] sm:$0xff] }
 0x671   :  { %9229 = vst.msk [vmem:[#allocation6 + $0x78] sm:$0xff] %vm205_vm3, %v9213_v0  ;;  %v9272_v1 = vld [vmem:[#allocation6 + $0x58] ss:$2 sm:$0xf]  ;;  %v9212_v8 = vmax.f32 %v9196_v44, 0.0  ;;  %v16313_v58 = vpack.c.bf16 %v13561_v15, %v13560_v61  ;;  %v13568_v59 = vld [vmem:[%s20475_s7 + $0x70] sm:$0xff]  ;;  %v16317_v2 = vpack.c.bf16 %v13567_v25, %v13566_v33 }
 0x672   :  { %v9313_v63 = vmax.f32 %v9297_v13, %v9305_v43  ;;  %v9288_v55 = vld [vmem:[#allocation6 + $0x59] ss:$2 sm:$0xf]  ;;  %v17264_v4 = vld [vmem:[#allocation4 + $0x2] ss:$8 sps:$4 sm:$0xff]   ;;  %v13576_v53 = vld [vmem:[%s20475_s7 + $0x90] sm:$0xff] }
 0x673   :  { %v9306_v20 = vmax.f32 %v9272_v1, %v9288_v55  ;;  %v9240_v41 = vld [vmem:[#allocation6 + $0x50] ss:$2 sm:$0xf]  ;;  %v9256_v7 = vld [vmem:[#allocation6 + $0x51] ss:$2 sm:$0xf] }
 0x674   :  { %9323 = vst.msk [vmem:[#allocation4 + $0x39] sm:$0xf] %vm9318_vm6, %v9313_v63  ;;  %v9298_v42 = vmax.f32 %v9240_v41, %v9256_v7  ;;  %v17257_v16 = vld [vmem:[#allocation4 + $0x11] ss:$8 sps:$4 sm:$0xff]   ;;  %v13574_v48 = vld [vmem:[%s20475_s7 + $0x80] sm:$0xff]  ;;  %v13575_v56 = vld [vmem:[%s20475_s7 + $0x88] sm:$0xff] }
 0x675   :  { %9228 = vst.msk [vmem:[#allocation6 + $0x70] sm:$0xff] %vm205_vm3, %v9212_v8  ;;  %15852 = vmatmul.mubr.msk.f32.vlgmr.msra.gmra.mrb[80].mxu1 %vm205_vm3, %v17257_v16  ;;  %v17261_v60 = vld [vmem:[#allocation4 + $0x10] ss:$8 sps:$4 sm:$0xff]   ;;  %v16325_v57 = vpack.c.bf16 %v13575_v56, %v13574_v48  ;;  %v13582_v3 = vld [vmem:[%s20475_s7 + $0xa0] sm:$0xff]  ;;  %v13583_v46 = vld [vmem:[%s20475_s7 + $0xa8] sm:$0xff] }
 0x676   :  { %v9314_v11 = vmax.f32 %v9298_v42, %v9306_v20  ;;  %v9274_v29 = vld [vmem:[#allocation6 + $0x68] ss:$2 sm:$0xf]  ;;  %v9290_v50 = vld [vmem:[#allocation6 + $0x69] ss:$2 sm:$0xf]  ;;  %16304 = vmatpush3.bf16.msra.mxu1 %v20147_v52  ;;  %v16333_v51 = vpack.c.bf16 %v13583_v46, %v13582_v3 }
 0x677   :  { %v9307_v31 = vmax.f32 %v9274_v29, %v9290_v50  ;;  %v9242_v18 = vld [vmem:[#allocation6 + $0x60] ss:$2 sm:$0xf]  ;;  %v9258_v38 = vld [vmem:[#allocation6 + $0x61] ss:$2 sm:$0xf]  ;;  %16306 = vmatprep.subr.bf16.mxu1 %v16305_v27 }
 0x678   :  { %9324 = vst.msk [vmem:[#allocation4 + $0x41] sm:$0xf] %vm9318_vm6, %v9314_v11  ;;  %v9299_v28 = vmax.f32 %v9242_v18, %v9258_v38  ;;  %v9276_v22 = vld [vmem:[#allocation6 + $0x78] ss:$2 sm:$0xf]  ;;  %v13584_v44 = vld [vmem:[%s20475_s7 + $0xb0] sm:$0xff] }
 0x679   :  { %v9292_v12 = vld [vmem:[#allocation6 + $0x79] ss:$2 sm:$0xf]  ;;  %v17268_v43 = vld [vmem:[#allocation4 + $0x8] ss:$8 sps:$4 sm:$0xff]   ;;  %v13590_v55 = vld [vmem:[%s20475_s7 + $0xc0] sm:$0xff] }
 0x67a   :  { %v9315_v30 = vmax.f32 %v9299_v28, %v9307_v31  ;;  %16308 = vmatpush3.bf16.msra.mxu1 %v16305_v27  ;;  %v9308_v26 = vmax.f32 %v9276_v22, %v9292_v12  ;;  %v13569_v54 = vld [vmem:[%s20475_s7 + $0x78] sm:$0xff]  ;;  %v17272_v0 = vld [vmem:[#allocation4 + $0x9] ss:$8 sps:$4 sm:$0xff]   ;;  %v13598_v11 = vld [vmem:[%s20475_s7 + $0xe0] sm:$0xff] }
 0x67b   :  { %v17258_v5 = vld [vmem:[#allocation4 + $0x31] ss:$8 sps:$4 sm:$0xff]   ;;  %16310 = vmatprep.subr.bf16.mxu1 %v16309_v23  ;;  %v16321_v6 = vpack.c.bf16 %v13569_v54, %v13568_v59  ;;  %v13591_v20 = vld [vmem:[%s20475_s7 + $0xc8] sm:$0xff] }
 0x67c   :  { %15854 = vmatprep.mubr.msk.f32.mxu1 %vm205_vm3, %v17258_v5  ;;  %9325 = vst.msk [vmem:[#allocation4 + $0x49] sm:$0xf] %vm9318_vm6, %v9315_v30  ;;  %v9244_v47 = vld [vmem:[#allocation6 + $0x70] ss:$2 sm:$0xf]  ;;  %v13577_v36 = vld [vmem:[%s20475_s7 + $0x98] sm:$0xff]  ;;  %v16341_v7 = vpack.c.bf16 %v13591_v20, %v13590_v55 }
 0x67d   :  { %v9260_v52 = vld [vmem:[#allocation6 + $0x71] ss:$2 sm:$0xf]  ;;  %v17269_v34 = vld [vmem:[#allocation4 + $0x18] ss:$8 sps:$4 sm:$0xff]   ;;  %v16329_v21 = vpack.c.bf16 %v13577_v36, %v13576_v53  ;;  %v13599_v29 = vld [vmem:[%s20475_s7 + $0xe8] sm:$0xff] }
 0x67e   :  { %v9300_v9 = vmax.f32 %v9244_v47, %v9260_v52  ;;  %v17262_v45 = vld [vmem:[#allocation4 + $0x30] ss:$8 sps:$4 sm:$0xff]   ;;  %v16349_v31 = vpack.c.bf16 %v13599_v29, %v13598_v11  ;;  %v17281_v28 = vld [vmem:[#allocation4 + $0x20] ss:$8 sps:$4 sm:$0xff]  }
 0x67f   :  { %v17265_v35 = vld [vmem:[#allocation4 + $0x12] ss:$8 sps:$4 sm:$0xff]   ;;  %v13606_v5 = vld [vmem:[%s20475_s7 + $0x100] sm:$0xff]  ;;  %v13607_v30 = vld [vmem:[%s20475_s7 + $0x108] sm:$0xff] }
 0x680   :  { %v9316_v14 = vmax.f32 %v9300_v9, %v9308_v26  ;;  %v17266_v19 = vld [vmem:[#allocation4 + $0x32] ss:$8 sps:$4 sm:$0xff]   ;;  %v16357_v47 = vpack.c.bf16 %v13607_v30, %v13606_v5  ;;  %v17285_v61 = vld [vmem:[#allocation4 + $0x21] ss:$8 sps:$4 sm:$0xff]  }
 0x681   :  { %v17270_v39 = vld [vmem:[#allocation4 + $0x38] ss:$8 sps:$4 sm:$0xff]   ;;  %v17276_v42 = vld [vmem:[#allocation4 + $0xa] ss:$8 sps:$4 sm:$0xff]  }
 0x682   :  { %9326 = vst.msk [vmem:[#allocation4 + $0x51] sm:$0xf] %vm9318_vm6, %v9316_v14  ;;  %v13585_v37 = vld [vmem:[%s20475_s7 + $0xb8] sm:$0xff]  ;;  %v13592_v8 = vld [vmem:[%s20475_s7 + $0xd0] sm:$0xff]  ;;  %v17289_v25 = vld [vmem:[#allocation4 + $0x22] ss:$8 sps:$4 sm:$0xff]  }
 0x683   :  { %v17259_v40 = vld [vmem:[#allocation4 + $0x41] ss:$8 sps:$4 sm:$0xff]   ;;  %v16337_v24 = vpack.c.bf16 %v13585_v37, %v13584_v44  ;;  %v13593_v16 = vld [vmem:[%s20475_s7 + $0xd8] sm:$0xff]  ;;  %v13600_v38 = vld [vmem:[%s20475_s7 + $0xf0] sm:$0xff] }
 0x684   :  { %15855 = vmatmul.mubr.msk.f32.gmra.mrb[82].mxu1 %vm205_vm3, %v17259_v40  ;;  %v17263_v32 = vld [vmem:[#allocation4 + $0x40] ss:$8 sps:$4 sm:$0xff]   ;;  %v16345_v49 = vpack.c.bf16 %v13593_v16, %v13592_v8  ;;  %v17280_v18 = vld [vmem:[#allocation4 + $0x10] ss:$8 sps:$4 sm:$0xff]  }
 0x685   :  { %15865 = vmatprep.mubr.msk.f32.mxu1 %vm205_vm3, %v17260_v10  ;;  %v17267_v62 = vld [vmem:[#allocation4 + $0x42] ss:$8 sps:$4 sm:$0xff]   ;;  %v17284_v52 = vld [vmem:[#allocation4 + $0x11] ss:$8 sps:$4 sm:$0xff]  }
 0x686   :  { %v17273_v63 = vld [vmem:[#allocation4 + $0x19] ss:$8 sps:$4 sm:$0xff]   ;;  %v13608_v9 = vld [vmem:[%s20475_s7 + $0x110] sm:$0xff] }
 0x687   :  { %v17274_v1 = vld [vmem:[#allocation4 + $0x39] ss:$8 sps:$4 sm:$0xff]   ;;  %v10485_v59 = vld [vmem:[#allocation10 + $0x28] sm:$0xff] }
 0x688   :  { %15866 = vmatmul.mubr.msk.f32.vlgmr.msra.gmra.mrb[80].mxu1 %vm205_vm3, %v17261_v60  ;;  %v17277_v27 = vld [vmem:[#allocation4 + $0x1a] ss:$8 sps:$4 sm:$0xff]   ;;  %v10472_v56 = vld [vmem:[#allocation10 + $0x8] sm:$0xff] }
 0x689   :  { %16312 = vmatpush3.bf16.msra.mxu1 %v16309_v23  ;;  %15868 = vmatprep.mubr.msk.f32.mxu1 %vm205_vm3, %v17262_v45  ;;  %v17271_v13 = vld [vmem:[#allocation4 + $0x48] ss:$8 sps:$4 sm:$0xff]   ;;  %v17278_v17 = vld [vmem:[#allocation4 + $0x3a] ss:$8 sps:$4 sm:$0xff]  }
 0x68a   :  { %16314 = vmatprep.subr.bf16.mxu1 %v16313_v58  ;;  %v17275_v41 = vld [vmem:[#allocation4 + $0x49] ss:$8 sps:$4 sm:$0xff]   ;;  %v13601_v23 = vld [vmem:[%s20475_s7 + $0xf8] sm:$0xff] }
 0x68b   :  { %v17279_v50 = vld [vmem:[#allocation4 + $0x4a] ss:$8 sps:$4 sm:$0xff]   ;;  %v16353_v22 = vpack.c.bf16 %v13601_v23, %v13600_v38  ;;  %v13609_v14 = vld [vmem:[%s20475_s7 + $0x118] sm:$0xff] }
 0x68c   :  { %15869 = vmatmul.mubr.msk.f32.gmra.mrb[82].mxu1 %vm205_vm3, %v17263_v32  ;;  %v17282_v12 = vld [vmem:[#allocation4 + $0x40] ss:$8 sps:$4 sm:$0xff]   ;;  %v17283_v26 = vld [vmem:[#allocation4 + $0x50] ss:$8 sps:$4 sm:$0xff]   ;;  %v16361_v40 = vpack.c.bf16 %v13609_v14, %v13608_v9 }
 0x68d   :  { %16316 = vmatpush3.bf16.msra.mxu1 %v16313_v58  ;;  %15879 = vmatprep.mubr.msk.f32.mxu1 %vm205_vm3, %v17264_v4  ;;  %v17286_v10 = vld [vmem:[#allocation4 + $0x41] ss:$8 sps:$4 sm:$0xff]   ;;  %v17287_v15 = vld [vmem:[#allocation4 + $0x51] ss:$8 sps:$4 sm:$0xff]  }
 0x68e   :  { %16318 = vmatprep.subr.bf16.mxu1 %v16317_v2  ;;  %v17288_v33 = vld [vmem:[#allocation4 + $0x12] ss:$8 sps:$4 sm:$0xff]   ;;  %v17290_v60 = vld [vmem:[#allocation4 + $0x42] ss:$8 sps:$4 sm:$0xff]  }
 0x68f   :  { %v17291_v58 = vld [vmem:[#allocation4 + $0x52] ss:$8 sps:$4 sm:$0xff]   ;;  %v10484_v45 = vld [vmem:[#allocation10 + $0x20] sm:$0xff] }
 0x690   :  { %15880 = vmatmul.mubr.msk.f32.vlgmr.msra.gmra.mrb[80].mxu1 %vm205_vm3, %v17265_v35  ;;  %v10486_v54 = vld [vmem:[#allocation10 + $0x30] sm:$0xff]  ;;  %v16365_v32 = vpack.c.bf16 %v10485_v59, %v10484_v45  ;;  %v10471_v48 = vld [vmem:[#allocation10] sm:$0xff]  ;;  %v10830_v23 = vld [vmem:[#allocation10 + $0x68] sm:$0xff] }
 0x691   :  { %16320 = vmatpush3.bf16.msra.mxu1 %v16317_v2  ;;  %15882 = vmatprep.mubr.msk.f32.mxu1 %vm205_vm3, %v17266_v19  ;;  %v10487_v2 = vld [vmem:[#allocation10 + $0x38] sm:$0xff]  ;;  %v16373_v35 = vpack.c.bf16 %v10472_v56, %v10471_v48  ;;  %v10707_v8 = vld [vmem:[#allocation10 + $0x40] sm:$0xff]  ;;  %v10709_v11 = vld [vmem:[#allocation10 + $0x50] sm:$0xff] }
 0x692   :  { %16322 = vmatprep.subr.bf16.mxu1 %v16321_v6  ;;  %v16369_v4 = vpack.c.bf16 %v10487_v2, %v10486_v54  ;;  %v10829_v38 = vld [vmem:[#allocation10 + $0x60] sm:$0xff]  ;;  %v10831_v5 = vld [vmem:[#allocation10 + $0x70] sm:$0xff]  ;;  %v10832_v30 = vld [vmem:[#allocation10 + $0x78] sm:$0xff] }
 0x693   :  { %v10951_v9 = vld [vmem:[#allocation10 + $0x80] sm:$0xff]  ;;  %v10952_v14 = vld [vmem:[#allocation10 + $0x88] sm:$0xff] }
 0x694   :  { %15883 = vmatmul.mubr.msk.f32.gmra.mrb[82].mxu1 %vm205_vm3, %v17267_v62  ;;  %v13615_v62 = vld [vmem:[%s20477_s9] ss:$0 sm:$0xff]  ;;  %v11073_v45 = vld [vmem:[#allocation10 + $0xa0] sm:$0xff]  ;;  %v11074_v59 = vld [vmem:[#allocation10 + $0xa8] sm:$0xff] }
 0x695   :  { %16324 = vmatpush3.bf16.msra.mxu1 %v16321_v6  ;;  %15893 = vmatprep.mubr.msk.f32.mxu1 %vm205_vm3, %v17268_v43  ;;  %v13614_v6 = vld [vmem:[%s20476_s8] ss:$0 sm:$0xff]  ;;  %v16405_v48 = vpack.c.bf16 %v11074_v59, %v11073_v45 }
 0x696   :  { %16326 = vmatprep.subr.bf16.mxu1 %v16325_v57 }
 0x698   :  { %15894 = vmatmul.mubr.msk.f32.vlgmr.msra.gmra.mrb[80].mxu1 %vm205_vm3, %v17269_v34 }
 0x699   :  { %16328 = vmatpush3.bf16.msra.mxu1 %v16325_v57  ;;  %15896 = vmatprep.mubr.msk.f32.mxu1 %vm205_vm3, %v17270_v39 }
 0x69a   :  { %16330 = vmatprep.subr.bf16.mxu1 %v16329_v21 }
 0x69c   :  { %15897 = vmatmul.mubr.msk.f32.gmra.mrb[82].mxu1 %vm205_vm3, %v17271_v13 }
 0x69d   :  { %16332 = vmatpush3.bf16.msra.mxu1 %v16329_v21  ;;  %15907 = vmatprep.mubr.msk.f32.mxu1 %vm205_vm3, %v17272_v0 }
 0x69e   :  { %16334 = vmatprep.subr.bf16.mxu1 %v16333_v51 }
 0x6a0   :  { %15908 = vmatmul.mubr.msk.f32.vlgmr.msra.gmra.mrb[80].mxu1 %vm205_vm3, %v17273_v63 }
 0x6a1   :  { %16336 = vmatpush3.bf16.msra.mxu1 %v16333_v51  ;;  %15910 = vmatprep.mubr.msk.f32.mxu1 %vm205_vm3, %v17274_v1 }
 0x6a2   :  { %16338 = vmatprep.subr.bf16.mxu1 %v16337_v24 }
 0x6a4   :  { %15911 = vmatmul.mubr.msk.f32.gmra.mrb[82].mxu1 %vm205_vm3, %v17275_v41  ;;  %v10473_v41 = vld [vmem:[#allocation10 + $0x10] sm:$0xff] }
 0x6a5   :  { %16340 = vmatpush3.bf16.msra.mxu1 %v16337_v24  ;;  %15921 = vmatprep.mubr.msk.f32.mxu1 %vm205_vm3, %v17276_v42 }
 0x6a6   :  { %16342 = vmatprep.subr.bf16.mxu1 %v16341_v7 }
 0x6a8   :  { %15922 = vmatmul.mubr.msk.f32.vlgmr.msra.gmra.mrb[80].mxu1 %vm205_vm3, %v17277_v27 }
 0x6a9   :  { %16344 = vmatpush3.bf16.msra.mxu1 %v16341_v7  ;;  %15924 = vmatprep.mubr.msk.f32.mxu1 %vm205_vm3, %v17278_v17  ;;  %v10474_v7 = vld [vmem:[#allocation10 + $0x18] sm:$0xff] }
 0x6aa   :  { %16346 = vmatprep.subr.bf16.mxu1 %v16345_v49  ;;  %v16377_v27 = vpack.c.bf16 %v10474_v7, %v10473_v41 }
 0x6ac   :  { %15925 = vmatmul.mubr.msk.f32.gmra.mrb[82].mxu1 %vm205_vm3, %v17279_v50 }
 0x6ad   :  { %16348 = vmatpush3.bf16.msra.mxu1 %v16345_v49  ;;  %15935 = vmatprep.mubr.msk.f32.mxu1 %vm205_vm3, %v17280_v18  ;;  %v10708_v49 = vld [vmem:[#allocation10 + $0x48] sm:$0xff]  ;;  %v10710_v18 = vld [vmem:[#allocation10 + $0x58] sm:$0xff] }
 0x6ae   :  { %16350 = vmatprep.subr.bf16.mxu1 %v16349_v31  ;;  %v16381_v50 = vpack.c.bf16 %v10708_v49, %v10707_v8  ;;  %v11440_v8 = vld [vmem:[#allocation10 + $0x108] sm:$0xff] }
 0x6b0   :  { %15936 = vmatmul.mubr.msk.f32.vlgmr.msra.gmra.mrb[80].mxu1 %vm205_vm3, %v17281_v28 }
 0x6b1   :  { %16352 = vmatpush3.bf16.msra.mxu1 %v16349_v31  ;;  %15938 = vmatprep.mubr.msk.f32.mxu1 %vm205_vm3, %v17282_v12 }
 0x6b2   :  { %16354 = vmatprep.subr.bf16.mxu1 %v16353_v22 }
 0x6b4   :  { %15939 = vmatmul.mubr.msk.f32.gmra.mrb[82].mxu1 %vm205_vm3, %v17283_v26 }
 0x6b5   :  { %16356 = vmatpush3.bf16.msra.mxu1 %v16353_v22  ;;  %15949 = vmatprep.mubr.msk.f32.mxu1 %vm205_vm3, %v17284_v52  ;;  %v16385_v22 = vpack.c.bf16 %v10710_v18, %v10709_v11  ;;  %v11442_v11 = vld [vmem:[#allocation10 + $0x118] sm:$0xff] }
 0x6b6   :  { %16358 = vmatprep.subr.bf16.mxu1 %v16357_v47 }
 0x6b8   :  { %15950 = vmatmul.mubr.msk.f32.vlgmr.msra.gmra.mrb[80].mxu1 %vm205_vm3, %v17285_v61 }
 0x6b9   :  { %16360 = vmatpush3.bf16.msra.mxu1 %v16357_v47  ;;  %15952 = vmatprep.mubr.msk.f32.mxu1 %vm205_vm3, %v17286_v10  ;;  %v16389_v47 = vpack.c.bf16 %v10830_v23, %v10829_v38 }
 0x6ba   :  { %16362 = vmatprep.subr.bf16.mxu1 %v16361_v40 }
 0x6bc   :  { %15953 = vmatmul.mubr.msk.f32.gmra.mrb[82].mxu1 %vm205_vm3, %v17287_v15  ;;  %v10953_v15 = vld [vmem:[#allocation10 + $0x90] sm:$0xff] }
 0x6bd   :  { %16364 = vmatpush3.bf16.msra.mxu1 %v16361_v40  ;;  %15963 = vmatprep.mubr.msk.f32.mxu1 %vm205_vm3, %v17288_v33  ;;  %v16393_v40 = vpack.c.bf16 %v10832_v30, %v10831_v5  ;;  %v10954_v33 = vld [vmem:[#allocation10 + $0x98] sm:$0xff]  ;;  %v11620_v5 = vld [vmem:[#allocation12 + $0x28] sm:$0xff]  ;;  %v11621_v30 = vld [vmem:[#allocation12 + $0x30] sm:$0xff] }
 0x6be   :  { %16366 = vmatprep.subr.bf16.mxu1 %v16365_v32 }
 0x6c0   :  { %15964 = vmatmul.mubr.msk.f32.vlgmr.msra.gmra.mrb[80].mxu1 %vm205_vm3, %v17289_v25 }
 0x6c1   :  { %15966 = vmatprep.mubr.msk.f32.mxu1 %vm205_vm3, %v17290_v60  ;;  %16368 = vmatpush3.bf16.msra.mxu1 %v16365_v32  ;;  %v16397_v60 = vpack.c.bf16 %v10952_v14, %v10951_v9  ;;  %v16401_v32 = vpack.c.bf16 %v10954_v33, %v10953_v15  ;;  %v11606_v9 = vld [vmem:[#allocation12] sm:$0xff]  ;;  %v11607_v14 = vld [vmem:[#allocation12 + $0x8] sm:$0xff]  ;;  %v13653_v15 = vld [vmem:[%s20480_s12] ss:$0 sm:$0xff] }
 0x6c2   :  { %16370 = vmatprep.subr.bf16.mxu1 %v16369_v4 }
 0x6c4   :  { %15967 = vmatmul.mubr.msk.f32.gmra.mrb[82].mxu1 %vm205_vm3, %v17291_v58 }
 0x6c5   :  { %16372 = vmatpush3.bf16.msra.mxu1 %v16369_v4 }
 0x6c6   :  { %16374 = vmatprep.subr.bf16.mxu1 %v16373_v35 }
 0x793   :  { %v15965_v19 = vpop.f32.mrb[80].mxu1 }
 0x794   :  { %v10425_v57 = vmul.f32 %v15965_v19, %v13614_v6  ;;  %v10394_v43 = vpop.f32.mrb[81].mxu1 }
 0x795   :  { %v10424_v53 = vmul.f32 %v13614_v6, %v10394_v43  ;;  %v11195_v43 = vld [vmem:[#allocation10 + $0xc0] sm:$0xff] }
 0x796   :  { %v10436_v36 = vadd.f32 %v13615_v62, %v10425_v57 }
 0x797   :  { %v10435_v34 = vadd.f32 %v13615_v62, %v10424_v53  ;;  %v15968_v21 = vpop.f32.mrb[82].mxu1  ;;  %v11196_v53 = vld [vmem:[#allocation10 + $0xc8] sm:$0xff] }
 0x798   :  { %v10440_v39 = vmax.f32 %v10436_v36, 0.0  ;;  %v10427_v3 = vmul.f32 %v15968_v21, %v13614_v6  ;;  %v10404_v46 = vpop.f32.mrb[83].mxu1 }
 0x799   :  { %v10439_v13 = vmax.f32 %v10435_v34, 0.0  ;;  %v10426_v51 = vmul.f32 %v13614_v6, %v10404_v46  ;;  %v11076_v6 = vld [vmem:[#allocation10 + $0xb8] sm:$0xff]  ;;  %v16413_v34 = vpack.c.bf16 %v11196_v53, %v11195_v43 }
 0x79a   :  { %v10448_v0 = vcombine.high %v10440_v39, %v10440_v39  ;;  %10457 = vst.msk [vmem:[#allocation4 + $0x19] sm:$0xf] %vm9318_vm6, %v10440_v39  ;;  %v10438_v44 = vadd.f32 %v13615_v62, %v10427_v3  ;;  %v11197_v39 = vld [vmem:[#allocation10 + $0xd0] sm:$0xff]  ;;  %v11198_v3 = vld [vmem:[#allocation10 + $0xd8] sm:$0xff] }
 0x79b   :  { %v10447_v37 = vcombine.high %v10439_v13, %v10439_v13  ;;  %10455 = vst.msk [vmem:[#allocation4 + $0x9] sm:$0xf] %vm9318_vm6, %v10439_v13  ;;  %v10437_v63 = vadd.f32 %v13615_v62, %v10426_v51  ;;  %v16417_v13 = vpack.c.bf16 %v11198_v3, %v11197_v39  ;;  %v11842_v39 = vld [vmem:[#allocation12 + $0x40] sm:$0xff] }
 0x79c   :  { %10458 = vst.msk [vmem:[#allocation4 + $0x21] sm:$0xf] %vm9318_vm6, %v10448_v0  ;;  %v10442_v24 = vmax.f32 %v10438_v44, 0.0  ;;  %v11317_v0 = vld [vmem:[#allocation10 + $0xe0] sm:$0xff]  ;;  %v11318_v44 = vld [vmem:[#allocation10 + $0xe8] sm:$0xff] }
 0x79d   :  { %10456 = vst.msk [vmem:[#allocation4 + $0x11] sm:$0xf] %vm9318_vm6, %v10447_v37  ;;  %v10441_v1 = vmax.f32 %v10437_v63, 0.0  ;;  %v16421_v63 = vpack.c.bf16 %v11318_v44, %v11317_v0  ;;  %v11844_v0 = vld [vmem:[#allocation12 + $0x50] sm:$0xff] }
 0x79e   :  { %v10450_v55 = vcombine.high %v10442_v24, %v10442_v24  ;;  %10461 = vst.msk [vmem:[#allocation4 + $0x49] sm:$0xf] %vm9318_vm6, %v10442_v24 }
 0x79f   :  { %v10449_v20 = vcombine.high %v10441_v1, %v10441_v1  ;;  %10459 = vst.msk [vmem:[#allocation4 + $0x39] sm:$0xf] %vm9318_vm6, %v10441_v1  ;;  %v11319_v1 = vld [vmem:[#allocation10 + $0xf0] sm:$0xff] }
 0x7a0   :  { %10462 = vst.msk [vmem:[#allocation4 + $0x51] sm:$0xf] %vm9318_vm6, %v10450_v55  ;;  %v11320_v55 = vld [vmem:[#allocation10 + $0xf8] sm:$0xff] }
 0x7a1   :  { %10460 = vst.msk [vmem:[#allocation4 + $0x41] sm:$0xf] %vm9318_vm6, %v10449_v20  ;;  %v16425_v41 = vpack.c.bf16 %v11320_v55, %v11319_v1  ;;  %v11964_v1 = vld [vmem:[#allocation12 + $0x60] sm:$0xff]  ;;  %v11965_v55 = vld [vmem:[#allocation12 + $0x68] sm:$0xff] }
 0x7a2   :  { %v17292_v42 = vld [vmem:[#allocation4 + $0x1] ss:$8 sps:$4 sm:$0xff]  }
 0x7a3   :  { %15977 = vmatprep.mubr.msk.f32.mxu1 %vm205_vm3, %v17292_v42  ;;  %v17296_v31 = vld [vmem:[#allocation4] ss:$8 sps:$4 sm:$0xff]  }
 0x7a4   :  { %v17293_v16 = vld [vmem:[#allocation4 + $0x11] ss:$8 sps:$4 sm:$0xff]   ;;  %v17300_v52 = vld [vmem:[#allocation4 + $0x2] ss:$8 sps:$4 sm:$0xff]  }
 0x7a5   :  { %15978 = vmatmul.mubr.msk.f32.vlgmr.msra.gmra.mrb[84].mxu1 %vm205_vm3, %v17293_v16  ;;  %v17297_v28 = vld [vmem:[#allocation4 + $0x10] ss:$8 sps:$4 sm:$0xff]   ;;  %v17317_v20 = vld [vmem:[#allocation4 + $0x20] ss:$8 sps:$4 sm:$0xff]  }
 0x7a6   :  { %v17294_v17 = vld [vmem:[#allocation4 + $0x31] ss:$8 sps:$4 sm:$0xff]   ;;  %16376 = vmatpush3.bf16.msra.mxu1 %v16373_v35  ;;  %v11439_v42 = vld [vmem:[#allocation10 + $0x100] sm:$0xff] }
 0x7a7   :  { %15980 = vmatprep.mubr.msk.f32.mxu1 %vm205_vm3, %v17294_v17  ;;  %16378 = vmatprep.subr.bf16.mxu1 %v16377_v27  ;;  %v17298_v12 = vld [vmem:[#allocation4 + $0x30] ss:$8 sps:$4 sm:$0xff]   ;;  %v17325_v23 = vld [vmem:[#allocation4 + $0x22] ss:$8 sps:$4 sm:$0xff]  }
 0x7a8   :  { %v17295_v29 = vld [vmem:[#allocation4 + $0x41] ss:$8 sps:$4 sm:$0xff]   ;;  %v17301_v61 = vld [vmem:[#allocation4 + $0x12] ss:$8 sps:$4 sm:$0xff]  }
 0x7a9   :  { %15981 = vmatmul.mubr.msk.f32.gmra.mrb[86].mxu1 %vm205_vm3, %v17295_v29  ;;  %v17299_v26 = vld [vmem:[#allocation4 + $0x40] ss:$8 sps:$4 sm:$0xff]   ;;  %v17302_v10 = vld [vmem:[#allocation4 + $0x32] ss:$8 sps:$4 sm:$0xff]  }
 0x7aa   :  { %16380 = vmatpush3.bf16.msra.mxu1 %v16377_v27  ;;  %15991 = vmatprep.mubr.msk.f32.mxu1 %vm205_vm3, %v17296_v31  ;;  %v17303_v25 = vld [vmem:[#allocation4 + $0x42] ss:$8 sps:$4 sm:$0xff]   ;;  %v11075_v35 = vld [vmem:[#allocation10 + $0xb0] sm:$0xff]  ;;  %v16429_v27 = vpack.c.bf16 %v11440_v8, %v11439_v42 }
 0x7ab   :  { %16382 = vmatprep.subr.bf16.mxu1 %v16381_v50  ;;  %v17304_v58 = vld [vmem:[#allocation4 + $0x8] ss:$8 sps:$4 sm:$0xff]   ;;  %v17305_v54 = vld [vmem:[#allocation4 + $0x18] ss:$8 sps:$4 sm:$0xff]   ;;  %v16409_v62 = vpack.c.bf16 %v11076_v6, %v11075_v35 }
 0x7ac   :  { %v17306_v2 = vld [vmem:[#allocation4 + $0x38] ss:$8 sps:$4 sm:$0xff]   ;;  %v17307_v4 = vld [vmem:[#allocation4 + $0x48] ss:$8 sps:$4 sm:$0xff]  }
 0x7ad   :  { %15992 = vmatmul.mubr.msk.f32.vlgmr.msra.gmra.mrb[84].mxu1 %vm205_vm3, %v17297_v28  ;;  %v17308_v56 = vld [vmem:[#allocation4 + $0x9] ss:$8 sps:$4 sm:$0xff]   ;;  %v17309_v19 = vld [vmem:[#allocation4 + $0x19] ss:$8 sps:$4 sm:$0xff]  }
 0x7ae   :  { %16384 = vmatpush3.bf16.msra.mxu1 %v16381_v50  ;;  %15994 = vmatprep.mubr.msk.f32.mxu1 %vm205_vm3, %v17298_v12  ;;  %v17310_v57 = vld [vmem:[#allocation4 + $0x39] ss:$8 sps:$4 sm:$0xff]   ;;  %v17311_v36 = vld [vmem:[#allocation4 + $0x49] ss:$8 sps:$4 sm:$0xff]  }
 0x7af   :  { %16386 = vmatprep.subr.bf16.mxu1 %v16385_v22  ;;  %v17312_v21 = vld [vmem:[#allocation4 + $0xa] ss:$8 sps:$4 sm:$0xff]   ;;  %v17313_v46 = vld [vmem:[#allocation4 + $0x1a] ss:$8 sps:$4 sm:$0xff]  }
 0x7b0   :  { %v17314_v51 = vld [vmem:[#allocation4 + $0x3a] ss:$8 sps:$4 sm:$0xff]   ;;  %v17315_v37 = vld [vmem:[#allocation4 + $0x4a] ss:$8 sps:$4 sm:$0xff]  }
 0x7b1   :  { %15995 = vmatmul.mubr.msk.f32.gmra.mrb[86].mxu1 %vm205_vm3, %v17299_v26  ;;  %v17316_v24 = vld [vmem:[#allocation4 + $0x10] ss:$8 sps:$4 sm:$0xff]   ;;  %v17318_v7 = vld [vmem:[#allocation4 + $0x40] ss:$8 sps:$4 sm:$0xff]  }
 0x7b2   :  { %16388 = vmatpush3.bf16.msra.mxu1 %v16385_v22  ;;  %16005 = vmatprep.mubr.msk.f32.mxu1 %vm205_vm3, %v17300_v52  ;;  %v17319_v16 = vld [vmem:[#allocation4 + $0x50] ss:$8 sps:$4 sm:$0xff]   ;;  %v17321_v29 = vld [vmem:[#allocation4 + $0x21] ss:$8 sps:$4 sm:$0xff]  }
 0x7b3   :  { %16390 = vmatprep.subr.bf16.mxu1 %v16389_v47  ;;  %v17320_v49 = vld [vmem:[#allocation4 + $0x11] ss:$8 sps:$4 sm:$0xff]   ;;  %v17322_v31 = vld [vmem:[#allocation4 + $0x41] ss:$8 sps:$4 sm:$0xff]  }
 0x7b4   :  { %v11441_v17 = vld [vmem:[#allocation10 + $0x110] sm:$0xff]  ;;  %v17326_v28 = vld [vmem:[#allocation4 + $0x42] ss:$8 sps:$4 sm:$0xff]  }
 0x7b5   :  { %16006 = vmatmul.mubr.msk.f32.vlgmr.msra.gmra.mrb[84].mxu1 %vm205_vm3, %v17301_v61  ;;  %v16433_v50 = vpack.c.bf16 %v11442_v11, %v11441_v17  ;;  %v17323_v18 = vld [vmem:[#allocation4 + $0x51] ss:$8 sps:$4 sm:$0xff]   ;;  %v11619_v12 = vld [vmem:[#allocation12 + $0x20] sm:$0xff]  ;;  %v16445_v61 = vpack.c.bf16 %v11607_v14, %v11606_v9 }
 0x7b6   :  { %16392 = vmatpush3.bf16.msra.mxu1 %v16389_v47  ;;  %16008 = vmatprep.mubr.msk.f32.mxu1 %vm205_vm3, %v17302_v10  ;;  %v17324_v38 = vld [vmem:[#allocation4 + $0x12] ss:$8 sps:$4 sm:$0xff]   ;;  %v16437_v26 = vpack.c.bf16 %v11620_v5, %v11619_v12  ;;  %v12086_v17 = vld [vmem:[#allocation12 + $0x80] sm:$0xff] }
 0x7b7   :  { %16394 = vmatprep.subr.bf16.mxu1 %v16393_v40  ;;  %v17327_v22 = vld [vmem:[#allocation4 + $0x52] ss:$8 sps:$4 sm:$0xff]   ;;  %v12208_v12 = vld [vmem:[#allocation12 + $0xa0] sm:$0xff] }
 0x7b8   :  { %v11622_v47 = vld [vmem:[#allocation12 + $0x38] sm:$0xff]  ;;  %v11966_v42 = vld [vmem:[#allocation12 + $0x70] sm:$0xff]  ;;  %v12087_v11 = vld [vmem:[#allocation12 + $0x88] sm:$0xff] }
 0x7b9   :  { %16009 = vmatmul.mubr.msk.f32.gmra.mrb[86].mxu1 %vm205_vm3, %v17303_v25  ;;  %v16441_v52 = vpack.c.bf16 %v11622_v47, %v11621_v30  ;;  %v11967_v8 = vld [vmem:[#allocation12 + $0x78] sm:$0xff]  ;;  %v12209_v5 = vld [vmem:[#allocation12 + $0xa8] sm:$0xff] }
 0x7ba   :  { %16396 = vmatpush3.bf16.msra.mxu1 %v16393_v40  ;;  %16019 = vmatprep.mubr.msk.f32.mxu1 %vm205_vm3, %v17304_v58  ;;  %v13652_v40 = vld [vmem:[%s20479_s11] ss:$0 sm:$0xff]  ;;  %v16477_v9 = vpack.c.bf16 %v12209_v5, %v12208_v12 }
 0x7bb   :  { %16398 = vmatprep.subr.bf16.mxu1 %v16397_v60 }
 0x7bd   :  { %16020 = vmatmul.mubr.msk.f32.vlgmr.msra.gmra.mrb[84].mxu1 %vm205_vm3, %v17305_v54 }
 0x7be   :  { %16400 = vmatpush3.bf16.msra.mxu1 %v16397_v60  ;;  %16022 = vmatprep.mubr.msk.f32.mxu1 %vm205_vm3, %v17306_v2 }
 0x7bf   :  { %16402 = vmatprep.subr.bf16.mxu1 %v16401_v32 }
 0x7c1   :  { %16023 = vmatmul.mubr.msk.f32.gmra.mrb[86].mxu1 %vm205_vm3, %v17307_v4 }
 0x7c2   :  { %16404 = vmatpush3.bf16.msra.mxu1 %v16401_v32  ;;  %16033 = vmatprep.mubr.msk.f32.mxu1 %vm205_vm3, %v17308_v56 }
 0x7c3   :  { %16406 = vmatprep.subr.bf16.mxu1 %v16405_v48 }
 0x7c5   :  { %16034 = vmatmul.mubr.msk.f32.vlgmr.msra.gmra.mrb[84].mxu1 %vm205_vm3, %v17309_v19 }
 0x7c6   :  { %16408 = vmatpush3.bf16.msra.mxu1 %v16405_v48  ;;  %16036 = vmatprep.mubr.msk.f32.mxu1 %vm205_vm3, %v17310_v57 }
 0x7c7   :  { %16410 = vmatprep.subr.bf16.mxu1 %v16409_v62 }
 0x7c9   :  { %16037 = vmatmul.mubr.msk.f32.gmra.mrb[86].mxu1 %vm205_vm3, %v17311_v36  ;;  %v11608_v36 = vld [vmem:[#allocation12 + $0x10] sm:$0xff] }
 0x7ca   :  { %16412 = vmatpush3.bf16.msra.mxu1 %v16409_v62  ;;  %16047 = vmatprep.mubr.msk.f32.mxu1 %vm205_vm3, %v17312_v21 }
 0x7cb   :  { %16414 = vmatprep.subr.bf16.mxu1 %v16413_v34 }
 0x7cd   :  { %16048 = vmatmul.mubr.msk.f32.vlgmr.msra.gmra.mrb[84].mxu1 %vm205_vm3, %v17313_v46 }
 0x7ce   :  { %16416 = vmatpush3.bf16.msra.mxu1 %v16413_v34  ;;  %16050 = vmatprep.mubr.msk.f32.mxu1 %vm205_vm3, %v17314_v51  ;;  %v11609_v34 = vld [vmem:[#allocation12 + $0x18] sm:$0xff] }
 0x7cf   :  { %16418 = vmatprep.subr.bf16.mxu1 %v16417_v13  ;;  %v16449_v46 = vpack.c.bf16 %v11609_v34, %v11608_v36 }
 0x7d1   :  { %16051 = vmatmul.mubr.msk.f32.gmra.mrb[86].mxu1 %vm205_vm3, %v17315_v37 }
 0x7d2   :  { %16420 = vmatpush3.bf16.msra.mxu1 %v16417_v13  ;;  %16061 = vmatprep.mubr.msk.f32.mxu1 %vm205_vm3, %v17316_v24  ;;  %v11843_v13 = vld [vmem:[#allocation12 + $0x48] sm:$0xff]  ;;  %v11845_v24 = vld [vmem:[#allocation12 + $0x58] sm:$0xff] }
 0x7d3   :  { %16422 = vmatprep.subr.bf16.mxu1 %v16421_v63  ;;  %v16453_v37 = vpack.c.bf16 %v11843_v13, %v11842_v39  ;;  %v12575_v39 = vld [vmem:[#allocation12 + $0x108] sm:$0xff] }
 0x7d5   :  { %16062 = vmatmul.mubr.msk.f32.vlgmr.msra.gmra.mrb[84].mxu1 %vm205_vm3, %v17317_v20 }
 0x7d6   :  { %16424 = vmatpush3.bf16.msra.mxu1 %v16421_v63  ;;  %16064 = vmatprep.mubr.msk.f32.mxu1 %vm205_vm3, %v17318_v7 }
 0x7d7   :  { %16426 = vmatprep.subr.bf16.mxu1 %v16425_v41 }
 0x7d9   :  { %16065 = vmatmul.mubr.msk.f32.gmra.mrb[86].mxu1 %vm205_vm3, %v17319_v16 }
 0x7da   :  { %16428 = vmatpush3.bf16.msra.mxu1 %v16425_v41  ;;  %16075 = vmatprep.mubr.msk.f32.mxu1 %vm205_vm3, %v17320_v49  ;;  %v16457_v41 = vpack.c.bf16 %v11845_v24, %v11844_v0  ;;  %v12577_v0 = vld [vmem:[#allocation12 + $0x118] sm:$0xff] }
 0x7db   :  { %16430 = vmatprep.subr.bf16.mxu1 %v16429_v27 }
 0x7dd   :  { %16076 = vmatmul.mubr.msk.f32.vlgmr.msra.gmra.mrb[84].mxu1 %vm205_vm3, %v17321_v29 }
 0x7de   :  { %16432 = vmatpush3.bf16.msra.mxu1 %v16429_v27  ;;  %16078 = vmatprep.mubr.msk.f32.mxu1 %vm205_vm3, %v17322_v31  ;;  %v16461_v27 = vpack.c.bf16 %v11965_v55, %v11964_v1 }
 0x7df   :  { %16434 = vmatprep.subr.bf16.mxu1 %v16433_v50 }
 0x7e1   :  { %16079 = vmatmul.mubr.msk.f32.gmra.mrb[86].mxu1 %vm205_vm3, %v17323_v18  ;;  %v12088_v18 = vld [vmem:[#allocation12 + $0x90] sm:$0xff] }
 0x7e2   :  { %16436 = vmatpush3.bf16.msra.mxu1 %v16433_v50  ;;  %16089 = vmatprep.mubr.msk.f32.mxu1 %vm205_vm3, %v17324_v38  ;;  %v16465_v50 = vpack.c.bf16 %v11967_v8, %v11966_v42  ;;  %v12089_v38 = vld [vmem:[#allocation12 + $0x98] sm:$0xff] }
 0x7e3   :  { %16438 = vmatprep.subr.bf16.mxu1 %v16437_v26  ;;  %v13691_v8 = vld [vmem:[%s20483_s15] ss:$0 sm:$0xff] }
 0x7e5   :  { %16090 = vmatmul.mubr.msk.f32.vlgmr.msra.gmra.mrb[84].mxu1 %vm205_vm3, %v17325_v23 }
 0x7e6   :  { %16092 = vmatprep.mubr.msk.f32.mxu1 %vm205_vm3, %v17326_v28  ;;  %16440 = vmatpush3.bf16.msra.mxu1 %v16437_v26  ;;  %v16469_v28 = vpack.c.bf16 %v12087_v11, %v12086_v17  ;;  %v16473_v26 = vpack.c.bf16 %v12089_v38, %v12088_v18 }
 0x7e7   :  { %16442 = vmatprep.subr.bf16.mxu1 %v16441_v52 }
 0x7e9   :  { %16093 = vmatmul.mubr.msk.f32.gmra.mrb[86].mxu1 %vm205_vm3, %v17327_v22 }
 0x7ea   :  { %16444 = vmatpush3.bf16.msra.mxu1 %v16441_v52 }
 0x7eb   :  { %16446 = vmatprep.subr.bf16.mxu1 %v16445_v61 }
 0x8b8   :  { %v16091_v10 = vpop.f32.mrb[84].mxu1 }
 0x8b9   :  { %v11560_v33 = vmul.f32 %v16091_v10, %v13652_v40  ;;  %v11529_v25 = vpop.f32.mrb[85].mxu1 }
 0x8ba   :  { %v11559_v60 = vmul.f32 %v13652_v40, %v11529_v25  ;;  %v12330_v25 = vld [vmem:[#allocation12 + $0xc0] sm:$0xff] }
 0x8bb   :  { %v11571_v58 = vadd.f32 %v13653_v15, %v11560_v33 }
 0x8bc   :  { %v11570_v45 = vadd.f32 %v13653_v15, %v11559_v60  ;;  %v16094_v59 = vpop.f32.mrb[86].mxu1  ;;  %v12331_v60 = vld [vmem:[#allocation12 + $0xc8] sm:$0xff] }
 0x8bd   :  { %v11575_v54 = vmax.f32 %v11571_v58, 0.0  ;;  %v11562_v32 = vmul.f32 %v16094_v59, %v13652_v40  ;;  %v11539_v2 = vpop.f32.mrb[87].mxu1 }
 0x8be   :  { %v11574_v4 = vmax.f32 %v11570_v45, 0.0  ;;  %v11561_v48 = vmul.f32 %v13652_v40, %v11539_v2  ;;  %v12211_v40 = vld [vmem:[#allocation12 + $0xb8] sm:$0xff]  ;;  %v16485_v45 = vpack.c.bf16 %v12331_v60, %v12330_v25 }
 0x8bf   :  { %v11583_v56 = vcombine.high %v11575_v54, %v11575_v54  ;;  %11592 = vst.msk [vmem:[#allocation4 + $0x19] sm:$0xf] %vm9318_vm6, %v11575_v54  ;;  %v11573_v35 = vadd.f32 %v13653_v15, %v11562_v32  ;;  %v12332_v54 = vld [vmem:[#allocation12 + $0xd0] sm:$0xff]  ;;  %v12333_v32 = vld [vmem:[#allocation12 + $0xd8] sm:$0xff] }
 0x8c0   :  { %v11582_v6 = vcombine.high %v11574_v4, %v11574_v4  ;;  %11590 = vst.msk [vmem:[#allocation4 + $0x9] sm:$0xf] %vm9318_vm6, %v11574_v4  ;;  %v11572_v19 = vadd.f32 %v13653_v15, %v11561_v48  ;;  %v16489_v4 = vpack.c.bf16 %v12333_v32, %v12332_v54 }
 0x8c1   :  { %11593 = vst.msk [vmem:[#allocation4 + $0x21] sm:$0xf] %vm9318_vm6, %v11583_v56  ;;  %v11577_v62 = vmax.f32 %v11573_v35, 0.0  ;;  %v12452_v56 = vld [vmem:[#allocation12 + $0xe0] sm:$0xff]  ;;  %v12453_v35 = vld [vmem:[#allocation12 + $0xe8] sm:$0xff] }
 0x8c2   :  { %11591 = vst.msk [vmem:[#allocation4 + $0x11] sm:$0xf] %vm9318_vm6, %v11582_v6  ;;  %v11576_v57 = vmax.f32 %v11572_v19, 0.0  ;;  %v16493_v19 = vpack.c.bf16 %v12453_v35, %v12452_v56 }
 0x8c3   :  { %v11585_v43 = vcombine.high %v11577_v62, %v11577_v62  ;;  %11596 = vst.msk [vmem:[#allocation4 + $0x49] sm:$0xf] %vm9318_vm6, %v11577_v62 }
 0x8c4   :  { %v11584_v53 = vcombine.high %v11576_v57, %v11576_v57  ;;  %11594 = vst.msk [vmem:[#allocation4 + $0x39] sm:$0xf] %vm9318_vm6, %v11576_v57  ;;  %v12454_v57 = vld [vmem:[#allocation12 + $0xf0] sm:$0xff] }
 0x8c5   :  { %11597 = vst.msk [vmem:[#allocation4 + $0x51] sm:$0xf] %vm9318_vm6, %v11585_v43  ;;  %v12455_v43 = vld [vmem:[#allocation12 + $0xf8] sm:$0xff] }
 0x8c6   :  { %11595 = vst.msk [vmem:[#allocation4 + $0x41] sm:$0xf] %vm9318_vm6, %v11584_v53  ;;  %v16497_v36 = vpack.c.bf16 %v12455_v43, %v12454_v57 }
 0x8c7   :  { %v17328_v21 = vld [vmem:[#allocation4 + $0x1] ss:$8 sps:$4 sm:$0xff]  }
 0x8c8   :  { %16103 = vmatprep.mubr.msk.f32.mxu1 %vm205_vm3, %v17328_v21  ;;  %v17332_v63 = vld [vmem:[#allocation4] ss:$8 sps:$4 sm:$0xff]  }
 0x8c9   :  { %v17329_v3 = vld [vmem:[#allocation4 + $0x11] ss:$8 sps:$4 sm:$0xff]   ;;  %v17336_v49 = vld [vmem:[#allocation4 + $0x2] ss:$8 sps:$4 sm:$0xff]  }
 0x8ca   :  { %16104 = vmatmul.mubr.msk.f32.vlgmr.msra.gmra.mrb[88].mxu1 %vm205_vm3, %v17329_v3  ;;  %v17333_v20 = vld [vmem:[#allocation4 + $0x10] ss:$8 sps:$4 sm:$0xff]   ;;  %v17353_v53 = vld [vmem:[#allocation4 + $0x20] ss:$8 sps:$4 sm:$0xff]  }
 0x8cb   :  { %v17330_v51 = vld [vmem:[#allocation4 + $0x31] ss:$8 sps:$4 sm:$0xff]   ;;  %16448 = vmatpush3.bf16.msra.mxu1 %v16445_v61  ;;  %v12574_v21 = vld [vmem:[#allocation12 + $0x100] sm:$0xff] }
 0x8cc   :  { %16106 = vmatprep.mubr.msk.f32.mxu1 %vm205_vm3, %v17330_v51  ;;  %16450 = vmatprep.subr.bf16.mxu1 %v16449_v46  ;;  %v17334_v7 = vld [vmem:[#allocation4 + $0x30] ss:$8 sps:$4 sm:$0xff]   ;;  %v17361_v55 = vld [vmem:[#allocation4 + $0x22] ss:$8 sps:$4 sm:$0xff]  }
 0x8cd   :  { %v17331_v44 = vld [vmem:[#allocation4 + $0x41] ss:$8 sps:$4 sm:$0xff]   ;;  %v17337_v29 = vld [vmem:[#allocation4 + $0x12] ss:$8 sps:$4 sm:$0xff]  }
 0x8ce   :  { %16107 = vmatmul.mubr.msk.f32.gmra.mrb[90].mxu1 %vm205_vm3, %v17331_v44  ;;  %v17335_v16 = vld [vmem:[#allocation4 + $0x40] ss:$8 sps:$4 sm:$0xff]   ;;  %v17338_v31 = vld [vmem:[#allocation4 + $0x32] ss:$8 sps:$4 sm:$0xff]  }
 0x8cf   :  { %16452 = vmatpush3.bf16.msra.mxu1 %v16449_v46  ;;  %16117 = vmatprep.mubr.msk.f32.mxu1 %vm205_vm3, %v17332_v63  ;;  %v17339_v23 = vld [vmem:[#allocation4 + $0x42] ss:$8 sps:$4 sm:$0xff]   ;;  %v12210_v61 = vld [vmem:[#allocation12 + $0xb0] sm:$0xff]  ;;  %v16501_v46 = vpack.c.bf16 %v12575_v39, %v12574_v21 }
 0x8d0   :  { %16454 = vmatprep.subr.bf16.mxu1 %v16453_v37  ;;  %v17340_v22 = vld [vmem:[#allocation4 + $0x8] ss:$8 sps:$4 sm:$0xff]   ;;  %v17341_v30 = vld [vmem:[#allocation4 + $0x18] ss:$8 sps:$4 sm:$0xff]   ;;  %v16481_v15 = vpack.c.bf16 %v12211_v40, %v12210_v61 }
 0x8d1   :  { %v17342_v47 = vld [vmem:[#allocation4 + $0x38] ss:$8 sps:$4 sm:$0xff]   ;;  %v17343_v52 = vld [vmem:[#allocation4 + $0x48] ss:$8 sps:$4 sm:$0xff]  }
 0x8d2   :  { %16118 = vmatmul.mubr.msk.f32.vlgmr.msra.gmra.mrb[88].mxu1 %vm205_vm3, %v17333_v20  ;;  %v17344_v14 = vld [vmem:[#allocation4 + $0x9] ss:$8 sps:$4 sm:$0xff]   ;;  %v17345_v10 = vld [vmem:[#allocation4 + $0x19] ss:$8 sps:$4 sm:$0xff]  }
 0x8d3   :  { %16456 = vmatpush3.bf16.msra.mxu1 %v16453_v37  ;;  %16120 = vmatprep.mubr.msk.f32.mxu1 %vm205_vm3, %v17334_v7  ;;  %v17346_v33 = vld [vmem:[#allocation4 + $0x39] ss:$8 sps:$4 sm:$0xff]   ;;  %v17347_v58 = vld [vmem:[#allocation4 + $0x49] ss:$8 sps:$4 sm:$0xff]   ;;  %v13690_v7 = vld [vmem:[%s20482_s14] ss:$0 sm:$0xff] }
 0x8d4   :  { %16458 = vmatprep.subr.bf16.mxu1 %v16457_v41  ;;  %v17348_v59 = vld [vmem:[#allocation4 + $0xa] ss:$8 sps:$4 sm:$0xff]   ;;  %v17349_v2 = vld [vmem:[#allocation4 + $0x1a] ss:$8 sps:$4 sm:$0xff]   ;;  %s17470_s14 = smov [#allocation13]  }
 0x8d5   :  { %v17350_v48 = vld [vmem:[#allocation4 + $0x3a] ss:$8 sps:$4 sm:$0xff]   ;;  %v17351_v6 = vld [vmem:[#allocation4 + $0x4a] ss:$8 sps:$4 sm:$0xff]   ;;  %s12722_s0 = sshll.u32 %s17470_s14, 4  ;;  %s12723_s0 = int_to_ptr.vmem [resolvable:$true] %s12722_s0 }
 0x8d6   :  { %16121 = vmatmul.mubr.msk.f32.gmra.mrb[90].mxu1 %vm205_vm3, %v17335_v16  ;;  %v17352_v62 = vld [vmem:[#allocation4 + $0x10] ss:$8 sps:$4 sm:$0xff]   ;;  %v17354_v34 = vld [vmem:[#allocation4 + $0x40] ss:$8 sps:$4 sm:$0xff]   ;;  %s17434_s15 = scalar_lea.vmem %s12723_s0, 512  ;;  %p17439_p11 = scmp.lt.s32.totalorder %s12723_s0, %s12723_s0 }
 0x8d7   :  { %16460 = vmatpush3.bf16.msra.mxu1 %v16457_v41  ;;  %16131 = vmatprep.mubr.msk.f32.mxu1 %vm205_vm3, %v17336_v49  ;;  %v17355_v3 = vld [vmem:[#allocation4 + $0x50] ss:$8 sps:$4 sm:$0xff]   ;;  %v17357_v44 = vld [vmem:[#allocation4 + $0x21] ss:$8 sps:$4 sm:$0xff]   ;;  %p17435_p10 = scmp.ne.s32.totalorder %s12723_s0, %s17434_s15  ;;  %p17440_p12 = scmp.lt.s32.totalorder %s17434_s15, %s17434_s15 }
 0x8d8   :  { %16462 = vmatprep.subr.bf16.mxu1 %v16461_v27  ;;  %v17356_v13 = vld [vmem:[#allocation4 + $0x11] ss:$8 sps:$4 sm:$0xff]   ;;  %v17358_v63 = vld [vmem:[#allocation4 + $0x41] ss:$8 sps:$4 sm:$0xff]  }
 0x8d9   :  { %v12576_v51 = vld [vmem:[#allocation12 + $0x110] sm:$0xff]  ;;  %v17362_v20 = vld [vmem:[#allocation4 + $0x42] ss:$8 sps:$4 sm:$0xff]   ;;  %p17441_p13 = por %p17440_p12, %p17439_p11 }
 0x8da   :  { %16132 = vmatmul.mubr.msk.f32.vlgmr.msra.gmra.mrb[88].mxu1 %vm205_vm3, %v17337_v29  ;;  %v16505_v37 = vpack.c.bf16 %v12577_v0, %v12576_v51  ;;  %v17359_v24 = vld [vmem:[#allocation4 + $0x51] ss:$8 sps:$4 sm:$0xff]  }
 0x8db   :  { %16464 = vmatpush3.bf16.msra.mxu1 %v16461_v27  ;;  %16134 = vmatprep.mubr.msk.f32.mxu1 %vm205_vm3, %v17338_v31  ;;  %v17360_v1 = vld [vmem:[#allocation4 + $0x12] ss:$8 sps:$4 sm:$0xff]   ;;  %p17442_p0 = pnand %p17441_p13, %p17435_p10 }
 0x8dc   :  { %16466 = vmatprep.subr.bf16.mxu1 %v16465_v50  ;;  %v17363_v41 = vld [vmem:[#allocation4 + $0x52] ss:$8 sps:$4 sm:$0xff]  }
 0x8de   :  { %16135 = vmatmul.mubr.msk.f32.gmra.mrb[90].mxu1 %vm205_vm3, %v17339_v23 }
 0x8df   :  { %16468 = vmatpush3.bf16.msra.mxu1 %v16465_v50  ;;  %16145 = vmatprep.mubr.msk.f32.mxu1 %vm205_vm3, %v17340_v22 }
 0x8e0   :  { %16470 = vmatprep.subr.bf16.mxu1 %v16469_v28 }
 0x8e2   :  { %16146 = vmatmul.mubr.msk.f32.vlgmr.msra.gmra.mrb[88].mxu1 %vm205_vm3, %v17341_v30 }
 0x8e3   :  { %16472 = vmatpush3.bf16.msra.mxu1 %v16469_v28  ;;  %16148 = vmatprep.mubr.msk.f32.mxu1 %vm205_vm3, %v17342_v47 }
 0x8e4   :  { %16474 = vmatprep.subr.bf16.mxu1 %v16473_v26 }
 0x8e6   :  { %16149 = vmatmul.mubr.msk.f32.gmra.mrb[90].mxu1 %vm205_vm3, %v17343_v52 }
 0x8e7   :  { %16476 = vmatpush3.bf16.msra.mxu1 %v16473_v26  ;;  %16159 = vmatprep.mubr.msk.f32.mxu1 %vm205_vm3, %v17344_v14 }
 0x8e8   :  { %16478 = vmatprep.subr.bf16.mxu1 %v16477_v9 }
 0x8ea   :  { %16160 = vmatmul.mubr.msk.f32.vlgmr.msra.gmra.mrb[88].mxu1 %vm205_vm3, %v17345_v10 }
 0x8eb   :  { %16480 = vmatpush3.bf16.msra.mxu1 %v16477_v9  ;;  %16162 = vmatprep.mubr.msk.f32.mxu1 %vm205_vm3, %v17346_v33 }
 0x8ec   :  { %16482 = vmatprep.subr.bf16.mxu1 %v16481_v15 }
 0x8ee   :  { %16163 = vmatmul.mubr.msk.f32.gmra.mrb[90].mxu1 %vm205_vm3, %v17347_v58 }
 0x8ef   :  { %16484 = vmatpush3.bf16.msra.mxu1 %v16481_v15  ;;  %16173 = vmatprep.mubr.msk.f32.mxu1 %vm205_vm3, %v17348_v59 }
 0x8f0   :  { %16486 = vmatprep.subr.bf16.mxu1 %v16485_v45 }
 0x8f2   :  { %16174 = vmatmul.mubr.msk.f32.vlgmr.msra.gmra.mrb[88].mxu1 %vm205_vm3, %v17349_v2 }
 0x8f3   :  { %16488 = vmatpush3.bf16.msra.mxu1 %v16485_v45  ;;  %16176 = vmatprep.mubr.msk.f32.mxu1 %vm205_vm3, %v17350_v48 }
 0x8f4   :  { %16490 = vmatprep.subr.bf16.mxu1 %v16489_v4 }
 0x8f6   :  { %16177 = vmatmul.mubr.msk.f32.gmra.mrb[90].mxu1 %vm205_vm3, %v17351_v6 }
 0x8f7   :  { %16492 = vmatpush3.bf16.msra.mxu1 %v16489_v4  ;;  %16187 = vmatprep.mubr.msk.f32.mxu1 %vm205_vm3, %v17352_v62 }
 0x8f8   :  { %16494 = vmatprep.subr.bf16.mxu1 %v16493_v19 }
 0x8fa   :  { %16188 = vmatmul.mubr.msk.f32.vlgmr.msra.gmra.mrb[88].mxu1 %vm205_vm3, %v17353_v53 }
 0x8fb   :  { %16496 = vmatpush3.bf16.msra.mxu1 %v16493_v19  ;;  %16190 = vmatprep.mubr.msk.f32.mxu1 %vm205_vm3, %v17354_v34 }
 0x8fc   :  { %16498 = vmatprep.subr.bf16.mxu1 %v16497_v36 }
 0x8fe   :  { %16191 = vmatmul.mubr.msk.f32.gmra.mrb[90].mxu1 %vm205_vm3, %v17355_v3 }
 0x8ff   :  { %16500 = vmatpush3.bf16.msra.mxu1 %v16497_v36  ;;  %16201 = vmatprep.mubr.msk.f32.mxu1 %vm205_vm3, %v17356_v13 }
 0x900   :  { %16502 = vmatprep.subr.bf16.mxu1 %v16501_v46 }
 0x902   :  { %16202 = vmatmul.mubr.msk.f32.vlgmr.msra.gmra.mrb[88].mxu1 %vm205_vm3, %v17357_v44 }
 0x903   :  { %16504 = vmatpush3.bf16.msra.mxu1 %v16501_v46  ;;  %16204 = vmatprep.mubr.msk.f32.mxu1 %vm205_vm3, %v17358_v63 }
 0x904   :  { %16506 = vmatprep.subr.bf16.mxu1 %v16505_v37 }
 0x906   :  { %16205 = vmatmul.mubr.msk.f32.gmra.mrb[90].mxu1 %vm205_vm3, %v17359_v24 }
 0x907   :  { %16508 = vmatpush3.bf16.msra.mxu1 %v16505_v37  ;;  %16215 = vmatprep.mubr.msk.f32.mxu1 %vm205_vm3, %v17360_v1 }
 0x90a   :  { %16216 = vmatmul.mubr.msk.f32.vlgmr.msra.gmra.mrb[88].mxu1 %vm205_vm3, %v17361_v55 }
 0x90b   :  { %16218 = vmatprep.mubr.msk.f32.mxu1 %vm205_vm3, %v17362_v20 }
 0x90e   :  { %16219 = vmatmul.mubr.msk.f32.gmra.mrb[90].mxu1 %vm205_vm3, %v17363_v41 }
 0x9dd   :  { %v16217_v42 = vpop.f32.mrb[88].mxu1 }
 0x9de   :  { %v12695_v16 = vmul.f32 %v16217_v42, %v13690_v7  ;;  %v12664_v27 = vpop.f32.mrb[89].mxu1 }
 0x9df   :  { %v12694_v49 = vmul.f32 %v13690_v7, %v12664_v27 }
 0x9e0   :  { %v12706_v17 = vadd.f32 %v13691_v8, %v12695_v16 }
 0x9e1   :  { %v12705_v11 = vadd.f32 %v13691_v8, %v12694_v49  ;;  %v16220_v29 = vpop.f32.mrb[90].mxu1 }
 0x9e2   :  { %v12710_v50 = vmax.f32 %v12706_v17, 0.0  ;;  %v12697_v31 = vmul.f32 %v16220_v29, %v13690_v7  ;;  %v12674_v18 = vpop.f32.mrb[91].mxu1 }
 0x9e3   :  { %v12709_v38 = vmax.f32 %v12705_v11, 0.0  ;;  %v12696_v23 = vmul.f32 %v13690_v7, %v12674_v18 }
 0x9e4   :  { %12714 = vst.msk [vmem:[#allocation13 + $0x8] sm:$0xff] %vm205_vm3, %v12710_v50  ;;  %v12708_v28 = vadd.f32 %v13691_v8, %v12697_v31 }
 0x9e5   :  { %12713 = vst.msk [vmem:[#allocation13] sm:$0xff] %vm205_vm3, %v12709_v38  ;;  %v12707_v22 = vadd.f32 %v13691_v8, %v12696_v23 }
 0x9e6   :  { %v12712_v12 = vmax.f32 %v12708_v28, 0.0 }
 0x9e7   :  { %v12711_v5 = vmax.f32 %v12707_v22, 0.0 }
 0x9e8   :  { %12716 = vst.msk [vmem:[#allocation13 + $0x18] sm:$0xff] %vm205_vm3, %v12712_v12 }
 0x9e9   :  { %12715 = vst.msk [vmem:[#allocation13 + $0x10] sm:$0xff] %vm205_vm3, %v12711_v5 }
 0x9ea   :  { %17445 = shalt.err (!%p17442_p0)
}
 0x9eb   :  { %s17446_s19 = scalar_lea.hbm %s20484_s16, 512 }
 0x9ec   :  { %p17447_p1 = scmp.ne.s32.totalorder %s20484_s16, %s17446_s19  ;;  %p17450_p2 = scmp.lt.u32.totalorder %s17446_s19, %s20484_s16 }
 0x9ee   :  { %p17452_p3 = pnand %p17450_p2, %p17447_p1 }
 0x9f0   :  { %17455 = shalt.err (!%p17452_p3)
}
 0x9f1   :  { %12728 = dma.vmem_to_hbm [thread:$0]  %s12723_s0, 512, %s20484_s16, [#allocation9], %s20521_s1, %s20521_s1, %s17464_s17  }
 0x9f2   :  { %17460 = dma.done.wait [#allocation9], 512  }
 0x9f3   :  { %17461 = vsyncadd [#allocation9], 4294966784 }
 0x9f4   :  { %12732 = vsyncpa [#allocation8], 1 }
 0x9f5   :  { %12733 = vsyncpa [#allocation11], 1 }
 0x9f6   :  { %12734 = vsyncpa [#allocation9], 1 }

</bundles_post_ra>
